<compile_context>
chip_gen: v7x
topology: tpu7x:2x2x1
jax: 0.10.0
libtpu: 0.0.40
codegen_flags: <defaults>
</compile_context>

<pallas_src>
import functools

import jax
import jax.numpy as jnp
from jax.experimental import pallas as pl
from jax.experimental.pallas import tpu as pltpu

_EPS = 1e-5  # torch BatchNorm1d default


# ----------------------------------------------------------------------------
# In-kernel helpers (pure value math; everything stays in vregs/VMEM).
# ----------------------------------------------------------------------------
def _dot(a, b):
    return jnp.dot(a, b, preferred_element_type=jnp.float32)


def _shift_matrix(t, d):
    """(t, t) f32 S with S[r, i] = 1 iff i == r + d (out-of-range rows are all zero)."""
    r = jax.lax.broadcasted_iota(jnp.int32, (t, t), 0)
    i = jax.lax.broadcasted_iota(jnp.int32, (t, t), 1)
    return jnp.where(i == r + d, 1.0, 0.0)


def _pool_select(t_out, t_in, j):
    """(t_out, t_in) f32 G with G[r, i] = 1 iff i == 2*r + j - 1 (pad rows -> all zero)."""
    r = jax.lax.broadcasted_iota(jnp.int32, (t_out, t_in), 0)
    i = jax.lax.broadcasted_iota(jnp.int32, (t_out, t_in), 1)
    return jnp.where(i == 2 * r + (j - 1), 1.0, 0.0)


def _conv_same(xs, w_ref, b_ref, k):
    """'same' stride-1 Conv1d on per-batch (t, c_in) values; w_ref: (k, c_in, c_out)."""
    pad = k // 2
    t = xs[0].shape[0]
    c_out = w_ref.shape[-1]
    outs = []
    for x in xs:
        acc = jnp.zeros((t, c_out), jnp.float32)
        for j in range(k):
            y = _dot(x, w_ref[j])                        # (t, c_out)
            acc = acc + _dot(_shift_matrix(t, j - pad), y)  # shifted, zero-padded add
        outs.append(acc + b_ref[...])
    return outs


def _bn_relu(xs, eps=_EPS):
    """Training-mode BatchNorm1d (gamma=1, beta=0) over (batch, time), then ReLU."""
    n = 0
    s = jnp.zeros((1, xs[0].shape[1]), jnp.float32)
    for x in xs:
        n += x.shape[0]
        s = s + jnp.sum(x, axis=0, keepdims=True)
    mean = s / n
    ss = jnp.zeros_like(s)
    for x in xs:
        ss = ss + jnp.sum((x - mean) ** 2, axis=0, keepdims=True)
    inv = jax.lax.rsqrt(ss / n + eps)
    return [jnp.maximum((x - mean) * inv, 0.0) for x in xs]


def _maxpool3s2(xs):
    """MaxPool1d(kernel=3, stride=2, padding=1) on per-batch (t, c) values (post-ReLU)."""
    t_in = xs[0].shape[0]
    t_out = t_in // 2
    outs = []
    for x in xs:
        p0 = _dot(_pool_select(t_out, t_in, 0), x)
        p1 = _dot(_pool_select(t_out, t_in, 1), x)
        p2 = _dot(_pool_select(t_out, t_in, 2), x)
        outs.append(jnp.maximum(jnp.maximum(p0, p1), p2))
    return outs


# ----------------------------------------------------------------------------
# Single fused kernel: stem -> 4 conv blocks -> flatten -> MLP -> AAI head.
# ----------------------------------------------------------------------------
def _seeg_kernel(stem_cols_ref, stem_w_ref, stem_b_ref,
                 b1_w_ref, b1_b_ref, b2_w_ref, b2_b_ref,
                 b3_w_ref, b3_b_ref, b4_w_ref, b4_b_ref,
                 mlp1_w_ref, mlp1_b_ref, mlp2_w_ref, mlp2_b_ref,
                 w_hat_ref, init1_w_ref, init1_b_ref, init2_w_ref, init2_b_ref,
                 attr_ref, init_ref, *, batch, t_stem):
    # Stem: Conv1d(256->64, k7, s2, p3) as one matmul over the im2col'd input,
    # then BatchNorm(+ReLU) over all (batch*time) rows.
    stem = _dot(stem_cols_ref[...], stem_w_ref[...]) + stem_b_ref[...]
    stem = _bn_relu([stem])[0]
    xs = [stem[b * t_stem:(b + 1) * t_stem, :] for b in range(batch)]

    # Conv blocks: Conv + BN + ReLU + MaxPool(3, 2, pad=1), all VMEM resident.
    for w_ref, b_ref, k in ((b1_w_ref, b1_b_ref, 7), (b2_w_ref, b2_b_ref, 5),
                            (b3_w_ref, b3_b_ref, 3), (b4_w_ref, b4_b_ref, 3)):
        xs = _maxpool3s2(_bn_relu(_conv_same(xs, w_ref, b_ref, k)))

    # Flatten (torch .view on (B, C, T): channel-major; handled by the pre-permuted
    # mlp1 weight of shape (t, c, out)) + runtime MLP + AAI head.
    t_f = xs[0].shape[0]
    for b in range(batch):
        x4 = xs[b]                                   # (t_f, 256) channels-last
        f1 = mlp1_b_ref[...]
        for t in range(t_f):
            f1 = f1 + _dot(x4[t:t + 1, :], mlp1_w_ref[t])
        f2 = _dot(f1, mlp2_w_ref[...]) + mlp2_b_ref[...]
        attr_ref[b:b + 1, :] = _dot(f2, w_hat_ref[...])
        h = jnp.maximum(_dot(f2, init1_w_ref[...]) + init1_b_ref[...], 0.0)
        init_ref[b:b + 1, :] = _dot(h, init2_w_ref[...]) + init2_b_ref[...]


# ----------------------------------------------------------------------------
# Host-side wrappers.
# ----------------------------------------------------------------------------
def _full_spec(shape):
    zeros = (0,) * len(shape)
    return pl.BlockSpec(shape, lambda i, _z=zeros: _z)


def _stem_im2col(x_nct, k=7, stride=2, pad=3):
    """NCT input -> (B*T_out, k*Cin) patches (k-major, cin-minor), the only XLA preamble."""
    B, C, T = x_nct.shape
    x = jnp.transpose(x_nct, (0, 2, 1)).astype(jnp.float32)       # (B, T, C)
    xp = jnp.pad(x, ((0, 0), (pad, pad), (0, 0)))
    t_out = (T + 2 * pad - k) // stride + 1
    cols = [xp[:, j:j + stride * (t_out - 1) + 1:stride, :] for j in range(k)]
    patches = jnp.stack(cols, axis=2)                              # (B, t_out, k, C)
    return patches.reshape(B * t_out, k * C), t_out


def seeg_forward(x_nct, q):
    """x_nct: (B, 256, T) float32 (PyTorch NCT layout). Returns (attr, init) logits."""
    B = x_nct.shape[0]
    stem_cols, t_stem = _stem_im2col(x_nct)

    inputs = (stem_cols,
              q["stem_w"], q["stem_b"],
              q["b1_w"], q["b1_b"], q["b2_w"], q["b2_b"],
              q["b3_w"], q["b3_b"], q["b4_w"], q["b4_b"],
              q["mlp1_w"], q["mlp1_b"], q["mlp2_w"], q["mlp2_b"],
              q["W_hat"], q["init1_w"], q["init1_b"], q["init2_w"], q["init2_b"])

    attr, init = pl.pallas_call(
        functools.partial(_seeg_kernel, batch=B, t_stem=t_stem),
        out_shape=(jax.ShapeDtypeStruct((B, 15), jnp.float32),
                   jax.ShapeDtypeStruct((B, 21), jnp.float32)),
        grid_spec=pltpu.PrefetchScalarGridSpec(
            num_scalar_prefetch=0,
            grid=(1,),
            in_specs=[_full_spec(a.shape) for a in inputs],
            out_specs=(_full_spec((B, 15)), _full_spec((B, 21))),
        ),
        compiler_params=pltpu.CompilerParams(
            dimension_semantics=("arbitrary",),
            vmem_limit_bytes=32 * 1024 * 1024),   # fits with margin on v7x's 64 MiB VMEM
    )(*inputs)
    return attr, init


# ----------------------------------------------------------------------------
# Parameters: deterministic synthetic init + one-time layout prep (hoisted).
# ----------------------------------------------------------------------------
def init_params(key, flat_dim):
    ks = jax.random.split(key, 16)
    p = {}

    def conv_w(k, cout, cin, ksz):
        return jax.random.normal(k, (cout, cin, ksz), jnp.float32) / jnp.sqrt(cin * ksz)

    def lin_w(k, din, dout):
        return jax.random.normal(k, (din, dout), jnp.float32) / jnp.sqrt(din)

    p["stem_w"] = conv_w(ks[0], 64, 256, 7);  p["stem_b"] = jnp.zeros((64,), jnp.float32)
    p["b1_w"] = conv_w(ks[1], 128, 64, 7);    p["b1_b"] = jnp.zeros((128,), jnp.float32)
    p["b2_w"] = conv_w(ks[2], 128, 128, 5);   p["b2_b"] = jnp.zeros((128,), jnp.float32)
    p["b3_w"] = conv_w(ks[3], 256, 128, 3);   p["b3_b"] = jnp.zeros((256,), jnp.float32)
    p["b4_w"] = conv_w(ks[4], 256, 256, 3);   p["b4_b"] = jnp.zeros((256,), jnp.float32)

    p["mlp1_w"] = lin_w(ks[5], flat_dim, 256); p["mlp1_b"] = jnp.zeros((256,), jnp.float32)
    p["mlp2_w"] = lin_w(ks[6], 256, 256);      p["mlp2_b"] = jnp.zeros((256,), jnp.float32)

    c_f, d_poa, d_moa, d_asp, d_dev = 256, 6, 5, 2, 2
    p["W_poa"] = jax.random.normal(ks[7], (c_f, d_poa), jnp.float32)
    p["W_moa"] = jax.random.normal(ks[8], (c_f, d_moa), jnp.float32)
    p["W_asp"] = jax.random.normal(ks[9], (c_f, d_asp), jnp.float32)
    p["W_dev"] = jax.random.normal(ks[10], (c_f, d_dev), jnp.float32)

    d_total = d_poa + d_moa + d_asp + d_dev
    A = jnp.zeros((d_total, d_total), jnp.float32)
    A = A.at[:d_poa, d_poa:d_poa + d_moa].set(1.0)
    A = A.at[d_poa:d_poa + d_moa, -d_dev:].set(1.0)
    A = A + A.T
    A = A + jnp.eye(d_total, dtype=jnp.float32)
    p["A"] = A

    p["init1_w"] = lin_w(ks[11], c_f, 256); p["init1_b"] = jnp.zeros((256,), jnp.float32)
    p["init2_w"] = lin_w(ks[12], 256, 21);  p["init2_b"] = jnp.zeros((21,), jnp.float32)
    return p


def prepare_params(p):
    """One-time weight layout prep, hoisted out of the forward pass."""
    q = {}
    # stem: torch (Cout, Cin, K) -> (K*Cin, Cout) matching the im2col column order.
    q["stem_w"] = jnp.transpose(p["stem_w"], (2, 1, 0)).reshape(-1, p["stem_w"].shape[0])
    q["stem_b"] = p["stem_b"].reshape(1, -1)
    # blocks: torch (Cout, Cin, K) -> (K, Cin, Cout) per-tap matrices.
    for n in ("b1", "b2", "b3", "b4"):
        q[n + "_w"] = jnp.transpose(p[n + "_w"], (2, 1, 0))
        q[n + "_b"] = p[n + "_b"].reshape(1, -1)
    # runtime MLP: permute mlp1 rows from torch flatten order (c-major, t-minor) to
    # (t, c, out) so the kernel consumes channels-last activations with no transpose.
    c_f = p["b4_w"].shape[0]
    flat_dim, dout = p["mlp1_w"].shape
    t_f = flat_dim // c_f
    q["mlp1_w"] = jnp.transpose(p["mlp1_w"].reshape(c_f, t_f, dout), (1, 0, 2))
    q["mlp1_b"] = p["mlp1_b"].reshape(1, -1)
    q["mlp2_w"] = p["mlp2_w"]
    q["mlp2_b"] = p["mlp2_b"].reshape(1, -1)
    # AAI: W_hat = relu(W @ A) is input-independent -> computed once here (plain XLA).
    W = jnp.concatenate([p["W_poa"], p["W_moa"], p["W_asp"], p["W_dev"]], axis=1)
    q["W_hat"] = jnp.maximum(jnp.dot(W, p["A"]), 0.0)
    q["init1_w"] = p["init1_w"]; q["init1_b"] = p["init1_b"].reshape(1, -1)
    q["init2_w"] = p["init2_w"]; q["init2_b"] = p["init2_b"].reshape(1, -1)
    return q


# ----------------------------------------------------------------------------
# Plain-XLA reference (for a numerical sanity check of the fused kernel).
# ----------------------------------------------------------------------------
def _reference_forward(x_nct, p):
    HI = jax.lax.Precision.HIGHEST

    def conv1d(x, w, b, stride, pad):            # x: (B, T, Cin), w: (Cout, Cin, K)
        B, T, Cin = x.shape
        Cout, _, K = w.shape
        xp = jnp.pad(x, ((0, 0), (pad, pad), (0, 0)))
        t_out = (T + 2 * pad - K) // stride + 1
        cols = [xp[:, j:j + stride * (t_out - 1) + 1:stride, :] for j in range(K)]
        a = jnp.stack(cols, axis=2).reshape(B * t_out, K * Cin)
        wm = jnp.transpose(w, (2, 1, 0)).reshape(K * Cin, Cout)
        return (jnp.dot(a, wm, precision=HI) + b).reshape(B, t_out, Cout)

    def bn_relu(x):                              # training-mode BN, gamma=1, beta=0
        mean = jnp.mean(x, axis=(0, 1), keepdims=True)
        var = jnp.mean((x - mean) ** 2, axis=(0, 1), keepdims=True)
        return jnp.maximum((x - mean) * jax.lax.rsqrt(var + _EPS), 0.0)

    def maxpool(x, k=3, s=2, pad=1):
        B, T, C = x.shape
        xp = jnp.pad(x, ((0, 0), (pad, pad), (0, 0)), constant_values=-jnp.inf)
        t_out = (T + 2 * pad - k) // s + 1
        ws = [xp[:, j:j + s * (t_out - 1) + 1:s, :] for j in range(k)]
        return jnp.max(jnp.stack(ws, axis=0), axis=0)

    x = jnp.transpose(x_nct, (0, 2, 1))
    x = bn_relu(conv1d(x, p["stem_w"], p["stem_b"], 2, 3))
    for wk, bk, ksz in (("b1_w", "b1_b", 7), ("b2_w", "b2_b", 5),
                        ("b3_w", "b3_b", 3), ("b4_w", "b4_b", 3)):
        x = maxpool(bn_relu(conv1d(x, p[wk], p[bk], 1, ksz // 2)))
    B = x.shape[0]
    feats = jnp.transpose(x, (0, 2, 1)).reshape(B, -1)
    feats = jnp.dot(feats, p["mlp1_w"], precision=HI) + p["mlp1_b"]
    feats = jnp.dot(feats, p["mlp2_w"], precision=HI) + p["mlp2_b"]
    W = jnp.concatenate([p["W_poa"], p["W_moa"], p["W_asp"], p["W_dev"]], axis=1)
    W_hat = jnp.maximum(jnp.dot(W, p["A"], precision=HI), 0.0)
    attr = jnp.dot(feats, W_hat, precision=HI)
    h = jnp.maximum(jnp.dot(feats, p["init1_w"], precision=HI) + p["init1_b"], 0.0)
    init = jnp.dot(h, p["init2_w"], precision=HI) + p["init2_b"]
    return attr, init


if __name__ == "__main__":
    key = jax.random.PRNGKey(0)
    kx, kp = jax.random.split(key)

    B, C, T = 2, 256, 64            # C fixed at 256 by Conv1d(256, 64, ...)
    x = jax.random.normal(kx, (B, C, T), jnp.float32)

    # flattened feature dim after stem (/2) and four pools (/2 each)
    t = (T + 2 * 3 - 7) // 2 + 1
    for _ in range(4):
        t = (t + 2 * 1 - 3) // 2 + 1
    flat_dim = 256 * t              # 512 for T=64

    params = init_params(kp, flat_dim)
    prepped = prepare_params(params)

    fwd = jax.jit(seeg_forward)
    attr, init = fwd(x, prepped)
    jax.block_until_ready((attr, init))

    assert attr.shape == (B, 15) and init.shape == (B, 21)
    assert bool(jnp.all(jnp.isfinite(attr))) and bool(jnp.all(jnp.isfinite(init)))

    # numerical sanity check against a plain-XLA reference of the same forward pass
    attr_ref, init_ref = _reference_forward(x, params)
    assert jnp.allclose(attr, attr_ref, rtol=5e-2, atol=5e-2), \
        float(jnp.max(jnp.abs(attr - attr_ref)))
    assert jnp.allclose(init, init_ref, rtol=5e-2, atol=5e-2), \
        float(jnp.max(jnp.abs(init - init_ref)))

    print("KERNEL_OK")
</pallas_src>

<mosaic_0001>
module attributes {stable_mosaic.version = 11 : i64} {
  func.func @_seeg_kernel(%arg0: i32, %arg1: memref<64x1792xf32, #tpu.memory_space<vmem>>, %arg2: memref<1792x64xf32, #tpu.memory_space<vmem>>, %arg3: memref<1x64xf32, #tpu.memory_space<vmem>>, %arg4: memref<7x64x128xf32, #tpu.memory_space<vmem>>, %arg5: memref<1x128xf32, #tpu.memory_space<vmem>>, %arg6: memref<5x128x128xf32, #tpu.memory_space<vmem>>, %arg7: memref<1x128xf32, #tpu.memory_space<vmem>>, %arg8: memref<3x128x256xf32, #tpu.memory_space<vmem>>, %arg9: memref<1x256xf32, #tpu.memory_space<vmem>>, %arg10: memref<3x256x256xf32, #tpu.memory_space<vmem>>, %arg11: memref<1x256xf32, #tpu.memory_space<vmem>>, %arg12: memref<2x256x256xf32, #tpu.memory_space<vmem>>, %arg13: memref<1x256xf32, #tpu.memory_space<vmem>>, %arg14: memref<256x256xf32, #tpu.memory_space<vmem>>, %arg15: memref<1x256xf32, #tpu.memory_space<vmem>>, %arg16: memref<256x15xf32, #tpu.memory_space<vmem>>, %arg17: memref<256x256xf32, #tpu.memory_space<vmem>>, %arg18: memref<1x256xf32, #tpu.memory_space<vmem>>, %arg19: memref<256x21xf32, #tpu.memory_space<vmem>>, %arg20: memref<1x21xf32, #tpu.memory_space<vmem>>, %arg21: memref<2x15xf32, #tpu.memory_space<vmem>>, %arg22: memref<2x21xf32, #tpu.memory_space<vmem>>) attributes {dimension_semantics = [#tpu.dimension_semantics<arbitrary>], iteration_bounds = array<i64: 1>, scalar_prefetch = 0 : i64, scratch_operands = 0 : i64, tpu.core_type = #tpu.core_type<tc>, window_params = [{pipeline_mode = #tpu.pipeline_mode<synchronous>, transform_indices = @transform_0, window_bounds = array<i64: 64, 1792>}, {pipeline_mode = #tpu.pipeline_mode<synchronous>, transform_indices = @transform_1, window_bounds = array<i64: 1792, 64>}, {pipeline_mode = #tpu.pipeline_mode<synchronous>, transform_indices = @transform_2, window_bounds = array<i64: 1, 64>}, {pipeline_mode = #tpu.pipeline_mode<synchronous>, transform_indices = @transform_3, window_bounds = array<i64: 7, 64, 128>}, {pipeline_mode = #tpu.pipeline_mode<synchronous>, transform_indices = @transform_4, window_bounds = array<i64: 1, 128>}, {pipeline_mode = #tpu.pipeline_mode<synchronous>, transform_indices = @transform_5, window_bounds = array<i64: 5, 128, 128>}, {pipeline_mode = #tpu.pipeline_mode<synchronous>, transform_indices = @transform_6, window_bounds = array<i64: 1, 128>}, {pipeline_mode = #tpu.pipeline_mode<synchronous>, transform_indices = @transform_7, window_bounds = array<i64: 3, 128, 256>}, {pipeline_mode = #tpu.pipeline_mode<synchronous>, transform_indices = @transform_8, window_bounds = array<i64: 1, 256>}, {pipeline_mode = #tpu.pipeline_mode<synchronous>, transform_indices = @transform_9, window_bounds = array<i64: 3, 256, 256>}, {pipeline_mode = #tpu.pipeline_mode<synchronous>, transform_indices = @transform_10, window_bounds = array<i64: 1, 256>}, {pipeline_mode = #tpu.pipeline_mode<synchronous>, transform_indices = @transform_11, window_bounds = array<i64: 2, 256, 256>}, {pipeline_mode = #tpu.pipeline_mode<synchronous>, transform_indices = @transform_12, window_bounds = array<i64: 1, 256>}, {pipeline_mode = #tpu.pipeline_mode<synchronous>, transform_indices = @transform_13, window_bounds = array<i64: 256, 256>}, {pipeline_mode = #tpu.pipeline_mode<synchronous>, transform_indices = @transform_14, window_bounds = array<i64: 1, 256>}, {pipeline_mode = #tpu.pipeline_mode<synchronous>, transform_indices = @transform_15, window_bounds = array<i64: 256, 15>}, {pipeline_mode = #tpu.pipeline_mode<synchronous>, transform_indices = @transform_16, window_bounds = array<i64: 256, 256>}, {pipeline_mode = #tpu.pipeline_mode<synchronous>, transform_indices = @transform_17, window_bounds = array<i64: 1, 256>}, {pipeline_mode = #tpu.pipeline_mode<synchronous>, transform_indices = @transform_18, window_bounds = array<i64: 256, 21>}, {pipeline_mode = #tpu.pipeline_mode<synchronous>, transform_indices = @transform_19, window_bounds = array<i64: 1, 21>}, {pipeline_mode = #tpu.pipeline_mode<synchronous>, transform_indices = @transform_20, window_bounds = array<i64: 2, 15>}, {pipeline_mode = #tpu.pipeline_mode<synchronous>, transform_indices = @transform_21, window_bounds = array<i64: 2, 21>}]} {
    %c0 = arith.constant 0 : index
    %c0_0 = arith.constant 0 : index
    %0 = vector.load %arg1[%c0, %c0_0] : memref<64x1792xf32, #tpu.memory_space<vmem>>, vector<64x1792xf32>
    %c0_1 = arith.constant 0 : index
    %c0_2 = arith.constant 0 : index
    %1 = vector.load %arg2[%c0_1, %c0_2] : memref<1792x64xf32, #tpu.memory_space<vmem>>, vector<1792x64xf32>
    %cst = arith.constant dense<0.000000e+00> : vector<64x64xf32>
    %2 = tpu.matmul %0, %1, %cst {dimension_numbers = #tpu.dot_dimension_numbers<[1], [0], [0], [1], [0, 0, 1, 1], [], []>} : vector<64x1792xf32>, vector<1792x64xf32>, vector<64x64xf32> -> vector<64x64xf32>
    %c0_3 = arith.constant 0 : index
    %c0_4 = arith.constant 0 : index
    %3 = vector.load %arg3[%c0_3, %c0_4] : memref<1x64xf32, #tpu.memory_space<vmem>>, vector<1x64xf32>
    %4 = vector.broadcast %3 : vector<1x64xf32> to vector<64x64xf32>
    %5 = arith.addf %2, %4 : vector<64x64xf32>
    %cst_5 = arith.constant 0.000000e+00 : f32
    %6 = vector.broadcast %cst_5 : f32 to vector<1x64xf32>
    %cst_6 = arith.constant dense<0.000000e+00> : vector<64xf32>
    %7 = vector.multi_reduction <add>, %5, %cst_6 [0] : vector<64x64xf32> to vector<64xf32>
    %8 = vector.shape_cast %7 : vector<64xf32> to vector<1x64xf32>
    %9 = arith.addf %6, %8 : vector<1x64xf32>
    %cst_7 = arith.constant 6.400000e+01 : f32
    %10 = vector.broadcast %cst_7 : f32 to vector<1x64xf32>
    %11 = arith.divf %9, %10 : vector<1x64xf32>
    %cst_8 = arith.constant 0.000000e+00 : f32
    %12 = vector.broadcast %cst_8 : f32 to vector<1x64xf32>
    %13 = vector.broadcast %11 : vector<1x64xf32> to vector<64x64xf32>
    %14 = arith.subf %5, %13 : vector<64x64xf32>
    %15 = arith.mulf %14, %14 : vector<64x64xf32>
    %cst_9 = arith.constant dense<0.000000e+00> : vector<64xf32>
    %16 = vector.multi_reduction <add>, %15, %cst_9 [0] : vector<64x64xf32> to vector<64xf32>
    %17 = vector.shape_cast %16 : vector<64xf32> to vector<1x64xf32>
    %18 = arith.addf %12, %17 : vector<1x64xf32>
    %cst_10 = arith.constant 6.400000e+01 : f32
    %19 = vector.broadcast %cst_10 : f32 to vector<1x64xf32>
    %20 = arith.divf %18, %19 : vector<1x64xf32>
    %cst_11 = arith.constant 9.99999974E-6 : f32
    %21 = vector.broadcast %cst_11 : f32 to vector<1x64xf32>
    %22 = arith.addf %20, %21 : vector<1x64xf32>
    %23 = math.rsqrt %22 : vector<1x64xf32>
    %24 = vector.broadcast %11 : vector<1x64xf32> to vector<64x64xf32>
    %25 = arith.subf %5, %24 : vector<64x64xf32>
    %26 = vector.broadcast %23 : vector<1x64xf32> to vector<64x64xf32>
    %27 = arith.mulf %25, %26 : vector<64x64xf32>
    %cst_12 = arith.constant 0.000000e+00 : f32
    %28 = vector.broadcast %cst_12 : f32 to vector<64x64xf32>
    %29 = arith.maximumf %27, %28 : vector<64x64xf32>
    %30 = vector.extract_strided_slice %29 {offsets = [0, 0], sizes = [32, 64], strides = [1, 1]} : vector<64x64xf32> to vector<32x64xf32>
    %31 = vector.extract_strided_slice %29 {offsets = [32, 0], sizes = [32, 64], strides = [1, 1]} : vector<64x64xf32> to vector<32x64xf32>
    %cst_13 = arith.constant 0.000000e+00 : f32
    %32 = vector.broadcast %cst_13 : f32 to vector<32x128xf32>
    %c0_14 = arith.constant 0 : index
    %c0_15 = arith.constant 0 : index
    %c0_16 = arith.constant 0 : index
    %33 = vector.load %arg4[%c0_14, %c0_15, %c0_16] : memref<7x64x128xf32, #tpu.memory_space<vmem>>, vector<1x64x128xf32>
    %34 = vector.shape_cast %33 : vector<1x64x128xf32> to vector<64x128xf32>
    %cst_17 = arith.constant dense<0.000000e+00> : vector<32x128xf32>
    %35 = tpu.matmul %30, %34, %cst_17 {dimension_numbers = #tpu.dot_dimension_numbers<[1], [0], [0], [1], [0, 0, 1, 1], [], []>} : vector<32x64xf32>, vector<64x128xf32>, vector<32x128xf32> -> vector<32x128xf32>
    %36 = tpu.iota {dimensions = array<i32: 0>} : vector<32x32xi32>
    %37 = tpu.iota {dimensions = array<i32: 1>} : vector<32x32xi32>
    %c-3_i32 = arith.constant -3 : i32
    %38 = vector.broadcast %c-3_i32 : i32 to vector<32x32xi32>
    %39 = arith.addi %36, %38 : vector<32x32xi32>
    %40 = arith.cmpi eq, %37, %39 : vector<32x32xi32>
    %cst_18 = arith.constant 1.000000e+00 : f32
    %cst_19 = arith.constant 0.000000e+00 : f32
    %41 = vector.broadcast %cst_18 : f32 to vector<32x32xf32>
    %42 = vector.broadcast %cst_19 : f32 to vector<32x32xf32>
    %43 = arith.select %40, %41, %42 : vector<32x32xi1>, vector<32x32xf32>
    %cst_20 = arith.constant dense<0.000000e+00> : vector<32x128xf32>
    %44 = tpu.matmul %43, %35, %cst_20 {dimension_numbers = #tpu.dot_dimension_numbers<[1], [0], [0], [1], [0, 0, 1, 1], [], []>} : vector<32x32xf32>, vector<32x128xf32>, vector<32x128xf32> -> vector<32x128xf32>
    %45 = arith.addf %32, %44 : vector<32x128xf32>
    %c1 = arith.constant 1 : index
    %c0_21 = arith.constant 0 : index
    %c0_22 = arith.constant 0 : index
    %46 = vector.load %arg4[%c1, %c0_21, %c0_22] : memref<7x64x128xf32, #tpu.memory_space<vmem>>, vector<1x64x128xf32>
    %47 = vector.shape_cast %46 : vector<1x64x128xf32> to vector<64x128xf32>
    %cst_23 = arith.constant dense<0.000000e+00> : vector<32x128xf32>
    %48 = tpu.matmul %30, %47, %cst_23 {dimension_numbers = #tpu.dot_dimension_numbers<[1], [0], [0], [1], [0, 0, 1, 1], [], []>} : vector<32x64xf32>, vector<64x128xf32>, vector<32x128xf32> -> vector<32x128xf32>
    %49 = tpu.iota {dimensions = array<i32: 0>} : vector<32x32xi32>
    %50 = tpu.iota {dimensions = array<i32: 1>} : vector<32x32xi32>
    %c-2_i32 = arith.constant -2 : i32
    %51 = vector.broadcast %c-2_i32 : i32 to vector<32x32xi32>
    %52 = arith.addi %49, %51 : vector<32x32xi32>
    %53 = arith.cmpi eq, %50, %52 : vector<32x32xi32>
    %cst_24 = arith.constant 1.000000e+00 : f32
    %cst_25 = arith.constant 0.000000e+00 : f32
    %54 = vector.broadcast %cst_24 : f32 to vector<32x32xf32>
    %55 = vector.broadcast %cst_25 : f32 to vector<32x32xf32>
    %56 = arith.select %53, %54, %55 : vector<32x32xi1>, vector<32x32xf32>
    %cst_26 = arith.constant dense<0.000000e+00> : vector<32x128xf32>
    %57 = tpu.matmul %56, %48, %cst_26 {dimension_numbers = #tpu.dot_dimension_numbers<[1], [0], [0], [1], [0, 0, 1, 1], [], []>} : vector<32x32xf32>, vector<32x128xf32>, vector<32x128xf32> -> vector<32x128xf32>
    %58 = arith.addf %45, %57 : vector<32x128xf32>
    %c2 = arith.constant 2 : index
    %c0_27 = arith.constant 0 : index
    %c0_28 = arith.constant 0 : index
    %59 = vector.load %arg4[%c2, %c0_27, %c0_28] : memref<7x64x128xf32, #tpu.memory_space<vmem>>, vector<1x64x128xf32>
    %60 = vector.shape_cast %59 : vector<1x64x128xf32> to vector<64x128xf32>
    %cst_29 = arith.constant dense<0.000000e+00> : vector<32x128xf32>
    %61 = tpu.matmul %30, %60, %cst_29 {dimension_numbers = #tpu.dot_dimension_numbers<[1], [0], [0], [1], [0, 0, 1, 1], [], []>} : vector<32x64xf32>, vector<64x128xf32>, vector<32x128xf32> -> vector<32x128xf32>
    %62 = tpu.iota {dimensions = array<i32: 0>} : vector<32x32xi32>
    %63 = tpu.iota {dimensions = array<i32: 1>} : vector<32x32xi32>
    %c-1_i32 = arith.constant -1 : i32
    %64 = vector.broadcast %c-1_i32 : i32 to vector<32x32xi32>
    %65 = arith.addi %62, %64 : vector<32x32xi32>
    %66 = arith.cmpi eq, %63, %65 : vector<32x32xi32>
    %cst_30 = arith.constant 1.000000e+00 : f32
    %cst_31 = arith.constant 0.000000e+00 : f32
    %67 = vector.broadcast %cst_30 : f32 to vector<32x32xf32>
    %68 = vector.broadcast %cst_31 : f32 to vector<32x32xf32>
    %69 = arith.select %66, %67, %68 : vector<32x32xi1>, vector<32x32xf32>
    %cst_32 = arith.constant dense<0.000000e+00> : vector<32x128xf32>
    %70 = tpu.matmul %69, %61, %cst_32 {dimension_numbers = #tpu.dot_dimension_numbers<[1], [0], [0], [1], [0, 0, 1, 1], [], []>} : vector<32x32xf32>, vector<32x128xf32>, vector<32x128xf32> -> vector<32x128xf32>
    %71 = arith.addf %58, %70 : vector<32x128xf32>
    %c3 = arith.constant 3 : index
    %c0_33 = arith.constant 0 : index
    %c0_34 = arith.constant 0 : index
    %72 = vector.load %arg4[%c3, %c0_33, %c0_34] : memref<7x64x128xf32, #tpu.memory_space<vmem>>, vector<1x64x128xf32>
    %73 = vector.shape_cast %72 : vector<1x64x128xf32> to vector<64x128xf32>
    %cst_35 = arith.constant dense<0.000000e+00> : vector<32x128xf32>
    %74 = tpu.matmul %30, %73, %cst_35 {dimension_numbers = #tpu.dot_dimension_numbers<[1], [0], [0], [1], [0, 0, 1, 1], [], []>} : vector<32x64xf32>, vector<64x128xf32>, vector<32x128xf32> -> vector<32x128xf32>
    %75 = tpu.iota {dimensions = array<i32: 0>} : vector<32x32xi32>
    %76 = tpu.iota {dimensions = array<i32: 1>} : vector<32x32xi32>
    %c0_i32 = arith.constant 0 : i32
    %77 = vector.broadcast %c0_i32 : i32 to vector<32x32xi32>
    %78 = arith.addi %75, %77 : vector<32x32xi32>
    %79 = arith.cmpi eq, %76, %78 : vector<32x32xi32>
    %cst_36 = arith.constant 1.000000e+00 : f32
    %cst_37 = arith.constant 0.000000e+00 : f32
    %80 = vector.broadcast %cst_36 : f32 to vector<32x32xf32>
    %81 = vector.broadcast %cst_37 : f32 to vector<32x32xf32>
    %82 = arith.select %79, %80, %81 : vector<32x32xi1>, vector<32x32xf32>
    %cst_38 = arith.constant dense<0.000000e+00> : vector<32x128xf32>
    %83 = tpu.matmul %82, %74, %cst_38 {dimension_numbers = #tpu.dot_dimension_numbers<[1], [0], [0], [1], [0, 0, 1, 1], [], []>} : vector<32x32xf32>, vector<32x128xf32>, vector<32x128xf32> -> vector<32x128xf32>
    %84 = arith.addf %71, %83 : vector<32x128xf32>
    %c4 = arith.constant 4 : index
    %c0_39 = arith.constant 0 : index
    %c0_40 = arith.constant 0 : index
    %85 = vector.load %arg4[%c4, %c0_39, %c0_40] : memref<7x64x128xf32, #tpu.memory_space<vmem>>, vector<1x64x128xf32>
    %86 = vector.shape_cast %85 : vector<1x64x128xf32> to vector<64x128xf32>
    %cst_41 = arith.constant dense<0.000000e+00> : vector<32x128xf32>
    %87 = tpu.matmul %30, %86, %cst_41 {dimension_numbers = #tpu.dot_dimension_numbers<[1], [0], [0], [1], [0, 0, 1, 1], [], []>} : vector<32x64xf32>, vector<64x128xf32>, vector<32x128xf32> -> vector<32x128xf32>
    %88 = tpu.iota {dimensions = array<i32: 0>} : vector<32x32xi32>
    %89 = tpu.iota {dimensions = array<i32: 1>} : vector<32x32xi32>
    %c1_i32 = arith.constant 1 : i32
    %90 = vector.broadcast %c1_i32 : i32 to vector<32x32xi32>
    %91 = arith.addi %88, %90 : vector<32x32xi32>
    %92 = arith.cmpi eq, %89, %91 : vector<32x32xi32>
    %cst_42 = arith.constant 1.000000e+00 : f32
    %cst_43 = arith.constant 0.000000e+00 : f32
    %93 = vector.broadcast %cst_42 : f32 to vector<32x32xf32>
    %94 = vector.broadcast %cst_43 : f32 to vector<32x32xf32>
    %95 = arith.select %92, %93, %94 : vector<32x32xi1>, vector<32x32xf32>
    %cst_44 = arith.constant dense<0.000000e+00> : vector<32x128xf32>
    %96 = tpu.matmul %95, %87, %cst_44 {dimension_numbers = #tpu.dot_dimension_numbers<[1], [0], [0], [1], [0, 0, 1, 1], [], []>} : vector<32x32xf32>, vector<32x128xf32>, vector<32x128xf32> -> vector<32x128xf32>
    %97 = arith.addf %84, %96 : vector<32x128xf32>
    %c5 = arith.constant 5 : index
    %c0_45 = arith.constant 0 : index
    %c0_46 = arith.constant 0 : index
    %98 = vector.load %arg4[%c5, %c0_45, %c0_46] : memref<7x64x128xf32, #tpu.memory_space<vmem>>, vector<1x64x128xf32>
    %99 = vector.shape_cast %98 : vector<1x64x128xf32> to vector<64x128xf32>
    %cst_47 = arith.constant dense<0.000000e+00> : vector<32x128xf32>
    %100 = tpu.matmul %30, %99, %cst_47 {dimension_numbers = #tpu.dot_dimension_numbers<[1], [0], [0], [1], [0, 0, 1, 1], [], []>} : vector<32x64xf32>, vector<64x128xf32>, vector<32x128xf32> -> vector<32x128xf32>
    %101 = tpu.iota {dimensions = array<i32: 0>} : vector<32x32xi32>
    %102 = tpu.iota {dimensions = array<i32: 1>} : vector<32x32xi32>
    %c2_i32 = arith.constant 2 : i32
    %103 = vector.broadcast %c2_i32 : i32 to vector<32x32xi32>
    %104 = arith.addi %101, %103 : vector<32x32xi32>
    %105 = arith.cmpi eq, %102, %104 : vector<32x32xi32>
    %cst_48 = arith.constant 1.000000e+00 : f32
    %cst_49 = arith.constant 0.000000e+00 : f32
    %106 = vector.broadcast %cst_48 : f32 to vector<32x32xf32>
    %107 = vector.broadcast %cst_49 : f32 to vector<32x32xf32>
    %108 = arith.select %105, %106, %107 : vector<32x32xi1>, vector<32x32xf32>
    %cst_50 = arith.constant dense<0.000000e+00> : vector<32x128xf32>
    %109 = tpu.matmul %108, %100, %cst_50 {dimension_numbers = #tpu.dot_dimension_numbers<[1], [0], [0], [1], [0, 0, 1, 1], [], []>} : vector<32x32xf32>, vector<32x128xf32>, vector<32x128xf32> -> vector<32x128xf32>
    %110 = arith.addf %97, %109 : vector<32x128xf32>
    %c6 = arith.constant 6 : index
    %c0_51 = arith.constant 0 : index
    %c0_52 = arith.constant 0 : index
    %111 = vector.load %arg4[%c6, %c0_51, %c0_52] : memref<7x64x128xf32, #tpu.memory_space<vmem>>, vector<1x64x128xf32>
    %112 = vector.shape_cast %111 : vector<1x64x128xf32> to vector<64x128xf32>
    %cst_53 = arith.constant dense<0.000000e+00> : vector<32x128xf32>
    %113 = tpu.matmul %30, %112, %cst_53 {dimension_numbers = #tpu.dot_dimension_numbers<[1], [0], [0], [1], [0, 0, 1, 1], [], []>} : vector<32x64xf32>, vector<64x128xf32>, vector<32x128xf32> -> vector<32x128xf32>
    %114 = tpu.iota {dimensions = array<i32: 0>} : vector<32x32xi32>
    %115 = tpu.iota {dimensions = array<i32: 1>} : vector<32x32xi32>
    %c3_i32 = arith.constant 3 : i32
    %116 = vector.broadcast %c3_i32 : i32 to vector<32x32xi32>
    %117 = arith.addi %114, %116 : vector<32x32xi32>
    %118 = arith.cmpi eq, %115, %117 : vector<32x32xi32>
    %cst_54 = arith.constant 1.000000e+00 : f32
    %cst_55 = arith.constant 0.000000e+00 : f32
    %119 = vector.broadcast %cst_54 : f32 to vector<32x32xf32>
    %120 = vector.broadcast %cst_55 : f32 to vector<32x32xf32>
    %121 = arith.select %118, %119, %120 : vector<32x32xi1>, vector<32x32xf32>
    %cst_56 = arith.constant dense<0.000000e+00> : vector<32x128xf32>
    %122 = tpu.matmul %121, %113, %cst_56 {dimension_numbers = #tpu.dot_dimension_numbers<[1], [0], [0], [1], [0, 0, 1, 1], [], []>} : vector<32x32xf32>, vector<32x128xf32>, vector<32x128xf32> -> vector<32x128xf32>
    %123 = arith.addf %110, %122 : vector<32x128xf32>
    %c0_57 = arith.constant 0 : index
    %c0_58 = arith.constant 0 : index
    %124 = vector.load %arg5[%c0_57, %c0_58] : memref<1x128xf32, #tpu.memory_space<vmem>>, vector<1x128xf32>
    %125 = vector.broadcast %124 : vector<1x128xf32> to vector<32x128xf32>
    %126 = arith.addf %123, %125 : vector<32x128xf32>
    %cst_59 = arith.constant 0.000000e+00 : f32
    %127 = vector.broadcast %cst_59 : f32 to vector<32x128xf32>
    %c0_60 = arith.constant 0 : index
    %c0_61 = arith.constant 0 : index
    %c0_62 = arith.constant 0 : index
    %128 = vector.load %arg4[%c0_60, %c0_61, %c0_62] : memref<7x64x128xf32, #tpu.memory_space<vmem>>, vector<1x64x128xf32>
    %129 = vector.shape_cast %128 : vector<1x64x128xf32> to vector<64x128xf32>
    %cst_63 = arith.constant dense<0.000000e+00> : vector<32x128xf32>
    %130 = tpu.matmul %31, %129, %cst_63 {dimension_numbers = #tpu.dot_dimension_numbers<[1], [0], [0], [1], [0, 0, 1, 1], [], []>} : vector<32x64xf32>, vector<64x128xf32>, vector<32x128xf32> -> vector<32x128xf32>
    %131 = tpu.iota {dimensions = array<i32: 0>} : vector<32x32xi32>
    %132 = tpu.iota {dimensions = array<i32: 1>} : vector<32x32xi32>
    %c-3_i32_64 = arith.constant -3 : i32
    %133 = vector.broadcast %c-3_i32_64 : i32 to vector<32x32xi32>
    %134 = arith.addi %131, %133 : vector<32x32xi32>
    %135 = arith.cmpi eq, %132, %134 : vector<32x32xi32>
    %cst_65 = arith.constant 1.000000e+00 : f32
    %cst_66 = arith.constant 0.000000e+00 : f32
    %136 = vector.broadcast %cst_65 : f32 to vector<32x32xf32>
    %137 = vector.broadcast %cst_66 : f32 to vector<32x32xf32>
    %138 = arith.select %135, %136, %137 : vector<32x32xi1>, vector<32x32xf32>
    %cst_67 = arith.constant dense<0.000000e+00> : vector<32x128xf32>
    %139 = tpu.matmul %138, %130, %cst_67 {dimension_numbers = #tpu.dot_dimension_numbers<[1], [0], [0], [1], [0, 0, 1, 1], [], []>} : vector<32x32xf32>, vector<32x128xf32>, vector<32x128xf32> -> vector<32x128xf32>
    %140 = arith.addf %127, %139 : vector<32x128xf32>
    %c1_68 = arith.constant 1 : index
    %c0_69 = arith.constant 0 : index
    %c0_70 = arith.constant 0 : index
    %141 = vector.load %arg4[%c1_68, %c0_69, %c0_70] : memref<7x64x128xf32, #tpu.memory_space<vmem>>, vector<1x64x128xf32>
    %142 = vector.shape_cast %141 : vector<1x64x128xf32> to vector<64x128xf32>
    %cst_71 = arith.constant dense<0.000000e+00> : vector<32x128xf32>
    %143 = tpu.matmul %31, %142, %cst_71 {dimension_numbers = #tpu.dot_dimension_numbers<[1], [0], [0], [1], [0, 0, 1, 1], [], []>} : vector<32x64xf32>, vector<64x128xf32>, vector<32x128xf32> -> vector<32x128xf32>
    %144 = tpu.iota {dimensions = array<i32: 0>} : vector<32x32xi32>
    %145 = tpu.iota {dimensions = array<i32: 1>} : vector<32x32xi32>
    %c-2_i32_72 = arith.constant -2 : i32
    %146 = vector.broadcast %c-2_i32_72 : i32 to vector<32x32xi32>
    %147 = arith.addi %144, %146 : vector<32x32xi32>
    %148 = arith.cmpi eq, %145, %147 : vector<32x32xi32>
    %cst_73 = arith.constant 1.000000e+00 : f32
    %cst_74 = arith.constant 0.000000e+00 : f32
    %149 = vector.broadcast %cst_73 : f32 to vector<32x32xf32>
    %150 = vector.broadcast %cst_74 : f32 to vector<32x32xf32>
    %151 = arith.select %148, %149, %150 : vector<32x32xi1>, vector<32x32xf32>
    %cst_75 = arith.constant dense<0.000000e+00> : vector<32x128xf32>
    %152 = tpu.matmul %151, %143, %cst_75 {dimension_numbers = #tpu.dot_dimension_numbers<[1], [0], [0], [1], [0, 0, 1, 1], [], []>} : vector<32x32xf32>, vector<32x128xf32>, vector<32x128xf32> -> vector<32x128xf32>
    %153 = arith.addf %140, %152 : vector<32x128xf32>
    %c2_76 = arith.constant 2 : index
    %c0_77 = arith.constant 0 : index
    %c0_78 = arith.constant 0 : index
    %154 = vector.load %arg4[%c2_76, %c0_77, %c0_78] : memref<7x64x128xf32, #tpu.memory_space<vmem>>, vector<1x64x128xf32>
    %155 = vector.shape_cast %154 : vector<1x64x128xf32> to vector<64x128xf32>
    %cst_79 = arith.constant dense<0.000000e+00> : vector<32x128xf32>
    %156 = tpu.matmul %31, %155, %cst_79 {dimension_numbers = #tpu.dot_dimension_numbers<[1], [0], [0], [1], [0, 0, 1, 1], [], []>} : vector<32x64xf32>, vector<64x128xf32>, vector<32x128xf32> -> vector<32x128xf32>
    %157 = tpu.iota {dimensions = array<i32: 0>} : vector<32x32xi32>
    %158 = tpu.iota {dimensions = array<i32: 1>} : vector<32x32xi32>
    %c-1_i32_80 = arith.constant -1 : i32
    %159 = vector.broadcast %c-1_i32_80 : i32 to vector<32x32xi32>
    %160 = arith.addi %157, %159 : vector<32x32xi32>
    %161 = arith.cmpi eq, %158, %160 : vector<32x32xi32>
    %cst_81 = arith.constant 1.000000e+00 : f32
    %cst_82 = arith.constant 0.000000e+00 : f32
    %162 = vector.broadcast %cst_81 : f32 to vector<32x32xf32>
    %163 = vector.broadcast %cst_82 : f32 to vector<32x32xf32>
    %164 = arith.select %161, %162, %163 : vector<32x32xi1>, vector<32x32xf32>
    %cst_83 = arith.constant dense<0.000000e+00> : vector<32x128xf32>
    %165 = tpu.matmul %164, %156, %cst_83 {dimension_numbers = #tpu.dot_dimension_numbers<[1], [0], [0], [1], [0, 0, 1, 1], [], []>} : vector<32x32xf32>, vector<32x128xf32>, vector<32x128xf32> -> vector<32x128xf32>
    %166 = arith.addf %153, %165 : vector<32x128xf32>
    %c3_84 = arith.constant 3 : index
    %c0_85 = arith.constant 0 : index
    %c0_86 = arith.constant 0 : index
    %167 = vector.load %arg4[%c3_84, %c0_85, %c0_86] : memref<7x64x128xf32, #tpu.memory_space<vmem>>, vector<1x64x128xf32>
    %168 = vector.shape_cast %167 : vector<1x64x128xf32> to vector<64x128xf32>
    %cst_87 = arith.constant dense<0.000000e+00> : vector<32x128xf32>
    %169 = tpu.matmul %31, %168, %cst_87 {dimension_numbers = #tpu.dot_dimension_numbers<[1], [0], [0], [1], [0, 0, 1, 1], [], []>} : vector<32x64xf32>, vector<64x128xf32>, vector<32x128xf32> -> vector<32x128xf32>
    %170 = tpu.iota {dimensions = array<i32: 0>} : vector<32x32xi32>
    %171 = tpu.iota {dimensions = array<i32: 1>} : vector<32x32xi32>
    %c0_i32_88 = arith.constant 0 : i32
    %172 = vector.broadcast %c0_i32_88 : i32 to vector<32x32xi32>
    %173 = arith.addi %170, %172 : vector<32x32xi32>
    %174 = arith.cmpi eq, %171, %173 : vector<32x32xi32>
    %cst_89 = arith.constant 1.000000e+00 : f32
    %cst_90 = arith.constant 0.000000e+00 : f32
    %175 = vector.broadcast %cst_89 : f32 to vector<32x32xf32>
    %176 = vector.broadcast %cst_90 : f32 to vector<32x32xf32>
    %177 = arith.select %174, %175, %176 : vector<32x32xi1>, vector<32x32xf32>
    %cst_91 = arith.constant dense<0.000000e+00> : vector<32x128xf32>
    %178 = tpu.matmul %177, %169, %cst_91 {dimension_numbers = #tpu.dot_dimension_numbers<[1], [0], [0], [1], [0, 0, 1, 1], [], []>} : vector<32x32xf32>, vector<32x128xf32>, vector<32x128xf32> -> vector<32x128xf32>
    %179 = arith.addf %166, %178 : vector<32x128xf32>
    %c4_92 = arith.constant 4 : index
    %c0_93 = arith.constant 0 : index
    %c0_94 = arith.constant 0 : index
    %180 = vector.load %arg4[%c4_92, %c0_93, %c0_94] : memref<7x64x128xf32, #tpu.memory_space<vmem>>, vector<1x64x128xf32>
    %181 = vector.shape_cast %180 : vector<1x64x128xf32> to vector<64x128xf32>
    %cst_95 = arith.constant dense<0.000000e+00> : vector<32x128xf32>
    %182 = tpu.matmul %31, %181, %cst_95 {dimension_numbers = #tpu.dot_dimension_numbers<[1], [0], [0], [1], [0, 0, 1, 1], [], []>} : vector<32x64xf32>, vector<64x128xf32>, vector<32x128xf32> -> vector<32x128xf32>
    %183 = tpu.iota {dimensions = array<i32: 0>} : vector<32x32xi32>
    %184 = tpu.iota {dimensions = array<i32: 1>} : vector<32x32xi32>
    %c1_i32_96 = arith.constant 1 : i32
    %185 = vector.broadcast %c1_i32_96 : i32 to vector<32x32xi32>
    %186 = arith.addi %183, %185 : vector<32x32xi32>
    %187 = arith.cmpi eq, %184, %186 : vector<32x32xi32>
    %cst_97 = arith.constant 1.000000e+00 : f32
    %cst_98 = arith.constant 0.000000e+00 : f32
    %188 = vector.broadcast %cst_97 : f32 to vector<32x32xf32>
    %189 = vector.broadcast %cst_98 : f32 to vector<32x32xf32>
    %190 = arith.select %187, %188, %189 : vector<32x32xi1>, vector<32x32xf32>
    %cst_99 = arith.constant dense<0.000000e+00> : vector<32x128xf32>
    %191 = tpu.matmul %190, %182, %cst_99 {dimension_numbers = #tpu.dot_dimension_numbers<[1], [0], [0], [1], [0, 0, 1, 1], [], []>} : vector<32x32xf32>, vector<32x128xf32>, vector<32x128xf32> -> vector<32x128xf32>
    %192 = arith.addf %179, %191 : vector<32x128xf32>
    %c5_100 = arith.constant 5 : index
    %c0_101 = arith.constant 0 : index
    %c0_102 = arith.constant 0 : index
    %193 = vector.load %arg4[%c5_100, %c0_101, %c0_102] : memref<7x64x128xf32, #tpu.memory_space<vmem>>, vector<1x64x128xf32>
    %194 = vector.shape_cast %193 : vector<1x64x128xf32> to vector<64x128xf32>
    %cst_103 = arith.constant dense<0.000000e+00> : vector<32x128xf32>
    %195 = tpu.matmul %31, %194, %cst_103 {dimension_numbers = #tpu.dot_dimension_numbers<[1], [0], [0], [1], [0, 0, 1, 1], [], []>} : vector<32x64xf32>, vector<64x128xf32>, vector<32x128xf32> -> vector<32x128xf32>
    %196 = tpu.iota {dimensions = array<i32: 0>} : vector<32x32xi32>
    %197 = tpu.iota {dimensions = array<i32: 1>} : vector<32x32xi32>
    %c2_i32_104 = arith.constant 2 : i32
    %198 = vector.broadcast %c2_i32_104 : i32 to vector<32x32xi32>
    %199 = arith.addi %196, %198 : vector<32x32xi32>
    %200 = arith.cmpi eq, %197, %199 : vector<32x32xi32>
    %cst_105 = arith.constant 1.000000e+00 : f32
    %cst_106 = arith.constant 0.000000e+00 : f32
    %201 = vector.broadcast %cst_105 : f32 to vector<32x32xf32>
    %202 = vector.broadcast %cst_106 : f32 to vector<32x32xf32>
    %203 = arith.select %200, %201, %202 : vector<32x32xi1>, vector<32x32xf32>
    %cst_107 = arith.constant dense<0.000000e+00> : vector<32x128xf32>
    %204 = tpu.matmul %203, %195, %cst_107 {dimension_numbers = #tpu.dot_dimension_numbers<[1], [0], [0], [1], [0, 0, 1, 1], [], []>} : vector<32x32xf32>, vector<32x128xf32>, vector<32x128xf32> -> vector<32x128xf32>
    %205 = arith.addf %192, %204 : vector<32x128xf32>
    %c6_108 = arith.constant 6 : index
    %c0_109 = arith.constant 0 : index
    %c0_110 = arith.constant 0 : index
    %206 = vector.load %arg4[%c6_108, %c0_109, %c0_110] : memref<7x64x128xf32, #tpu.memory_space<vmem>>, vector<1x64x128xf32>
    %207 = vector.shape_cast %206 : vector<1x64x128xf32> to vector<64x128xf32>
    %cst_111 = arith.constant dense<0.000000e+00> : vector<32x128xf32>
    %208 = tpu.matmul %31, %207, %cst_111 {dimension_numbers = #tpu.dot_dimension_numbers<[1], [0], [0], [1], [0, 0, 1, 1], [], []>} : vector<32x64xf32>, vector<64x128xf32>, vector<32x128xf32> -> vector<32x128xf32>
    %209 = tpu.iota {dimensions = array<i32: 0>} : vector<32x32xi32>
    %210 = tpu.iota {dimensions = array<i32: 1>} : vector<32x32xi32>
    %c3_i32_112 = arith.constant 3 : i32
    %211 = vector.broadcast %c3_i32_112 : i32 to vector<32x32xi32>
    %212 = arith.addi %209, %211 : vector<32x32xi32>
    %213 = arith.cmpi eq, %210, %212 : vector<32x32xi32>
    %cst_113 = arith.constant 1.000000e+00 : f32
    %cst_114 = arith.constant 0.000000e+00 : f32
    %214 = vector.broadcast %cst_113 : f32 to vector<32x32xf32>
    %215 = vector.broadcast %cst_114 : f32 to vector<32x32xf32>
    %216 = arith.select %213, %214, %215 : vector<32x32xi1>, vector<32x32xf32>
    %cst_115 = arith.constant dense<0.000000e+00> : vector<32x128xf32>
    %217 = tpu.matmul %216, %208, %cst_115 {dimension_numbers = #tpu.dot_dimension_numbers<[1], [0], [0], [1], [0, 0, 1, 1], [], []>} : vector<32x32xf32>, vector<32x128xf32>, vector<32x128xf32> -> vector<32x128xf32>
    %218 = arith.addf %205, %217 : vector<32x128xf32>
    %c0_116 = arith.constant 0 : index
    %c0_117 = arith.constant 0 : index
    %219 = vector.load %arg5[%c0_116, %c0_117] : memref<1x128xf32, #tpu.memory_space<vmem>>, vector<1x128xf32>
    %220 = vector.broadcast %219 : vector<1x128xf32> to vector<32x128xf32>
    %221 = arith.addf %218, %220 : vector<32x128xf32>
    %cst_118 = arith.constant 0.000000e+00 : f32
    %222 = vector.broadcast %cst_118 : f32 to vector<1x128xf32>
    %cst_119 = arith.constant dense<0.000000e+00> : vector<128xf32>
    %223 = vector.multi_reduction <add>, %126, %cst_119 [0] : vector<32x128xf32> to vector<128xf32>
    %224 = vector.shape_cast %223 : vector<128xf32> to vector<1x128xf32>
    %225 = arith.addf %222, %224 : vector<1x128xf32>
    %cst_120 = arith.constant dense<0.000000e+00> : vector<128xf32>
    %226 = vector.multi_reduction <add>, %221, %cst_120 [0] : vector<32x128xf32> to vector<128xf32>
    %227 = vector.shape_cast %226 : vector<128xf32> to vector<1x128xf32>
    %228 = arith.addf %225, %227 : vector<1x128xf32>
    %cst_121 = arith.constant 6.400000e+01 : f32
    %229 = vector.broadcast %cst_121 : f32 to vector<1x128xf32>
    %230 = arith.divf %228, %229 : vector<1x128xf32>
    %cst_122 = arith.constant 0.000000e+00 : f32
    %231 = vector.broadcast %cst_122 : f32 to vector<1x128xf32>
    %232 = vector.broadcast %230 : vector<1x128xf32> to vector<32x128xf32>
    %233 = arith.subf %126, %232 : vector<32x128xf32>
    %234 = arith.mulf %233, %233 : vector<32x128xf32>
    %cst_123 = arith.constant dense<0.000000e+00> : vector<128xf32>
    %235 = vector.multi_reduction <add>, %234, %cst_123 [0] : vector<32x128xf32> to vector<128xf32>
    %236 = vector.shape_cast %235 : vector<128xf32> to vector<1x128xf32>
    %237 = arith.addf %231, %236 : vector<1x128xf32>
    %238 = vector.broadcast %230 : vector<1x128xf32> to vector<32x128xf32>
    %239 = arith.subf %221, %238 : vector<32x128xf32>
    %240 = arith.mulf %239, %239 : vector<32x128xf32>
    %cst_124 = arith.constant dense<0.000000e+00> : vector<128xf32>
    %241 = vector.multi_reduction <add>, %240, %cst_124 [0] : vector<32x128xf32> to vector<128xf32>
    %242 = vector.shape_cast %241 : vector<128xf32> to vector<1x128xf32>
    %243 = arith.addf %237, %242 : vector<1x128xf32>
    %cst_125 = arith.constant 6.400000e+01 : f32
    %244 = vector.broadcast %cst_125 : f32 to vector<1x128xf32>
    %245 = arith.divf %243, %244 : vector<1x128xf32>
    %cst_126 = arith.constant 9.99999974E-6 : f32
    %246 = vector.broadcast %cst_126 : f32 to vector<1x128xf32>
    %247 = arith.addf %245, %246 : vector<1x128xf32>
    %248 = math.rsqrt %247 : vector<1x128xf32>
    %249 = vector.broadcast %230 : vector<1x128xf32> to vector<32x128xf32>
    %250 = arith.subf %126, %249 : vector<32x128xf32>
    %251 = vector.broadcast %248 : vector<1x128xf32> to vector<32x128xf32>
    %252 = arith.mulf %250, %251 : vector<32x128xf32>
    %cst_127 = arith.constant 0.000000e+00 : f32
    %253 = vector.broadcast %cst_127 : f32 to vector<32x128xf32>
    %254 = arith.maximumf %252, %253 : vector<32x128xf32>
    %255 = vector.broadcast %230 : vector<1x128xf32> to vector<32x128xf32>
    %256 = arith.subf %221, %255 : vector<32x128xf32>
    %257 = vector.broadcast %248 : vector<1x128xf32> to vector<32x128xf32>
    %258 = arith.mulf %256, %257 : vector<32x128xf32>
    %cst_128 = arith.constant 0.000000e+00 : f32
    %259 = vector.broadcast %cst_128 : f32 to vector<32x128xf32>
    %260 = arith.maximumf %258, %259 : vector<32x128xf32>
    %261 = tpu.iota {dimensions = array<i32: 0>} : vector<16x32xi32>
    %262 = tpu.iota {dimensions = array<i32: 1>} : vector<16x32xi32>
    %c2_i32_129 = arith.constant 2 : i32
    %263 = vector.broadcast %c2_i32_129 : i32 to vector<16x32xi32>
    %264 = arith.muli %263, %261 : vector<16x32xi32>
    %c-1_i32_130 = arith.constant -1 : i32
    %265 = vector.broadcast %c-1_i32_130 : i32 to vector<16x32xi32>
    %266 = arith.addi %264, %265 : vector<16x32xi32>
    %267 = arith.cmpi eq, %262, %266 : vector<16x32xi32>
    %cst_131 = arith.constant 1.000000e+00 : f32
    %cst_132 = arith.constant 0.000000e+00 : f32
    %268 = vector.broadcast %cst_131 : f32 to vector<16x32xf32>
    %269 = vector.broadcast %cst_132 : f32 to vector<16x32xf32>
    %270 = arith.select %267, %268, %269 : vector<16x32xi1>, vector<16x32xf32>
    %cst_133 = arith.constant dense<0.000000e+00> : vector<16x128xf32>
    %271 = tpu.matmul %270, %254, %cst_133 {dimension_numbers = #tpu.dot_dimension_numbers<[1], [0], [0], [1], [0, 0, 1, 1], [], []>} : vector<16x32xf32>, vector<32x128xf32>, vector<16x128xf32> -> vector<16x128xf32>
    %272 = tpu.iota {dimensions = array<i32: 0>} : vector<16x32xi32>
    %273 = tpu.iota {dimensions = array<i32: 1>} : vector<16x32xi32>
    %c2_i32_134 = arith.constant 2 : i32
    %274 = vector.broadcast %c2_i32_134 : i32 to vector<16x32xi32>
    %275 = arith.muli %274, %272 : vector<16x32xi32>
    %c0_i32_135 = arith.constant 0 : i32
    %276 = vector.broadcast %c0_i32_135 : i32 to vector<16x32xi32>
    %277 = arith.addi %275, %276 : vector<16x32xi32>
    %278 = arith.cmpi eq, %273, %277 : vector<16x32xi32>
    %cst_136 = arith.constant 1.000000e+00 : f32
    %cst_137 = arith.constant 0.000000e+00 : f32
    %279 = vector.broadcast %cst_136 : f32 to vector<16x32xf32>
    %280 = vector.broadcast %cst_137 : f32 to vector<16x32xf32>
    %281 = arith.select %278, %279, %280 : vector<16x32xi1>, vector<16x32xf32>
    %cst_138 = arith.constant dense<0.000000e+00> : vector<16x128xf32>
    %282 = tpu.matmul %281, %254, %cst_138 {dimension_numbers = #tpu.dot_dimension_numbers<[1], [0], [0], [1], [0, 0, 1, 1], [], []>} : vector<16x32xf32>, vector<32x128xf32>, vector<16x128xf32> -> vector<16x128xf32>
    %283 = tpu.iota {dimensions = array<i32: 0>} : vector<16x32xi32>
    %284 = tpu.iota {dimensions = array<i32: 1>} : vector<16x32xi32>
    %c2_i32_139 = arith.constant 2 : i32
    %285 = vector.broadcast %c2_i32_139 : i32 to vector<16x32xi32>
    %286 = arith.muli %285, %283 : vector<16x32xi32>
    %c1_i32_140 = arith.constant 1 : i32
    %287 = vector.broadcast %c1_i32_140 : i32 to vector<16x32xi32>
    %288 = arith.addi %286, %287 : vector<16x32xi32>
    %289 = arith.cmpi eq, %284, %288 : vector<16x32xi32>
    %cst_141 = arith.constant 1.000000e+00 : f32
    %cst_142 = arith.constant 0.000000e+00 : f32
    %290 = vector.broadcast %cst_141 : f32 to vector<16x32xf32>
    %291 = vector.broadcast %cst_142 : f32 to vector<16x32xf32>
    %292 = arith.select %289, %290, %291 : vector<16x32xi1>, vector<16x32xf32>
    %cst_143 = arith.constant dense<0.000000e+00> : vector<16x128xf32>
    %293 = tpu.matmul %292, %254, %cst_143 {dimension_numbers = #tpu.dot_dimension_numbers<[1], [0], [0], [1], [0, 0, 1, 1], [], []>} : vector<16x32xf32>, vector<32x128xf32>, vector<16x128xf32> -> vector<16x128xf32>
    %294 = arith.maximumf %271, %282 : vector<16x128xf32>
    %295 = arith.maximumf %294, %293 : vector<16x128xf32>
    %296 = tpu.iota {dimensions = array<i32: 0>} : vector<16x32xi32>
    %297 = tpu.iota {dimensions = array<i32: 1>} : vector<16x32xi32>
    %c2_i32_144 = arith.constant 2 : i32
    %298 = vector.broadcast %c2_i32_144 : i32 to vector<16x32xi32>
    %299 = arith.muli %298, %296 : vector<16x32xi32>
    %c-1_i32_145 = arith.constant -1 : i32
    %300 = vector.broadcast %c-1_i32_145 : i32 to vector<16x32xi32>
    %301 = arith.addi %299, %300 : vector<16x32xi32>
    %302 = arith.cmpi eq, %297, %301 : vector<16x32xi32>
    %cst_146 = arith.constant 1.000000e+00 : f32
    %cst_147 = arith.constant 0.000000e+00 : f32
    %303 = vector.broadcast %cst_146 : f32 to vector<16x32xf32>
    %304 = vector.broadcast %cst_147 : f32 to vector<16x32xf32>
    %305 = arith.select %302, %303, %304 : vector<16x32xi1>, vector<16x32xf32>
    %cst_148 = arith.constant dense<0.000000e+00> : vector<16x128xf32>
    %306 = tpu.matmul %305, %260, %cst_148 {dimension_numbers = #tpu.dot_dimension_numbers<[1], [0], [0], [1], [0, 0, 1, 1], [], []>} : vector<16x32xf32>, vector<32x128xf32>, vector<16x128xf32> -> vector<16x128xf32>
    %307 = tpu.iota {dimensions = array<i32: 0>} : vector<16x32xi32>
    %308 = tpu.iota {dimensions = array<i32: 1>} : vector<16x32xi32>
    %c2_i32_149 = arith.constant 2 : i32
    %309 = vector.broadcast %c2_i32_149 : i32 to vector<16x32xi32>
    %310 = arith.muli %309, %307 : vector<16x32xi32>
    %c0_i32_150 = arith.constant 0 : i32
    %311 = vector.broadcast %c0_i32_150 : i32 to vector<16x32xi32>
    %312 = arith.addi %310, %311 : vector<16x32xi32>
    %313 = arith.cmpi eq, %308, %312 : vector<16x32xi32>
    %cst_151 = arith.constant 1.000000e+00 : f32
    %cst_152 = arith.constant 0.000000e+00 : f32
    %314 = vector.broadcast %cst_151 : f32 to vector<16x32xf32>
    %315 = vector.broadcast %cst_152 : f32 to vector<16x32xf32>
    %316 = arith.select %313, %314, %315 : vector<16x32xi1>, vector<16x32xf32>
    %cst_153 = arith.constant dense<0.000000e+00> : vector<16x128xf32>
    %317 = tpu.matmul %316, %260, %cst_153 {dimension_numbers = #tpu.dot_dimension_numbers<[1], [0], [0], [1], [0, 0, 1, 1], [], []>} : vector<16x32xf32>, vector<32x128xf32>, vector<16x128xf32> -> vector<16x128xf32>
    %318 = tpu.iota {dimensions = array<i32: 0>} : vector<16x32xi32>
    %319 = tpu.iota {dimensions = array<i32: 1>} : vector<16x32xi32>
    %c2_i32_154 = arith.constant 2 : i32
    %320 = vector.broadcast %c2_i32_154 : i32 to vector<16x32xi32>
    %321 = arith.muli %320, %318 : vector<16x32xi32>
    %c1_i32_155 = arith.constant 1 : i32
    %322 = vector.broadcast %c1_i32_155 : i32 to vector<16x32xi32>
    %323 = arith.addi %321, %322 : vector<16x32xi32>
    %324 = arith.cmpi eq, %319, %323 : vector<16x32xi32>
    %cst_156 = arith.constant 1.000000e+00 : f32
    %cst_157 = arith.constant 0.000000e+00 : f32
    %325 = vector.broadcast %cst_156 : f32 to vector<16x32xf32>
    %326 = vector.broadcast %cst_157 : f32 to vector<16x32xf32>
    %327 = arith.select %324, %325, %326 : vector<16x32xi1>, vector<16x32xf32>
    %cst_158 = arith.constant dense<0.000000e+00> : vector<16x128xf32>
    %328 = tpu.matmul %327, %260, %cst_158 {dimension_numbers = #tpu.dot_dimension_numbers<[1], [0], [0], [1], [0, 0, 1, 1], [], []>} : vector<16x32xf32>, vector<32x128xf32>, vector<16x128xf32> -> vector<16x128xf32>
    %329 = arith.maximumf %306, %317 : vector<16x128xf32>
    %330 = arith.maximumf %329, %328 : vector<16x128xf32>
    %cst_159 = arith.constant 0.000000e+00 : f32
    %331 = vector.broadcast %cst_159 : f32 to vector<16x128xf32>
    %c0_160 = arith.constant 0 : index
    %c0_161 = arith.constant 0 : index
    %c0_162 = arith.constant 0 : index
    %332 = vector.load %arg6[%c0_160, %c0_161, %c0_162] : memref<5x128x128xf32, #tpu.memory_space<vmem>>, vector<1x128x128xf32>
    %333 = vector.shape_cast %332 : vector<1x128x128xf32> to vector<128x128xf32>
    %cst_163 = arith.constant dense<0.000000e+00> : vector<16x128xf32>
    %334 = tpu.matmul %295, %333, %cst_163 {dimension_numbers = #tpu.dot_dimension_numbers<[1], [0], [0], [1], [0, 0, 1, 1], [], []>} : vector<16x128xf32>, vector<128x128xf32>, vector<16x128xf32> -> vector<16x128xf32>
    %335 = tpu.iota {dimensions = array<i32: 0>} : vector<16x16xi32>
    %336 = tpu.iota {dimensions = array<i32: 1>} : vector<16x16xi32>
    %c-2_i32_164 = arith.constant -2 : i32
    %337 = vector.broadcast %c-2_i32_164 : i32 to vector<16x16xi32>
    %338 = arith.addi %335, %337 : vector<16x16xi32>
    %339 = arith.cmpi eq, %336, %338 : vector<16x16xi32>
    %cst_165 = arith.constant 1.000000e+00 : f32
    %cst_166 = arith.constant 0.000000e+00 : f32
    %340 = vector.broadcast %cst_165 : f32 to vector<16x16xf32>
    %341 = vector.broadcast %cst_166 : f32 to vector<16x16xf32>
    %342 = arith.select %339, %340, %341 : vector<16x16xi1>, vector<16x16xf32>
    %cst_167 = arith.constant dense<0.000000e+00> : vector<16x128xf32>
    %343 = tpu.matmul %342, %334, %cst_167 {dimension_numbers = #tpu.dot_dimension_numbers<[1], [0], [0], [1], [0, 0, 1, 1], [], []>} : vector<16x16xf32>, vector<16x128xf32>, vector<16x128xf32> -> vector<16x128xf32>
    %344 = arith.addf %331, %343 : vector<16x128xf32>
    %c1_168 = arith.constant 1 : index
    %c0_169 = arith.constant 0 : index
    %c0_170 = arith.constant 0 : index
    %345 = vector.load %arg6[%c1_168, %c0_169, %c0_170] : memref<5x128x128xf32, #tpu.memory_space<vmem>>, vector<1x128x128xf32>
    %346 = vector.shape_cast %345 : vector<1x128x128xf32> to vector<128x128xf32>
    %cst_171 = arith.constant dense<0.000000e+00> : vector<16x128xf32>
    %347 = tpu.matmul %295, %346, %cst_171 {dimension_numbers = #tpu.dot_dimension_numbers<[1], [0], [0], [1], [0, 0, 1, 1], [], []>} : vector<16x128xf32>, vector<128x128xf32>, vector<16x128xf32> -> vector<16x128xf32>
    %348 = tpu.iota {dimensions = array<i32: 0>} : vector<16x16xi32>
    %349 = tpu.iota {dimensions = array<i32: 1>} : vector<16x16xi32>
    %c-1_i32_172 = arith.constant -1 : i32
    %350 = vector.broadcast %c-1_i32_172 : i32 to vector<16x16xi32>
    %351 = arith.addi %348, %350 : vector<16x16xi32>
    %352 = arith.cmpi eq, %349, %351 : vector<16x16xi32>
    %cst_173 = arith.constant 1.000000e+00 : f32
    %cst_174 = arith.constant 0.000000e+00 : f32
    %353 = vector.broadcast %cst_173 : f32 to vector<16x16xf32>
    %354 = vector.broadcast %cst_174 : f32 to vector<16x16xf32>
    %355 = arith.select %352, %353, %354 : vector<16x16xi1>, vector<16x16xf32>
    %cst_175 = arith.constant dense<0.000000e+00> : vector<16x128xf32>
    %356 = tpu.matmul %355, %347, %cst_175 {dimension_numbers = #tpu.dot_dimension_numbers<[1], [0], [0], [1], [0, 0, 1, 1], [], []>} : vector<16x16xf32>, vector<16x128xf32>, vector<16x128xf32> -> vector<16x128xf32>
    %357 = arith.addf %344, %356 : vector<16x128xf32>
    %c2_176 = arith.constant 2 : index
    %c0_177 = arith.constant 0 : index
    %c0_178 = arith.constant 0 : index
    %358 = vector.load %arg6[%c2_176, %c0_177, %c0_178] : memref<5x128x128xf32, #tpu.memory_space<vmem>>, vector<1x128x128xf32>
    %359 = vector.shape_cast %358 : vector<1x128x128xf32> to vector<128x128xf32>
    %cst_179 = arith.constant dense<0.000000e+00> : vector<16x128xf32>
    %360 = tpu.matmul %295, %359, %cst_179 {dimension_numbers = #tpu.dot_dimension_numbers<[1], [0], [0], [1], [0, 0, 1, 1], [], []>} : vector<16x128xf32>, vector<128x128xf32>, vector<16x128xf32> -> vector<16x128xf32>
    %361 = tpu.iota {dimensions = array<i32: 0>} : vector<16x16xi32>
    %362 = tpu.iota {dimensions = array<i32: 1>} : vector<16x16xi32>
    %c0_i32_180 = arith.constant 0 : i32
    %363 = vector.broadcast %c0_i32_180 : i32 to vector<16x16xi32>
    %364 = arith.addi %361, %363 : vector<16x16xi32>
    %365 = arith.cmpi eq, %362, %364 : vector<16x16xi32>
    %cst_181 = arith.constant 1.000000e+00 : f32
    %cst_182 = arith.constant 0.000000e+00 : f32
    %366 = vector.broadcast %cst_181 : f32 to vector<16x16xf32>
    %367 = vector.broadcast %cst_182 : f32 to vector<16x16xf32>
    %368 = arith.select %365, %366, %367 : vector<16x16xi1>, vector<16x16xf32>
    %cst_183 = arith.constant dense<0.000000e+00> : vector<16x128xf32>
    %369 = tpu.matmul %368, %360, %cst_183 {dimension_numbers = #tpu.dot_dimension_numbers<[1], [0], [0], [1], [0, 0, 1, 1], [], []>} : vector<16x16xf32>, vector<16x128xf32>, vector<16x128xf32> -> vector<16x128xf32>
    %370 = arith.addf %357, %369 : vector<16x128xf32>
    %c3_184 = arith.constant 3 : index
    %c0_185 = arith.constant 0 : index
    %c0_186 = arith.constant 0 : index
    %371 = vector.load %arg6[%c3_184, %c0_185, %c0_186] : memref<5x128x128xf32, #tpu.memory_space<vmem>>, vector<1x128x128xf32>
    %372 = vector.shape_cast %371 : vector<1x128x128xf32> to vector<128x128xf32>
    %cst_187 = arith.constant dense<0.000000e+00> : vector<16x128xf32>
    %373 = tpu.matmul %295, %372, %cst_187 {dimension_numbers = #tpu.dot_dimension_numbers<[1], [0], [0], [1], [0, 0, 1, 1], [], []>} : vector<16x128xf32>, vector<128x128xf32>, vector<16x128xf32> -> vector<16x128xf32>
    %374 = tpu.iota {dimensions = array<i32: 0>} : vector<16x16xi32>
    %375 = tpu.iota {dimensions = array<i32: 1>} : vector<16x16xi32>
    %c1_i32_188 = arith.constant 1 : i32
    %376 = vector.broadcast %c1_i32_188 : i32 to vector<16x16xi32>
    %377 = arith.addi %374, %376 : vector<16x16xi32>
    %378 = arith.cmpi eq, %375, %377 : vector<16x16xi32>
    %cst_189 = arith.constant 1.000000e+00 : f32
    %cst_190 = arith.constant 0.000000e+00 : f32
    %379 = vector.broadcast %cst_189 : f32 to vector<16x16xf32>
    %380 = vector.broadcast %cst_190 : f32 to vector<16x16xf32>
    %381 = arith.select %378, %379, %380 : vector<16x16xi1>, vector<16x16xf32>
    %cst_191 = arith.constant dense<0.000000e+00> : vector<16x128xf32>
    %382 = tpu.matmul %381, %373, %cst_191 {dimension_numbers = #tpu.dot_dimension_numbers<[1], [0], [0], [1], [0, 0, 1, 1], [], []>} : vector<16x16xf32>, vector<16x128xf32>, vector<16x128xf32> -> vector<16x128xf32>
    %383 = arith.addf %370, %382 : vector<16x128xf32>
    %c4_192 = arith.constant 4 : index
    %c0_193 = arith.constant 0 : index
    %c0_194 = arith.constant 0 : index
    %384 = vector.load %arg6[%c4_192, %c0_193, %c0_194] : memref<5x128x128xf32, #tpu.memory_space<vmem>>, vector<1x128x128xf32>
    %385 = vector.shape_cast %384 : vector<1x128x128xf32> to vector<128x128xf32>
    %cst_195 = arith.constant dense<0.000000e+00> : vector<16x128xf32>
    %386 = tpu.matmul %295, %385, %cst_195 {dimension_numbers = #tpu.dot_dimension_numbers<[1], [0], [0], [1], [0, 0, 1, 1], [], []>} : vector<16x128xf32>, vector<128x128xf32>, vector<16x128xf32> -> vector<16x128xf32>
    %387 = tpu.iota {dimensions = array<i32: 0>} : vector<16x16xi32>
    %388 = tpu.iota {dimensions = array<i32: 1>} : vector<16x16xi32>
    %c2_i32_196 = arith.constant 2 : i32
    %389 = vector.broadcast %c2_i32_196 : i32 to vector<16x16xi32>
    %390 = arith.addi %387, %389 : vector<16x16xi32>
    %391 = arith.cmpi eq, %388, %390 : vector<16x16xi32>
    %cst_197 = arith.constant 1.000000e+00 : f32
    %cst_198 = arith.constant 0.000000e+00 : f32
    %392 = vector.broadcast %cst_197 : f32 to vector<16x16xf32>
    %393 = vector.broadcast %cst_198 : f32 to vector<16x16xf32>
    %394 = arith.select %391, %392, %393 : vector<16x16xi1>, vector<16x16xf32>
    %cst_199 = arith.constant dense<0.000000e+00> : vector<16x128xf32>
    %395 = tpu.matmul %394, %386, %cst_199 {dimension_numbers = #tpu.dot_dimension_numbers<[1], [0], [0], [1], [0, 0, 1, 1], [], []>} : vector<16x16xf32>, vector<16x128xf32>, vector<16x128xf32> -> vector<16x128xf32>
    %396 = arith.addf %383, %395 : vector<16x128xf32>
    %c0_200 = arith.constant 0 : index
    %c0_201 = arith.constant 0 : index
    %397 = vector.load %arg7[%c0_200, %c0_201] : memref<1x128xf32, #tpu.memory_space<vmem>>, vector<1x128xf32>
    %398 = vector.broadcast %397 : vector<1x128xf32> to vector<16x128xf32>
    %399 = arith.addf %396, %398 : vector<16x128xf32>
    %cst_202 = arith.constant 0.000000e+00 : f32
    %400 = vector.broadcast %cst_202 : f32 to vector<16x128xf32>
    %c0_203 = arith.constant 0 : index
    %c0_204 = arith.constant 0 : index
    %c0_205 = arith.constant 0 : index
    %401 = vector.load %arg6[%c0_203, %c0_204, %c0_205] : memref<5x128x128xf32, #tpu.memory_space<vmem>>, vector<1x128x128xf32>
    %402 = vector.shape_cast %401 : vector<1x128x128xf32> to vector<128x128xf32>
    %cst_206 = arith.constant dense<0.000000e+00> : vector<16x128xf32>
    %403 = tpu.matmul %330, %402, %cst_206 {dimension_numbers = #tpu.dot_dimension_numbers<[1], [0], [0], [1], [0, 0, 1, 1], [], []>} : vector<16x128xf32>, vector<128x128xf32>, vector<16x128xf32> -> vector<16x128xf32>
    %404 = tpu.iota {dimensions = array<i32: 0>} : vector<16x16xi32>
    %405 = tpu.iota {dimensions = array<i32: 1>} : vector<16x16xi32>
    %c-2_i32_207 = arith.constant -2 : i32
    %406 = vector.broadcast %c-2_i32_207 : i32 to vector<16x16xi32>
    %407 = arith.addi %404, %406 : vector<16x16xi32>
    %408 = arith.cmpi eq, %405, %407 : vector<16x16xi32>
    %cst_208 = arith.constant 1.000000e+00 : f32
    %cst_209 = arith.constant 0.000000e+00 : f32
    %409 = vector.broadcast %cst_208 : f32 to vector<16x16xf32>
    %410 = vector.broadcast %cst_209 : f32 to vector<16x16xf32>
    %411 = arith.select %408, %409, %410 : vector<16x16xi1>, vector<16x16xf32>
    %cst_210 = arith.constant dense<0.000000e+00> : vector<16x128xf32>
    %412 = tpu.matmul %411, %403, %cst_210 {dimension_numbers = #tpu.dot_dimension_numbers<[1], [0], [0], [1], [0, 0, 1, 1], [], []>} : vector<16x16xf32>, vector<16x128xf32>, vector<16x128xf32> -> vector<16x128xf32>
    %413 = arith.addf %400, %412 : vector<16x128xf32>
    %c1_211 = arith.constant 1 : index
    %c0_212 = arith.constant 0 : index
    %c0_213 = arith.constant 0 : index
    %414 = vector.load %arg6[%c1_211, %c0_212, %c0_213] : memref<5x128x128xf32, #tpu.memory_space<vmem>>, vector<1x128x128xf32>
    %415 = vector.shape_cast %414 : vector<1x128x128xf32> to vector<128x128xf32>
    %cst_214 = arith.constant dense<0.000000e+00> : vector<16x128xf32>
    %416 = tpu.matmul %330, %415, %cst_214 {dimension_numbers = #tpu.dot_dimension_numbers<[1], [0], [0], [1], [0, 0, 1, 1], [], []>} : vector<16x128xf32>, vector<128x128xf32>, vector<16x128xf32> -> vector<16x128xf32>
    %417 = tpu.iota {dimensions = array<i32: 0>} : vector<16x16xi32>
    %418 = tpu.iota {dimensions = array<i32: 1>} : vector<16x16xi32>
    %c-1_i32_215 = arith.constant -1 : i32
    %419 = vector.broadcast %c-1_i32_215 : i32 to vector<16x16xi32>
    %420 = arith.addi %417, %419 : vector<16x16xi32>
    %421 = arith.cmpi eq, %418, %420 : vector<16x16xi32>
    %cst_216 = arith.constant 1.000000e+00 : f32
    %cst_217 = arith.constant 0.000000e+00 : f32
    %422 = vector.broadcast %cst_216 : f32 to vector<16x16xf32>
    %423 = vector.broadcast %cst_217 : f32 to vector<16x16xf32>
    %424 = arith.select %421, %422, %423 : vector<16x16xi1>, vector<16x16xf32>
    %cst_218 = arith.constant dense<0.000000e+00> : vector<16x128xf32>
    %425 = tpu.matmul %424, %416, %cst_218 {dimension_numbers = #tpu.dot_dimension_numbers<[1], [0], [0], [1], [0, 0, 1, 1], [], []>} : vector<16x16xf32>, vector<16x128xf32>, vector<16x128xf32> -> vector<16x128xf32>
    %426 = arith.addf %413, %425 : vector<16x128xf32>
    %c2_219 = arith.constant 2 : index
    %c0_220 = arith.constant 0 : index
    %c0_221 = arith.constant 0 : index
    %427 = vector.load %arg6[%c2_219, %c0_220, %c0_221] : memref<5x128x128xf32, #tpu.memory_space<vmem>>, vector<1x128x128xf32>
    %428 = vector.shape_cast %427 : vector<1x128x128xf32> to vector<128x128xf32>
    %cst_222 = arith.constant dense<0.000000e+00> : vector<16x128xf32>
    %429 = tpu.matmul %330, %428, %cst_222 {dimension_numbers = #tpu.dot_dimension_numbers<[1], [0], [0], [1], [0, 0, 1, 1], [], []>} : vector<16x128xf32>, vector<128x128xf32>, vector<16x128xf32> -> vector<16x128xf32>
    %430 = tpu.iota {dimensions = array<i32: 0>} : vector<16x16xi32>
    %431 = tpu.iota {dimensions = array<i32: 1>} : vector<16x16xi32>
    %c0_i32_223 = arith.constant 0 : i32
    %432 = vector.broadcast %c0_i32_223 : i32 to vector<16x16xi32>
    %433 = arith.addi %430, %432 : vector<16x16xi32>
    %434 = arith.cmpi eq, %431, %433 : vector<16x16xi32>
    %cst_224 = arith.constant 1.000000e+00 : f32
    %cst_225 = arith.constant 0.000000e+00 : f32
    %435 = vector.broadcast %cst_224 : f32 to vector<16x16xf32>
    %436 = vector.broadcast %cst_225 : f32 to vector<16x16xf32>
    %437 = arith.select %434, %435, %436 : vector<16x16xi1>, vector<16x16xf32>
    %cst_226 = arith.constant dense<0.000000e+00> : vector<16x128xf32>
    %438 = tpu.matmul %437, %429, %cst_226 {dimension_numbers = #tpu.dot_dimension_numbers<[1], [0], [0], [1], [0, 0, 1, 1], [], []>} : vector<16x16xf32>, vector<16x128xf32>, vector<16x128xf32> -> vector<16x128xf32>
    %439 = arith.addf %426, %438 : vector<16x128xf32>
    %c3_227 = arith.constant 3 : index
    %c0_228 = arith.constant 0 : index
    %c0_229 = arith.constant 0 : index
    %440 = vector.load %arg6[%c3_227, %c0_228, %c0_229] : memref<5x128x128xf32, #tpu.memory_space<vmem>>, vector<1x128x128xf32>
    %441 = vector.shape_cast %440 : vector<1x128x128xf32> to vector<128x128xf32>
    %cst_230 = arith.constant dense<0.000000e+00> : vector<16x128xf32>
    %442 = tpu.matmul %330, %441, %cst_230 {dimension_numbers = #tpu.dot_dimension_numbers<[1], [0], [0], [1], [0, 0, 1, 1], [], []>} : vector<16x128xf32>, vector<128x128xf32>, vector<16x128xf32> -> vector<16x128xf32>
    %443 = tpu.iota {dimensions = array<i32: 0>} : vector<16x16xi32>
    %444 = tpu.iota {dimensions = array<i32: 1>} : vector<16x16xi32>
    %c1_i32_231 = arith.constant 1 : i32
    %445 = vector.broadcast %c1_i32_231 : i32 to vector<16x16xi32>
    %446 = arith.addi %443, %445 : vector<16x16xi32>
    %447 = arith.cmpi eq, %444, %446 : vector<16x16xi32>
    %cst_232 = arith.constant 1.000000e+00 : f32
    %cst_233 = arith.constant 0.000000e+00 : f32
    %448 = vector.broadcast %cst_232 : f32 to vector<16x16xf32>
    %449 = vector.broadcast %cst_233 : f32 to vector<16x16xf32>
    %450 = arith.select %447, %448, %449 : vector<16x16xi1>, vector<16x16xf32>
    %cst_234 = arith.constant dense<0.000000e+00> : vector<16x128xf32>
    %451 = tpu.matmul %450, %442, %cst_234 {dimension_numbers = #tpu.dot_dimension_numbers<[1], [0], [0], [1], [0, 0, 1, 1], [], []>} : vector<16x16xf32>, vector<16x128xf32>, vector<16x128xf32> -> vector<16x128xf32>
    %452 = arith.addf %439, %451 : vector<16x128xf32>
    %c4_235 = arith.constant 4 : index
    %c0_236 = arith.constant 0 : index
    %c0_237 = arith.constant 0 : index
    %453 = vector.load %arg6[%c4_235, %c0_236, %c0_237] : memref<5x128x128xf32, #tpu.memory_space<vmem>>, vector<1x128x128xf32>
    %454 = vector.shape_cast %453 : vector<1x128x128xf32> to vector<128x128xf32>
    %cst_238 = arith.constant dense<0.000000e+00> : vector<16x128xf32>
    %455 = tpu.matmul %330, %454, %cst_238 {dimension_numbers = #tpu.dot_dimension_numbers<[1], [0], [0], [1], [0, 0, 1, 1], [], []>} : vector<16x128xf32>, vector<128x128xf32>, vector<16x128xf32> -> vector<16x128xf32>
    %456 = tpu.iota {dimensions = array<i32: 0>} : vector<16x16xi32>
    %457 = tpu.iota {dimensions = array<i32: 1>} : vector<16x16xi32>
    %c2_i32_239 = arith.constant 2 : i32
    %458 = vector.broadcast %c2_i32_239 : i32 to vector<16x16xi32>
    %459 = arith.addi %456, %458 : vector<16x16xi32>
    %460 = arith.cmpi eq, %457, %459 : vector<16x16xi32>
    %cst_240 = arith.constant 1.000000e+00 : f32
    %cst_241 = arith.constant 0.000000e+00 : f32
    %461 = vector.broadcast %cst_240 : f32 to vector<16x16xf32>
    %462 = vector.broadcast %cst_241 : f32 to vector<16x16xf32>
    %463 = arith.select %460, %461, %462 : vector<16x16xi1>, vector<16x16xf32>
    %cst_242 = arith.constant dense<0.000000e+00> : vector<16x128xf32>
    %464 = tpu.matmul %463, %455, %cst_242 {dimension_numbers = #tpu.dot_dimension_numbers<[1], [0], [0], [1], [0, 0, 1, 1], [], []>} : vector<16x16xf32>, vector<16x128xf32>, vector<16x128xf32> -> vector<16x128xf32>
    %465 = arith.addf %452, %464 : vector<16x128xf32>
    %c0_243 = arith.constant 0 : index
    %c0_244 = arith.constant 0 : index
    %466 = vector.load %arg7[%c0_243, %c0_244] : memref<1x128xf32, #tpu.memory_space<vmem>>, vector<1x128xf32>
    %467 = vector.broadcast %466 : vector<1x128xf32> to vector<16x128xf32>
    %468 = arith.addf %465, %467 : vector<16x128xf32>
    %cst_245 = arith.constant 0.000000e+00 : f32
    %469 = vector.broadcast %cst_245 : f32 to vector<1x128xf32>
    %cst_246 = arith.constant dense<0.000000e+00> : vector<128xf32>
    %470 = vector.multi_reduction <add>, %399, %cst_246 [0] : vector<16x128xf32> to vector<128xf32>
    %471 = vector.shape_cast %470 : vector<128xf32> to vector<1x128xf32>
    %472 = arith.addf %469, %471 : vector<1x128xf32>
    %cst_247 = arith.constant dense<0.000000e+00> : vector<128xf32>
    %473 = vector.multi_reduction <add>, %468, %cst_247 [0] : vector<16x128xf32> to vector<128xf32>
    %474 = vector.shape_cast %473 : vector<128xf32> to vector<1x128xf32>
    %475 = arith.addf %472, %474 : vector<1x128xf32>
    %cst_248 = arith.constant 3.200000e+01 : f32
    %476 = vector.broadcast %cst_248 : f32 to vector<1x128xf32>
    %477 = arith.divf %475, %476 : vector<1x128xf32>
    %cst_249 = arith.constant 0.000000e+00 : f32
    %478 = vector.broadcast %cst_249 : f32 to vector<1x128xf32>
    %479 = vector.broadcast %477 : vector<1x128xf32> to vector<16x128xf32>
    %480 = arith.subf %399, %479 : vector<16x128xf32>
    %481 = arith.mulf %480, %480 : vector<16x128xf32>
    %cst_250 = arith.constant dense<0.000000e+00> : vector<128xf32>
    %482 = vector.multi_reduction <add>, %481, %cst_250 [0] : vector<16x128xf32> to vector<128xf32>
    %483 = vector.shape_cast %482 : vector<128xf32> to vector<1x128xf32>
    %484 = arith.addf %478, %483 : vector<1x128xf32>
    %485 = vector.broadcast %477 : vector<1x128xf32> to vector<16x128xf32>
    %486 = arith.subf %468, %485 : vector<16x128xf32>
    %487 = arith.mulf %486, %486 : vector<16x128xf32>
    %cst_251 = arith.constant dense<0.000000e+00> : vector<128xf32>
    %488 = vector.multi_reduction <add>, %487, %cst_251 [0] : vector<16x128xf32> to vector<128xf32>
    %489 = vector.shape_cast %488 : vector<128xf32> to vector<1x128xf32>
    %490 = arith.addf %484, %489 : vector<1x128xf32>
    %cst_252 = arith.constant 3.200000e+01 : f32
    %491 = vector.broadcast %cst_252 : f32 to vector<1x128xf32>
    %492 = arith.divf %490, %491 : vector<1x128xf32>
    %cst_253 = arith.constant 9.99999974E-6 : f32
    %493 = vector.broadcast %cst_253 : f32 to vector<1x128xf32>
    %494 = arith.addf %492, %493 : vector<1x128xf32>
    %495 = math.rsqrt %494 : vector<1x128xf32>
    %496 = vector.broadcast %477 : vector<1x128xf32> to vector<16x128xf32>
    %497 = arith.subf %399, %496 : vector<16x128xf32>
    %498 = vector.broadcast %495 : vector<1x128xf32> to vector<16x128xf32>
    %499 = arith.mulf %497, %498 : vector<16x128xf32>
    %cst_254 = arith.constant 0.000000e+00 : f32
    %500 = vector.broadcast %cst_254 : f32 to vector<16x128xf32>
    %501 = arith.maximumf %499, %500 : vector<16x128xf32>
    %502 = vector.broadcast %477 : vector<1x128xf32> to vector<16x128xf32>
    %503 = arith.subf %468, %502 : vector<16x128xf32>
    %504 = vector.broadcast %495 : vector<1x128xf32> to vector<16x128xf32>
    %505 = arith.mulf %503, %504 : vector<16x128xf32>
    %cst_255 = arith.constant 0.000000e+00 : f32
    %506 = vector.broadcast %cst_255 : f32 to vector<16x128xf32>
    %507 = arith.maximumf %505, %506 : vector<16x128xf32>
    %508 = tpu.iota {dimensions = array<i32: 0>} : vector<8x16xi32>
    %509 = tpu.iota {dimensions = array<i32: 1>} : vector<8x16xi32>
    %c2_i32_256 = arith.constant 2 : i32
    %510 = vector.broadcast %c2_i32_256 : i32 to vector<8x16xi32>
    %511 = arith.muli %510, %508 : vector<8x16xi32>
    %c-1_i32_257 = arith.constant -1 : i32
    %512 = vector.broadcast %c-1_i32_257 : i32 to vector<8x16xi32>
    %513 = arith.addi %511, %512 : vector<8x16xi32>
    %514 = arith.cmpi eq, %509, %513 : vector<8x16xi32>
    %cst_258 = arith.constant 1.000000e+00 : f32
    %cst_259 = arith.constant 0.000000e+00 : f32
    %515 = vector.broadcast %cst_258 : f32 to vector<8x16xf32>
    %516 = vector.broadcast %cst_259 : f32 to vector<8x16xf32>
    %517 = arith.select %514, %515, %516 : vector<8x16xi1>, vector<8x16xf32>
    %cst_260 = arith.constant dense<0.000000e+00> : vector<8x128xf32>
    %518 = tpu.matmul %517, %501, %cst_260 {dimension_numbers = #tpu.dot_dimension_numbers<[1], [0], [0], [1], [0, 0, 1, 1], [], []>} : vector<8x16xf32>, vector<16x128xf32>, vector<8x128xf32> -> vector<8x128xf32>
    %519 = tpu.iota {dimensions = array<i32: 0>} : vector<8x16xi32>
    %520 = tpu.iota {dimensions = array<i32: 1>} : vector<8x16xi32>
    %c2_i32_261 = arith.constant 2 : i32
    %521 = vector.broadcast %c2_i32_261 : i32 to vector<8x16xi32>
    %522 = arith.muli %521, %519 : vector<8x16xi32>
    %c0_i32_262 = arith.constant 0 : i32
    %523 = vector.broadcast %c0_i32_262 : i32 to vector<8x16xi32>
    %524 = arith.addi %522, %523 : vector<8x16xi32>
    %525 = arith.cmpi eq, %520, %524 : vector<8x16xi32>
    %cst_263 = arith.constant 1.000000e+00 : f32
    %cst_264 = arith.constant 0.000000e+00 : f32
    %526 = vector.broadcast %cst_263 : f32 to vector<8x16xf32>
    %527 = vector.broadcast %cst_264 : f32 to vector<8x16xf32>
    %528 = arith.select %525, %526, %527 : vector<8x16xi1>, vector<8x16xf32>
    %cst_265 = arith.constant dense<0.000000e+00> : vector<8x128xf32>
    %529 = tpu.matmul %528, %501, %cst_265 {dimension_numbers = #tpu.dot_dimension_numbers<[1], [0], [0], [1], [0, 0, 1, 1], [], []>} : vector<8x16xf32>, vector<16x128xf32>, vector<8x128xf32> -> vector<8x128xf32>
    %530 = tpu.iota {dimensions = array<i32: 0>} : vector<8x16xi32>
    %531 = tpu.iota {dimensions = array<i32: 1>} : vector<8x16xi32>
    %c2_i32_266 = arith.constant 2 : i32
    %532 = vector.broadcast %c2_i32_266 : i32 to vector<8x16xi32>
    %533 = arith.muli %532, %530 : vector<8x16xi32>
    %c1_i32_267 = arith.constant 1 : i32
    %534 = vector.broadcast %c1_i32_267 : i32 to vector<8x16xi32>
    %535 = arith.addi %533, %534 : vector<8x16xi32>
    %536 = arith.cmpi eq, %531, %535 : vector<8x16xi32>
    %cst_268 = arith.constant 1.000000e+00 : f32
    %cst_269 = arith.constant 0.000000e+00 : f32
    %537 = vector.broadcast %cst_268 : f32 to vector<8x16xf32>
    %538 = vector.broadcast %cst_269 : f32 to vector<8x16xf32>
    %539 = arith.select %536, %537, %538 : vector<8x16xi1>, vector<8x16xf32>
    %cst_270 = arith.constant dense<0.000000e+00> : vector<8x128xf32>
    %540 = tpu.matmul %539, %501, %cst_270 {dimension_numbers = #tpu.dot_dimension_numbers<[1], [0], [0], [1], [0, 0, 1, 1], [], []>} : vector<8x16xf32>, vector<16x128xf32>, vector<8x128xf32> -> vector<8x128xf32>
    %541 = arith.maximumf %518, %529 : vector<8x128xf32>
    %542 = arith.maximumf %541, %540 : vector<8x128xf32>
    %543 = tpu.iota {dimensions = array<i32: 0>} : vector<8x16xi32>
    %544 = tpu.iota {dimensions = array<i32: 1>} : vector<8x16xi32>
    %c2_i32_271 = arith.constant 2 : i32
    %545 = vector.broadcast %c2_i32_271 : i32 to vector<8x16xi32>
    %546 = arith.muli %545, %543 : vector<8x16xi32>
    %c-1_i32_272 = arith.constant -1 : i32
    %547 = vector.broadcast %c-1_i32_272 : i32 to vector<8x16xi32>
    %548 = arith.addi %546, %547 : vector<8x16xi32>
    %549 = arith.cmpi eq, %544, %548 : vector<8x16xi32>
    %cst_273 = arith.constant 1.000000e+00 : f32
    %cst_274 = arith.constant 0.000000e+00 : f32
    %550 = vector.broadcast %cst_273 : f32 to vector<8x16xf32>
    %551 = vector.broadcast %cst_274 : f32 to vector<8x16xf32>
    %552 = arith.select %549, %550, %551 : vector<8x16xi1>, vector<8x16xf32>
    %cst_275 = arith.constant dense<0.000000e+00> : vector<8x128xf32>
    %553 = tpu.matmul %552, %507, %cst_275 {dimension_numbers = #tpu.dot_dimension_numbers<[1], [0], [0], [1], [0, 0, 1, 1], [], []>} : vector<8x16xf32>, vector<16x128xf32>, vector<8x128xf32> -> vector<8x128xf32>
    %554 = tpu.iota {dimensions = array<i32: 0>} : vector<8x16xi32>
    %555 = tpu.iota {dimensions = array<i32: 1>} : vector<8x16xi32>
    %c2_i32_276 = arith.constant 2 : i32
    %556 = vector.broadcast %c2_i32_276 : i32 to vector<8x16xi32>
    %557 = arith.muli %556, %554 : vector<8x16xi32>
    %c0_i32_277 = arith.constant 0 : i32
    %558 = vector.broadcast %c0_i32_277 : i32 to vector<8x16xi32>
    %559 = arith.addi %557, %558 : vector<8x16xi32>
    %560 = arith.cmpi eq, %555, %559 : vector<8x16xi32>
    %cst_278 = arith.constant 1.000000e+00 : f32
    %cst_279 = arith.constant 0.000000e+00 : f32
    %561 = vector.broadcast %cst_278 : f32 to vector<8x16xf32>
    %562 = vector.broadcast %cst_279 : f32 to vector<8x16xf32>
    %563 = arith.select %560, %561, %562 : vector<8x16xi1>, vector<8x16xf32>
    %cst_280 = arith.constant dense<0.000000e+00> : vector<8x128xf32>
    %564 = tpu.matmul %563, %507, %cst_280 {dimension_numbers = #tpu.dot_dimension_numbers<[1], [0], [0], [1], [0, 0, 1, 1], [], []>} : vector<8x16xf32>, vector<16x128xf32>, vector<8x128xf32> -> vector<8x128xf32>
    %565 = tpu.iota {dimensions = array<i32: 0>} : vector<8x16xi32>
    %566 = tpu.iota {dimensions = array<i32: 1>} : vector<8x16xi32>
    %c2_i32_281 = arith.constant 2 : i32
    %567 = vector.broadcast %c2_i32_281 : i32 to vector<8x16xi32>
    %568 = arith.muli %567, %565 : vector<8x16xi32>
    %c1_i32_282 = arith.constant 1 : i32
    %569 = vector.broadcast %c1_i32_282 : i32 to vector<8x16xi32>
    %570 = arith.addi %568, %569 : vector<8x16xi32>
    %571 = arith.cmpi eq, %566, %570 : vector<8x16xi32>
    %cst_283 = arith.constant 1.000000e+00 : f32
    %cst_284 = arith.constant 0.000000e+00 : f32
    %572 = vector.broadcast %cst_283 : f32 to vector<8x16xf32>
    %573 = vector.broadcast %cst_284 : f32 to vector<8x16xf32>
    %574 = arith.select %571, %572, %573 : vector<8x16xi1>, vector<8x16xf32>
    %cst_285 = arith.constant dense<0.000000e+00> : vector<8x128xf32>
    %575 = tpu.matmul %574, %507, %cst_285 {dimension_numbers = #tpu.dot_dimension_numbers<[1], [0], [0], [1], [0, 0, 1, 1], [], []>} : vector<8x16xf32>, vector<16x128xf32>, vector<8x128xf32> -> vector<8x128xf32>
    %576 = arith.maximumf %553, %564 : vector<8x128xf32>
    %577 = arith.maximumf %576, %575 : vector<8x128xf32>
    %cst_286 = arith.constant 0.000000e+00 : f32
    %578 = vector.broadcast %cst_286 : f32 to vector<8x256xf32>
    %c0_287 = arith.constant 0 : index
    %c0_288 = arith.constant 0 : index
    %c0_289 = arith.constant 0 : index
    %579 = vector.load %arg8[%c0_287, %c0_288, %c0_289] : memref<3x128x256xf32, #tpu.memory_space<vmem>>, vector<1x128x256xf32>
    %580 = vector.shape_cast %579 : vector<1x128x256xf32> to vector<128x256xf32>
    %cst_290 = arith.constant dense<0.000000e+00> : vector<8x256xf32>
    %581 = tpu.matmul %542, %580, %cst_290 {dimension_numbers = #tpu.dot_dimension_numbers<[1], [0], [0], [1], [0, 0, 1, 1], [], []>} : vector<8x128xf32>, vector<128x256xf32>, vector<8x256xf32> -> vector<8x256xf32>
    %582 = tpu.iota {dimensions = array<i32: 0>} : vector<8x8xi32>
    %583 = tpu.iota {dimensions = array<i32: 1>} : vector<8x8xi32>
    %c-1_i32_291 = arith.constant -1 : i32
    %584 = vector.broadcast %c-1_i32_291 : i32 to vector<8x8xi32>
    %585 = arith.addi %582, %584 : vector<8x8xi32>
    %586 = arith.cmpi eq, %583, %585 : vector<8x8xi32>
    %cst_292 = arith.constant 1.000000e+00 : f32
    %cst_293 = arith.constant 0.000000e+00 : f32
    %587 = vector.broadcast %cst_292 : f32 to vector<8x8xf32>
    %588 = vector.broadcast %cst_293 : f32 to vector<8x8xf32>
    %589 = arith.select %586, %587, %588 : vector<8x8xi1>, vector<8x8xf32>
    %cst_294 = arith.constant dense<0.000000e+00> : vector<8x256xf32>
    %590 = tpu.matmul %589, %581, %cst_294 {dimension_numbers = #tpu.dot_dimension_numbers<[1], [0], [0], [1], [0, 0, 1, 1], [], []>} : vector<8x8xf32>, vector<8x256xf32>, vector<8x256xf32> -> vector<8x256xf32>
    %591 = arith.addf %578, %590 : vector<8x256xf32>
    %c1_295 = arith.constant 1 : index
    %c0_296 = arith.constant 0 : index
    %c0_297 = arith.constant 0 : index
    %592 = vector.load %arg8[%c1_295, %c0_296, %c0_297] : memref<3x128x256xf32, #tpu.memory_space<vmem>>, vector<1x128x256xf32>
    %593 = vector.shape_cast %592 : vector<1x128x256xf32> to vector<128x256xf32>
    %cst_298 = arith.constant dense<0.000000e+00> : vector<8x256xf32>
    %594 = tpu.matmul %542, %593, %cst_298 {dimension_numbers = #tpu.dot_dimension_numbers<[1], [0], [0], [1], [0, 0, 1, 1], [], []>} : vector<8x128xf32>, vector<128x256xf32>, vector<8x256xf32> -> vector<8x256xf32>
    %595 = tpu.iota {dimensions = array<i32: 0>} : vector<8x8xi32>
    %596 = tpu.iota {dimensions = array<i32: 1>} : vector<8x8xi32>
    %c0_i32_299 = arith.constant 0 : i32
    %597 = vector.broadcast %c0_i32_299 : i32 to vector<8x8xi32>
    %598 = arith.addi %595, %597 : vector<8x8xi32>
    %599 = arith.cmpi eq, %596, %598 : vector<8x8xi32>
    %cst_300 = arith.constant 1.000000e+00 : f32
    %cst_301 = arith.constant 0.000000e+00 : f32
    %600 = vector.broadcast %cst_300 : f32 to vector<8x8xf32>
    %601 = vector.broadcast %cst_301 : f32 to vector<8x8xf32>
    %602 = arith.select %599, %600, %601 : vector<8x8xi1>, vector<8x8xf32>
    %cst_302 = arith.constant dense<0.000000e+00> : vector<8x256xf32>
    %603 = tpu.matmul %602, %594, %cst_302 {dimension_numbers = #tpu.dot_dimension_numbers<[1], [0], [0], [1], [0, 0, 1, 1], [], []>} : vector<8x8xf32>, vector<8x256xf32>, vector<8x256xf32> -> vector<8x256xf32>
    %604 = arith.addf %591, %603 : vector<8x256xf32>
    %c2_303 = arith.constant 2 : index
    %c0_304 = arith.constant 0 : index
    %c0_305 = arith.constant 0 : index
    %605 = vector.load %arg8[%c2_303, %c0_304, %c0_305] : memref<3x128x256xf32, #tpu.memory_space<vmem>>, vector<1x128x256xf32>
    %606 = vector.shape_cast %605 : vector<1x128x256xf32> to vector<128x256xf32>
    %cst_306 = arith.constant dense<0.000000e+00> : vector<8x256xf32>
    %607 = tpu.matmul %542, %606, %cst_306 {dimension_numbers = #tpu.dot_dimension_numbers<[1], [0], [0], [1], [0, 0, 1, 1], [], []>} : vector<8x128xf32>, vector<128x256xf32>, vector<8x256xf32> -> vector<8x256xf32>
    %608 = tpu.iota {dimensions = array<i32: 0>} : vector<8x8xi32>
    %609 = tpu.iota {dimensions = array<i32: 1>} : vector<8x8xi32>
    %c1_i32_307 = arith.constant 1 : i32
    %610 = vector.broadcast %c1_i32_307 : i32 to vector<8x8xi32>
    %611 = arith.addi %608, %610 : vector<8x8xi32>
    %612 = arith.cmpi eq, %609, %611 : vector<8x8xi32>
    %cst_308 = arith.constant 1.000000e+00 : f32
    %cst_309 = arith.constant 0.000000e+00 : f32
    %613 = vector.broadcast %cst_308 : f32 to vector<8x8xf32>
    %614 = vector.broadcast %cst_309 : f32 to vector<8x8xf32>
    %615 = arith.select %612, %613, %614 : vector<8x8xi1>, vector<8x8xf32>
    %cst_310 = arith.constant dense<0.000000e+00> : vector<8x256xf32>
    %616 = tpu.matmul %615, %607, %cst_310 {dimension_numbers = #tpu.dot_dimension_numbers<[1], [0], [0], [1], [0, 0, 1, 1], [], []>} : vector<8x8xf32>, vector<8x256xf32>, vector<8x256xf32> -> vector<8x256xf32>
    %617 = arith.addf %604, %616 : vector<8x256xf32>
    %c0_311 = arith.constant 0 : index
    %c0_312 = arith.constant 0 : index
    %618 = vector.load %arg9[%c0_311, %c0_312] : memref<1x256xf32, #tpu.memory_space<vmem>>, vector<1x256xf32>
    %619 = vector.broadcast %618 : vector<1x256xf32> to vector<8x256xf32>
    %620 = arith.addf %617, %619 : vector<8x256xf32>
    %cst_313 = arith.constant 0.000000e+00 : f32
    %621 = vector.broadcast %cst_313 : f32 to vector<8x256xf32>
    %c0_314 = arith.constant 0 : index
    %c0_315 = arith.constant 0 : index
    %c0_316 = arith.constant 0 : index
    %622 = vector.load %arg8[%c0_314, %c0_315, %c0_316] : memref<3x128x256xf32, #tpu.memory_space<vmem>>, vector<1x128x256xf32>
    %623 = vector.shape_cast %622 : vector<1x128x256xf32> to vector<128x256xf32>
    %cst_317 = arith.constant dense<0.000000e+00> : vector<8x256xf32>
    %624 = tpu.matmul %577, %623, %cst_317 {dimension_numbers = #tpu.dot_dimension_numbers<[1], [0], [0], [1], [0, 0, 1, 1], [], []>} : vector<8x128xf32>, vector<128x256xf32>, vector<8x256xf32> -> vector<8x256xf32>
    %625 = tpu.iota {dimensions = array<i32: 0>} : vector<8x8xi32>
    %626 = tpu.iota {dimensions = array<i32: 1>} : vector<8x8xi32>
    %c-1_i32_318 = arith.constant -1 : i32
    %627 = vector.broadcast %c-1_i32_318 : i32 to vector<8x8xi32>
    %628 = arith.addi %625, %627 : vector<8x8xi32>
    %629 = arith.cmpi eq, %626, %628 : vector<8x8xi32>
    %cst_319 = arith.constant 1.000000e+00 : f32
    %cst_320 = arith.constant 0.000000e+00 : f32
    %630 = vector.broadcast %cst_319 : f32 to vector<8x8xf32>
    %631 = vector.broadcast %cst_320 : f32 to vector<8x8xf32>
    %632 = arith.select %629, %630, %631 : vector<8x8xi1>, vector<8x8xf32>
    %cst_321 = arith.constant dense<0.000000e+00> : vector<8x256xf32>
    %633 = tpu.matmul %632, %624, %cst_321 {dimension_numbers = #tpu.dot_dimension_numbers<[1], [0], [0], [1], [0, 0, 1, 1], [], []>} : vector<8x8xf32>, vector<8x256xf32>, vector<8x256xf32> -> vector<8x256xf32>
    %634 = arith.addf %621, %633 : vector<8x256xf32>
    %c1_322 = arith.constant 1 : index
    %c0_323 = arith.constant 0 : index
    %c0_324 = arith.constant 0 : index
    %635 = vector.load %arg8[%c1_322, %c0_323, %c0_324] : memref<3x128x256xf32, #tpu.memory_space<vmem>>, vector<1x128x256xf32>
    %636 = vector.shape_cast %635 : vector<1x128x256xf32> to vector<128x256xf32>
    %cst_325 = arith.constant dense<0.000000e+00> : vector<8x256xf32>
    %637 = tpu.matmul %577, %636, %cst_325 {dimension_numbers = #tpu.dot_dimension_numbers<[1], [0], [0], [1], [0, 0, 1, 1], [], []>} : vector<8x128xf32>, vector<128x256xf32>, vector<8x256xf32> -> vector<8x256xf32>
    %638 = tpu.iota {dimensions = array<i32: 0>} : vector<8x8xi32>
    %639 = tpu.iota {dimensions = array<i32: 1>} : vector<8x8xi32>
    %c0_i32_326 = arith.constant 0 : i32
    %640 = vector.broadcast %c0_i32_326 : i32 to vector<8x8xi32>
    %641 = arith.addi %638, %640 : vector<8x8xi32>
    %642 = arith.cmpi eq, %639, %641 : vector<8x8xi32>
    %cst_327 = arith.constant 1.000000e+00 : f32
    %cst_328 = arith.constant 0.000000e+00 : f32
    %643 = vector.broadcast %cst_327 : f32 to vector<8x8xf32>
    %644 = vector.broadcast %cst_328 : f32 to vector<8x8xf32>
    %645 = arith.select %642, %643, %644 : vector<8x8xi1>, vector<8x8xf32>
    %cst_329 = arith.constant dense<0.000000e+00> : vector<8x256xf32>
    %646 = tpu.matmul %645, %637, %cst_329 {dimension_numbers = #tpu.dot_dimension_numbers<[1], [0], [0], [1], [0, 0, 1, 1], [], []>} : vector<8x8xf32>, vector<8x256xf32>, vector<8x256xf32> -> vector<8x256xf32>
    %647 = arith.addf %634, %646 : vector<8x256xf32>
    %c2_330 = arith.constant 2 : index
    %c0_331 = arith.constant 0 : index
    %c0_332 = arith.constant 0 : index
    %648 = vector.load %arg8[%c2_330, %c0_331, %c0_332] : memref<3x128x256xf32, #tpu.memory_space<vmem>>, vector<1x128x256xf32>
    %649 = vector.shape_cast %648 : vector<1x128x256xf32> to vector<128x256xf32>
    %cst_333 = arith.constant dense<0.000000e+00> : vector<8x256xf32>
    %650 = tpu.matmul %577, %649, %cst_333 {dimension_numbers = #tpu.dot_dimension_numbers<[1], [0], [0], [1], [0, 0, 1, 1], [], []>} : vector<8x128xf32>, vector<128x256xf32>, vector<8x256xf32> -> vector<8x256xf32>
    %651 = tpu.iota {dimensions = array<i32: 0>} : vector<8x8xi32>
    %652 = tpu.iota {dimensions = array<i32: 1>} : vector<8x8xi32>
    %c1_i32_334 = arith.constant 1 : i32
    %653 = vector.broadcast %c1_i32_334 : i32 to vector<8x8xi32>
    %654 = arith.addi %651, %653 : vector<8x8xi32>
    %655 = arith.cmpi eq, %652, %654 : vector<8x8xi32>
    %cst_335 = arith.constant 1.000000e+00 : f32
    %cst_336 = arith.constant 0.000000e+00 : f32
    %656 = vector.broadcast %cst_335 : f32 to vector<8x8xf32>
    %657 = vector.broadcast %cst_336 : f32 to vector<8x8xf32>
    %658 = arith.select %655, %656, %657 : vector<8x8xi1>, vector<8x8xf32>
    %cst_337 = arith.constant dense<0.000000e+00> : vector<8x256xf32>
    %659 = tpu.matmul %658, %650, %cst_337 {dimension_numbers = #tpu.dot_dimension_numbers<[1], [0], [0], [1], [0, 0, 1, 1], [], []>} : vector<8x8xf32>, vector<8x256xf32>, vector<8x256xf32> -> vector<8x256xf32>
    %660 = arith.addf %647, %659 : vector<8x256xf32>
    %c0_338 = arith.constant 0 : index
    %c0_339 = arith.constant 0 : index
    %661 = vector.load %arg9[%c0_338, %c0_339] : memref<1x256xf32, #tpu.memory_space<vmem>>, vector<1x256xf32>
    %662 = vector.broadcast %661 : vector<1x256xf32> to vector<8x256xf32>
    %663 = arith.addf %660, %662 : vector<8x256xf32>
    %cst_340 = arith.constant 0.000000e+00 : f32
    %664 = vector.broadcast %cst_340 : f32 to vector<1x256xf32>
    %cst_341 = arith.constant dense<0.000000e+00> : vector<256xf32>
    %665 = vector.multi_reduction <add>, %620, %cst_341 [0] : vector<8x256xf32> to vector<256xf32>
    %666 = vector.shape_cast %665 : vector<256xf32> to vector<1x256xf32>
    %667 = arith.addf %664, %666 : vector<1x256xf32>
    %cst_342 = arith.constant dense<0.000000e+00> : vector<256xf32>
    %668 = vector.multi_reduction <add>, %663, %cst_342 [0] : vector<8x256xf32> to vector<256xf32>
    %669 = vector.shape_cast %668 : vector<256xf32> to vector<1x256xf32>
    %670 = arith.addf %667, %669 : vector<1x256xf32>
    %cst_343 = arith.constant 1.600000e+01 : f32
    %671 = vector.broadcast %cst_343 : f32 to vector<1x256xf32>
    %672 = arith.divf %670, %671 : vector<1x256xf32>
    %cst_344 = arith.constant 0.000000e+00 : f32
    %673 = vector.broadcast %cst_344 : f32 to vector<1x256xf32>
    %674 = vector.broadcast %672 : vector<1x256xf32> to vector<8x256xf32>
    %675 = arith.subf %620, %674 : vector<8x256xf32>
    %676 = arith.mulf %675, %675 : vector<8x256xf32>
    %cst_345 = arith.constant dense<0.000000e+00> : vector<256xf32>
    %677 = vector.multi_reduction <add>, %676, %cst_345 [0] : vector<8x256xf32> to vector<256xf32>
    %678 = vector.shape_cast %677 : vector<256xf32> to vector<1x256xf32>
    %679 = arith.addf %673, %678 : vector<1x256xf32>
    %680 = vector.broadcast %672 : vector<1x256xf32> to vector<8x256xf32>
    %681 = arith.subf %663, %680 : vector<8x256xf32>
    %682 = arith.mulf %681, %681 : vector<8x256xf32>
    %cst_346 = arith.constant dense<0.000000e+00> : vector<256xf32>
    %683 = vector.multi_reduction <add>, %682, %cst_346 [0] : vector<8x256xf32> to vector<256xf32>
    %684 = vector.shape_cast %683 : vector<256xf32> to vector<1x256xf32>
    %685 = arith.addf %679, %684 : vector<1x256xf32>
    %cst_347 = arith.constant 1.600000e+01 : f32
    %686 = vector.broadcast %cst_347 : f32 to vector<1x256xf32>
    %687 = arith.divf %685, %686 : vector<1x256xf32>
    %cst_348 = arith.constant 9.99999974E-6 : f32
    %688 = vector.broadcast %cst_348 : f32 to vector<1x256xf32>
    %689 = arith.addf %687, %688 : vector<1x256xf32>
    %690 = math.rsqrt %689 : vector<1x256xf32>
    %691 = vector.broadcast %672 : vector<1x256xf32> to vector<8x256xf32>
    %692 = arith.subf %620, %691 : vector<8x256xf32>
    %693 = vector.broadcast %690 : vector<1x256xf32> to vector<8x256xf32>
    %694 = arith.mulf %692, %693 : vector<8x256xf32>
    %cst_349 = arith.constant 0.000000e+00 : f32
    %695 = vector.broadcast %cst_349 : f32 to vector<8x256xf32>
    %696 = arith.maximumf %694, %695 : vector<8x256xf32>
    %697 = vector.broadcast %672 : vector<1x256xf32> to vector<8x256xf32>
    %698 = arith.subf %663, %697 : vector<8x256xf32>
    %699 = vector.broadcast %690 : vector<1x256xf32> to vector<8x256xf32>
    %700 = arith.mulf %698, %699 : vector<8x256xf32>
    %cst_350 = arith.constant 0.000000e+00 : f32
    %701 = vector.broadcast %cst_350 : f32 to vector<8x256xf32>
    %702 = arith.maximumf %700, %701 : vector<8x256xf32>
    %703 = tpu.iota {dimensions = array<i32: 0>} : vector<4x8xi32>
    %704 = tpu.iota {dimensions = array<i32: 1>} : vector<4x8xi32>
    %c2_i32_351 = arith.constant 2 : i32
    %705 = vector.broadcast %c2_i32_351 : i32 to vector<4x8xi32>
    %706 = arith.muli %705, %703 : vector<4x8xi32>
    %c-1_i32_352 = arith.constant -1 : i32
    %707 = vector.broadcast %c-1_i32_352 : i32 to vector<4x8xi32>
    %708 = arith.addi %706, %707 : vector<4x8xi32>
    %709 = arith.cmpi eq, %704, %708 : vector<4x8xi32>
    %cst_353 = arith.constant 1.000000e+00 : f32
    %cst_354 = arith.constant 0.000000e+00 : f32
    %710 = vector.broadcast %cst_353 : f32 to vector<4x8xf32>
    %711 = vector.broadcast %cst_354 : f32 to vector<4x8xf32>
    %712 = arith.select %709, %710, %711 : vector<4x8xi1>, vector<4x8xf32>
    %cst_355 = arith.constant dense<0.000000e+00> : vector<4x256xf32>
    %713 = tpu.matmul %712, %696, %cst_355 {dimension_numbers = #tpu.dot_dimension_numbers<[1], [0], [0], [1], [0, 0, 1, 1], [], []>} : vector<4x8xf32>, vector<8x256xf32>, vector<4x256xf32> -> vector<4x256xf32>
    %714 = tpu.iota {dimensions = array<i32: 0>} : vector<4x8xi32>
    %715 = tpu.iota {dimensions = array<i32: 1>} : vector<4x8xi32>
    %c2_i32_356 = arith.constant 2 : i32
    %716 = vector.broadcast %c2_i32_356 : i32 to vector<4x8xi32>
    %717 = arith.muli %716, %714 : vector<4x8xi32>
    %c0_i32_357 = arith.constant 0 : i32
    %718 = vector.broadcast %c0_i32_357 : i32 to vector<4x8xi32>
    %719 = arith.addi %717, %718 : vector<4x8xi32>
    %720 = arith.cmpi eq, %715, %719 : vector<4x8xi32>
    %cst_358 = arith.constant 1.000000e+00 : f32
    %cst_359 = arith.constant 0.000000e+00 : f32
    %721 = vector.broadcast %cst_358 : f32 to vector<4x8xf32>
    %722 = vector.broadcast %cst_359 : f32 to vector<4x8xf32>
    %723 = arith.select %720, %721, %722 : vector<4x8xi1>, vector<4x8xf32>
    %cst_360 = arith.constant dense<0.000000e+00> : vector<4x256xf32>
    %724 = tpu.matmul %723, %696, %cst_360 {dimension_numbers = #tpu.dot_dimension_numbers<[1], [0], [0], [1], [0, 0, 1, 1], [], []>} : vector<4x8xf32>, vector<8x256xf32>, vector<4x256xf32> -> vector<4x256xf32>
    %725 = tpu.iota {dimensions = array<i32: 0>} : vector<4x8xi32>
    %726 = tpu.iota {dimensions = array<i32: 1>} : vector<4x8xi32>
    %c2_i32_361 = arith.constant 2 : i32
    %727 = vector.broadcast %c2_i32_361 : i32 to vector<4x8xi32>
    %728 = arith.muli %727, %725 : vector<4x8xi32>
    %c1_i32_362 = arith.constant 1 : i32
    %729 = vector.broadcast %c1_i32_362 : i32 to vector<4x8xi32>
    %730 = arith.addi %728, %729 : vector<4x8xi32>
    %731 = arith.cmpi eq, %726, %730 : vector<4x8xi32>
    %cst_363 = arith.constant 1.000000e+00 : f32
    %cst_364 = arith.constant 0.000000e+00 : f32
    %732 = vector.broadcast %cst_363 : f32 to vector<4x8xf32>
    %733 = vector.broadcast %cst_364 : f32 to vector<4x8xf32>
    %734 = arith.select %731, %732, %733 : vector<4x8xi1>, vector<4x8xf32>
    %cst_365 = arith.constant dense<0.000000e+00> : vector<4x256xf32>
    %735 = tpu.matmul %734, %696, %cst_365 {dimension_numbers = #tpu.dot_dimension_numbers<[1], [0], [0], [1], [0, 0, 1, 1], [], []>} : vector<4x8xf32>, vector<8x256xf32>, vector<4x256xf32> -> vector<4x256xf32>
    %736 = arith.maximumf %713, %724 : vector<4x256xf32>
    %737 = arith.maximumf %736, %735 : vector<4x256xf32>
    %738 = tpu.iota {dimensions = array<i32: 0>} : vector<4x8xi32>
    %739 = tpu.iota {dimensions = array<i32: 1>} : vector<4x8xi32>
    %c2_i32_366 = arith.constant 2 : i32
    %740 = vector.broadcast %c2_i32_366 : i32 to vector<4x8xi32>
    %741 = arith.muli %740, %738 : vector<4x8xi32>
    %c-1_i32_367 = arith.constant -1 : i32
    %742 = vector.broadcast %c-1_i32_367 : i32 to vector<4x8xi32>
    %743 = arith.addi %741, %742 : vector<4x8xi32>
    %744 = arith.cmpi eq, %739, %743 : vector<4x8xi32>
    %cst_368 = arith.constant 1.000000e+00 : f32
    %cst_369 = arith.constant 0.000000e+00 : f32
    %745 = vector.broadcast %cst_368 : f32 to vector<4x8xf32>
    %746 = vector.broadcast %cst_369 : f32 to vector<4x8xf32>
    %747 = arith.select %744, %745, %746 : vector<4x8xi1>, vector<4x8xf32>
    %cst_370 = arith.constant dense<0.000000e+00> : vector<4x256xf32>
    %748 = tpu.matmul %747, %702, %cst_370 {dimension_numbers = #tpu.dot_dimension_numbers<[1], [0], [0], [1], [0, 0, 1, 1], [], []>} : vector<4x8xf32>, vector<8x256xf32>, vector<4x256xf32> -> vector<4x256xf32>
    %749 = tpu.iota {dimensions = array<i32: 0>} : vector<4x8xi32>
    %750 = tpu.iota {dimensions = array<i32: 1>} : vector<4x8xi32>
    %c2_i32_371 = arith.constant 2 : i32
    %751 = vector.broadcast %c2_i32_371 : i32 to vector<4x8xi32>
    %752 = arith.muli %751, %749 : vector<4x8xi32>
    %c0_i32_372 = arith.constant 0 : i32
    %753 = vector.broadcast %c0_i32_372 : i32 to vector<4x8xi32>
    %754 = arith.addi %752, %753 : vector<4x8xi32>
    %755 = arith.cmpi eq, %750, %754 : vector<4x8xi32>
    %cst_373 = arith.constant 1.000000e+00 : f32
    %cst_374 = arith.constant 0.000000e+00 : f32
    %756 = vector.broadcast %cst_373 : f32 to vector<4x8xf32>
    %757 = vector.broadcast %cst_374 : f32 to vector<4x8xf32>
    %758 = arith.select %755, %756, %757 : vector<4x8xi1>, vector<4x8xf32>
    %cst_375 = arith.constant dense<0.000000e+00> : vector<4x256xf32>
    %759 = tpu.matmul %758, %702, %cst_375 {dimension_numbers = #tpu.dot_dimension_numbers<[1], [0], [0], [1], [0, 0, 1, 1], [], []>} : vector<4x8xf32>, vector<8x256xf32>, vector<4x256xf32> -> vector<4x256xf32>
    %760 = tpu.iota {dimensions = array<i32: 0>} : vector<4x8xi32>
    %761 = tpu.iota {dimensions = array<i32: 1>} : vector<4x8xi32>
    %c2_i32_376 = arith.constant 2 : i32
    %762 = vector.broadcast %c2_i32_376 : i32 to vector<4x8xi32>
    %763 = arith.muli %762, %760 : vector<4x8xi32>
    %c1_i32_377 = arith.constant 1 : i32
    %764 = vector.broadcast %c1_i32_377 : i32 to vector<4x8xi32>
    %765 = arith.addi %763, %764 : vector<4x8xi32>
    %766 = arith.cmpi eq, %761, %765 : vector<4x8xi32>
    %cst_378 = arith.constant 1.000000e+00 : f32
    %cst_379 = arith.constant 0.000000e+00 : f32
    %767 = vector.broadcast %cst_378 : f32 to vector<4x8xf32>
    %768 = vector.broadcast %cst_379 : f32 to vector<4x8xf32>
    %769 = arith.select %766, %767, %768 : vector<4x8xi1>, vector<4x8xf32>
    %cst_380 = arith.constant dense<0.000000e+00> : vector<4x256xf32>
    %770 = tpu.matmul %769, %702, %cst_380 {dimension_numbers = #tpu.dot_dimension_numbers<[1], [0], [0], [1], [0, 0, 1, 1], [], []>} : vector<4x8xf32>, vector<8x256xf32>, vector<4x256xf32> -> vector<4x256xf32>
    %771 = arith.maximumf %748, %759 : vector<4x256xf32>
    %772 = arith.maximumf %771, %770 : vector<4x256xf32>
    %cst_381 = arith.constant 0.000000e+00 : f32
    %773 = vector.broadcast %cst_381 : f32 to vector<4x256xf32>
    %c0_382 = arith.constant 0 : index
    %c0_383 = arith.constant 0 : index
    %c0_384 = arith.constant 0 : index
    %774 = vector.load %arg10[%c0_382, %c0_383, %c0_384] : memref<3x256x256xf32, #tpu.memory_space<vmem>>, vector<1x256x256xf32>
    %775 = vector.shape_cast %774 : vector<1x256x256xf32> to vector<256x256xf32>
    %cst_385 = arith.constant dense<0.000000e+00> : vector<4x256xf32>
    %776 = tpu.matmul %737, %775, %cst_385 {dimension_numbers = #tpu.dot_dimension_numbers<[1], [0], [0], [1], [0, 0, 1, 1], [], []>} : vector<4x256xf32>, vector<256x256xf32>, vector<4x256xf32> -> vector<4x256xf32>
    %777 = tpu.iota {dimensions = array<i32: 0>} : vector<4x4xi32>
    %778 = tpu.iota {dimensions = array<i32: 1>} : vector<4x4xi32>
    %c-1_i32_386 = arith.constant -1 : i32
    %779 = vector.broadcast %c-1_i32_386 : i32 to vector<4x4xi32>
    %780 = arith.addi %777, %779 : vector<4x4xi32>
    %781 = arith.cmpi eq, %778, %780 : vector<4x4xi32>
    %cst_387 = arith.constant 1.000000e+00 : f32
    %cst_388 = arith.constant 0.000000e+00 : f32
    %782 = vector.broadcast %cst_387 : f32 to vector<4x4xf32>
    %783 = vector.broadcast %cst_388 : f32 to vector<4x4xf32>
    %784 = arith.select %781, %782, %783 : vector<4x4xi1>, vector<4x4xf32>
    %cst_389 = arith.constant dense<0.000000e+00> : vector<4x256xf32>
    %785 = tpu.matmul %784, %776, %cst_389 {dimension_numbers = #tpu.dot_dimension_numbers<[1], [0], [0], [1], [0, 0, 1, 1], [], []>} : vector<4x4xf32>, vector<4x256xf32>, vector<4x256xf32> -> vector<4x256xf32>
    %786 = arith.addf %773, %785 : vector<4x256xf32>
    %c1_390 = arith.constant 1 : index
    %c0_391 = arith.constant 0 : index
    %c0_392 = arith.constant 0 : index
    %787 = vector.load %arg10[%c1_390, %c0_391, %c0_392] : memref<3x256x256xf32, #tpu.memory_space<vmem>>, vector<1x256x256xf32>
    %788 = vector.shape_cast %787 : vector<1x256x256xf32> to vector<256x256xf32>
    %cst_393 = arith.constant dense<0.000000e+00> : vector<4x256xf32>
    %789 = tpu.matmul %737, %788, %cst_393 {dimension_numbers = #tpu.dot_dimension_numbers<[1], [0], [0], [1], [0, 0, 1, 1], [], []>} : vector<4x256xf32>, vector<256x256xf32>, vector<4x256xf32> -> vector<4x256xf32>
    %790 = tpu.iota {dimensions = array<i32: 0>} : vector<4x4xi32>
    %791 = tpu.iota {dimensions = array<i32: 1>} : vector<4x4xi32>
    %c0_i32_394 = arith.constant 0 : i32
    %792 = vector.broadcast %c0_i32_394 : i32 to vector<4x4xi32>
    %793 = arith.addi %790, %792 : vector<4x4xi32>
    %794 = arith.cmpi eq, %791, %793 : vector<4x4xi32>
    %cst_395 = arith.constant 1.000000e+00 : f32
    %cst_396 = arith.constant 0.000000e+00 : f32
    %795 = vector.broadcast %cst_395 : f32 to vector<4x4xf32>
    %796 = vector.broadcast %cst_396 : f32 to vector<4x4xf32>
    %797 = arith.select %794, %795, %796 : vector<4x4xi1>, vector<4x4xf32>
    %cst_397 = arith.constant dense<0.000000e+00> : vector<4x256xf32>
    %798 = tpu.matmul %797, %789, %cst_397 {dimension_numbers = #tpu.dot_dimension_numbers<[1], [0], [0], [1], [0, 0, 1, 1], [], []>} : vector<4x4xf32>, vector<4x256xf32>, vector<4x256xf32> -> vector<4x256xf32>
    %799 = arith.addf %786, %798 : vector<4x256xf32>
    %c2_398 = arith.constant 2 : index
    %c0_399 = arith.constant 0 : index
    %c0_400 = arith.constant 0 : index
    %800 = vector.load %arg10[%c2_398, %c0_399, %c0_400] : memref<3x256x256xf32, #tpu.memory_space<vmem>>, vector<1x256x256xf32>
    %801 = vector.shape_cast %800 : vector<1x256x256xf32> to vector<256x256xf32>
    %cst_401 = arith.constant dense<0.000000e+00> : vector<4x256xf32>
    %802 = tpu.matmul %737, %801, %cst_401 {dimension_numbers = #tpu.dot_dimension_numbers<[1], [0], [0], [1], [0, 0, 1, 1], [], []>} : vector<4x256xf32>, vector<256x256xf32>, vector<4x256xf32> -> vector<4x256xf32>
    %803 = tpu.iota {dimensions = array<i32: 0>} : vector<4x4xi32>
    %804 = tpu.iota {dimensions = array<i32: 1>} : vector<4x4xi32>
    %c1_i32_402 = arith.constant 1 : i32
    %805 = vector.broadcast %c1_i32_402 : i32 to vector<4x4xi32>
    %806 = arith.addi %803, %805 : vector<4x4xi32>
    %807 = arith.cmpi eq, %804, %806 : vector<4x4xi32>
    %cst_403 = arith.constant 1.000000e+00 : f32
    %cst_404 = arith.constant 0.000000e+00 : f32
    %808 = vector.broadcast %cst_403 : f32 to vector<4x4xf32>
    %809 = vector.broadcast %cst_404 : f32 to vector<4x4xf32>
    %810 = arith.select %807, %808, %809 : vector<4x4xi1>, vector<4x4xf32>
    %cst_405 = arith.constant dense<0.000000e+00> : vector<4x256xf32>
    %811 = tpu.matmul %810, %802, %cst_405 {dimension_numbers = #tpu.dot_dimension_numbers<[1], [0], [0], [1], [0, 0, 1, 1], [], []>} : vector<4x4xf32>, vector<4x256xf32>, vector<4x256xf32> -> vector<4x256xf32>
    %812 = arith.addf %799, %811 : vector<4x256xf32>
    %c0_406 = arith.constant 0 : index
    %c0_407 = arith.constant 0 : index
    %813 = vector.load %arg11[%c0_406, %c0_407] : memref<1x256xf32, #tpu.memory_space<vmem>>, vector<1x256xf32>
    %814 = vector.broadcast %813 : vector<1x256xf32> to vector<4x256xf32>
    %815 = arith.addf %812, %814 : vector<4x256xf32>
    %cst_408 = arith.constant 0.000000e+00 : f32
    %816 = vector.broadcast %cst_408 : f32 to vector<4x256xf32>
    %c0_409 = arith.constant 0 : index
    %c0_410 = arith.constant 0 : index
    %c0_411 = arith.constant 0 : index
    %817 = vector.load %arg10[%c0_409, %c0_410, %c0_411] : memref<3x256x256xf32, #tpu.memory_space<vmem>>, vector<1x256x256xf32>
    %818 = vector.shape_cast %817 : vector<1x256x256xf32> to vector<256x256xf32>
    %cst_412 = arith.constant dense<0.000000e+00> : vector<4x256xf32>
    %819 = tpu.matmul %772, %818, %cst_412 {dimension_numbers = #tpu.dot_dimension_numbers<[1], [0], [0], [1], [0, 0, 1, 1], [], []>} : vector<4x256xf32>, vector<256x256xf32>, vector<4x256xf32> -> vector<4x256xf32>
    %820 = tpu.iota {dimensions = array<i32: 0>} : vector<4x4xi32>
    %821 = tpu.iota {dimensions = array<i32: 1>} : vector<4x4xi32>
    %c-1_i32_413 = arith.constant -1 : i32
    %822 = vector.broadcast %c-1_i32_413 : i32 to vector<4x4xi32>
    %823 = arith.addi %820, %822 : vector<4x4xi32>
    %824 = arith.cmpi eq, %821, %823 : vector<4x4xi32>
    %cst_414 = arith.constant 1.000000e+00 : f32
    %cst_415 = arith.constant 0.000000e+00 : f32
    %825 = vector.broadcast %cst_414 : f32 to vector<4x4xf32>
    %826 = vector.broadcast %cst_415 : f32 to vector<4x4xf32>
    %827 = arith.select %824, %825, %826 : vector<4x4xi1>, vector<4x4xf32>
    %cst_416 = arith.constant dense<0.000000e+00> : vector<4x256xf32>
    %828 = tpu.matmul %827, %819, %cst_416 {dimension_numbers = #tpu.dot_dimension_numbers<[1], [0], [0], [1], [0, 0, 1, 1], [], []>} : vector<4x4xf32>, vector<4x256xf32>, vector<4x256xf32> -> vector<4x256xf32>
    %829 = arith.addf %816, %828 : vector<4x256xf32>
    %c1_417 = arith.constant 1 : index
    %c0_418 = arith.constant 0 : index
    %c0_419 = arith.constant 0 : index
    %830 = vector.load %arg10[%c1_417, %c0_418, %c0_419] : memref<3x256x256xf32, #tpu.memory_space<vmem>>, vector<1x256x256xf32>
    %831 = vector.shape_cast %830 : vector<1x256x256xf32> to vector<256x256xf32>
    %cst_420 = arith.constant dense<0.000000e+00> : vector<4x256xf32>
    %832 = tpu.matmul %772, %831, %cst_420 {dimension_numbers = #tpu.dot_dimension_numbers<[1], [0], [0], [1], [0, 0, 1, 1], [], []>} : vector<4x256xf32>, vector<256x256xf32>, vector<4x256xf32> -> vector<4x256xf32>
    %833 = tpu.iota {dimensions = array<i32: 0>} : vector<4x4xi32>
    %834 = tpu.iota {dimensions = array<i32: 1>} : vector<4x4xi32>
    %c0_i32_421 = arith.constant 0 : i32
    %835 = vector.broadcast %c0_i32_421 : i32 to vector<4x4xi32>
    %836 = arith.addi %833, %835 : vector<4x4xi32>
    %837 = arith.cmpi eq, %834, %836 : vector<4x4xi32>
    %cst_422 = arith.constant 1.000000e+00 : f32
    %cst_423 = arith.constant 0.000000e+00 : f32
    %838 = vector.broadcast %cst_422 : f32 to vector<4x4xf32>
    %839 = vector.broadcast %cst_423 : f32 to vector<4x4xf32>
    %840 = arith.select %837, %838, %839 : vector<4x4xi1>, vector<4x4xf32>
    %cst_424 = arith.constant dense<0.000000e+00> : vector<4x256xf32>
    %841 = tpu.matmul %840, %832, %cst_424 {dimension_numbers = #tpu.dot_dimension_numbers<[1], [0], [0], [1], [0, 0, 1, 1], [], []>} : vector<4x4xf32>, vector<4x256xf32>, vector<4x256xf32> -> vector<4x256xf32>
    %842 = arith.addf %829, %841 : vector<4x256xf32>
    %c2_425 = arith.constant 2 : index
    %c0_426 = arith.constant 0 : index
    %c0_427 = arith.constant 0 : index
    %843 = vector.load %arg10[%c2_425, %c0_426, %c0_427] : memref<3x256x256xf32, #tpu.memory_space<vmem>>, vector<1x256x256xf32>
    %844 = vector.shape_cast %843 : vector<1x256x256xf32> to vector<256x256xf32>
    %cst_428 = arith.constant dense<0.000000e+00> : vector<4x256xf32>
    %845 = tpu.matmul %772, %844, %cst_428 {dimension_numbers = #tpu.dot_dimension_numbers<[1], [0], [0], [1], [0, 0, 1, 1], [], []>} : vector<4x256xf32>, vector<256x256xf32>, vector<4x256xf32> -> vector<4x256xf32>
    %846 = tpu.iota {dimensions = array<i32: 0>} : vector<4x4xi32>
    %847 = tpu.iota {dimensions = array<i32: 1>} : vector<4x4xi32>
    %c1_i32_429 = arith.constant 1 : i32
    %848 = vector.broadcast %c1_i32_429 : i32 to vector<4x4xi32>
    %849 = arith.addi %846, %848 : vector<4x4xi32>
    %850 = arith.cmpi eq, %847, %849 : vector<4x4xi32>
    %cst_430 = arith.constant 1.000000e+00 : f32
    %cst_431 = arith.constant 0.000000e+00 : f32
    %851 = vector.broadcast %cst_430 : f32 to vector<4x4xf32>
    %852 = vector.broadcast %cst_431 : f32 to vector<4x4xf32>
    %853 = arith.select %850, %851, %852 : vector<4x4xi1>, vector<4x4xf32>
    %cst_432 = arith.constant dense<0.000000e+00> : vector<4x256xf32>
    %854 = tpu.matmul %853, %845, %cst_432 {dimension_numbers = #tpu.dot_dimension_numbers<[1], [0], [0], [1], [0, 0, 1, 1], [], []>} : vector<4x4xf32>, vector<4x256xf32>, vector<4x256xf32> -> vector<4x256xf32>
    %855 = arith.addf %842, %854 : vector<4x256xf32>
    %c0_433 = arith.constant 0 : index
    %c0_434 = arith.constant 0 : index
    %856 = vector.load %arg11[%c0_433, %c0_434] : memref<1x256xf32, #tpu.memory_space<vmem>>, vector<1x256xf32>
    %857 = vector.broadcast %856 : vector<1x256xf32> to vector<4x256xf32>
    %858 = arith.addf %855, %857 : vector<4x256xf32>
    %cst_435 = arith.constant 0.000000e+00 : f32
    %859 = vector.broadcast %cst_435 : f32 to vector<1x256xf32>
    %cst_436 = arith.constant dense<0.000000e+00> : vector<256xf32>
    %860 = vector.multi_reduction <add>, %815, %cst_436 [0] : vector<4x256xf32> to vector<256xf32>
    %861 = vector.shape_cast %860 : vector<256xf32> to vector<1x256xf32>
    %862 = arith.addf %859, %861 : vector<1x256xf32>
    %cst_437 = arith.constant dense<0.000000e+00> : vector<256xf32>
    %863 = vector.multi_reduction <add>, %858, %cst_437 [0] : vector<4x256xf32> to vector<256xf32>
    %864 = vector.shape_cast %863 : vector<256xf32> to vector<1x256xf32>
    %865 = arith.addf %862, %864 : vector<1x256xf32>
    %cst_438 = arith.constant 8.000000e+00 : f32
    %866 = vector.broadcast %cst_438 : f32 to vector<1x256xf32>
    %867 = arith.divf %865, %866 : vector<1x256xf32>
    %cst_439 = arith.constant 0.000000e+00 : f32
    %868 = vector.broadcast %cst_439 : f32 to vector<1x256xf32>
    %869 = vector.broadcast %867 : vector<1x256xf32> to vector<4x256xf32>
    %870 = arith.subf %815, %869 : vector<4x256xf32>
    %871 = arith.mulf %870, %870 : vector<4x256xf32>
    %cst_440 = arith.constant dense<0.000000e+00> : vector<256xf32>
    %872 = vector.multi_reduction <add>, %871, %cst_440 [0] : vector<4x256xf32> to vector<256xf32>
    %873 = vector.shape_cast %872 : vector<256xf32> to vector<1x256xf32>
    %874 = arith.addf %868, %873 : vector<1x256xf32>
    %875 = vector.broadcast %867 : vector<1x256xf32> to vector<4x256xf32>
    %876 = arith.subf %858, %875 : vector<4x256xf32>
    %877 = arith.mulf %876, %876 : vector<4x256xf32>
    %cst_441 = arith.constant dense<0.000000e+00> : vector<256xf32>
    %878 = vector.multi_reduction <add>, %877, %cst_441 [0] : vector<4x256xf32> to vector<256xf32>
    %879 = vector.shape_cast %878 : vector<256xf32> to vector<1x256xf32>
    %880 = arith.addf %874, %879 : vector<1x256xf32>
    %cst_442 = arith.constant 8.000000e+00 : f32
    %881 = vector.broadcast %cst_442 : f32 to vector<1x256xf32>
    %882 = arith.divf %880, %881 : vector<1x256xf32>
    %cst_443 = arith.constant 9.99999974E-6 : f32
    %883 = vector.broadcast %cst_443 : f32 to vector<1x256xf32>
    %884 = arith.addf %882, %883 : vector<1x256xf32>
    %885 = math.rsqrt %884 : vector<1x256xf32>
    %886 = vector.broadcast %867 : vector<1x256xf32> to vector<4x256xf32>
    %887 = arith.subf %815, %886 : vector<4x256xf32>
    %888 = vector.broadcast %885 : vector<1x256xf32> to vector<4x256xf32>
    %889 = arith.mulf %887, %888 : vector<4x256xf32>
    %cst_444 = arith.constant 0.000000e+00 : f32
    %890 = vector.broadcast %cst_444 : f32 to vector<4x256xf32>
    %891 = arith.maximumf %889, %890 : vector<4x256xf32>
    %892 = vector.broadcast %867 : vector<1x256xf32> to vector<4x256xf32>
    %893 = arith.subf %858, %892 : vector<4x256xf32>
    %894 = vector.broadcast %885 : vector<1x256xf32> to vector<4x256xf32>
    %895 = arith.mulf %893, %894 : vector<4x256xf32>
    %cst_445 = arith.constant 0.000000e+00 : f32
    %896 = vector.broadcast %cst_445 : f32 to vector<4x256xf32>
    %897 = arith.maximumf %895, %896 : vector<4x256xf32>
    %898 = tpu.iota {dimensions = array<i32: 0>} : vector<2x4xi32>
    %899 = tpu.iota {dimensions = array<i32: 1>} : vector<2x4xi32>
    %c2_i32_446 = arith.constant 2 : i32
    %900 = vector.broadcast %c2_i32_446 : i32 to vector<2x4xi32>
    %901 = arith.muli %900, %898 : vector<2x4xi32>
    %c-1_i32_447 = arith.constant -1 : i32
    %902 = vector.broadcast %c-1_i32_447 : i32 to vector<2x4xi32>
    %903 = arith.addi %901, %902 : vector<2x4xi32>
    %904 = arith.cmpi eq, %899, %903 : vector<2x4xi32>
    %cst_448 = arith.constant 1.000000e+00 : f32
    %cst_449 = arith.constant 0.000000e+00 : f32
    %905 = vector.broadcast %cst_448 : f32 to vector<2x4xf32>
    %906 = vector.broadcast %cst_449 : f32 to vector<2x4xf32>
    %907 = arith.select %904, %905, %906 : vector<2x4xi1>, vector<2x4xf32>
    %cst_450 = arith.constant dense<0.000000e+00> : vector<2x256xf32>
    %908 = tpu.matmul %907, %891, %cst_450 {dimension_numbers = #tpu.dot_dimension_numbers<[1], [0], [0], [1], [0, 0, 1, 1], [], []>} : vector<2x4xf32>, vector<4x256xf32>, vector<2x256xf32> -> vector<2x256xf32>
    %909 = tpu.iota {dimensions = array<i32: 0>} : vector<2x4xi32>
    %910 = tpu.iota {dimensions = array<i32: 1>} : vector<2x4xi32>
    %c2_i32_451 = arith.constant 2 : i32
    %911 = vector.broadcast %c2_i32_451 : i32 to vector<2x4xi32>
    %912 = arith.muli %911, %909 : vector<2x4xi32>
    %c0_i32_452 = arith.constant 0 : i32
    %913 = vector.broadcast %c0_i32_452 : i32 to vector<2x4xi32>
    %914 = arith.addi %912, %913 : vector<2x4xi32>
    %915 = arith.cmpi eq, %910, %914 : vector<2x4xi32>
    %cst_453 = arith.constant 1.000000e+00 : f32
    %cst_454 = arith.constant 0.000000e+00 : f32
    %916 = vector.broadcast %cst_453 : f32 to vector<2x4xf32>
    %917 = vector.broadcast %cst_454 : f32 to vector<2x4xf32>
    %918 = arith.select %915, %916, %917 : vector<2x4xi1>, vector<2x4xf32>
    %cst_455 = arith.constant dense<0.000000e+00> : vector<2x256xf32>
    %919 = tpu.matmul %918, %891, %cst_455 {dimension_numbers = #tpu.dot_dimension_numbers<[1], [0], [0], [1], [0, 0, 1, 1], [], []>} : vector<2x4xf32>, vector<4x256xf32>, vector<2x256xf32> -> vector<2x256xf32>
    %920 = tpu.iota {dimensions = array<i32: 0>} : vector<2x4xi32>
    %921 = tpu.iota {dimensions = array<i32: 1>} : vector<2x4xi32>
    %c2_i32_456 = arith.constant 2 : i32
    %922 = vector.broadcast %c2_i32_456 : i32 to vector<2x4xi32>
    %923 = arith.muli %922, %920 : vector<2x4xi32>
    %c1_i32_457 = arith.constant 1 : i32
    %924 = vector.broadcast %c1_i32_457 : i32 to vector<2x4xi32>
    %925 = arith.addi %923, %924 : vector<2x4xi32>
    %926 = arith.cmpi eq, %921, %925 : vector<2x4xi32>
    %cst_458 = arith.constant 1.000000e+00 : f32
    %cst_459 = arith.constant 0.000000e+00 : f32
    %927 = vector.broadcast %cst_458 : f32 to vector<2x4xf32>
    %928 = vector.broadcast %cst_459 : f32 to vector<2x4xf32>
    %929 = arith.select %926, %927, %928 : vector<2x4xi1>, vector<2x4xf32>
    %cst_460 = arith.constant dense<0.000000e+00> : vector<2x256xf32>
    %930 = tpu.matmul %929, %891, %cst_460 {dimension_numbers = #tpu.dot_dimension_numbers<[1], [0], [0], [1], [0, 0, 1, 1], [], []>} : vector<2x4xf32>, vector<4x256xf32>, vector<2x256xf32> -> vector<2x256xf32>
    %931 = arith.maximumf %908, %919 : vector<2x256xf32>
    %932 = arith.maximumf %931, %930 : vector<2x256xf32>
    %933 = tpu.iota {dimensions = array<i32: 0>} : vector<2x4xi32>
    %934 = tpu.iota {dimensions = array<i32: 1>} : vector<2x4xi32>
    %c2_i32_461 = arith.constant 2 : i32
    %935 = vector.broadcast %c2_i32_461 : i32 to vector<2x4xi32>
    %936 = arith.muli %935, %933 : vector<2x4xi32>
    %c-1_i32_462 = arith.constant -1 : i32
    %937 = vector.broadcast %c-1_i32_462 : i32 to vector<2x4xi32>
    %938 = arith.addi %936, %937 : vector<2x4xi32>
    %939 = arith.cmpi eq, %934, %938 : vector<2x4xi32>
    %cst_463 = arith.constant 1.000000e+00 : f32
    %cst_464 = arith.constant 0.000000e+00 : f32
    %940 = vector.broadcast %cst_463 : f32 to vector<2x4xf32>
    %941 = vector.broadcast %cst_464 : f32 to vector<2x4xf32>
    %942 = arith.select %939, %940, %941 : vector<2x4xi1>, vector<2x4xf32>
    %cst_465 = arith.constant dense<0.000000e+00> : vector<2x256xf32>
    %943 = tpu.matmul %942, %897, %cst_465 {dimension_numbers = #tpu.dot_dimension_numbers<[1], [0], [0], [1], [0, 0, 1, 1], [], []>} : vector<2x4xf32>, vector<4x256xf32>, vector<2x256xf32> -> vector<2x256xf32>
    %944 = tpu.iota {dimensions = array<i32: 0>} : vector<2x4xi32>
    %945 = tpu.iota {dimensions = array<i32: 1>} : vector<2x4xi32>
    %c2_i32_466 = arith.constant 2 : i32
    %946 = vector.broadcast %c2_i32_466 : i32 to vector<2x4xi32>
    %947 = arith.muli %946, %944 : vector<2x4xi32>
    %c0_i32_467 = arith.constant 0 : i32
    %948 = vector.broadcast %c0_i32_467 : i32 to vector<2x4xi32>
    %949 = arith.addi %947, %948 : vector<2x4xi32>
    %950 = arith.cmpi eq, %945, %949 : vector<2x4xi32>
    %cst_468 = arith.constant 1.000000e+00 : f32
    %cst_469 = arith.constant 0.000000e+00 : f32
    %951 = vector.broadcast %cst_468 : f32 to vector<2x4xf32>
    %952 = vector.broadcast %cst_469 : f32 to vector<2x4xf32>
    %953 = arith.select %950, %951, %952 : vector<2x4xi1>, vector<2x4xf32>
    %cst_470 = arith.constant dense<0.000000e+00> : vector<2x256xf32>
    %954 = tpu.matmul %953, %897, %cst_470 {dimension_numbers = #tpu.dot_dimension_numbers<[1], [0], [0], [1], [0, 0, 1, 1], [], []>} : vector<2x4xf32>, vector<4x256xf32>, vector<2x256xf32> -> vector<2x256xf32>
    %955 = tpu.iota {dimensions = array<i32: 0>} : vector<2x4xi32>
    %956 = tpu.iota {dimensions = array<i32: 1>} : vector<2x4xi32>
    %c2_i32_471 = arith.constant 2 : i32
    %957 = vector.broadcast %c2_i32_471 : i32 to vector<2x4xi32>
    %958 = arith.muli %957, %955 : vector<2x4xi32>
    %c1_i32_472 = arith.constant 1 : i32
    %959 = vector.broadcast %c1_i32_472 : i32 to vector<2x4xi32>
    %960 = arith.addi %958, %959 : vector<2x4xi32>
    %961 = arith.cmpi eq, %956, %960 : vector<2x4xi32>
    %cst_473 = arith.constant 1.000000e+00 : f32
    %cst_474 = arith.constant 0.000000e+00 : f32
    %962 = vector.broadcast %cst_473 : f32 to vector<2x4xf32>
    %963 = vector.broadcast %cst_474 : f32 to vector<2x4xf32>
    %964 = arith.select %961, %962, %963 : vector<2x4xi1>, vector<2x4xf32>
    %cst_475 = arith.constant dense<0.000000e+00> : vector<2x256xf32>
    %965 = tpu.matmul %964, %897, %cst_475 {dimension_numbers = #tpu.dot_dimension_numbers<[1], [0], [0], [1], [0, 0, 1, 1], [], []>} : vector<2x4xf32>, vector<4x256xf32>, vector<2x256xf32> -> vector<2x256xf32>
    %966 = arith.maximumf %943, %954 : vector<2x256xf32>
    %967 = arith.maximumf %966, %965 : vector<2x256xf32>
    %c0_476 = arith.constant 0 : index
    %c0_477 = arith.constant 0 : index
    %968 = vector.load %arg13[%c0_476, %c0_477] : memref<1x256xf32, #tpu.memory_space<vmem>>, vector<1x256xf32>
    %969 = vector.extract_strided_slice %932 {offsets = [0, 0], sizes = [1, 256], strides = [1, 1]} : vector<2x256xf32> to vector<1x256xf32>
    %c0_478 = arith.constant 0 : index
    %c0_479 = arith.constant 0 : index
    %c0_480 = arith.constant 0 : index
    %970 = vector.load %arg12[%c0_478, %c0_479, %c0_480] : memref<2x256x256xf32, #tpu.memory_space<vmem>>, vector<1x256x256xf32>
    %971 = vector.shape_cast %970 : vector<1x256x256xf32> to vector<256x256xf32>
    %cst_481 = arith.constant dense<0.000000e+00> : vector<1x256xf32>
    %972 = tpu.matmul %969, %971, %cst_481 {dimension_numbers = #tpu.dot_dimension_numbers<[1], [0], [0], [1], [0, 0, 1, 1], [], []>} : vector<1x256xf32>, vector<256x256xf32>, vector<1x256xf32> -> vector<1x256xf32>
    %973 = arith.addf %968, %972 : vector<1x256xf32>
    %974 = vector.extract_strided_slice %932 {offsets = [1, 0], sizes = [1, 256], strides = [1, 1]} : vector<2x256xf32> to vector<1x256xf32>
    %c1_482 = arith.constant 1 : index
    %c0_483 = arith.constant 0 : index
    %c0_484 = arith.constant 0 : index
    %975 = vector.load %arg12[%c1_482, %c0_483, %c0_484] : memref<2x256x256xf32, #tpu.memory_space<vmem>>, vector<1x256x256xf32>
    %976 = vector.shape_cast %975 : vector<1x256x256xf32> to vector<256x256xf32>
    %cst_485 = arith.constant dense<0.000000e+00> : vector<1x256xf32>
    %977 = tpu.matmul %974, %976, %cst_485 {dimension_numbers = #tpu.dot_dimension_numbers<[1], [0], [0], [1], [0, 0, 1, 1], [], []>} : vector<1x256xf32>, vector<256x256xf32>, vector<1x256xf32> -> vector<1x256xf32>
    %978 = arith.addf %973, %977 : vector<1x256xf32>
    %c0_486 = arith.constant 0 : index
    %c0_487 = arith.constant 0 : index
    %979 = vector.load %arg14[%c0_486, %c0_487] : memref<256x256xf32, #tpu.memory_space<vmem>>, vector<256x256xf32>
    %cst_488 = arith.constant dense<0.000000e+00> : vector<1x256xf32>
    %980 = tpu.matmul %978, %979, %cst_488 {dimension_numbers = #tpu.dot_dimension_numbers<[1], [0], [0], [1], [0, 0, 1, 1], [], []>} : vector<1x256xf32>, vector<256x256xf32>, vector<1x256xf32> -> vector<1x256xf32>
    %c0_489 = arith.constant 0 : index
    %c0_490 = arith.constant 0 : index
    %981 = vector.load %arg15[%c0_489, %c0_490] : memref<1x256xf32, #tpu.memory_space<vmem>>, vector<1x256xf32>
    %982 = arith.addf %980, %981 : vector<1x256xf32>
    %c0_491 = arith.constant 0 : index
    %c0_492 = arith.constant 0 : index
    %983 = vector.load %arg16[%c0_491, %c0_492] : memref<256x15xf32, #tpu.memory_space<vmem>>, vector<256x15xf32>
    %cst_493 = arith.constant dense<0.000000e+00> : vector<1x15xf32>
    %984 = tpu.matmul %982, %983, %cst_493 {dimension_numbers = #tpu.dot_dimension_numbers<[1], [0], [0], [1], [0, 0, 1, 1], [], []>} : vector<1x256xf32>, vector<256x15xf32>, vector<1x15xf32> -> vector<1x15xf32>
    %c0_494 = arith.constant 0 : index
    %c0_495 = arith.constant 0 : index
    %985 = vector.load %arg21[%c0_494, %c0_495] : memref<2x15xf32, #tpu.memory_space<vmem>>, vector<1x15xf32>
    tpu.vector_store %arg21[%c0_494, %c0_495], %984 {strides = array<i32>} : memref<2x15xf32, #tpu.memory_space<vmem>>, vector<1x15xf32>,
    %c0_496 = arith.constant 0 : index
    %c0_497 = arith.constant 0 : index
    %986 = vector.load %arg17[%c0_496, %c0_497] : memref<256x256xf32, #tpu.memory_space<vmem>>, vector<256x256xf32>
    %cst_498 = arith.constant dense<0.000000e+00> : vector<1x256xf32>
    %987 = tpu.matmul %982, %986, %cst_498 {dimension_numbers = #tpu.dot_dimension_numbers<[1], [0], [0], [1], [0, 0, 1, 1], [], []>} : vector<1x256xf32>, vector<256x256xf32>, vector<1x256xf32> -> vector<1x256xf32>
    %c0_499 = arith.constant 0 : index
    %c0_500 = arith.constant 0 : index
    %988 = vector.load %arg18[%c0_499, %c0_500] : memref<1x256xf32, #tpu.memory_space<vmem>>, vector<1x256xf32>
    %989 = arith.addf %987, %988 : vector<1x256xf32>
    %cst_501 = arith.constant 0.000000e+00 : f32
    %990 = vector.broadcast %cst_501 : f32 to vector<1x256xf32>
    %991 = arith.maximumf %989, %990 : vector<1x256xf32>
    %c0_502 = arith.constant 0 : index
    %c0_503 = arith.constant 0 : index
    %992 = vector.load %arg19[%c0_502, %c0_503] : memref<256x21xf32, #tpu.memory_space<vmem>>, vector<256x21xf32>
    %cst_504 = arith.constant dense<0.000000e+00> : vector<1x21xf32>
    %993 = tpu.matmul %991, %992, %cst_504 {dimension_numbers = #tpu.dot_dimension_numbers<[1], [0], [0], [1], [0, 0, 1, 1], [], []>} : vector<1x256xf32>, vector<256x21xf32>, vector<1x21xf32> -> vector<1x21xf32>
    %c0_505 = arith.constant 0 : index
    %c0_506 = arith.constant 0 : index
    %994 = vector.load %arg20[%c0_505, %c0_506] : memref<1x21xf32, #tpu.memory_space<vmem>>, vector<1x21xf32>
    %995 = arith.addf %993, %994 : vector<1x21xf32>
    %c0_507 = arith.constant 0 : index
    %c0_508 = arith.constant 0 : index
    %996 = vector.load %arg22[%c0_507, %c0_508] : memref<2x21xf32, #tpu.memory_space<vmem>>, vector<1x21xf32>
    tpu.vector_store %arg22[%c0_507, %c0_508], %995 {strides = array<i32>} : memref<2x21xf32, #tpu.memory_space<vmem>>, vector<1x21xf32>,
    %c0_509 = arith.constant 0 : index
    %c0_510 = arith.constant 0 : index
    %997 = vector.load %arg13[%c0_509, %c0_510] : memref<1x256xf32, #tpu.memory_space<vmem>>, vector<1x256xf32>
    %998 = vector.extract_strided_slice %967 {offsets = [0, 0], sizes = [1, 256], strides = [1, 1]} : vector<2x256xf32> to vector<1x256xf32>
    %c0_511 = arith.constant 0 : index
    %c0_512 = arith.constant 0 : index
    %c0_513 = arith.constant 0 : index
    %999 = vector.load %arg12[%c0_511, %c0_512, %c0_513] : memref<2x256x256xf32, #tpu.memory_space<vmem>>, vector<1x256x256xf32>
    %1000 = vector.shape_cast %999 : vector<1x256x256xf32> to vector<256x256xf32>
    %cst_514 = arith.constant dense<0.000000e+00> : vector<1x256xf32>
    %1001 = tpu.matmul %998, %1000, %cst_514 {dimension_numbers = #tpu.dot_dimension_numbers<[1], [0], [0], [1], [0, 0, 1, 1], [], []>} : vector<1x256xf32>, vector<256x256xf32>, vector<1x256xf32> -> vector<1x256xf32>
    %1002 = arith.addf %997, %1001 : vector<1x256xf32>
    %1003 = vector.extract_strided_slice %967 {offsets = [1, 0], sizes = [1, 256], strides = [1, 1]} : vector<2x256xf32> to vector<1x256xf32>
    %c1_515 = arith.constant 1 : index
    %c0_516 = arith.constant 0 : index
    %c0_517 = arith.constant 0 : index
    %1004 = vector.load %arg12[%c1_515, %c0_516, %c0_517] : memref<2x256x256xf32, #tpu.memory_space<vmem>>, vector<1x256x256xf32>
    %1005 = vector.shape_cast %1004 : vector<1x256x256xf32> to vector<256x256xf32>
    %cst_518 = arith.constant dense<0.000000e+00> : vector<1x256xf32>
    %1006 = tpu.matmul %1003, %1005, %cst_518 {dimension_numbers = #tpu.dot_dimension_numbers<[1], [0], [0], [1], [0, 0, 1, 1], [], []>} : vector<1x256xf32>, vector<256x256xf32>, vector<1x256xf32> -> vector<1x256xf32>
    %1007 = arith.addf %1002, %1006 : vector<1x256xf32>
    %c0_519 = arith.constant 0 : index
    %c0_520 = arith.constant 0 : index
    %1008 = vector.load %arg14[%c0_519, %c0_520] : memref<256x256xf32, #tpu.memory_space<vmem>>, vector<256x256xf32>
    %cst_521 = arith.constant dense<0.000000e+00> : vector<1x256xf32>
    %1009 = tpu.matmul %1007, %1008, %cst_521 {dimension_numbers = #tpu.dot_dimension_numbers<[1], [0], [0], [1], [0, 0, 1, 1], [], []>} : vector<1x256xf32>, vector<256x256xf32>, vector<1x256xf32> -> vector<1x256xf32>
    %c0_522 = arith.constant 0 : index
    %c0_523 = arith.constant 0 : index
    %1010 = vector.load %arg15[%c0_522, %c0_523] : memref<1x256xf32, #tpu.memory_space<vmem>>, vector<1x256xf32>
    %1011 = arith.addf %1009, %1010 : vector<1x256xf32>
    %c0_524 = arith.constant 0 : index
    %c0_525 = arith.constant 0 : index
    %1012 = vector.load %arg16[%c0_524, %c0_525] : memref<256x15xf32, #tpu.memory_space<vmem>>, vector<256x15xf32>
    %cst_526 = arith.constant dense<0.000000e+00> : vector<1x15xf32>
    %1013 = tpu.matmul %1011, %1012, %cst_526 {dimension_numbers = #tpu.dot_dimension_numbers<[1], [0], [0], [1], [0, 0, 1, 1], [], []>} : vector<1x256xf32>, vector<256x15xf32>, vector<1x15xf32> -> vector<1x15xf32>
    %c1_527 = arith.constant 1 : index
    %c0_528 = arith.constant 0 : index
    %1014 = vector.load %arg21[%c1_527, %c0_528] : memref<2x15xf32, #tpu.memory_space<vmem>>, vector<1x15xf32>
    tpu.vector_store %arg21[%c1_527, %c0_528], %1013 {strides = array<i32>} : memref<2x15xf32, #tpu.memory_space<vmem>>, vector<1x15xf32>,
    %c0_529 = arith.constant 0 : index
    %c0_530 = arith.constant 0 : index
    %1015 = vector.load %arg17[%c0_529, %c0_530] : memref<256x256xf32, #tpu.memory_space<vmem>>, vector<256x256xf32>
    %cst_531 = arith.constant dense<0.000000e+00> : vector<1x256xf32>
    %1016 = tpu.matmul %1011, %1015, %cst_531 {dimension_numbers = #tpu.dot_dimension_numbers<[1], [0], [0], [1], [0, 0, 1, 1], [], []>} : vector<1x256xf32>, vector<256x256xf32>, vector<1x256xf32> -> vector<1x256xf32>
    %c0_532 = arith.constant 0 : index
    %c0_533 = arith.constant 0 : index
    %1017 = vector.load %arg18[%c0_532, %c0_533] : memref<1x256xf32, #tpu.memory_space<vmem>>, vector<1x256xf32>
    %1018 = arith.addf %1016, %1017 : vector<1x256xf32>
    %cst_534 = arith.constant 0.000000e+00 : f32
    %1019 = vector.broadcast %cst_534 : f32 to vector<1x256xf32>
    %1020 = arith.maximumf %1018, %1019 : vector<1x256xf32>
    %c0_535 = arith.constant 0 : index
    %c0_536 = arith.constant 0 : index
    %1021 = vector.load %arg19[%c0_535, %c0_536] : memref<256x21xf32, #tpu.memory_space<vmem>>, vector<256x21xf32>
    %cst_537 = arith.constant dense<0.000000e+00> : vector<1x21xf32>
    %1022 = tpu.matmul %1020, %1021, %cst_537 {dimension_numbers = #tpu.dot_dimension_numbers<[1], [0], [0], [1], [0, 0, 1, 1], [], []>} : vector<1x256xf32>, vector<256x21xf32>, vector<1x21xf32> -> vector<1x21xf32>
    %c0_538 = arith.constant 0 : index
    %c0_539 = arith.constant 0 : index
    %1023 = vector.load %arg20[%c0_538, %c0_539] : memref<1x21xf32, #tpu.memory_space<vmem>>, vector<1x21xf32>
    %1024 = arith.addf %1022, %1023 : vector<1x21xf32>
    %c1_540 = arith.constant 1 : index
    %c0_541 = arith.constant 0 : index
    %1025 = vector.load %arg22[%c1_540, %c0_541] : memref<2x21xf32, #tpu.memory_space<vmem>>, vector<1x21xf32>
    tpu.vector_store %arg22[%c1_540, %c0_541], %1024 {strides = array<i32>} : memref<2x21xf32, #tpu.memory_space<vmem>>, vector<1x21xf32>,
    return
  }
  func.func @transform_0(%arg0: i32) -> (i32, i32) {
    %c0_i32 = arith.constant 0 : i32
    %c0_i32_0 = arith.constant 0 : i32
    %c0_i32_1 = arith.constant 0 : i32
    return %c0_i32, %c0_i32_0 : i32, i32
  }
  func.func @transform_1(%arg0: i32) -> (i32, i32) {
    %c0_i32 = arith.constant 0 : i32
    %c0_i32_0 = arith.constant 0 : i32
    %c0_i32_1 = arith.constant 0 : i32
    return %c0_i32, %c0_i32_0 : i32, i32
  }
  func.func @transform_2(%arg0: i32) -> (i32, i32) {
    %c0_i32 = arith.constant 0 : i32
    %c0_i32_0 = arith.constant 0 : i32
    %c0_i32_1 = arith.constant 0 : i32
    return %c0_i32, %c0_i32_0 : i32, i32
  }
  func.func @transform_3(%arg0: i32) -> (i32, i32, i32) {
    %c0_i32 = arith.constant 0 : i32
    %c0_i32_0 = arith.constant 0 : i32
    %c0_i32_1 = arith.constant 0 : i32
    %c0_i32_2 = arith.constant 0 : i32
    return %c0_i32, %c0_i32_0, %c0_i32_1 : i32, i32, i32
  }
  func.func @transform_4(%arg0: i32) -> (i32, i32) {
    %c0_i32 = arith.constant 0 : i32
    %c0_i32_0 = arith.constant 0 : i32
    %c0_i32_1 = arith.constant 0 : i32
    return %c0_i32, %c0_i32_0 : i32, i32
  }
  func.func @transform_5(%arg0: i32) -> (i32, i32, i32) {
    %c0_i32 = arith.constant 0 : i32
    %c0_i32_0 = arith.constant 0 : i32
    %c0_i32_1 = arith.constant 0 : i32
    %c0_i32_2 = arith.constant 0 : i32
    return %c0_i32, %c0_i32_0, %c0_i32_1 : i32, i32, i32
  }
  func.func @transform_6(%arg0: i32) -> (i32, i32) {
    %c0_i32 = arith.constant 0 : i32
    %c0_i32_0 = arith.constant 0 : i32
    %c0_i32_1 = arith.constant 0 : i32
    return %c0_i32, %c0_i32_0 : i32, i32
  }
  func.func @transform_7(%arg0: i32) -> (i32, i32, i32) {
    %c0_i32 = arith.constant 0 : i32
    %c0_i32_0 = arith.constant 0 : i32
    %c0_i32_1 = arith.constant 0 : i32
    %c0_i32_2 = arith.constant 0 : i32
    return %c0_i32, %c0_i32_0, %c0_i32_1 : i32, i32, i32
  }
  func.func @transform_8(%arg0: i32) -> (i32, i32) {
    %c0_i32 = arith.constant 0 : i32
    %c0_i32_0 = arith.constant 0 : i32
    %c0_i32_1 = arith.constant 0 : i32
    return %c0_i32, %c0_i32_0 : i32, i32
  }
  func.func @transform_9(%arg0: i32) -> (i32, i32, i32) {
    %c0_i32 = arith.constant 0 : i32
    %c0_i32_0 = arith.constant 0 : i32
    %c0_i32_1 = arith.constant 0 : i32
    %c0_i32_2 = arith.constant 0 : i32
    return %c0_i32, %c0_i32_0, %c0_i32_1 : i32, i32, i32
  }
  func.func @transform_10(%arg0: i32) -> (i32, i32) {
    %c0_i32 = arith.constant 0 : i32
    %c0_i32_0 = arith.constant 0 : i32
    %c0_i32_1 = arith.constant 0 : i32
    return %c0_i32, %c0_i32_0 : i32, i32
  }
  func.func @transform_11(%arg0: i32) -> (i32, i32, i32) {
    %c0_i32 = arith.constant 0 : i32
    %c0_i32_0 = arith.constant 0 : i32
    %c0_i32_1 = arith.constant 0 : i32
    %c0_i32_2 = arith.constant 0 : i32
    return %c0_i32, %c0_i32_0, %c0_i32_1 : i32, i32, i32
  }
  func.func @transform_12(%arg0: i32) -> (i32, i32) {
    %c0_i32 = arith.constant 0 : i32
    %c0_i32_0 = arith.constant 0 : i32
    %c0_i32_1 = arith.constant 0 : i32
    return %c0_i32, %c0_i32_0 : i32, i32
  }
  func.func @transform_13(%arg0: i32) -> (i32, i32) {
    %c0_i32 = arith.constant 0 : i32
    %c0_i32_0 = arith.constant 0 : i32
    %c0_i32_1 = arith.constant 0 : i32
    return %c0_i32, %c0_i32_0 : i32, i32
  }
  func.func @transform_14(%arg0: i32) -> (i32, i32) {
    %c0_i32 = arith.constant 0 : i32
    %c0_i32_0 = arith.constant 0 : i32
    %c0_i32_1 = arith.constant 0 : i32
    return %c0_i32, %c0_i32_0 : i32, i32
  }
  func.func @transform_15(%arg0: i32) -> (i32, i32) {
    %c0_i32 = arith.constant 0 : i32
    %c0_i32_0 = arith.constant 0 : i32
    %c0_i32_1 = arith.constant 0 : i32
    return %c0_i32, %c0_i32_0 : i32, i32
  }
  func.func @transform_16(%arg0: i32) -> (i32, i32) {
    %c0_i32 = arith.constant 0 : i32
    %c0_i32_0 = arith.constant 0 : i32
    %c0_i32_1 = arith.constant 0 : i32
    return %c0_i32, %c0_i32_0 : i32, i32
  }
  func.func @transform_17(%arg0: i32) -> (i32, i32) {
    %c0_i32 = arith.constant 0 : i32
    %c0_i32_0 = arith.constant 0 : i32
    %c0_i32_1 = arith.constant 0 : i32
    return %c0_i32, %c0_i32_0 : i32, i32
  }
  func.func @transform_18(%arg0: i32) -> (i32, i32) {
    %c0_i32 = arith.constant 0 : i32
    %c0_i32_0 = arith.constant 0 : i32
    %c0_i32_1 = arith.constant 0 : i32
    return %c0_i32, %c0_i32_0 : i32, i32
  }
  func.func @transform_19(%arg0: i32) -> (i32, i32) {
    %c0_i32 = arith.constant 0 : i32
    %c0_i32_0 = arith.constant 0 : i32
    %c0_i32_1 = arith.constant 0 : i32
    return %c0_i32, %c0_i32_0 : i32, i32
  }
  func.func @transform_20(%arg0: i32) -> (i32, i32) {
    %c0_i32 = arith.constant 0 : i32
    %c0_i32_0 = arith.constant 0 : i32
    %c0_i32_1 = arith.constant 0 : i32
    return %c0_i32, %c0_i32_0 : i32, i32
  }
  func.func @transform_21(%arg0: i32) -> (i32, i32) {
    %c0_i32 = arith.constant 0 : i32
    %c0_i32_0 = arith.constant 0 : i32
    %c0_i32_1 = arith.constant 0 : i32
    return %c0_i32, %c0_i32_0 : i32, i32
  }
}

</mosaic_0001>

<bundles_post_ra>
// kernel: seeg_forward.1
= control target key start
LH: loop header
LB: loop body
LE: loop exit
PB: predicated region body
PF: predicated region fallthrough
CT: control target
= control target key end

     0   :  { %s22791_s0 = inlined_call_operand.vmem [shape: f32[64,1792], index: 0, kind: input, shape index: {}]   ;;  %s22792_s1 = inlined_call_operand.vmem [shape: f32[1792,64], index: 1, kind: input, shape index: {}]   ;;  %s22793_s2 = inlined_call_operand.vmem [shape: f32[1,64], index: 2, kind: input, shape index: {}]   ;;  %s22794_s3 = inlined_call_operand.vmem [shape: f32[7,64,128], index: 3, kind: input, shape index: {}]   ;;  %s22795_s4 = inlined_call_operand.vmem [shape: f32[1,128], index: 4, kind: input, shape index: {}]   ;;  %s22796_s5 = inlined_call_operand.vmem [shape: f32[5,128,128], index: 5, kind: input, shape index: {}]   ;;  %s22797_s6 = inlined_call_operand.vmem [shape: f32[1,128], index: 6, kind: input, shape index: {}]   ;;  %s22798_s7 = inlined_call_operand.vmem [shape: f32[3,128,256], index: 7, kind: input, shape index: {}]   ;;  %s22799_s8 = inlined_call_operand.vmem [shape: f32[1,256], index: 8, kind: input, shape index: {}]   ;;  %s22800_s9 = inlined_call_operand.vmem [shape: f32[3,256,256], index: 9, kind: input, shape index: {}]   ;;  %s22801_s10 = inlined_call_operand.vmem [shape: f32[1,256], index: 10, kind: input, shape index: {}]   ;;  %s22802_s11 = inlined_call_operand.vmem [shape: f32[2,256,256], index: 11, kind: input, shape index: {}]   ;;  %s22803_s12 = inlined_call_operand.vmem [shape: f32[1,256], index: 12, kind: input, shape index: {}]   ;;  %s22804_s13 = inlined_call_operand.vmem [shape: f32[256,256], index: 13, kind: input, shape index: {}]   ;;  %s22805_s14 = inlined_call_operand.vmem [shape: f32[1,256], index: 14, kind: input, shape index: {}]   ;;  %s22806_s15 = inlined_call_operand.vmem [shape: f32[256,15], index: 15, kind: input, shape index: {}]   ;;  %s22807_s16 = inlined_call_operand.vmem [shape: f32[256,256], index: 16, kind: input, shape index: {}]   ;;  %s22808_s17 = inlined_call_operand.vmem [shape: f32[1,256], index: 17, kind: input, shape index: {}]   ;;  %s22809_s18 = inlined_call_operand.vmem [shape: f32[256,21], index: 18, kind: input, shape index: {}]   ;;  %s22810_s19 = inlined_call_operand.vmem [shape: f32[1,21], index: 19, kind: input, shape index: {}]   ;;  %s22811_s20 = inlined_call_operand.hbm [shape: f32[2,15], index: 20, kind: output, shape index: {0}]   ;;  %s22812_s21 = inlined_call_operand.hbm [shape: f32[2,21], index: 21, kind: output, shape index: {1}]  }
   0x1   :  { %22883 = sst [smem:[#allocation59_spill]] %s22791_s0 }
   0x2   :  { %22884 = sst [smem:[#allocation60_spill]] %s22792_s1 }
   0x3   :  { %22885 = sst [smem:[#allocation61_spill]] %s22793_s2 }
   0x4   :  { %22886 = sst [smem:[#allocation62_spill]] %s22794_s3 }
   0x5   :  { %22887 = sst [smem:[#allocation63_spill]] %s22795_s4 }
   0x6   :  { %22888 = sst [smem:[#allocation64_spill]] %s22796_s5 }
   0x7   :  { %27 = vsyncpa [#allocation3], 0  ;;  %s22889_s26 = sld [smem:[#allocation60_spill]]  ;;  %s22890_s22 = sld [smem:[#allocation59_spill]] }
   0xd   :  { %v197_v0 = vld [vmem:[%s22889_s26 + $0x80] sm:$0xff]  ;;  %v198_v1 = vld [vmem:[%s22889_s26 + $0x88] sm:$0xff]  ;;  %v199_v11 = vld [vmem:[%s22889_s26 + $0x90] sm:$0xff] }
   0xe   :  { %v181_v2 = vld [vmem:[%s22889_s26] sm:$0xff]  ;;  %v14192_v3 = vpack.c.bf16 %v198_v1, %v197_v0  ;;  %v182_v4 = vld [vmem:[%s22889_s26 + $0x8] sm:$0xff]  ;;  %v200_v13 = vld [vmem:[%s22889_s26 + $0x98] sm:$0xff] }
   0xf   :  { %v229_v5 = vld [vmem:[%s22889_s26 + $0x180] sm:$0xff]  ;;  %v230_v6 = vld [vmem:[%s22889_s26 + $0x188] sm:$0xff]  ;;  %v14194_v7 = vpack.c.bf16 %v182_v4, %v181_v2  ;;  %v183_v14 = vld [vmem:[%s22889_s26 + $0x10] sm:$0xff]  ;;  %v14196_v16 = vpack.c.bf16 %v200_v13, %v199_v11 }
  0x10   :  { %v14224_v8 = vpack.c.bf16 %v230_v6, %v229_v5  ;;  %v213_v9 = vld [vmem:[%s22889_s26 + $0x100] sm:$0xff]  ;;  %v214_v10 = vld [vmem:[%s22889_s26 + $0x108] sm:$0xff]  ;;  %14193 = vmatprep.subr.bf16.mxu0 %v14192_v3  ;;  %v184_v15 = vld [vmem:[%s22889_s26 + $0x18] sm:$0xff] }
  0x11   :  { %v14226_v12 = vpack.c.bf16 %v214_v10, %v213_v9  ;;  %14195 = vmatpush3.bf16.msra.mxu0 %v14194_v7  ;;  %v14198_v17 = vpack.c.bf16 %v184_v15, %v183_v14  ;;  %v231_v18 = vld [vmem:[%s22889_s26 + $0x190] sm:$0xff]  ;;  %v232_v19 = vld [vmem:[%s22889_s26 + $0x198] sm:$0xff]  ;;  %v201_v23 = vld [vmem:[%s22889_s26 + $0xa0] sm:$0xff] }
  0x12   :  { %14225 = vmatprep.subr.bf16.mxu1 %v14224_v8  ;;  %v215_v20 = vld [vmem:[%s22889_s26 + $0x110] sm:$0xff]  ;;  %v14228_v21 = vpack.c.bf16 %v232_v19, %v231_v18  ;;  %v216_v22 = vld [vmem:[%s22889_s26 + $0x118] sm:$0xff]  ;;  %v202_v24 = vld [vmem:[%s22889_s26 + $0xa8] sm:$0xff]  ;;  %14197 = vmatprep.subr.bf16.mxu0 %v14196_v16 }
  0x13   :  { %14227 = vmatpush3.bf16.msra.mxu1 %v14226_v12  ;;  %v14230_v25 = vpack.c.bf16 %v216_v22, %v215_v20  ;;  %v14200_v26 = vpack.c.bf16 %v202_v24, %v201_v23  ;;  %v185_v27 = vld [vmem:[%s22889_s26 + $0x20] sm:$0xff]  ;;  %v186_v28 = vld [vmem:[%s22889_s26 + $0x28] sm:$0xff]  ;;  %v203_v35 = vld [vmem:[%s22889_s26 + $0xb0] sm:$0xff] }
  0x14   :  { %v233_v29 = vld [vmem:[%s22889_s26 + $0x1a0] sm:$0xff]  ;;  %14229 = vmatprep.subr.bf16.mxu1 %v14228_v21  ;;  %v234_v30 = vld [vmem:[%s22889_s26 + $0x1a8] sm:$0xff]  ;;  %v14202_v33 = vpack.c.bf16 %v186_v28, %v185_v27  ;;  %v204_v36 = vld [vmem:[%s22889_s26 + $0xb8] sm:$0xff] }
  0x15   :  { %v217_v31 = vld [vmem:[%s22889_s26 + $0x120] sm:$0xff]  ;;  %v218_v32 = vld [vmem:[%s22889_s26 + $0x128] sm:$0xff]  ;;  %14199 = vmatpush3.bf16.msra.mxu0 %v14198_v17  ;;  %v14232_v34 = vpack.c.bf16 %v234_v30, %v233_v29  ;;  %v187_v37 = vld [vmem:[%s22889_s26 + $0x30] sm:$0xff]  ;;  %v14204_v39 = vpack.c.bf16 %v204_v36, %v203_v35 }
  0x16   :  { %14201 = vmatprep.subr.bf16.mxu0 %v14200_v26  ;;  %v14234_v38 = vpack.c.bf16 %v218_v32, %v217_v31  ;;  %v188_v40 = vld [vmem:[%s22889_s26 + $0x38] sm:$0xff]  ;;  %v235_v41 = vld [vmem:[%s22889_s26 + $0x1b0] sm:$0xff]  ;;  %v205_v46 = vld [vmem:[%s22889_s26 + $0xc0] sm:$0xff] }
  0x17   :  { %14231 = vmatpush3.bf16.msra.mxu1 %v14230_v25  ;;  %v236_v42 = vld [vmem:[%s22889_s26 + $0x1b8] sm:$0xff]  ;;  %v219_v44 = vld [vmem:[%s22889_s26 + $0x130] sm:$0xff]  ;;  %v206_v47 = vld [vmem:[%s22889_s26 + $0xc8] sm:$0xff]  ;;  %v14206_v48 = vpack.c.bf16 %v188_v40, %v187_v37 }
  0x18   :  { %14233 = vmatprep.subr.bf16.mxu1 %v14232_v34  ;;  %v14236_v43 = vpack.c.bf16 %v236_v42, %v235_v41  ;;  %v220_v45 = vld [vmem:[%s22889_s26 + $0x138] sm:$0xff]  ;;  %v237_v49 = vld [vmem:[%s22889_s26 + $0x1c0] sm:$0xff]  ;;  %v238_v50 = vld [vmem:[%s22889_s26 + $0x1c8] sm:$0xff]  ;;  %v14208_v52 = vpack.c.bf16 %v206_v47, %v205_v46 }
  0x19   :  { %14203 = vmatpush3.bf16.msra.mxu0 %v14202_v33  ;;  %v14238_v51 = vpack.c.bf16 %v220_v45, %v219_v44  ;;  %v189_v53 = vld [vmem:[%s22889_s26 + $0x40] sm:$0xff]  ;;  %v190_v54 = vld [vmem:[%s22889_s26 + $0x48] sm:$0xff]  ;;  %v14240_v56 = vpack.c.bf16 %v238_v50, %v237_v49  ;;  %v207_v58 = vld [vmem:[%s22889_s26 + $0xd0] sm:$0xff] }
  0x1a   :  { %14205 = vmatprep.subr.bf16.mxu0 %v14204_v39  ;;  %v221_v55 = vld [vmem:[%s22889_s26 + $0x140] sm:$0xff]  ;;  %v222_v57 = vld [vmem:[%s22889_s26 + $0x148] sm:$0xff]  ;;  %v208_v59 = vld [vmem:[%s22889_s26 + $0xd8] sm:$0xff]  ;;  %v14210_v62 = vpack.c.bf16 %v190_v54, %v189_v53 }
  0x1b   :  { %14235 = vmatpush3.bf16.msra.mxu1 %v14234_v38  ;;  %v239_v60 = vld [vmem:[%s22889_s26 + $0x1d0] sm:$0xff]  ;;  %v240_v61 = vld [vmem:[%s22889_s26 + $0x1d8] sm:$0xff]  ;;  %v14242_v63 = vpack.c.bf16 %v222_v57, %v221_v55  ;;  %v14212_v0 = vpack.c.bf16 %v208_v59, %v207_v58  ;;  %v209_v6 = vld [vmem:[%s22889_s26 + $0xe0] sm:$0xff] }
  0x1c   :  { %14237 = vmatprep.subr.bf16.mxu1 %v14236_v43  ;;  %v191_v1 = vld [vmem:[%s22889_s26 + $0x50] sm:$0xff]  ;;  %v192_v2 = vld [vmem:[%s22889_s26 + $0x58] sm:$0xff]  ;;  %v14244_v4 = vpack.c.bf16 %v240_v61, %v239_v60  ;;  %v210_v7 = vld [vmem:[%s22889_s26 + $0xe8] sm:$0xff] }
  0x1d   :  { %14207 = vmatpush3.bf16.msra.mxu0 %v14206_v48  ;;  %v223_v3 = vld [vmem:[%s22889_s26 + $0x150] sm:$0xff]  ;;  %v224_v5 = vld [vmem:[%s22889_s26 + $0x158] sm:$0xff]  ;;  %v241_v8 = vld [vmem:[%s22889_s26 + $0x1e0] sm:$0xff]  ;;  %v14214_v10 = vpack.c.bf16 %v192_v2, %v191_v1  ;;  %v14216_v14 = vpack.c.bf16 %v210_v7, %v209_v6 }
  0x1e   :  { %14209 = vmatprep.subr.bf16.mxu0 %v14208_v52  ;;  %v242_v9 = vld [vmem:[%s22889_s26 + $0x1e8] sm:$0xff]  ;;  %v193_v11 = vld [vmem:[%s22889_s26 + $0x60] sm:$0xff]  ;;  %v14246_v13 = vpack.c.bf16 %v224_v5, %v223_v3  ;;  %v211_v19 = vld [vmem:[%s22889_s26 + $0xf0] sm:$0xff] }
  0x1f   :  { %14239 = vmatpush3.bf16.msra.mxu1 %v14238_v51  ;;  %v70_v12 = vld [vmem:[%s22890_s22 + $0x8] sm:$0xff]  ;;  %v225_v16 = vld [vmem:[%s22889_s26 + $0x160] sm:$0xff]  ;;  %v14248_v18 = vpack.c.bf16 %v242_v9, %v241_v8  ;;  %v212_v20 = vld [vmem:[%s22889_s26 + $0xf8] sm:$0xff] }
  0x20   :  { %14241 = vmatprep.subr.bf16.mxu1 %v14240_v56  ;;  %v194_v15 = vld [vmem:[%s22889_s26 + $0x68] sm:$0xff]  ;;  %476 = vmatprep.mubr.f32.mxu0 %v70_v12  ;;  %v72_v21 = vld [vmem:[%s22890_s22 + $0x18] sm:$0xff]  ;;  %v243_v22 = vld [vmem:[%s22889_s26 + $0x1f0] sm:$0xff]  ;;  %v14220_v26 = vpack.c.bf16 %v212_v20, %v211_v19 }
  0x21   :  { %14211 = vmatpush3.bf16.msra.mxu0 %v14210_v62  ;;  %v226_v17 = vld [vmem:[%s22889_s26 + $0x168] sm:$0xff]  ;;  %v244_v23 = vld [vmem:[%s22889_s26 + $0x1f8] sm:$0xff]  ;;  %581 = vmatprep.mubr.f32.mxu1 %v72_v21  ;;  %v14218_v24 = vpack.c.bf16 %v194_v15, %v193_v11  ;;  %v195_v27 = vld [vmem:[%s22889_s26 + $0x70] sm:$0xff] }
  0x22   :  { %14213 = vmatprep.subr.bf16.mxu0 %v14212_v0  ;;  %v14250_v25 = vpack.c.bf16 %v226_v17, %v225_v16  ;;  %v196_v28 = vld [vmem:[%s22889_s26 + $0x78] sm:$0xff]  ;;  %v227_v29 = vld [vmem:[%s22889_s26 + $0x170] sm:$0xff]  ;;  %v14252_v30 = vpack.c.bf16 %v244_v23, %v243_v22  ;;  %v261_v32 = vld [vmem:[%s22889_s26 + $0x280] sm:$0xff] }
  0x23   :  { %14243 = vmatpush3.bf16.msra.mxu1 %v14242_v63  ;;  %v228_v31 = vld [vmem:[%s22889_s26 + $0x178] sm:$0xff]  ;;  %v262_v33 = vld [vmem:[%s22889_s26 + $0x288] sm:$0xff]  ;;  %v293_v34 = vld [vmem:[%s22889_s26 + $0x380] sm:$0xff]  ;;  %v14222_v36 = vpack.c.bf16 %v196_v28, %v195_v27 }
  0x24   :  { %14245 = vmatprep.subr.bf16.mxu1 %v14244_v4  ;;  %v294_v35 = vld [vmem:[%s22889_s26 + $0x388] sm:$0xff]  ;;  %v14254_v37 = vpack.c.bf16 %v228_v31, %v227_v29  ;;  %v14256_v38 = vpack.c.bf16 %v262_v33, %v261_v32  ;;  %v245_v39 = vld [vmem:[%s22889_s26 + $0x200] sm:$0xff]  ;;  %v263_v44 = vld [vmem:[%s22889_s26 + $0x290] sm:$0xff] }
  0x25   :  { %14215 = vmatpush3.bf16.msra.mxu0 %v14214_v10  ;;  %v246_v40 = vld [vmem:[%s22889_s26 + $0x208] sm:$0xff]  ;;  %v14288_v41 = vpack.c.bf16 %v294_v35, %v293_v34  ;;  %v277_v42 = vld [vmem:[%s22889_s26 + $0x300] sm:$0xff]  ;;  %v264_v45 = vld [vmem:[%s22889_s26 + $0x298] sm:$0xff] }
  0x26   :  { %14217 = vmatprep.subr.bf16.mxu0 %v14216_v14  ;;  %v278_v43 = vld [vmem:[%s22889_s26 + $0x308] sm:$0xff]  ;;  %v69_v46 = vld [vmem:[%s22890_s22] sm:$0xff]  ;;  %v14258_v47 = vpack.c.bf16 %v246_v40, %v245_v39  ;;  %v295_v48 = vld [vmem:[%s22889_s26 + $0x390] sm:$0xff]  ;;  %v14260_v55 = vpack.c.bf16 %v264_v45, %v263_v44 }
  0x27   :  { %14247 = vmatpush3.bf16.msra.mxu1 %v14246_v13  ;;  %v296_v49 = vld [vmem:[%s22889_s26 + $0x398] sm:$0xff]  ;;  %v71_v50 = vld [vmem:[%s22890_s22 + $0x10] sm:$0xff]  ;;  %v14290_v51 = vpack.c.bf16 %v278_v43, %v277_v42  ;;  %v86_v58 = vld [vmem:[%s22890_s22 + $0x88] sm:$0xff] }
  0x28   :  { %14249 = vmatprep.subr.bf16.mxu1 %v14248_v18  ;;  %v247_v52 = vld [vmem:[%s22889_s26 + $0x210] sm:$0xff]  ;;  %v248_v53 = vld [vmem:[%s22889_s26 + $0x218] sm:$0xff]  ;;  %v14292_v59 = vpack.c.bf16 %v296_v49, %v295_v48  ;;  %v265_v60 = vld [vmem:[%s22889_s26 + $0x2a0] sm:$0xff] }
  0x29   :  { %14219 = vmatpush3.bf16.msra.mxu0 %v14218_v24  ;;  %v84_v54 = vld [vmem:[%s22890_s22 + $0x78] sm:$0xff]  ;;  %v279_v56 = vld [vmem:[%s22889_s26 + $0x310] sm:$0xff]  ;;  %v266_v61 = vld [vmem:[%s22889_s26 + $0x2a8] sm:$0xff]  ;;  %v14262_v63 = vpack.c.bf16 %v248_v53, %v247_v52 }
  0x2a   :  { %14221 = vmatprep.subr.bf16.mxu0 %v14220_v26  ;;  %v280_v57 = vld [vmem:[%s22889_s26 + $0x318] sm:$0xff]  ;;  %v83_v62 = vld [vmem:[%s22890_s22 + $0x70] sm:$0xff]  ;;  %v297_v0 = vld [vmem:[%s22889_s26 + $0x3a0] sm:$0xff]  ;;  %v14264_v7 = vpack.c.bf16 %v266_v61, %v265_v60 }
  0x2b   :  { %14251 = vmatpush3.bf16.msra.mxu1 %v14250_v25  ;;  %v298_v1 = vld [vmem:[%s22889_s26 + $0x3a8] sm:$0xff]  ;;  %v85_v2 = vld [vmem:[%s22890_s22 + $0x80] sm:$0xff]  ;;  %v14294_v3 = vpack.c.bf16 %v280_v57, %v279_v56  ;;  %v100_v10 = vld [vmem:[%s22890_s22 + $0xf8] sm:$0xff] }
  0x2c   :  { %14253 = vmatprep.subr.bf16.mxu1 %v14252_v30  ;;  %v249_v4 = vld [vmem:[%s22889_s26 + $0x220] sm:$0xff]  ;;  %v250_v5 = vld [vmem:[%s22889_s26 + $0x228] sm:$0xff]  ;;  %v14296_v11 = vpack.c.bf16 %v298_v1, %v297_v0  ;;  %v267_v12 = vld [vmem:[%s22889_s26 + $0x2b0] sm:$0xff] }
  0x2d   :  { %14223 = vmatpush3.bf16.msra.mxu0 %v14222_v36  ;;  %v98_v6 = vld [vmem:[%s22890_s22 + $0xe8] sm:$0xff]  ;;  %v281_v8 = vld [vmem:[%s22889_s26 + $0x320] sm:$0xff]  ;;  %v268_v13 = vld [vmem:[%s22889_s26 + $0x2b8] sm:$0xff]  ;;  %v14266_v15 = vpack.c.bf16 %v250_v5, %v249_v4 }
  0x2e   :  { %14257 = vmatprep.subr.bf16.mxu0 %v14256_v38  ;;  %v282_v9 = vld [vmem:[%s22889_s26 + $0x328] sm:$0xff]  ;;  %v97_v14 = vld [vmem:[%s22890_s22 + $0xe0] sm:$0xff]  ;;  %v299_v16 = vld [vmem:[%s22889_s26 + $0x3b0] sm:$0xff]  ;;  %v14268_v23 = vpack.c.bf16 %v268_v13, %v267_v12 }
  0x2f   :  { %14255 = vmatpush3.bf16.msra.mxu1 %v14254_v37  ;;  %v300_v17 = vld [vmem:[%s22889_s26 + $0x3b8] sm:$0xff]  ;;  %v99_v18 = vld [vmem:[%s22890_s22 + $0xf0] sm:$0xff]  ;;  %v14298_v19 = vpack.c.bf16 %v282_v9, %v281_v8  ;;  %v114_v26 = vld [vmem:[%s22890_s22 + $0x168] sm:$0xff] }
  0x30   :  { %14289 = vmatprep.subr.bf16.mxu1 %v14288_v41  ;;  %477 = vmatmul.mubr.f32.vlgmr.msra.gmra.mrb[0].mxu0 %v69_v46  ;;  %v251_v20 = vld [vmem:[%s22889_s26 + $0x230] sm:$0xff]  ;;  %v252_v21 = vld [vmem:[%s22889_s26 + $0x238] sm:$0xff]  ;;  %v14300_v27 = vpack.c.bf16 %v300_v17, %v299_v16  ;;  %v269_v28 = vld [vmem:[%s22889_s26 + $0x2c0] sm:$0xff] }
  0x31   :  { %14259 = vmatpush3.bf16.msra.mxu0 %v14258_v47  ;;  %481 = vmatprep.mubr.f32.mxu0 %v84_v54  ;;  %v112_v22 = vld [vmem:[%s22890_s22 + $0x158] sm:$0xff]  ;;  %v283_v24 = vld [vmem:[%s22889_s26 + $0x330] sm:$0xff]  ;;  %v270_v29 = vld [vmem:[%s22889_s26 + $0x2c8] sm:$0xff]  ;;  %v14270_v31 = vpack.c.bf16 %v252_v21, %v251_v20 }
  0x32   :  { %582 = vmatmul.mubr.f32.vlgmr.msra.gmra.mrb[0].mxu1 %v71_v50  ;;  %14261 = vmatprep.subr.bf16.mxu0 %v14260_v55  ;;  %v284_v25 = vld [vmem:[%s22889_s26 + $0x338] sm:$0xff]  ;;  %v111_v30 = vld [vmem:[%s22890_s22 + $0x150] sm:$0xff]  ;;  %v301_v32 = vld [vmem:[%s22889_s26 + $0x3c0] sm:$0xff]  ;;  %v14272_v39 = vpack.c.bf16 %v270_v29, %v269_v28 }
  0x33   :  { %14291 = vmatpush3.bf16.msra.mxu1 %v14290_v51  ;;  %586 = vmatprep.mubr.f32.mxu1 %v86_v58  ;;  %v302_v33 = vld [vmem:[%s22889_s26 + $0x3c8] sm:$0xff]  ;;  %v113_v34 = vld [vmem:[%s22890_s22 + $0x160] sm:$0xff]  ;;  %v14302_v35 = vpack.c.bf16 %v284_v25, %v283_v24  ;;  %v128_v42 = vld [vmem:[%s22890_s22 + $0x1d8] sm:$0xff] }
  0x34   :  { %482 = vmatmul.mubr.f32.gmra.mrb[2].mxu0 %v83_v62  ;;  %14293 = vmatprep.subr.bf16.mxu1 %v14292_v59  ;;  %v253_v36 = vld [vmem:[%s22889_s26 + $0x240] sm:$0xff]  ;;  %v254_v37 = vld [vmem:[%s22889_s26 + $0x248] sm:$0xff]  ;;  %v14304_v43 = vpack.c.bf16 %v302_v33, %v301_v32  ;;  %v271_v44 = vld [vmem:[%s22889_s26 + $0x2d0] sm:$0xff] }
  0x35   :  { %14263 = vmatpush3.bf16.msra.mxu0 %v14262_v63  ;;  %486 = vmatprep.mubr.f32.mxu0 %v98_v6  ;;  %v126_v38 = vld [vmem:[%s22890_s22 + $0x1c8] sm:$0xff]  ;;  %v285_v40 = vld [vmem:[%s22889_s26 + $0x340] sm:$0xff]  ;;  %v272_v45 = vld [vmem:[%s22889_s26 + $0x2d8] sm:$0xff]  ;;  %v14274_v47 = vpack.c.bf16 %v254_v37, %v253_v36 }
  0x36   :  { %587 = vmatmul.mubr.f32.gmra.mrb[2].mxu1 %v85_v2  ;;  %14265 = vmatprep.subr.bf16.mxu0 %v14264_v7  ;;  %v286_v41 = vld [vmem:[%s22889_s26 + $0x348] sm:$0xff]  ;;  %v125_v46 = vld [vmem:[%s22890_s22 + $0x1c0] sm:$0xff]  ;;  %v303_v48 = vld [vmem:[%s22889_s26 + $0x3d0] sm:$0xff]  ;;  %v14276_v55 = vpack.c.bf16 %v272_v45, %v271_v44 }
  0x37   :  { %14295 = vmatpush3.bf16.msra.mxu1 %v14294_v3  ;;  %591 = vmatprep.mubr.f32.mxu1 %v100_v10  ;;  %v304_v49 = vld [vmem:[%s22889_s26 + $0x3d8] sm:$0xff]  ;;  %v127_v50 = vld [vmem:[%s22890_s22 + $0x1d0] sm:$0xff]  ;;  %v14306_v51 = vpack.c.bf16 %v286_v41, %v285_v40  ;;  %v142_v58 = vld [vmem:[%s22890_s22 + $0x248] sm:$0xff] }
  0x38   :  { %487 = vmatmul.mubr.f32.gmra.mrb[4].mxu0 %v97_v14  ;;  %14297 = vmatprep.subr.bf16.mxu1 %v14296_v11  ;;  %v255_v52 = vld [vmem:[%s22889_s26 + $0x250] sm:$0xff]  ;;  %v256_v53 = vld [vmem:[%s22889_s26 + $0x258] sm:$0xff]  ;;  %v14308_v59 = vpack.c.bf16 %v304_v49, %v303_v48  ;;  %v273_v60 = vld [vmem:[%s22889_s26 + $0x2e0] sm:$0xff] }
  0x39   :  { %14267 = vmatpush3.bf16.msra.mxu0 %v14266_v15  ;;  %491 = vmatprep.mubr.f32.mxu0 %v112_v22  ;;  %v140_v54 = vld [vmem:[%s22890_s22 + $0x238] sm:$0xff]  ;;  %v287_v56 = vld [vmem:[%s22889_s26 + $0x350] sm:$0xff]  ;;  %v274_v61 = vld [vmem:[%s22889_s26 + $0x2e8] sm:$0xff]  ;;  %v14278_v63 = vpack.c.bf16 %v256_v53, %v255_v52 }
  0x3a   :  { %592 = vmatmul.mubr.f32.gmra.mrb[4].mxu1 %v99_v18  ;;  %14269 = vmatprep.subr.bf16.mxu0 %v14268_v23  ;;  %v288_v57 = vld [vmem:[%s22889_s26 + $0x358] sm:$0xff]  ;;  %v139_v62 = vld [vmem:[%s22890_s22 + $0x230] sm:$0xff]  ;;  %v305_v0 = vld [vmem:[%s22889_s26 + $0x3e0] sm:$0xff]  ;;  %v14280_v7 = vpack.c.bf16 %v274_v61, %v273_v60 }
  0x3b   :  { %14299 = vmatpush3.bf16.msra.mxu1 %v14298_v19  ;;  %596 = vmatprep.mubr.f32.mxu1 %v114_v26  ;;  %v306_v1 = vld [vmem:[%s22889_s26 + $0x3e8] sm:$0xff]  ;;  %v141_v2 = vld [vmem:[%s22890_s22 + $0x240] sm:$0xff]  ;;  %v14310_v3 = vpack.c.bf16 %v288_v57, %v287_v56  ;;  %v156_v10 = vld [vmem:[%s22890_s22 + $0x2b8] sm:$0xff] }
  0x3c   :  { %492 = vmatmul.mubr.f32.gmra.mrb[6].mxu0 %v111_v30  ;;  %14301 = vmatprep.subr.bf16.mxu1 %v14300_v27  ;;  %v257_v4 = vld [vmem:[%s22889_s26 + $0x260] sm:$0xff]  ;;  %v258_v5 = vld [vmem:[%s22889_s26 + $0x268] sm:$0xff]  ;;  %v14312_v11 = vpack.c.bf16 %v306_v1, %v305_v0  ;;  %v275_v12 = vld [vmem:[%s22889_s26 + $0x2f0] sm:$0xff] }
  0x3d   :  { %14271 = vmatpush3.bf16.msra.mxu0 %v14270_v31  ;;  %496 = vmatprep.mubr.f32.mxu0 %v126_v38  ;;  %v154_v6 = vld [vmem:[%s22890_s22 + $0x2a8] sm:$0xff]  ;;  %v289_v8 = vld [vmem:[%s22889_s26 + $0x360] sm:$0xff]  ;;  %v276_v13 = vld [vmem:[%s22889_s26 + $0x2f8] sm:$0xff]  ;;  %v14282_v15 = vpack.c.bf16 %v258_v5, %v257_v4 }
  0x3e   :  { %597 = vmatmul.mubr.f32.gmra.mrb[6].mxu1 %v113_v34  ;;  %14273 = vmatprep.subr.bf16.mxu0 %v14272_v39  ;;  %v290_v9 = vld [vmem:[%s22889_s26 + $0x368] sm:$0xff]  ;;  %v153_v14 = vld [vmem:[%s22890_s22 + $0x2a0] sm:$0xff]  ;;  %v307_v16 = vld [vmem:[%s22889_s26 + $0x3f0] sm:$0xff]  ;;  %v14284_v23 = vpack.c.bf16 %v276_v13, %v275_v12 }
  0x3f   :  { %14303 = vmatpush3.bf16.msra.mxu1 %v14302_v35  ;;  %601 = vmatprep.mubr.f32.mxu1 %v128_v42  ;;  %v308_v17 = vld [vmem:[%s22889_s26 + $0x3f8] sm:$0xff]  ;;  %v155_v18 = vld [vmem:[%s22890_s22 + $0x2b0] sm:$0xff]  ;;  %v14314_v19 = vpack.c.bf16 %v290_v9, %v289_v8  ;;  %v170_v26 = vld [vmem:[%s22890_s22 + $0x328] sm:$0xff] }
  0x40   :  { %497 = vmatmul.mubr.f32.gmra.mrb[8].mxu0 %v125_v46  ;;  %14305 = vmatprep.subr.bf16.mxu1 %v14304_v43  ;;  %v259_v20 = vld [vmem:[%s22889_s26 + $0x270] sm:$0xff]  ;;  %v260_v21 = vld [vmem:[%s22889_s26 + $0x278] sm:$0xff]  ;;  %v14316_v27 = vpack.c.bf16 %v308_v17, %v307_v16  ;;  %v325_v28 = vld [vmem:[%s22889_s26 + $0x480] sm:$0xff] }
  0x41   :  { %14275 = vmatpush3.bf16.msra.mxu0 %v14274_v47  ;;  %501 = vmatprep.mubr.f32.mxu0 %v140_v54  ;;  %v168_v22 = vld [vmem:[%s22890_s22 + $0x318] sm:$0xff]  ;;  %v291_v24 = vld [vmem:[%s22889_s26 + $0x370] sm:$0xff]  ;;  %v326_v29 = vld [vmem:[%s22889_s26 + $0x488] sm:$0xff]  ;;  %v14286_v31 = vpack.c.bf16 %v260_v21, %v259_v20 }
  0x42   :  { %602 = vmatmul.mubr.f32.gmra.mrb[8].mxu1 %v127_v50  ;;  %14277 = vmatprep.subr.bf16.mxu0 %v14276_v55  ;;  %v292_v25 = vld [vmem:[%s22889_s26 + $0x378] sm:$0xff]  ;;  %v167_v30 = vld [vmem:[%s22890_s22 + $0x310] sm:$0xff]  ;;  %v357_v32 = vld [vmem:[%s22889_s26 + $0x580] sm:$0xff]  ;;  %v14320_v39 = vpack.c.bf16 %v326_v29, %v325_v28 }
  0x43   :  { %14307 = vmatpush3.bf16.msra.mxu1 %v14306_v51  ;;  %606 = vmatprep.mubr.f32.mxu1 %v142_v58  ;;  %v358_v33 = vld [vmem:[%s22889_s26 + $0x588] sm:$0xff]  ;;  %v169_v34 = vld [vmem:[%s22890_s22 + $0x320] sm:$0xff]  ;;  %v14318_v35 = vpack.c.bf16 %v292_v25, %v291_v24  ;;  %v76_v42 = vld [vmem:[%s22890_s22 + $0x38] sm:$0xff] }
  0x44   :  { %502 = vmatmul.mubr.f32.gmra.mrb[10].mxu0 %v139_v62  ;;  %14309 = vmatprep.subr.bf16.mxu1 %v14308_v59  ;;  %v309_v36 = vld [vmem:[%s22889_s26 + $0x400] sm:$0xff]  ;;  %v310_v37 = vld [vmem:[%s22889_s26 + $0x408] sm:$0xff]  ;;  %v14352_v43 = vpack.c.bf16 %v358_v33, %v357_v32  ;;  %v327_v44 = vld [vmem:[%s22889_s26 + $0x490] sm:$0xff] }
  0x45   :  { %14279 = vmatpush3.bf16.msra.mxu0 %v14278_v63  ;;  %506 = vmatprep.mubr.f32.mxu0 %v154_v6  ;;  %v74_v38 = vld [vmem:[%s22890_s22 + $0x28] sm:$0xff]  ;;  %v341_v40 = vld [vmem:[%s22889_s26 + $0x500] sm:$0xff]  ;;  %v328_v45 = vld [vmem:[%s22889_s26 + $0x498] sm:$0xff]  ;;  %v14322_v47 = vpack.c.bf16 %v310_v37, %v309_v36 }
  0x46   :  { %607 = vmatmul.mubr.f32.gmra.mrb[10].mxu1 %v141_v2  ;;  %14281 = vmatprep.subr.bf16.mxu0 %v14280_v7  ;;  %v342_v41 = vld [vmem:[%s22889_s26 + $0x508] sm:$0xff]  ;;  %v73_v46 = vld [vmem:[%s22890_s22 + $0x20] sm:$0xff]  ;;  %v359_v48 = vld [vmem:[%s22889_s26 + $0x590] sm:$0xff]  ;;  %v14324_v55 = vpack.c.bf16 %v328_v45, %v327_v44 }
  0x47   :  { %14311 = vmatpush3.bf16.msra.mxu1 %v14310_v3  ;;  %611 = vmatprep.mubr.f32.mxu1 %v156_v10  ;;  %v360_v49 = vld [vmem:[%s22889_s26 + $0x598] sm:$0xff]  ;;  %v75_v50 = vld [vmem:[%s22890_s22 + $0x30] sm:$0xff]  ;;  %v14354_v51 = vpack.c.bf16 %v342_v41, %v341_v40  ;;  %v90_v58 = vld [vmem:[%s22890_s22 + $0xa8] sm:$0xff] }
  0x48   :  { %507 = vmatmul.mubr.f32.gmra.mrb[12].mxu0 %v153_v14  ;;  %14313 = vmatprep.subr.bf16.mxu1 %v14312_v11  ;;  %v311_v52 = vld [vmem:[%s22889_s26 + $0x410] sm:$0xff]  ;;  %v312_v53 = vld [vmem:[%s22889_s26 + $0x418] sm:$0xff]  ;;  %v14356_v59 = vpack.c.bf16 %v360_v49, %v359_v48  ;;  %v329_v60 = vld [vmem:[%s22889_s26 + $0x4a0] sm:$0xff] }
  0x49   :  { %14283 = vmatpush3.bf16.msra.mxu0 %v14282_v15  ;;  %511 = vmatprep.mubr.f32.mxu0 %v168_v22  ;;  %v88_v54 = vld [vmem:[%s22890_s22 + $0x98] sm:$0xff]  ;;  %v343_v56 = vld [vmem:[%s22889_s26 + $0x510] sm:$0xff]  ;;  %v330_v61 = vld [vmem:[%s22889_s26 + $0x4a8] sm:$0xff]  ;;  %v14326_v63 = vpack.c.bf16 %v312_v53, %v311_v52 }
  0x4a   :  { %612 = vmatmul.mubr.f32.gmra.mrb[12].mxu1 %v155_v18  ;;  %14285 = vmatprep.subr.bf16.mxu0 %v14284_v23  ;;  %v344_v57 = vld [vmem:[%s22889_s26 + $0x518] sm:$0xff]  ;;  %v87_v62 = vld [vmem:[%s22890_s22 + $0x90] sm:$0xff]  ;;  %v361_v0 = vld [vmem:[%s22889_s26 + $0x5a0] sm:$0xff]  ;;  %v14328_v7 = vpack.c.bf16 %v330_v61, %v329_v60 }
  0x4b   :  { %14315 = vmatpush3.bf16.msra.mxu1 %v14314_v19  ;;  %616 = vmatprep.mubr.f32.mxu1 %v170_v26  ;;  %v362_v1 = vld [vmem:[%s22889_s26 + $0x5a8] sm:$0xff]  ;;  %v89_v2 = vld [vmem:[%s22890_s22 + $0xa0] sm:$0xff]  ;;  %v14358_v3 = vpack.c.bf16 %v344_v57, %v343_v56  ;;  %v104_v10 = vld [vmem:[%s22890_s22 + $0x118] sm:$0xff] }
  0x4c   :  { %512 = vmatmul.mubr.f32.gmra.mrb[14].mxu0 %v167_v30  ;;  %14317 = vmatprep.subr.bf16.mxu1 %v14316_v27  ;;  %v313_v4 = vld [vmem:[%s22889_s26 + $0x420] sm:$0xff]  ;;  %v314_v5 = vld [vmem:[%s22889_s26 + $0x428] sm:$0xff]  ;;  %v14360_v11 = vpack.c.bf16 %v362_v1, %v361_v0  ;;  %v331_v12 = vld [vmem:[%s22889_s26 + $0x4b0] sm:$0xff] }
  0x4d   :  { %14287 = vmatpush3.bf16.msra.mxu0 %v14286_v31  ;;  %686 = vmatprep.mubr.f32.mxu0 %v74_v38  ;;  %v102_v6 = vld [vmem:[%s22890_s22 + $0x108] sm:$0xff]  ;;  %v345_v8 = vld [vmem:[%s22889_s26 + $0x520] sm:$0xff]  ;;  %v332_v13 = vld [vmem:[%s22889_s26 + $0x4b8] sm:$0xff]  ;;  %v14330_v15 = vpack.c.bf16 %v314_v5, %v313_v4 }
  0x4e   :  { %617 = vmatmul.mubr.f32.gmra.mrb[14].mxu1 %v169_v34  ;;  %14321 = vmatprep.subr.bf16.mxu0 %v14320_v39  ;;  %v346_v9 = vld [vmem:[%s22889_s26 + $0x528] sm:$0xff]  ;;  %v101_v14 = vld [vmem:[%s22890_s22 + $0x100] sm:$0xff]  ;;  %v363_v16 = vld [vmem:[%s22889_s26 + $0x5b0] sm:$0xff]  ;;  %v14332_v23 = vpack.c.bf16 %v332_v13, %v331_v12 }
  0x4f   :  { %14319 = vmatpush3.bf16.msra.mxu1 %v14318_v35  ;;  %791 = vmatprep.mubr.f32.mxu1 %v76_v42  ;;  %v364_v17 = vld [vmem:[%s22889_s26 + $0x5b8] sm:$0xff]  ;;  %v103_v18 = vld [vmem:[%s22890_s22 + $0x110] sm:$0xff]  ;;  %v14362_v19 = vpack.c.bf16 %v346_v9, %v345_v8  ;;  %v118_v26 = vld [vmem:[%s22890_s22 + $0x188] sm:$0xff] }
  0x50   :  { %687 = vmatmul.mubr.f32.vlgmr.msra.gmra.mrb[16].mxu0 %v73_v46  ;;  %14353 = vmatprep.subr.bf16.mxu1 %v14352_v43  ;;  %v315_v20 = vld [vmem:[%s22889_s26 + $0x430] sm:$0xff]  ;;  %v316_v21 = vld [vmem:[%s22889_s26 + $0x438] sm:$0xff]  ;;  %v14364_v27 = vpack.c.bf16 %v364_v17, %v363_v16  ;;  %v333_v28 = vld [vmem:[%s22889_s26 + $0x4c0] sm:$0xff] }
  0x51   :  { %14323 = vmatpush3.bf16.msra.mxu0 %v14322_v47  ;;  %691 = vmatprep.mubr.f32.mxu0 %v88_v54  ;;  %v116_v22 = vld [vmem:[%s22890_s22 + $0x178] sm:$0xff]  ;;  %v347_v24 = vld [vmem:[%s22889_s26 + $0x530] sm:$0xff]  ;;  %v334_v29 = vld [vmem:[%s22889_s26 + $0x4c8] sm:$0xff]  ;;  %v14334_v31 = vpack.c.bf16 %v316_v21, %v315_v20 }
  0x52   :  { %792 = vmatmul.mubr.f32.vlgmr.msra.gmra.mrb[16].mxu1 %v75_v50  ;;  %14325 = vmatprep.subr.bf16.mxu0 %v14324_v55  ;;  %v348_v25 = vld [vmem:[%s22889_s26 + $0x538] sm:$0xff]  ;;  %v115_v30 = vld [vmem:[%s22890_s22 + $0x170] sm:$0xff]  ;;  %v365_v32 = vld [vmem:[%s22889_s26 + $0x5c0] sm:$0xff]  ;;  %v14336_v39 = vpack.c.bf16 %v334_v29, %v333_v28 }
  0x53   :  { %14355 = vmatpush3.bf16.msra.mxu1 %v14354_v51  ;;  %796 = vmatprep.mubr.f32.mxu1 %v90_v58  ;;  %v366_v33 = vld [vmem:[%s22889_s26 + $0x5c8] sm:$0xff]  ;;  %v117_v34 = vld [vmem:[%s22890_s22 + $0x180] sm:$0xff]  ;;  %v14366_v35 = vpack.c.bf16 %v348_v25, %v347_v24  ;;  %v132_v42 = vld [vmem:[%s22890_s22 + $0x1f8] sm:$0xff] }
  0x54   :  { %692 = vmatmul.mubr.f32.gmra.mrb[18].mxu0 %v87_v62  ;;  %14357 = vmatprep.subr.bf16.mxu1 %v14356_v59  ;;  %v317_v36 = vld [vmem:[%s22889_s26 + $0x440] sm:$0xff]  ;;  %v318_v37 = vld [vmem:[%s22889_s26 + $0x448] sm:$0xff]  ;;  %v14368_v43 = vpack.c.bf16 %v366_v33, %v365_v32  ;;  %v335_v44 = vld [vmem:[%s22889_s26 + $0x4d0] sm:$0xff] }
  0x55   :  { %14327 = vmatpush3.bf16.msra.mxu0 %v14326_v63  ;;  %696 = vmatprep.mubr.f32.mxu0 %v102_v6  ;;  %v130_v38 = vld [vmem:[%s22890_s22 + $0x1e8] sm:$0xff]  ;;  %v349_v40 = vld [vmem:[%s22889_s26 + $0x540] sm:$0xff]  ;;  %v336_v45 = vld [vmem:[%s22889_s26 + $0x4d8] sm:$0xff]  ;;  %v14338_v47 = vpack.c.bf16 %v318_v37, %v317_v36 }
  0x56   :  { %797 = vmatmul.mubr.f32.gmra.mrb[18].mxu1 %v89_v2  ;;  %14329 = vmatprep.subr.bf16.mxu0 %v14328_v7  ;;  %v350_v41 = vld [vmem:[%s22889_s26 + $0x548] sm:$0xff]  ;;  %v129_v46 = vld [vmem:[%s22890_s22 + $0x1e0] sm:$0xff]  ;;  %v367_v48 = vld [vmem:[%s22889_s26 + $0x5d0] sm:$0xff]  ;;  %v14340_v55 = vpack.c.bf16 %v336_v45, %v335_v44 }
  0x57   :  { %14359 = vmatpush3.bf16.msra.mxu1 %v14358_v3  ;;  %801 = vmatprep.mubr.f32.mxu1 %v104_v10  ;;  %v368_v49 = vld [vmem:[%s22889_s26 + $0x5d8] sm:$0xff]  ;;  %v131_v50 = vld [vmem:[%s22890_s22 + $0x1f0] sm:$0xff]  ;;  %v14370_v51 = vpack.c.bf16 %v350_v41, %v349_v40  ;;  %v146_v58 = vld [vmem:[%s22890_s22 + $0x268] sm:$0xff] }
  0x58   :  { %697 = vmatmul.mubr.f32.gmra.mrb[20].mxu0 %v101_v14  ;;  %14361 = vmatprep.subr.bf16.mxu1 %v14360_v11  ;;  %v319_v52 = vld [vmem:[%s22889_s26 + $0x450] sm:$0xff]  ;;  %v320_v53 = vld [vmem:[%s22889_s26 + $0x458] sm:$0xff]  ;;  %v14372_v59 = vpack.c.bf16 %v368_v49, %v367_v48  ;;  %v337_v60 = vld [vmem:[%s22889_s26 + $0x4e0] sm:$0xff] }
  0x59   :  { %14331 = vmatpush3.bf16.msra.mxu0 %v14330_v15  ;;  %701 = vmatprep.mubr.f32.mxu0 %v116_v22  ;;  %v144_v54 = vld [vmem:[%s22890_s22 + $0x258] sm:$0xff]  ;;  %v351_v56 = vld [vmem:[%s22889_s26 + $0x550] sm:$0xff]  ;;  %v338_v61 = vld [vmem:[%s22889_s26 + $0x4e8] sm:$0xff]  ;;  %v14342_v63 = vpack.c.bf16 %v320_v53, %v319_v52 }
  0x5a   :  { %802 = vmatmul.mubr.f32.gmra.mrb[20].mxu1 %v103_v18  ;;  %14333 = vmatprep.subr.bf16.mxu0 %v14332_v23  ;;  %v352_v57 = vld [vmem:[%s22889_s26 + $0x558] sm:$0xff]  ;;  %v143_v62 = vld [vmem:[%s22890_s22 + $0x250] sm:$0xff]  ;;  %v369_v0 = vld [vmem:[%s22889_s26 + $0x5e0] sm:$0xff]  ;;  %v14344_v7 = vpack.c.bf16 %v338_v61, %v337_v60 }
  0x5b   :  { %14363 = vmatpush3.bf16.msra.mxu1 %v14362_v19  ;;  %806 = vmatprep.mubr.f32.mxu1 %v118_v26  ;;  %v370_v1 = vld [vmem:[%s22889_s26 + $0x5e8] sm:$0xff]  ;;  %v145_v2 = vld [vmem:[%s22890_s22 + $0x260] sm:$0xff]  ;;  %v14374_v3 = vpack.c.bf16 %v352_v57, %v351_v56  ;;  %v160_v10 = vld [vmem:[%s22890_s22 + $0x2d8] sm:$0xff] }
  0x5c   :  { %702 = vmatmul.mubr.f32.gmra.mrb[22].mxu0 %v115_v30  ;;  %14365 = vmatprep.subr.bf16.mxu1 %v14364_v27  ;;  %v321_v4 = vld [vmem:[%s22889_s26 + $0x460] sm:$0xff]  ;;  %v322_v5 = vld [vmem:[%s22889_s26 + $0x468] sm:$0xff]  ;;  %v14376_v11 = vpack.c.bf16 %v370_v1, %v369_v0  ;;  %v339_v12 = vld [vmem:[%s22889_s26 + $0x4f0] sm:$0xff] }
  0x5d   :  { %14335 = vmatpush3.bf16.msra.mxu0 %v14334_v31  ;;  %706 = vmatprep.mubr.f32.mxu0 %v130_v38  ;;  %v158_v6 = vld [vmem:[%s22890_s22 + $0x2c8] sm:$0xff]  ;;  %v353_v8 = vld [vmem:[%s22889_s26 + $0x560] sm:$0xff]  ;;  %v340_v13 = vld [vmem:[%s22889_s26 + $0x4f8] sm:$0xff]  ;;  %v14346_v15 = vpack.c.bf16 %v322_v5, %v321_v4 }
  0x5e   :  { %807 = vmatmul.mubr.f32.gmra.mrb[22].mxu1 %v117_v34  ;;  %14337 = vmatprep.subr.bf16.mxu0 %v14336_v39  ;;  %v354_v9 = vld [vmem:[%s22889_s26 + $0x568] sm:$0xff]  ;;  %v157_v14 = vld [vmem:[%s22890_s22 + $0x2c0] sm:$0xff]  ;;  %v371_v16 = vld [vmem:[%s22889_s26 + $0x5f0] sm:$0xff]  ;;  %v14348_v23 = vpack.c.bf16 %v340_v13, %v339_v12 }
  0x5f   :  { %14367 = vmatpush3.bf16.msra.mxu1 %v14366_v35  ;;  %811 = vmatprep.mubr.f32.mxu1 %v132_v42  ;;  %v372_v17 = vld [vmem:[%s22889_s26 + $0x5f8] sm:$0xff]  ;;  %v159_v18 = vld [vmem:[%s22890_s22 + $0x2d0] sm:$0xff]  ;;  %v14378_v19 = vpack.c.bf16 %v354_v9, %v353_v8  ;;  %v174_v26 = vld [vmem:[%s22890_s22 + $0x348] sm:$0xff] }
  0x60   :  { %707 = vmatmul.mubr.f32.gmra.mrb[24].mxu0 %v129_v46  ;;  %14369 = vmatprep.subr.bf16.mxu1 %v14368_v43  ;;  %v323_v20 = vld [vmem:[%s22889_s26 + $0x470] sm:$0xff]  ;;  %v324_v21 = vld [vmem:[%s22889_s26 + $0x478] sm:$0xff]  ;;  %v14380_v27 = vpack.c.bf16 %v372_v17, %v371_v16  ;;  %v389_v28 = vld [vmem:[%s22889_s26 + $0x680] sm:$0xff] }
  0x61   :  { %14339 = vmatpush3.bf16.msra.mxu0 %v14338_v47  ;;  %711 = vmatprep.mubr.f32.mxu0 %v144_v54  ;;  %v172_v22 = vld [vmem:[%s22890_s22 + $0x338] sm:$0xff]  ;;  %v355_v24 = vld [vmem:[%s22889_s26 + $0x570] sm:$0xff]  ;;  %v390_v29 = vld [vmem:[%s22889_s26 + $0x688] sm:$0xff]  ;;  %v14350_v31 = vpack.c.bf16 %v324_v21, %v323_v20 }
  0x62   :  { %812 = vmatmul.mubr.f32.gmra.mrb[24].mxu1 %v131_v50  ;;  %14341 = vmatprep.subr.bf16.mxu0 %v14340_v55  ;;  %v356_v25 = vld [vmem:[%s22889_s26 + $0x578] sm:$0xff]  ;;  %v171_v30 = vld [vmem:[%s22890_s22 + $0x330] sm:$0xff]  ;;  %v173_v32 = vld [vmem:[%s22890_s22 + $0x340] sm:$0xff]  ;;  %v14384_v37 = vpack.c.bf16 %v390_v29, %v389_v28 }
  0x63   :  { %14371 = vmatpush3.bf16.msra.mxu1 %v14370_v51  ;;  %816 = vmatprep.mubr.f32.mxu1 %v146_v58  ;;  %v14382_v33 = vpack.c.bf16 %v356_v25, %v355_v24  ;;  %v373_v34 = vld [vmem:[%s22889_s26 + $0x600] sm:$0xff]  ;;  %v374_v35 = vld [vmem:[%s22889_s26 + $0x608] sm:$0xff]  ;;  %v391_v38 = vld [vmem:[%s22889_s26 + $0x690] sm:$0xff] }
  0x64   :  { %712 = vmatmul.mubr.f32.gmra.mrb[26].mxu0 %v143_v62  ;;  %14373 = vmatprep.subr.bf16.mxu1 %v14372_v59  ;;  %v78_v36 = vld [vmem:[%s22890_s22 + $0x48] sm:$0xff]  ;;  %v392_v39 = vld [vmem:[%s22889_s26 + $0x698] sm:$0xff]  ;;  %v77_v41 = vld [vmem:[%s22890_s22 + $0x40] sm:$0xff]  ;;  %v14386_v42 = vpack.c.bf16 %v374_v35, %v373_v34 }
  0x65   :  { %14343 = vmatpush3.bf16.msra.mxu0 %v14342_v63  ;;  %716 = vmatprep.mubr.f32.mxu0 %v158_v6  ;;  %v80_v40 = vld [vmem:[%s22890_s22 + $0x58] sm:$0xff]  ;;  %v79_v43 = vld [vmem:[%s22890_s22 + $0x50] sm:$0xff]  ;;  %v14388_v44 = vpack.c.bf16 %v392_v39, %v391_v38  ;;  %v393_v48 = vld [vmem:[%s22889_s26 + $0x6a0] sm:$0xff] }
  0x66   :  { %817 = vmatmul.mubr.f32.gmra.mrb[26].mxu1 %v145_v2  ;;  %14345 = vmatprep.subr.bf16.mxu0 %v14344_v7  ;;  %v375_v45 = vld [vmem:[%s22889_s26 + $0x610] sm:$0xff]  ;;  %v376_v46 = vld [vmem:[%s22889_s26 + $0x618] sm:$0xff]  ;;  %v394_v49 = vld [vmem:[%s22889_s26 + $0x6a8] sm:$0xff] }
  0x67   :  { %14375 = vmatpush3.bf16.msra.mxu1 %v14374_v3  ;;  %821 = vmatprep.mubr.f32.mxu1 %v160_v10  ;;  %v92_v47 = vld [vmem:[%s22890_s22 + $0xb8] sm:$0xff]  ;;  %v94_v50 = vld [vmem:[%s22890_s22 + $0xc8] sm:$0xff]  ;;  %v91_v51 = vld [vmem:[%s22890_s22 + $0xb0] sm:$0xff]  ;;  %v14390_v52 = vpack.c.bf16 %v376_v46, %v375_v45  ;;  %v14392_v54 = vpack.c.bf16 %v394_v49, %v393_v48 }
  0x68   :  { %717 = vmatmul.mubr.f32.gmra.mrb[28].mxu0 %v157_v14  ;;  %14377 = vmatprep.subr.bf16.mxu1 %v14376_v11  ;;  %v93_v53 = vld [vmem:[%s22890_s22 + $0xc0] sm:$0xff]  ;;  %v378_v56 = vld [vmem:[%s22889_s26 + $0x628] sm:$0xff]  ;;  %v395_v58 = vld [vmem:[%s22889_s26 + $0x6b0] sm:$0xff] }
  0x69   :  { %14347 = vmatpush3.bf16.msra.mxu0 %v14346_v15  ;;  %721 = vmatprep.mubr.f32.mxu0 %v172_v22  ;;  %v377_v55 = vld [vmem:[%s22889_s26 + $0x620] sm:$0xff]  ;;  %v106_v57 = vld [vmem:[%s22890_s22 + $0x128] sm:$0xff]  ;;  %v396_v59 = vld [vmem:[%s22889_s26 + $0x6b8] sm:$0xff] }
  0x6a   :  { %822 = vmatmul.mubr.f32.gmra.mrb[28].mxu1 %v159_v18  ;;  %14349 = vmatprep.subr.bf16.mxu0 %v14348_v23  ;;  %v108_v60 = vld [vmem:[%s22890_s22 + $0x138] sm:$0xff]  ;;  %v105_v61 = vld [vmem:[%s22890_s22 + $0x120] sm:$0xff]  ;;  %v14394_v62 = vpack.c.bf16 %v378_v56, %v377_v55  ;;  %v107_v63 = vld [vmem:[%s22890_s22 + $0x130] sm:$0xff]  ;;  %v14396_v0 = vpack.c.bf16 %v396_v59, %v395_v58 }
  0x6b   :  { %14379 = vmatpush3.bf16.msra.mxu1 %v14378_v19  ;;  %826 = vmatprep.mubr.f32.mxu1 %v174_v26  ;;  %v379_v1 = vld [vmem:[%s22889_s26 + $0x630] sm:$0xff]  ;;  %v380_v2 = vld [vmem:[%s22889_s26 + $0x638] sm:$0xff]  ;;  %v397_v4 = vld [vmem:[%s22889_s26 + $0x6c0] sm:$0xff] }
  0x6c   :  { %722 = vmatmul.mubr.f32.gmra.mrb[30].mxu0 %v171_v30  ;;  %14381 = vmatprep.subr.bf16.mxu1 %v14380_v27  ;;  %v120_v3 = vld [vmem:[%s22890_s22 + $0x198] sm:$0xff]  ;;  %v398_v5 = vld [vmem:[%s22889_s26 + $0x6c8] sm:$0xff]  ;;  %v119_v7 = vld [vmem:[%s22890_s22 + $0x190] sm:$0xff]  ;;  %v14398_v8 = vpack.c.bf16 %v380_v2, %v379_v1 }
  0x6d   :  { %14351 = vmatpush3.bf16.msra.mxu0 %v14350_v31  ;;  %896 = vmatprep.mubr.f32.mxu0 %v78_v36  ;;  %v122_v6 = vld [vmem:[%s22890_s22 + $0x1a8] sm:$0xff]  ;;  %v121_v9 = vld [vmem:[%s22890_s22 + $0x1a0] sm:$0xff]  ;;  %v14400_v10 = vpack.c.bf16 %v398_v5, %v397_v4  ;;  %v399_v14 = vld [vmem:[%s22889_s26 + $0x6d0] sm:$0xff] }
  0x6e   :  { %827 = vmatmul.mubr.f32.gmra.mrb[30].mxu1 %v173_v32  ;;  %14385 = vmatprep.subr.bf16.mxu0 %v14384_v37  ;;  %v381_v11 = vld [vmem:[%s22889_s26 + $0x640] sm:$0xff]  ;;  %v382_v12 = vld [vmem:[%s22889_s26 + $0x648] sm:$0xff]  ;;  %v400_v15 = vld [vmem:[%s22889_s26 + $0x6d8] sm:$0xff] }
  0x6f   :  { %14383 = vmatpush3.bf16.msra.mxu1 %v14382_v33  ;;  %1001 = vmatprep.mubr.f32.mxu1 %v80_v40  ;;  %v134_v13 = vld [vmem:[%s22890_s22 + $0x208] sm:$0xff]  ;;  %v136_v16 = vld [vmem:[%s22890_s22 + $0x218] sm:$0xff]  ;;  %v133_v17 = vld [vmem:[%s22890_s22 + $0x200] sm:$0xff]  ;;  %v14402_v18 = vpack.c.bf16 %v382_v12, %v381_v11 }
  0x70   :  { %897 = vmatmul.mubr.f32.vlgmr.msra.gmra.mrb[32].mxu0 %v77_v41 }
  0x71   :  { %14387 = vmatpush3.bf16.msra.mxu0 %v14386_v42  ;;  %901 = vmatprep.mubr.f32.mxu0 %v92_v47 }
  0x72   :  { %1002 = vmatmul.mubr.f32.vlgmr.msra.gmra.mrb[32].mxu1 %v79_v43  ;;  %14389 = vmatprep.subr.bf16.mxu0 %v14388_v44 }
  0x73   :  { %1006 = vmatprep.mubr.f32.mxu1 %v94_v50 }
  0x74   :  { %902 = vmatmul.mubr.f32.gmra.mrb[34].mxu0 %v91_v51 }
  0x75   :  { %14391 = vmatpush3.bf16.msra.mxu0 %v14390_v52  ;;  %906 = vmatprep.mubr.f32.mxu0 %v106_v57 }
  0x76   :  { %1007 = vmatmul.mubr.f32.gmra.mrb[34].mxu1 %v93_v53  ;;  %14393 = vmatprep.subr.bf16.mxu0 %v14392_v54 }
  0x77   :  { %1011 = vmatprep.mubr.f32.mxu1 %v108_v60 }
  0x78   :  { %907 = vmatmul.mubr.f32.gmra.mrb[36].mxu0 %v105_v61 }
  0x79   :  { %14395 = vmatpush3.bf16.msra.mxu0 %v14394_v62  ;;  %911 = vmatprep.mubr.f32.mxu0 %v120_v3 }
  0x7a   :  { %1012 = vmatmul.mubr.f32.gmra.mrb[36].mxu1 %v107_v63  ;;  %14397 = vmatprep.subr.bf16.mxu0 %v14396_v0 }
  0x7b   :  { %1016 = vmatprep.mubr.f32.mxu1 %v122_v6 }
  0x7c   :  { %912 = vmatmul.mubr.f32.gmra.mrb[38].mxu0 %v119_v7 }
  0x7d   :  { %14399 = vmatpush3.bf16.msra.mxu0 %v14398_v8 }
  0x7e   :  { %1017 = vmatmul.mubr.f32.gmra.mrb[38].mxu1 %v121_v9 }
  0x7f   :  { %28 = vsyncpa [#allocation5], 0  ;;  %916 = vmatprep.mubr.f32.mxu0 %v134_v13  ;;  %14401 = vmatprep.subr.bf16.mxu0 %v14400_v10  ;;  %v135_v19 = vld [vmem:[%s22890_s22 + $0x210] sm:$0xff]  ;;  %v14404_v20 = vpack.c.bf16 %v400_v15, %v399_v14  ;;  %v384_v22 = vld [vmem:[%s22889_s26 + $0x658] sm:$0xff]  ;;  %s22891_s25 = sld [smem:[#allocation61_spill]]  ;;  %s22892_s3 = sld [smem:[#allocation62_spill]] }
  0x80   :  { %v383_v21 = vld [vmem:[%s22889_s26 + $0x650] sm:$0xff]  ;;  %1021 = vmatprep.mubr.f32.mxu1 %v136_v16  ;;  %v148_v23 = vld [vmem:[%s22890_s22 + $0x278] sm:$0xff]  ;;  %v401_v24 = vld [vmem:[%s22889_s26 + $0x6e0] sm:$0xff]  ;;  %917 = vmatmul.mubr.f32.gmra.mrb[40].mxu0 %v133_v17  ;;  %vm1147_vm0 = vcmask 523264   ;;  %vm1459_vm2 = vcmask 261120   ;;  %s22900_s27 = sld [smem:[#allocation63_spill]] }
  0x81   :  { %v402_v25 = vld [vmem:[%s22889_s26 + $0x6e8] sm:$0xff]  ;;  %14403 = vmatpush3.bf16.msra.mxu0 %v14402_v18  ;;  %v147_v27 = vld [vmem:[%s22890_s22 + $0x270] sm:$0xff]  ;;  %v14406_v28 = vpack.c.bf16 %v384_v22, %v383_v21  ;;  %921 = vmatprep.mubr.f32.mxu0 %v148_v23  ;;  %v149_v29 = vld [vmem:[%s22890_s22 + $0x280] sm:$0xff]  ;;  %s22908_s0 = sld [smem:[#allocation64_spill]] }
  0x82   :  { %v150_v26 = vld [vmem:[%s22890_s22 + $0x288] sm:$0xff]  ;;  %1022 = vmatmul.mubr.f32.gmra.mrb[40].mxu1 %v135_v19  ;;  %14405 = vmatprep.subr.bf16.mxu0 %v14404_v20  ;;  %v14408_v30 = vpack.c.bf16 %v402_v25, %v401_v24  ;;  %v385_v31 = vld [vmem:[%s22889_s26 + $0x660] sm:$0xff]  ;;  %v403_v34 = vld [vmem:[%s22889_s26 + $0x6f0] sm:$0xff] }
  0x83   :  { %v386_v32 = vld [vmem:[%s22889_s26 + $0x668] sm:$0xff]  ;;  %1026 = vmatprep.mubr.f32.mxu1 %v150_v26  ;;  %v404_v35 = vld [vmem:[%s22889_s26 + $0x6f8] sm:$0xff]  ;;  %v161_v37 = vld [vmem:[%s22890_s22 + $0x2e0] sm:$0xff] }
  0x84   :  { %v162_v33 = vld [vmem:[%s22890_s22 + $0x2e8] sm:$0xff]  ;;  %922 = vmatmul.mubr.f32.gmra.mrb[42].mxu0 %v147_v27  ;;  %v164_v36 = vld [vmem:[%s22890_s22 + $0x2f8] sm:$0xff]  ;;  %v14410_v38 = vpack.c.bf16 %v386_v32, %v385_v31  ;;  %v163_v39 = vld [vmem:[%s22890_s22 + $0x2f0] sm:$0xff]  ;;  %v14412_v40 = vpack.c.bf16 %v404_v35, %v403_v34 }
  0x85   :  { %14407 = vmatpush3.bf16.msra.mxu0 %v14406_v28  ;;  %926 = vmatprep.mubr.f32.mxu0 %v162_v33  ;;  %v387_v41 = vld [vmem:[%s22889_s26 + $0x670] sm:$0xff]  ;;  %v388_v42 = vld [vmem:[%s22889_s26 + $0x678] sm:$0xff]  ;;  %v178_v44 = vld [vmem:[%s22890_s22 + $0x368] sm:$0xff] }
  0x86   :  { %1027 = vmatmul.mubr.f32.gmra.mrb[42].mxu1 %v149_v29  ;;  %14409 = vmatprep.subr.bf16.mxu0 %v14408_v30  ;;  %v176_v43 = vld [vmem:[%s22890_s22 + $0x358] sm:$0xff]  ;;  %v175_v45 = vld [vmem:[%s22890_s22 + $0x350] sm:$0xff]  ;;  %v14414_v46 = vpack.c.bf16 %v388_v42, %v387_v41  ;;  %v177_v47 = vld [vmem:[%s22890_s22 + $0x360] sm:$0xff] }
  0x87   :  { %1031 = vmatprep.mubr.f32.mxu1 %v164_v36  ;;  %v82_v48 = vld [vmem:[%s22890_s22 + $0x68] sm:$0xff]  ;;  %v81_v49 = vld [vmem:[%s22890_s22 + $0x60] sm:$0xff]  ;;  %v96_v50 = vld [vmem:[%s22890_s22 + $0xd8] sm:$0xff] }
  0x88   :  { %927 = vmatmul.mubr.f32.gmra.mrb[44].mxu0 %v161_v37  ;;  %v95_v51 = vld [vmem:[%s22890_s22 + $0xd0] sm:$0xff]  ;;  %v110_v52 = vld [vmem:[%s22890_s22 + $0x148] sm:$0xff]  ;;  %v109_v53 = vld [vmem:[%s22890_s22 + $0x140] sm:$0xff] }
  0x89   :  { %14411 = vmatpush3.bf16.msra.mxu0 %v14410_v38  ;;  %931 = vmatprep.mubr.f32.mxu0 %v176_v43  ;;  %v124_v54 = vld [vmem:[%s22890_s22 + $0x1b8] sm:$0xff]  ;;  %v123_v55 = vld [vmem:[%s22890_s22 + $0x1b0] sm:$0xff]  ;;  %v138_v56 = vld [vmem:[%s22890_s22 + $0x228] sm:$0xff] }
  0x8a   :  { %1032 = vmatmul.mubr.f32.gmra.mrb[44].mxu1 %v163_v39  ;;  %14413 = vmatprep.subr.bf16.mxu0 %v14412_v40  ;;  %v137_v57 = vld [vmem:[%s22890_s22 + $0x220] sm:$0xff]  ;;  %v152_v58 = vld [vmem:[%s22890_s22 + $0x298] sm:$0xff]  ;;  %v151_v59 = vld [vmem:[%s22890_s22 + $0x290] sm:$0xff] }
  0x8b   :  { %1036 = vmatprep.mubr.f32.mxu1 %v178_v44  ;;  %v166_v60 = vld [vmem:[%s22890_s22 + $0x308] sm:$0xff]  ;;  %v165_v61 = vld [vmem:[%s22890_s22 + $0x300] sm:$0xff]  ;;  %v180_v62 = vld [vmem:[%s22890_s22 + $0x378] sm:$0xff] }
  0x8c   :  { %932 = vmatmul.mubr.f32.gmra.mrb[46].mxu0 %v175_v45  ;;  %v179_v63 = vld [vmem:[%s22890_s22 + $0x370] sm:$0xff]  ;;  %v11441_v1 = vld [vmem:[%s22891_s25] ss:$0 sm:$0xff] }
  0x8d   :  { %14415 = vmatpush3.bf16.msra.mxu0 %v14414_v46  ;;  %1106 = vmatprep.mubr.f32.mxu0 %v82_v48 }
  0x8e   :  { %1037 = vmatmul.mubr.f32.gmra.mrb[46].mxu1 %v177_v47 }
  0x90   :  { %1107 = vmatmul.mubr.f32.vlgmr.msra.gmra.mrb[48].mxu0 %v81_v49 }
  0x91   :  { %1111 = vmatprep.mubr.f32.mxu0 %v96_v50 }
  0x94   :  { %1112 = vmatmul.mubr.f32.gmra.mrb[50].mxu0 %v95_v51 }
  0x95   :  { %1116 = vmatprep.mubr.f32.mxu0 %v110_v52 }
  0x98   :  { %1117 = vmatmul.mubr.f32.gmra.mrb[52].mxu0 %v109_v53 }
  0x99   :  { %1121 = vmatprep.mubr.f32.mxu0 %v124_v54 }
  0x9c   :  { %1122 = vmatmul.mubr.f32.gmra.mrb[54].mxu0 %v123_v55 }
  0x9d   :  { %1126 = vmatprep.mubr.f32.mxu0 %v138_v56 }
  0xa0   :  { %1127 = vmatmul.mubr.f32.gmra.mrb[56].mxu0 %v137_v57 }
  0xa1   :  { %1131 = vmatprep.mubr.f32.mxu0 %v152_v58 }
  0xa4   :  { %1132 = vmatmul.mubr.f32.gmra.mrb[58].mxu0 %v151_v59 }
  0xa5   :  { %1136 = vmatprep.mubr.f32.mxu0 %v166_v60 }
  0xa8   :  { %1137 = vmatmul.mubr.f32.gmra.mrb[60].mxu0 %v165_v61 }
  0xa9   :  { %1141 = vmatprep.mubr.f32.mxu0 %v180_v62 }
  0xac   :  { %1142 = vmatmul.mubr.f32.gmra.mrb[62].mxu0 %v179_v63 }
 0x103   :  { %v12106_v0 = vpop.f32.mrb[0].mxu0 }
 0x104   :  { %v12107_v2 = vpop.f32.mrb[1].mxu0 }
 0x105   :  { %v12162_v3 = vpop.f32.mrb[0].mxu1  ;;  %v12108_v4 = vadd.f32 %v12107_v2, %v12106_v0 }
 0x106   :  { %v12163_v5 = vpop.f32.mrb[1].mxu1 }
 0x107   :  { %v12164_v6 = vadd.f32 %v12163_v5, %v12162_v3  ;;  %v479_v7 = vadd.f32 %v12108_v4, %v11441_v1  ;;  %v12109_v8 = vpop.f32.mrb[2].mxu0 }
 0x108   :  { %v12110_v9 = vpop.f32.mrb[3].mxu0 }
 0x109   :  { %v12165_v10 = vpop.f32.mrb[2].mxu1  ;;  %v584_v11 = vadd.f32 %v12164_v6, %v479_v7  ;;  %v12111_v12 = vadd.f32 %v12110_v9, %v12109_v8 }
 0x10a   :  { %v12166_v13 = vpop.f32.mrb[3].mxu1 }
 0x10b   :  { %v12167_v14 = vadd.f32 %v12166_v13, %v12165_v10  ;;  %v484_v15 = vadd.f32 %v12111_v12, %v11441_v1  ;;  %v12112_v16 = vpop.f32.mrb[4].mxu0 }
 0x10c   :  { %v12113_v17 = vpop.f32.mrb[5].mxu0 }
 0x10d   :  { %v12168_v18 = vpop.f32.mrb[4].mxu1  ;;  %v589_v19 = vadd.f32 %v12167_v14, %v484_v15  ;;  %v12114_v20 = vadd.f32 %v12113_v17, %v12112_v16 }
 0x10e   :  { %v12169_v21 = vpop.f32.mrb[5].mxu1 }
 0x10f   :  { %v12170_v22 = vadd.f32 %v12169_v21, %v12168_v18  ;;  %v489_v23 = vadd.f32 %v12114_v20, %v11441_v1  ;;  %v12115_v24 = vpop.f32.mrb[6].mxu0 }
 0x110   :  { %v12116_v25 = vpop.f32.mrb[7].mxu0 }
 0x111   :  { %v12171_v26 = vpop.f32.mrb[6].mxu1  ;;  %v594_v27 = vadd.f32 %v12170_v22, %v489_v23  ;;  %v12117_v28 = vadd.f32 %v12116_v25, %v12115_v24 }
 0x112   :  { %v12172_v29 = vpop.f32.mrb[7].mxu1 }
 0x113   :  { %v12173_v30 = vadd.f32 %v12172_v29, %v12171_v26  ;;  %v494_v31 = vadd.f32 %v12117_v28, %v11441_v1  ;;  %v12118_v32 = vpop.f32.mrb[8].mxu0 }
 0x114   :  { %v12119_v33 = vpop.f32.mrb[9].mxu0 }
 0x115   :  { %v12174_v34 = vpop.f32.mrb[8].mxu1  ;;  %v599_v35 = vadd.f32 %v12173_v30, %v494_v31  ;;  %v12120_v36 = vadd.f32 %v12119_v33, %v12118_v32 }
 0x116   :  { %v12175_v37 = vpop.f32.mrb[9].mxu1 }
 0x117   :  { %v12176_v38 = vadd.f32 %v12175_v37, %v12174_v34  ;;  %v499_v39 = vadd.f32 %v12120_v36, %v11441_v1  ;;  %v12121_v40 = vpop.f32.mrb[10].mxu0 }
 0x118   :  { %v12122_v41 = vpop.f32.mrb[11].mxu0 }
 0x119   :  { %v12177_v42 = vpop.f32.mrb[10].mxu1  ;;  %v604_v43 = vadd.f32 %v12176_v38, %v499_v39  ;;  %v12123_v44 = vadd.f32 %v12122_v41, %v12121_v40 }
 0x11a   :  { %v12178_v45 = vpop.f32.mrb[11].mxu1 }
 0x11b   :  { %v12179_v46 = vadd.f32 %v12178_v45, %v12177_v42  ;;  %v504_v47 = vadd.f32 %v12123_v44, %v11441_v1  ;;  %v12124_v48 = vpop.f32.mrb[12].mxu0  ;;  %v1230_v44 = vld [vmem:[%s22892_s3 + $0x8] sm:$0xff] }
 0x11c   :  { %v12125_v49 = vpop.f32.mrb[13].mxu0 }
 0x11d   :  { %v12180_v50 = vpop.f32.mrb[12].mxu1  ;;  %v17669_v51 = vadd.f32 %v12179_v46, %v504_v47  ;;  %v12126_v52 = vadd.f32 %v12125_v49, %v12124_v48 }
 0x11e   :  { %v12181_v53 = vpop.f32.mrb[13].mxu1 }
 0x11f   :  { %v12182_v54 = vadd.f32 %v12181_v53, %v12180_v50  ;;  %v509_v55 = vadd.f32 %v12126_v52, %v11441_v1  ;;  %v12127_v56 = vpop.f32.mrb[14].mxu0 }
 0x120   :  { %v12128_v57 = vpop.f32.mrb[15].mxu0 }
 0x121   :  { %v12183_v58 = vpop.f32.mrb[14].mxu1  ;;  %v17671_v59 = vadd.f32 %v12182_v54, %v509_v55  ;;  %v12129_v60 = vadd.f32 %v12128_v57, %v12127_v56  ;;  %v1231_v56 = vld [vmem:[%s22892_s3 + $0x10] sm:$0xff]  ;;  %v1232_v57 = vld [vmem:[%s22892_s3 + $0x18] sm:$0xff] }
 0x122   :  { %v12184_v61 = vpop.f32.mrb[15].mxu1 }
 0x123   :  { %v12185_v62 = vadd.f32 %v12184_v61, %v12183_v58  ;;  %v514_v63 = vadd.f32 %v12129_v60, %v11441_v1  ;;  %v12218_v0 = vpop.f32.mrb[16].mxu0  ;;  %v11468_v58 = vld [vmem:[%s22892_s3 + $0x90] sm:$0xff] }
 0x124   :  { %v12219_v2 = vpop.f32.mrb[17].mxu0 }
 0x125   :  { %v12274_v3 = vpop.f32.mrb[16].mxu1  ;;  %v17673_v4 = vadd.f32 %v12185_v62, %v514_v63  ;;  %v12220_v5 = vadd.f32 %v12219_v2, %v12218_v0  ;;  %v11469_v62 = vld [vmem:[%s22892_s3 + $0x98] sm:$0xff] }
 0x126   :  { %v12275_v6 = vpop.f32.mrb[17].mxu1 }
 0x127   :  { %v12276_v7 = vadd.f32 %v12275_v6, %v12274_v3  ;;  %v689_v8 = vadd.f32 %v12220_v5, %v584_v11  ;;  %v12221_v9 = vpop.f32.mrb[18].mxu0  ;;  %v17722_v3 = vpack.c.bf16 %v11469_v62, %v11468_v58 }
 0x128   :  { %v12222_v10 = vpop.f32.mrb[19].mxu0 }
 0x129   :  { %v12277_v12 = vpop.f32.mrb[18].mxu1  ;;  %v17675_v13 = vadd.f32 %v12276_v7, %v689_v8  ;;  %v12223_v14 = vadd.f32 %v12222_v10, %v12221_v9  ;;  %v1233_v8 = vld [vmem:[%s22892_s3 + $0x20] sm:$0xff]  ;;  %v1234_v9 = vld [vmem:[%s22892_s3 + $0x28] sm:$0xff] }
 0x12a   :  { %v12278_v15 = vpop.f32.mrb[19].mxu1  ;;  %v11470_v10 = vld [vmem:[%s22892_s3 + $0xa0] sm:$0xff] }
 0x12b   :  { %v12279_v16 = vadd.f32 %v12278_v15, %v12277_v12  ;;  %v694_v17 = vadd.f32 %v12223_v14, %v589_v19  ;;  %v12224_v18 = vpop.f32.mrb[20].mxu0  ;;  %v11471_v15 = vld [vmem:[%s22892_s3 + $0xa8] sm:$0xff] }
 0x12c   :  { %v12225_v1 = vpop.f32.mrb[21].mxu0 }
 0x12d   :  { %v12280_v20 = vpop.f32.mrb[20].mxu1  ;;  %v17677_v21 = vadd.f32 %v12279_v16, %v694_v17  ;;  %v12226_v22 = vadd.f32 %v12225_v1, %v12224_v18  ;;  %v17745_v1 = vpack.c.bf16 %v11471_v15, %v11470_v10 }
 0x12e   :  { %v12281_v23 = vpop.f32.mrb[21].mxu1 }
 0x12f   :  { %v12282_v24 = vadd.f32 %v12281_v23, %v12280_v20  ;;  %v699_v25 = vadd.f32 %v12226_v22, %v594_v27  ;;  %v12227_v26 = vpop.f32.mrb[22].mxu0  ;;  %v1229_v27 = vld [vmem:[%s22892_s3] sm:$0xff] }
 0x130   :  { %v12228_v11 = vpop.f32.mrb[23].mxu0  ;;  %v17692_v47 = vpack.c.bf16 %v1230_v44, %v1229_v27  ;;  %v11483_v44 = vld [vmem:[%s22892_s3 + $0xc8] sm:$0xff] }
 0x131   :  { %v12283_v28 = vpop.f32.mrb[22].mxu1  ;;  %v17679_v29 = vadd.f32 %v12282_v24, %v699_v25  ;;  %v12229_v30 = vadd.f32 %v12228_v11, %v12227_v26  ;;  %v1235_v24 = vld [vmem:[%s22892_s3 + $0x30] sm:$0xff]  ;;  %v1236_v25 = vld [vmem:[%s22892_s3 + $0x38] sm:$0xff] }
 0x132   :  { %v12284_v31 = vpop.f32.mrb[23].mxu1  ;;  %14417 = vmatprep.subr.bf16.mxu1 %v17692_v47  ;;  %v11472_v26 = vld [vmem:[%s22892_s3 + $0xb0] sm:$0xff] }
 0x133   :  { %v12285_v32 = vadd.f32 %v12284_v31, %v12283_v28  ;;  %v704_v33 = vadd.f32 %v12229_v30, %v599_v35  ;;  %v12230_v34 = vpop.f32.mrb[24].mxu0  ;;  %v11466_v35 = vld [vmem:[%s22892_s3 + $0x80] sm:$0xff]  ;;  %14419 = vmatpush3.bf16.msra.mxu1 %v17692_v47  ;;  %v11473_v30 = vld [vmem:[%s22892_s3 + $0xb8] sm:$0xff] }
 0x134   :  { %v12231_v19 = vpop.f32.mrb[25].mxu0 }
 0x135   :  { %v12286_v36 = vpop.f32.mrb[24].mxu1  ;;  %v17681_v37 = vadd.f32 %v12285_v32, %v704_v33  ;;  %v12232_v38 = vadd.f32 %v12231_v19, %v12230_v34  ;;  %v17768_v34 = vpack.c.bf16 %v11473_v30, %v11472_v26 }
 0x136   :  { %v12287_v39 = vpop.f32.mrb[25].mxu1 }
 0x137   :  { %v12288_v40 = vadd.f32 %v12287_v39, %v12286_v36  ;;  %v709_v41 = vadd.f32 %v12232_v38, %v604_v43  ;;  %v12233_v42 = vpop.f32.mrb[26].mxu0  ;;  %v11467_v43 = vld [vmem:[%s22892_s3 + $0x88] sm:$0xff]  ;;  %v11446_v39 = vld [vmem:[%s22892_s3 + $0x40] sm:$0xff] }
 0x138   :  { %v12234_v45 = vpop.f32.mrb[27].mxu0  ;;  %v17699_v52 = vpack.c.bf16 %v11467_v43, %v11466_v35 }
 0x139   :  { %v12289_v46 = vpop.f32.mrb[26].mxu1  ;;  %v17697_v48 = vadd.f32 %v12288_v40, %v709_v41  ;;  %v12235_v49 = vadd.f32 %v12234_v45, %v12233_v42  ;;  %v11447_v40 = vld [vmem:[%s22892_s3 + $0x48] sm:$0xff]  ;;  %v11482_v41 = vld [vmem:[%s22892_s3 + $0xc0] sm:$0xff] }
 0x13a   :  { %v12290_v50 = vpop.f32.mrb[27].mxu1  ;;  %14465 = vmatprep.subr.bf16.mxu0 %v17699_v52  ;;  %v17789_v43 = vpack.c.bf16 %v11483_v44, %v11482_v41 }
 0x13b   :  { %v12291_v53 = vadd.f32 %v12290_v50, %v12289_v46  ;;  %v714_v54 = vadd.f32 %v12235_v49, %v17669_v51  ;;  %v12236_v55 = vpop.f32.mrb[28].mxu0  ;;  %v17714_v51 = vpack.c.bf16 %v1232_v57, %v1231_v56  ;;  %14467 = vmatpush3.bf16.msra.mxu0 %v17699_v52 }
 0x13c   :  { %v12237_v60 = vpop.f32.mrb[29].mxu0  ;;  %14469 = vmatprep.subr.bf16.mxu0 %v17722_v3 }
 0x13d   :  { %v12292_v61 = vpop.f32.mrb[28].mxu1  ;;  %v17720_v63 = vadd.f32 %v12291_v53, %v714_v54  ;;  %v12238_v0 = vadd.f32 %v12237_v60, %v12236_v55  ;;  %14421 = vmatprep.subr.bf16.mxu1 %v17714_v51 }
 0x13e   :  { %v12293_v2 = vpop.f32.mrb[29].mxu1  ;;  %14423 = vmatpush3.bf16.msra.mxu1 %v17714_v51 }
 0x13f   :  { %v12294_v5 = vadd.f32 %v12293_v2, %v12292_v61  ;;  %v719_v6 = vadd.f32 %v12238_v0, %v17671_v59  ;;  %v12239_v7 = vpop.f32.mrb[30].mxu0  ;;  %14471 = vmatpush3.bf16.msra.mxu0 %v17722_v3  ;;  %v17738_v59 = vpack.c.bf16 %v1234_v9, %v1233_v8 }
 0x140   :  { %v12240_v12 = vpop.f32.mrb[31].mxu0  ;;  %14473 = vmatprep.subr.bf16.mxu0 %v17745_v1 }
 0x141   :  { %v12295_v14 = vpop.f32.mrb[30].mxu1  ;;  %v17743_v16 = vadd.f32 %v12294_v5, %v719_v6  ;;  %v12241_v17 = vadd.f32 %v12240_v12, %v12239_v7  ;;  %14425 = vmatprep.subr.bf16.mxu1 %v17738_v59 }
 0x142   :  { %v12296_v18 = vpop.f32.mrb[31].mxu1  ;;  %14427 = vmatpush3.bf16.msra.mxu1 %v17738_v59 }
 0x143   :  { %v12297_v20 = vadd.f32 %v12296_v18, %v12295_v14  ;;  %v724_v22 = vadd.f32 %v12241_v17, %v17673_v4  ;;  %v12330_v23 = vpop.f32.mrb[32].mxu0  ;;  %14475 = vmatpush3.bf16.msra.mxu0 %v17745_v1  ;;  %v17761_v4 = vpack.c.bf16 %v1236_v25, %v1235_v24 }
 0x144   :  { %v12331_v11 = vpop.f32.mrb[33].mxu0  ;;  %14477 = vmatprep.subr.bf16.mxu0 %v17768_v34 }
 0x145   :  { %v12386_v28 = vpop.f32.mrb[32].mxu1  ;;  %v17766_v31 = vadd.f32 %v12297_v20, %v724_v22  ;;  %v12332_v32 = vadd.f32 %v12331_v11, %v12330_v23  ;;  %14429 = vmatprep.subr.bf16.mxu1 %v17761_v4 }
 0x146   :  { %v12387_v33 = vpop.f32.mrb[33].mxu1  ;;  %14431 = vmatpush3.bf16.msra.mxu1 %v17761_v4 }
 0x147   :  { %v12388_v19 = vadd.f32 %v12387_v33, %v12386_v28  ;;  %v899_v36 = vadd.f32 %v12332_v32, %v17675_v13  ;;  %v12333_v38 = vpop.f32.mrb[34].mxu0  ;;  %14479 = vmatpush3.bf16.msra.mxu0 %v17768_v34  ;;  %v17784_v13 = vpack.c.bf16 %v11447_v40, %v11446_v39 }
 0x148   :  { %v12334_v42 = vpop.f32.mrb[35].mxu0  ;;  %14489 = vmatprep.subr.bf16.mxu0 %v17789_v43 }
 0x149   :  { %v12389_v27 = vpop.f32.mrb[34].mxu1  ;;  %v1004_v35 = vadd.f32 %v12388_v19, %v899_v36  ;;  %v12335_v45 = vadd.f32 %v12334_v42, %v12333_v38  ;;  %14433 = vmatprep.subr.bf16.mxu1 %v17784_v13 }
 0x14a   :  { %v12390_v46 = vpop.f32.mrb[35].mxu1 }
 0x14b   :  { %v12391_v49 = vadd.f32 %v12390_v46, %v12389_v27  ;;  %v904_v50 = vadd.f32 %v12335_v45, %v17677_v21  ;;  %v12336_v53 = vpop.f32.mrb[36].mxu0 }
 0x14c   :  { %v12337_v54 = vpop.f32.mrb[37].mxu0 }
 0x14d   :  { %v12392_v55 = vpop.f32.mrb[36].mxu1  ;;  %v1009_v56 = vadd.f32 %v12391_v49, %v904_v50  ;;  %v12338_v57 = vadd.f32 %v12337_v54, %v12336_v53 }
 0x14e   :  { %v12393_v58 = vpop.f32.mrb[37].mxu1 }
 0x14f   :  { %v12394_v60 = vadd.f32 %v12393_v58, %v12392_v55  ;;  %v909_v61 = vadd.f32 %v12338_v57, %v17679_v29  ;;  %v12339_v62 = vpop.f32.mrb[38].mxu0 }
 0x150   :  { %v12340_v0 = vpop.f32.mrb[39].mxu0 }
 0x151   :  { %v12395_v2 = vpop.f32.mrb[38].mxu1  ;;  %v1014_v5 = vadd.f32 %v12394_v60, %v909_v61  ;;  %v12341_v6 = vadd.f32 %v12340_v0, %v12339_v62 }
 0x152   :  { %v12396_v7 = vpop.f32.mrb[39].mxu1 }
 0x153   :  { %v12397_v8 = vadd.f32 %v12396_v7, %v12395_v2  ;;  %v914_v21 = vadd.f32 %v12341_v6, %v17681_v37  ;;  %v12342_v9 = vpop.f32.mrb[40].mxu0 }
 0x154   :  { %v12343_v10 = vpop.f32.mrb[41].mxu0 }
 0x155   :  { %v12398_v12 = vpop.f32.mrb[40].mxu1  ;;  %v1019_v14 = vadd.f32 %v12397_v8, %v914_v21  ;;  %v12344_v15 = vadd.f32 %v12343_v10, %v12342_v9 }
 0x156   :  { %v12399_v17 = vpop.f32.mrb[41].mxu1 }
 0x157   :  { %v12400_v18 = vadd.f32 %v12399_v17, %v12398_v12  ;;  %v919_v20 = vadd.f32 %v12344_v15, %v17697_v48  ;;  %v12345_v22 = vpop.f32.mrb[42].mxu0 }
 0x158   :  { %v12346_v29 = vpop.f32.mrb[43].mxu0 }
 0x159   :  { %v12401_v23 = vpop.f32.mrb[42].mxu1  ;;  %v1024_v24 = vadd.f32 %v12400_v18, %v919_v20  ;;  %v12347_v25 = vadd.f32 %v12346_v29, %v12345_v22 }
 0x15a   :  { %v12402_v26 = vpop.f32.mrb[43].mxu1 }
 0x15b   :  { %v12403_v11 = vadd.f32 %v12402_v26, %v12401_v23  ;;  %v924_v28 = vadd.f32 %v12347_v25, %v17720_v63  ;;  %v12348_v30 = vpop.f32.mrb[44].mxu0 }
 0x15c   :  { %v12349_v37 = vpop.f32.mrb[45].mxu0 }
 0x15d   :  { %v12404_v32 = vpop.f32.mrb[44].mxu1  ;;  %v1029_v33 = vadd.f32 %v12403_v11, %v924_v28  ;;  %v12350_v19 = vadd.f32 %v12349_v37, %v12348_v30 }
 0x15e   :  { %v12405_v36 = vpop.f32.mrb[45].mxu1 }
 0x15f   :  { %v12406_v38 = vadd.f32 %v12405_v36, %v12404_v32  ;;  %v929_v39 = vadd.f32 %v12350_v19, %v17743_v16  ;;  %v12351_v40 = vpop.f32.mrb[46].mxu0 }
 0x160   :  { %v12352_v48 = vpop.f32.mrb[47].mxu0 }
 0x161   :  { %v12407_v41 = vpop.f32.mrb[46].mxu1  ;;  %v1034_v42 = vadd.f32 %v12406_v38, %v929_v39  ;;  %v12353_v27 = vadd.f32 %v12352_v48, %v12351_v40 }
 0x162   :  { %v12408_v44 = vpop.f32.mrb[47].mxu1 }
 0x163   :  { %v12409_v45 = vadd.f32 %v12408_v44, %v12407_v41  ;;  %v934_v46 = vadd.f32 %v12353_v27, %v17766_v31  ;;  %v12442_v49 = vpop.f32.mrb[48].mxu0 }
 0x164   :  { %v12443_v63 = vpop.f32.mrb[49].mxu0 }
 0x165   :  { %v1039_v50 = vadd.f32 %v12409_v45, %v934_v46  ;;  %v12444_v53 = vadd.f32 %v12443_v63, %v12442_v49 }
 0x167   :  { %v1109_v54 = vadd.f32 %v12444_v53, %v1004_v35  ;;  %v12445_v55 = vpop.f32.mrb[50].mxu0 }
 0x168   :  { %v12446_v57 = vpop.f32.mrb[51].mxu0 }
 0x169   :  { %v12447_v58 = vadd.f32 %v12446_v57, %v12445_v55  ;;  %v1148_v62 = vsel %vm1147_vm0, %v1109_v54, 0.0 }
 0x16b   :  { %v1114_v60 = vadd.f32 %v12447_v58, %v1009_v56  ;;  %v12448_v16 = vpop.f32.mrb[52].mxu0 }
 0x16c   :  { %v12449_v61 = vpop.f32.mrb[53].mxu0 }
 0x16d   :  { %v1149_v0 = vsel %vm1147_vm0, %v1114_v60, 0.0  ;;  %v12450_v2 = vadd.f32 %v12449_v61, %v12448_v16 }
 0x16e   :  { %v1150_v6 = vadd.f32 %v1149_v0, %v1148_v62 }
 0x16f   :  { %v1119_v7 = vadd.f32 %v12450_v2, %v1014_v5  ;;  %v12451_v31 = vpop.f32.mrb[54].mxu0 }
 0x170   :  { %v12452_v8 = vpop.f32.mrb[55].mxu0 }
 0x171   :  { %v1151_v21 = vsel %vm1147_vm0, %v1119_v7, 0.0  ;;  %v12453_v9 = vadd.f32 %v12452_v8, %v12451_v31 }
 0x172   :  { %v1152_v35 = vadd.f32 %v1151_v21, %v1150_v6 }
 0x173   :  { %v1124_v10 = vadd.f32 %v12453_v9, %v1019_v14  ;;  %v12454_v12 = vpop.f32.mrb[56].mxu0 }
 0x174   :  { %v12455_v15 = vpop.f32.mrb[57].mxu0 }
 0x175   :  { %v1153_v56 = vsel %vm1147_vm0, %v1124_v10, 0.0  ;;  %v12456_v17 = vadd.f32 %v12455_v15, %v12454_v12 }
 0x176   :  { %v1154_v18 = vadd.f32 %v1153_v56, %v1152_v35 }
 0x177   :  { %v1129_v20 = vadd.f32 %v12456_v17, %v1024_v24  ;;  %v12457_v22 = vpop.f32.mrb[58].mxu0 }
 0x178   :  { %v12458_v29 = vpop.f32.mrb[59].mxu0 }
 0x179   :  { %v1155_v23 = vsel %vm1147_vm0, %v1129_v20, 0.0  ;;  %v12459_v25 = vadd.f32 %v12458_v29, %v12457_v22 }
 0x17a   :  { %v1156_v5 = vadd.f32 %v1155_v23, %v1154_v18 }
 0x17b   :  { %v1134_v26 = vadd.f32 %v12459_v25, %v1029_v33  ;;  %v12460_v11 = vpop.f32.mrb[60].mxu0 }
 0x17c   :  { %v12461_v28 = vpop.f32.mrb[61].mxu0 }
 0x17d   :  { %v1157_v30 = vsel %vm1147_vm0, %v1134_v26, 0.0  ;;  %v12462_v37 = vadd.f32 %v12461_v28, %v12460_v11 }
 0x17e   :  { %v1158_v14 = vadd.f32 %v1157_v30, %v1156_v5 }
 0x17f   :  { %v1139_v32 = vadd.f32 %v12462_v37, %v1034_v42  ;;  %v12463_v19 = vpop.f32.mrb[62].mxu0 }
 0x180   :  { %v12464_v36 = vpop.f32.mrb[63].mxu0 }
 0x181   :  { %v1159_v38 = vsel %vm1147_vm0, %v1139_v32, 0.0  ;;  %v12465_v39 = vadd.f32 %v12464_v36, %v12463_v19 }
 0x182   :  { %v1160_v24 = vadd.f32 %v1159_v38, %v1158_v14 }
 0x183   :  { %v1144_v40 = vadd.f32 %v12465_v39, %v1039_v50 }
 0x185   :  { %v1161_v48 = vsel %vm1147_vm0, %v1144_v40, 0.0 }
 0x186   :  { %v1162_v41 = vadd.f32 %v1161_v48, %v1160_v24 }
 0x188   :  { %v1163_v27 = vrot.slane %v1162_v41, 4 }
 0x18a   :  { %v1164_v44 = vadd.f32 %v1163_v27, %v1162_v41  ;;  %v11448_v27 = vld [vmem:[%s22892_s3 + $0x50] sm:$0xff] }
 0x18c   :  { %v1165_v33 = vrot.slane %v1164_v44, 2 }
 0x18e   :  { %v1166_v45 = vadd.f32 %v1165_v33, %v1164_v44  ;;  %v11449_v33 = vld [vmem:[%s22892_s3 + $0x58] sm:$0xff] }
 0x190   :  { %v1167_v46 = vrot.slane %v1166_v45, 1 }
 0x192   :  { %v1168_v49 = vadd.f32 %v1167_v46, %v1166_v45  ;;  %v11484_v45 = vld [vmem:[%s22892_s3 + $0xd0] sm:$0xff]  ;;  %v11485_v46 = vld [vmem:[%s22892_s3 + $0xd8] sm:$0xff] }
 0x194   :  { %v1171_v63 = vmul.f32 0.015625, %v1168_v49 }
 0x196   :  { %v1172_v53 = vsub.f32 %v1109_v54, %v1171_v63  ;;  %v1173_v55 = vsub.f32 %v1114_v60, %v1171_v63  ;;  %v1174_v42 = vsub.f32 %v1119_v7, %v1171_v63  ;;  %v1175_v57 = vsub.f32 %v1124_v10, %v1171_v63 }
 0x197   :  { %v1176_v58 = vsub.f32 %v1129_v20, %v1171_v63  ;;  %v1177_v16 = vsub.f32 %v1134_v26, %v1171_v63  ;;  %v1178_v61 = vsub.f32 %v1139_v32, %v1171_v63  ;;  %v1179_v62 = vsub.f32 %v1144_v40, %v1171_v63 }
 0x198   :  { %v1180_v0 = vmul.f32 %v1172_v53, %v1172_v53  ;;  %v1181_v50 = vmul.f32 %v1173_v55, %v1173_v55  ;;  %v1182_v2 = vmul.f32 %v1174_v42, %v1174_v42  ;;  %v1183_v6 = vmul.f32 %v1175_v57, %v1175_v57 }
 0x199   :  { %v1184_v9 = vmul.f32 %v1176_v58, %v1176_v58  ;;  %v1185_v60 = vmul.f32 %v1177_v16, %v1177_v16  ;;  %v1186_v12 = vmul.f32 %v1178_v61, %v1178_v61  ;;  %v1187_v17 = vmul.f32 %v1179_v62, %v1179_v62 }
 0x19a   :  { %v1188_v31 = vsel %vm1147_vm0, %v1180_v0, 0.0  ;;  %v1189_v8 = vsel %vm1147_vm0, %v1181_v50, 0.0  ;;  %v1191_v35 = vsel %vm1147_vm0, %v1182_v2, 0.0  ;;  %v1193_v7 = vsel %vm1147_vm0, %v1183_v6, 0.0  ;;  %v11452_v0 = vld [vmem:[%s22892_s3 + $0x70] sm:$0xff]  ;;  %v11453_v6 = vld [vmem:[%s22892_s3 + $0x78] sm:$0xff] }
 0x19b   :  { %v1190_v21 = vadd.f32 %v1189_v8, %v1188_v31  ;;  %v1195_v15 = vsel %vm1147_vm0, %v1184_v9, 0.0  ;;  %v1197_v18 = vsel %vm1147_vm0, %v1185_v60, 0.0  ;;  %v1199_v22 = vsel %vm1147_vm0, %v1186_v12, 0.0  ;;  %v11488_v31 = vld [vmem:[%s22892_s3 + $0xf0] sm:$0xff]  ;;  %v11489_v8 = vld [vmem:[%s22892_s3 + $0xf8] sm:$0xff] }
 0x19c   :  { %v1201_v23 = vsel %vm1147_vm0, %v1187_v17, 0.0  ;;  %v17904_v9 = vpack.c.bf16 %v11489_v8, %v11488_v31 }
 0x19d   :  { %v1192_v54 = vadd.f32 %v1191_v35, %v1190_v21  ;;  %v17902_v21 = vpack.c.bf16 %v11453_v6, %v11452_v0  ;;  %v11498_v35 = vld [vmem:[%s22892_s3 + $0x100] sm:$0xff] }
 0x19f   :  { %v1194_v10 = vadd.f32 %v1193_v7, %v1192_v54  ;;  %v11499_v54 = vld [vmem:[%s22892_s3 + $0x108] sm:$0xff]  ;;  %v11500_v7 = vld [vmem:[%s22892_s3 + $0x110] sm:$0xff] }
 0x1a0   :  { %v17918_v60 = vpack.c.bf16 %v11499_v54, %v11498_v35 }
 0x1a1   :  { %v1196_v56 = vadd.f32 %v1195_v15, %v1194_v10  ;;  %v11501_v10 = vld [vmem:[%s22892_s3 + $0x118] sm:$0xff]  ;;  %v11502_v15 = vld [vmem:[%s22892_s3 + $0x120] sm:$0xff] }
 0x1a2   :  { %v17929_v12 = vpack.c.bf16 %v11501_v10, %v11500_v7 }
 0x1a3   :  { %v1198_v20 = vadd.f32 %v1197_v18, %v1196_v56  ;;  %v11503_v56 = vld [vmem:[%s22892_s3 + $0x128] sm:$0xff]  ;;  %v11504_v18 = vld [vmem:[%s22892_s3 + $0x130] sm:$0xff] }
 0x1a4   :  { %v17947_v17 = vpack.c.bf16 %v11503_v56, %v11502_v15 }
 0x1a5   :  { %v1200_v29 = vadd.f32 %v1199_v22, %v1198_v20  ;;  %v11505_v20 = vld [vmem:[%s22892_s3 + $0x138] sm:$0xff] }
 0x1a6   :  { %v17963_v22 = vpack.c.bf16 %v11505_v20, %v11504_v18 }
 0x1a7   :  { %v1202_v25 = vadd.f32 %v1201_v23, %v1200_v29  ;;  %v11530_v29 = vld [vmem:[%s22892_s3 + $0x180] sm:$0xff]  ;;  %v11531_v23 = vld [vmem:[%s22892_s3 + $0x188] sm:$0xff] }
 0x1a9   :  { %v1203_v5 = vrot.slane %v1202_v25, 4 }
 0x1ab   :  { %v1204_v26 = vadd.f32 %v1203_v5, %v1202_v25  ;;  %v17973_v25 = vpack.c.bf16 %v11531_v23, %v11530_v29  ;;  %v11532_v5 = vld [vmem:[%s22892_s3 + $0x190] sm:$0xff] }
 0x1ad   :  { %v1205_v11 = vrot.slane %v1204_v26, 2 }
 0x1af   :  { %v1206_v28 = vadd.f32 %v1205_v11, %v1204_v26  ;;  %v11533_v26 = vld [vmem:[%s22892_s3 + $0x198] sm:$0xff] }
 0x1b0   :  { %v17983_v11 = vpack.c.bf16 %v11533_v26, %v11532_v5 }
 0x1b1   :  { %v1207_v30 = vrot.slane %v1206_v28, 1 }
 0x1b3   :  { %v1208_v37 = vadd.f32 %v1207_v30, %v1206_v28  ;;  %v11534_v28 = vld [vmem:[%s22892_s3 + $0x1a0] sm:$0xff]  ;;  %v11535_v30 = vld [vmem:[%s22892_s3 + $0x1a8] sm:$0xff] }
 0x1b5   :  { %v1210_v14 = vmul.f32 0.015625, %v1208_v37  ;;  %v17997_v37 = vpack.c.bf16 %v11535_v30, %v11534_v28 }
 0x1b7   :  { %v1211_v32 = vadd.f32 1e-05, %v1210_v14  ;;  %v11536_v14 = vld [vmem:[%s22892_s3 + $0x1b0] sm:$0xff] }
 0x1b9   :  { %16480 = vrsqrt.f32 %v1211_v32  ;;  %v11537_v32 = vld [vmem:[%s22892_s3 + $0x1b8] sm:$0xff] }
 0x1c3   :  { %v16481_v19 = vpop.eup %16480 }
 0x1c4   :  { %v17816_v36 = vmul.f32 %v16481_v19, %v1176_v58  ;;  %v17818_v38 = vmul.f32 %v16481_v19, %v1177_v16  ;;  %v17820_v39 = vmul.f32 %v16481_v19, %v1178_v61  ;;  %v17822_v24 = vmul.f32 %v16481_v19, %v1179_v62  ;;  %v11451_v58 = vld [vmem:[%s22892_s3 + $0x68] sm:$0xff]  ;;  %v11486_v16 = vld [vmem:[%s22892_s3 + $0xe0] sm:$0xff] }
 0x1c5   :  { %v1213_v40 = vmul.f32 %v16481_v19, %v1172_v53  ;;  %v1214_v48 = vmul.f32 %v16481_v19, %v1173_v55  ;;  %v1215_v41 = vmul.f32 %v16481_v19, %v1174_v42  ;;  %v1216_v44 = vmul.f32 %v16481_v19, %v1175_v57  ;;  %v11450_v42 = vld [vmem:[%s22892_s3 + $0x60] sm:$0xff]  ;;  %v11487_v61 = vld [vmem:[%s22892_s3 + $0xe8] sm:$0xff] }
 0x1c6   :  { %v17844_v53 = vpack.c.bf16 %v11449_v33, %v11448_v27  ;;  %v17846_v55 = vpack.c.bf16 %v11485_v46, %v11484_v45  ;;  %v17879_v50 = vpack.c.bf16 %v11451_v58, %v11450_v42  ;;  %v17881_v2 = vpack.c.bf16 %v11487_v61, %v11486_v16 }
 0x1c7   :  { %v17836_v49 = vmax.f32 %v1213_v40, 0.0  ;;  %v17838_v63 = vmax.f32 %v1214_v48, 0.0  ;;  %v17855_v57 = vmax.f32 %v1215_v41, 0.0  ;;  %v17872_v62 = vmax.f32 %v1216_v44, 0.0 }
 0x1c8   :  { %v18011_v19 = vpack.c.bf16 %v11537_v32, %v11536_v14  ;;  %v18024_v40 = vmax.f32 %v17816_v36, 0.0  ;;  %v18039_v36 = vmax.f32 %v17820_v39, 0.0  ;;  %v22817_v48 = vmov 0.0  }
 0x1c9   :  { %13176 = vmatprep.mubr.msk.f32.mxu1 %vm1147_vm0, %v17836_v49  ;;  %13248 = vmatprep.mubr.msk.f32.mxu0 %vm1147_vm0, %v17836_v49 }
 0x1ca   :  { %13177 = vmatmul.mubr.msk.f32.vlgmr.msra.gmra.mrb[48].mxu1 %vm1147_vm0, %v17838_v63  ;;  %13249 = vmatmul.mubr.msk.f32.vlgmr.msra.gmra.mrb[64].mxu0 %vm1147_vm0, %v17838_v63 }
 0x1cb   :  { %14435 = vmatpush3.bf16.msra.mxu1 %v17784_v13  ;;  %14491 = vmatpush3.bf16.msra.mxu0 %v17789_v43 }
 0x1cc   :  { %13179 = vmatprep.mubr.msk.f32.mxu1 %vm1147_vm0, %v17855_v57  ;;  %13251 = vmatprep.mubr.msk.f32.mxu0 %vm1147_vm0, %v17855_v57 }
 0x1cd   :  { %14437 = vmatprep.subr.bf16.mxu1 %v17844_v53  ;;  %14493 = vmatprep.subr.bf16.mxu0 %v17846_v55 }
 0x1ce   :  { %13180 = vmatmul.mubr.msk.f32.gmra.mrb[50].mxu1 %vm1147_vm0, %v17872_v62  ;;  %13252 = vmatmul.mubr.msk.f32.gmra.mrb[66].mxu0 %vm1147_vm0, %v17872_v62 }
 0x1cf   :  { %14439 = vmatpush3.bf16.msra.mxu1 %v17844_v53  ;;  %14495 = vmatpush3.bf16.msra.mxu0 %v17846_v55 }
 0x1d0   :  { %13198 = vmatprep.mubr.msk.f32.mxu1 %vm1147_vm0, %v17836_v49  ;;  %13284 = vmatprep.mubr.msk.f32.mxu0 %vm1147_vm0, %v17836_v49 }
 0x1d1   :  { %14441 = vmatprep.subr.bf16.mxu1 %v17879_v50  ;;  %14497 = vmatprep.subr.bf16.mxu0 %v17881_v2 }
 0x1d3   :  { %14443 = vmatpush3.bf16.msra.mxu1 %v17879_v50  ;;  %14499 = vmatpush3.bf16.msra.mxu0 %v17881_v2 }
 0x1d4   :  { %14445 = vmatprep.subr.bf16.mxu1 %v17902_v21  ;;  %14501 = vmatprep.subr.bf16.mxu0 %v17904_v9 }
 0x1d7   :  { %14447 = vmatpush3.bf16.msra.mxu1 %v17902_v21  ;;  %14503 = vmatpush3.bf16.msra.mxu0 %v17904_v9 }
 0x1d8   :  { %14513 = vmatprep.subr.bf16.mxu0 %v17918_v60 }
 0x1da   :  { %13199 = vmatmul.mubr.msk.f32.vlgmr.msra.gmra.mrb[52].mxu1 %vm1147_vm0, %v17838_v63  ;;  %13285 = vmatmul.mubr.msk.f32.vlgmr.msra.gmra.mrb[68].mxu0 %vm1147_vm0, %v17838_v63 }
 0x1db   :  { %13201 = vmatprep.mubr.msk.f32.mxu1 %vm1147_vm0, %v17855_v57  ;;  %13287 = vmatprep.mubr.msk.f32.mxu0 %vm1147_vm0, %v17855_v57 }
 0x1dc   :  { %14515 = vmatpush3.bf16.msra.mxu0 %v17918_v60 }
 0x1dd   :  { %14517 = vmatprep.subr.bf16.mxu0 %v17929_v12 }
 0x1de   :  { %13202 = vmatmul.mubr.msk.f32.gmra.mrb[54].mxu1 %vm1147_vm0, %v17872_v62  ;;  %13288 = vmatmul.mubr.msk.f32.gmra.mrb[70].mxu0 %vm1147_vm0, %v17872_v62 }
 0x1df   :  { %13320 = vmatprep.mubr.msk.f32.mxu0 %vm1147_vm0, %v17836_v49 }
 0x1e0   :  { %14519 = vmatpush3.bf16.msra.mxu0 %v17929_v12 }
 0x1e1   :  { %14521 = vmatprep.subr.bf16.mxu0 %v17947_v17 }
 0x1e4   :  { %14523 = vmatpush3.bf16.msra.mxu0 %v17947_v17 }
 0x1e5   :  { %14525 = vmatprep.subr.bf16.mxu0 %v17963_v22 }
 0x1e8   :  { %14527 = vmatpush3.bf16.msra.mxu0 %v17963_v22 }
 0x1e9   :  { %14561 = vmatprep.subr.bf16.mxu0 %v17973_v25 }
 0x1eb   :  { %13321 = vmatmul.mubr.msk.f32.vlgmr.msra.gmra.mrb[72].mxu0 %vm1147_vm0, %v17838_v63 }
 0x1ec   :  { %13323 = vmatprep.mubr.msk.f32.mxu0 %vm1147_vm0, %v17855_v57  ;;  %14563 = vmatpush3.bf16.msra.mxu0 %v17973_v25 }
 0x1ed   :  { %14565 = vmatprep.subr.bf16.mxu0 %v17983_v11 }
 0x1ef   :  { %13324 = vmatmul.mubr.msk.f32.gmra.mrb[74].mxu0 %vm1147_vm0, %v17872_v62 }
 0x1f0   :  { %14567 = vmatpush3.bf16.msra.mxu0 %v17983_v11  ;;  %13392 = vmatprep.mubr.msk.f32.mxu0 %vm1147_vm0, %v17836_v49 }
 0x1f1   :  { %14569 = vmatprep.subr.bf16.mxu0 %v17997_v37 }
 0x1f4   :  { %14571 = vmatpush3.bf16.msra.mxu0 %v17997_v37 }
 0x1f5   :  { %14573 = vmatprep.subr.bf16.mxu0 %v18011_v19 }
 0x1f8   :  { %14575 = vmatpush3.bf16.msra.mxu0 %v18011_v19 }
 0x1f9   :  { %14585 = vmatprep.subr.bf16.mxu0 %v17692_v47 }
 0x1fb   :  { %13393 = vmatmul.mubr.msk.f32.vlgmr.msra.gmra.mrb[76].mxu0 %vm1147_vm0, %v17838_v63 }
 0x1fc   :  { %13395 = vmatprep.mubr.msk.f32.mxu0 %vm1147_vm0, %v17855_v57  ;;  %14587 = vmatpush3.bf16.msra.mxu0 %v17692_v47  ;;  %v18036_v47 = vmax.f32 %v17818_v38, 0.0 }
 0x1fd   :  { %14589 = vmatprep.subr.bf16.mxu0 %v17714_v51 }
 0x1ff   :  { %13396 = vmatmul.mubr.msk.f32.gmra.mrb[78].mxu0 %vm1147_vm0, %v17872_v62 }
 0x200   :  { %14591 = vmatpush3.bf16.msra.mxu0 %v17714_v51  ;;  %13428 = vmatprep.mubr.msk.f32.mxu0 %vm1147_vm0, %v18024_v40  ;;  %v18046_v51 = vmax.f32 %v17822_v24, 0.0 }
 0x201   :  { %14593 = vmatprep.subr.bf16.mxu0 %v17738_v59 }
 0x204   :  { %14595 = vmatpush3.bf16.msra.mxu0 %v17738_v59  ;;  %v1334_v59 = vlaneseq }
 0x205   :  { %14597 = vmatprep.subr.bf16.mxu0 %v17761_v4 }
 0x206   :  { %v18052_v38 = vand.u32 127, %v1334_v59 }
 0x208   :  { %14599 = vmatpush3.bf16.msra.mxu0 %v17761_v4  ;;  %v18050_v4 = vshrl.u32 %v1334_v59, 7 }
 0x20a   :  { %22893 = vst [vmem:[#allocation8_spill] sm:$0xff] %v18050_v4  ;;  %v1447_v39 = vadd.s32 4294967294, %v18050_v4  ;;  %v18068_v31 = vadd.s32 8, %v18050_v4  ;;  %v18071_v8 = vadd.s32 16, %v18050_v4  ;;  %v18077_v20 = vadd.s32 24, %v18050_v4 }
 0x20b   :  { %13429 = vmatmul.mubr.msk.f32.vlgmr.msra.gmra.mrb[80].mxu0 %vm1147_vm0, %v18036_v47  ;;  %v1341_v59 = vadd.s32 4294967293, %v18050_v4  ;;  %vm1955_vm14 = vcmp.eq.s32.totalorder %v18052_v38, %v18050_v4 }
 0x20c   :  { %13431 = vmatprep.mubr.msk.f32.mxu0 %vm1147_vm0, %v18039_v36  ;;  %vm1451_vm1 = vcmp.eq.s32.totalorder %v18052_v38, %v1447_v39  ;;  %v1448_v18 = vadd.s32 4294967294, %v18068_v31  ;;  %v1449_v29 = vadd.s32 4294967294, %v18071_v8  ;;  %v1450_v32 = vadd.s32 4294967294, %v18077_v20 }
 0x20d   :  { %v18057_v41 = vsel %vm1451_vm1, 1.0, %v22817_v48  ;;  %vm1345_vm6 = vcmp.eq.s32.totalorder %v18052_v38, %v1341_v59  ;;  %vm1956_vm15 = vcmp.eq.s32.totalorder %v18052_v38, %v18068_v31  ;;  %vm1957_vm1 = vcmp.eq.s32.totalorder %v18052_v38, %v18071_v8 }
 0x20e   :  { %22894 = vst [vmem:[#allocation9_spill] sm:$0xff] %v18057_v41  ;;  %13212 = vmatprep.mubr.msk.f32.mxu1 %vm1459_vm2, %v18057_v41  ;;  %vm1452_vm3 = vcmp.eq.s32.totalorder %v18052_v38, %v1448_v18  ;;  %vm1453_vm4 = vcmp.eq.s32.totalorder %v18052_v38, %v1449_v29  ;;  %vm1454_vm5 = vcmp.eq.s32.totalorder %v18052_v38, %v1450_v32  ;;  %v2158_v32 = vadd.s32 1, %v18050_v4 }
 0x20f   :  { %13432 = vmatmul.mubr.msk.f32.gmra.mrb[82].mxu0 %vm1147_vm0, %v18046_v51  ;;  %v18087_v39 = vsel %vm1452_vm3, 1.0, %v22817_v48  ;;  %v18178_v59 = vsel %vm1956_vm15, 1.0, %v22817_v48  ;;  %vm1958_vm3 = vcmp.eq.s32.totalorder %v18052_v38, %v18077_v20 }
 0x210   :  { %13464 = vmatprep.mubr.msk.f32.mxu0 %vm1459_vm2, %v18057_v41 }
 0x29d   :  { %v13178_v24 = vpop.f32.mrb[48].mxu1  ;;  %v13250_v27 = vpop.f32.mrb[64].mxu0 }
 0x29e   :  { %v1315_v44 = vpop.f32.mrb[49].mxu1  ;;  %v1729_v33 = vpop.f32.mrb[65].mxu0 }
 0x29f   :  { %v14456_v45 = vpack.c.bf16 %v13178_v24, %v1315_v44  ;;  %v18063_v46 = vpack.c.bf16 %v13250_v27, %v1729_v33  ;;  %v18090_v24 = vsel %vm1453_vm4, 1.0, %v22817_v48  ;;  %v1342_v27 = vadd.s32 4294967293, %v18068_v31 }
 0x2a0   :  { %v1343_v44 = vadd.s32 4294967293, %v18071_v8  ;;  %v18101_v33 = vsel %vm1454_vm5, 1.0, %v22817_v48  ;;  %vm2162_vm4 = vcmp.eq.s32.totalorder %v18052_v38, %v2158_v32  ;;  %v2161_v32 = vadd.s32 1, %v18077_v20 }
 0x2a1   :  { %v13181_v42 = vpop.f32.mrb[50].mxu1  ;;  %v13253_v58 = vpop.f32.mrb[66].mxu0  ;;  %vm1346_vm7 = vcmp.eq.s32.totalorder %v18052_v38, %v1342_v27 }
 0x2a2   :  { %v1325_v16 = vpop.f32.mrb[51].mxu1  ;;  %v1739_v61 = vpop.f32.mrb[67].mxu0  ;;  %vm1347_vm8 = vcmp.eq.s32.totalorder %v18052_v38, %v1343_v44  ;;  %v18181_v44 = vsel %vm1957_vm1, 1.0, %v22817_v48 }
 0x2a3   :  { %v14460_v0 = vpack.c.bf16 %v13181_v42, %v1325_v16  ;;  %v18065_v6 = vpack.c.bf16 %v13253_v58, %v1739_v61  ;;  %v18104_v42 = vsel %vm1345_vm6, 1.0, %v22817_v48  ;;  %v1344_v58 = vadd.s32 4294967293, %v18077_v20 }
 0x2a4   :  { %v1748_v16 = vadd.s32 4294967295, %v18050_v4  ;;  %v18115_v61 = vsel %vm1346_vm7, 1.0, %v22817_v48  ;;  %vm2165_vm7 = vcmp.eq.s32.totalorder %v18052_v38, %v2161_v32  ;;  %v11520_v32 = vld [vmem:[%s22892_s3 + $0x170] sm:$0xff] }
 0x2a5   :  { %vm1348_vm9 = vcmp.eq.s32.totalorder %v18052_v38, %v1344_v58  ;;  %v2159_v58 = vadd.s32 1, %v18068_v31 }
 0x2a6   :  { %vm1752_vm10 = vcmp.eq.s32.totalorder %v18052_v38, %v1748_v16  ;;  %v18131_v18 = vsel %vm1348_vm9, 1.0, %v22817_v48 }
 0x2a7   :  { %vm2163_vm5 = vcmp.eq.s32.totalorder %v18052_v38, %v2159_v58 }
 0x2a8   :  { %v18224_v58 = vsel %vm2163_vm5, 1.0, %v22817_v48 }
 0x2a9   :  { %22895 = vst [vmem:[#allocation10_spill] sm:$0xff] %v18224_v58 }
 0x2ad   :  { %v13200_v35 = vpop.f32.mrb[52].mxu1  ;;  %v13286_v54 = vpop.f32.mrb[68].mxu0 }
 0x2ae   :  { %v1428_v7 = vpop.f32.mrb[53].mxu1  ;;  %v1936_v10 = vpop.f32.mrb[69].mxu0 }
 0x2af   :  { %v14448_v15 = vpack.c.bf16 %v13200_v35, %v1428_v7  ;;  %v18073_v56 = vpack.c.bf16 %v13286_v54, %v1936_v10  ;;  %v18119_v54 = vsel %vm1347_vm8, 1.0, %v22817_v48  ;;  %v1749_v7 = vadd.s32 4294967295, %v18068_v31 }
 0x2b1   :  { %v13203_v23 = vpop.f32.mrb[54].mxu1  ;;  %14449 = vmatprep.subr.bf16.mxu1 %v14448_v15  ;;  %v13289_v5 = vpop.f32.mrb[70].mxu0  ;;  %vm1753_vm11 = vcmp.eq.s32.totalorder %v18052_v38, %v1749_v7 }
 0x2b2   :  { %v1438_v26 = vpop.f32.mrb[55].mxu1  ;;  %14451 = vmatpush3.bf16.msra.mxu1 %v14448_v15  ;;  %v1946_v28 = vpop.f32.mrb[71].mxu0 }
 0x2b3   :  { %v14452_v30 = vpack.c.bf16 %v13203_v23, %v1438_v26  ;;  %v18080_v14 = vpack.c.bf16 %v13289_v5, %v1946_v28  ;;  %v18135_v23 = vsel %vm1752_vm10, 1.0, %v22817_v48  ;;  %v1751_v5 = vadd.s32 4294967295, %v18077_v20 }
 0x2b5   :  { %14453 = vmatprep.subr.bf16.mxu1 %v14452_v30  ;;  %vm1755_vm13 = vcmp.eq.s32.totalorder %v18052_v38, %v1751_v5 }
 0x2b6   :  { %14455 = vmatpush3.bf16.msra.mxu1 %v14452_v30  ;;  %v18165_v30 = vsel %vm1955_vm14, 1.0, %v22817_v48 }
 0x2b7   :  { %14457 = vmatprep.subr.bf16.mxu1 %v14456_v45 }
 0x2b9   :  { %13213 = vmatmul.mubr.msk.f32.vlgmr.msra.gmra.mrb[56].mxu1 %vm1459_vm2, %v18087_v39 }
 0x2ba   :  { %14459 = vmatpush3.bf16.msra.mxu1 %v14456_v45  ;;  %13215 = vmatprep.mubr.msk.f32.mxu1 %vm1459_vm2, %v18090_v24 }
 0x2bb   :  { %14461 = vmatprep.subr.bf16.mxu1 %v14460_v0 }
 0x2bd   :  { %13216 = vmatmul.mubr.msk.f32.gmra.mrb[58].mxu1 %vm1459_vm2, %v18101_v33 }
 0x2be   :  { %v13322_v45 = vpop.f32.mrb[72].mxu0  ;;  %14463 = vmatpush3.bf16.msra.mxu1 %v14460_v0  ;;  %13226 = vmatprep.mubr.msk.f32.mxu1 %vm1459_vm2, %v18104_v42  ;;  %v1750_v0 = vadd.s32 4294967295, %v18071_v8 }
 0x2bf   :  { %v2139_v35 = vpop.f32.mrb[73].mxu0  ;;  %14481 = vmatprep.subr.bf16.mxu1 %v18063_v46 }
 0x2c0   :  { %v14528_v10 = vpack.c.bf16 %v13322_v45, %v2139_v35  ;;  %vm1754_vm12 = vcmp.eq.s32.totalorder %v18052_v38, %v1750_v0  ;;  %v11515_v45 = vld [vmem:[%s22892_s3 + $0x148] sm:$0xff]  ;;  %v2160_v35 = vadd.s32 1, %v18071_v8  ;;  %v18201_v0 = vsel %vm1958_vm3, 1.0, %v22817_v48 }
 0x2c1   :  { %13227 = vmatmul.mubr.msk.f32.vlgmr.msra.gmra.mrb[56].mxu1 %vm1459_vm2, %v18115_v61  ;;  %v18150_v28 = vsel %vm1754_vm12, 1.0, %v22817_v48 }
 0x2c2   :  { %v13325_v15 = vpop.f32.mrb[74].mxu0  ;;  %14483 = vmatpush3.bf16.msra.mxu1 %v18063_v46  ;;  %13229 = vmatprep.mubr.msk.f32.mxu1 %vm1459_vm2, %v18119_v54  ;;  %v18146_v46 = vsel %vm1753_vm11, 1.0, %v22817_v48  ;;  %vm2164_vm6 = vcmp.eq.s32.totalorder %v18052_v38, %v2160_v35  ;;  %v11518_v35 = vld [vmem:[%s22892_s3 + $0x160] sm:$0xff] }
 0x2c3   :  { %v2149_v29 = vpop.f32.mrb[75].mxu0  ;;  %14485 = vmatprep.subr.bf16.mxu1 %v18065_v6 }
 0x2c4   :  { %v14532_v26 = vpack.c.bf16 %v13325_v15, %v2149_v29  ;;  %v18204_v29 = vsel %vm2162_vm4, 1.0, %v22817_v48 }
 0x2c5   :  { %13230 = vmatmul.mubr.msk.f32.gmra.mrb[58].mxu1 %vm1459_vm2, %v18131_v18 }
 0x2c6   :  { %14487 = vmatpush3.bf16.msra.mxu1 %v18065_v6  ;;  %13262 = vmatprep.mubr.msk.f32.mxu1 %vm1459_vm2, %v18135_v23  ;;  %v18161_v6 = vsel %vm1755_vm13, 1.0, %v22817_v48 }
 0x2c7   :  { %14505 = vmatprep.subr.bf16.mxu1 %v18073_v56 }
 0x2c9   :  { %13263 = vmatmul.mubr.msk.f32.vlgmr.msra.gmra.mrb[56].mxu1 %vm1459_vm2, %v18146_v46 }
 0x2ca   :  { %14507 = vmatpush3.bf16.msra.mxu1 %v18073_v56  ;;  %13265 = vmatprep.mubr.msk.f32.mxu1 %vm1459_vm2, %v18150_v28 }
 0x2cb   :  { %14509 = vmatprep.subr.bf16.mxu1 %v18080_v14 }
 0x2cd   :  { %13266 = vmatmul.mubr.msk.f32.gmra.mrb[58].mxu1 %vm1459_vm2, %v18161_v6 }
 0x2ce   :  { %v13394_v56 = vpop.f32.mrb[76].mxu0  ;;  %14511 = vmatpush3.bf16.msra.mxu1 %v18080_v14  ;;  %13298 = vmatprep.mubr.msk.f32.mxu1 %vm1459_vm2, %v18165_v30  ;;  %v11514_v14 = vld [vmem:[%s22892_s3 + $0x140] sm:$0xff] }
 0x2cf   :  { %v2553_v27 = vpop.f32.mrb[77].mxu0  ;;  %14529 = vmatprep.subr.bf16.mxu1 %v14528_v10  ;;  %v18207_v5 = vpack.c.bf16 %v11515_v45, %v11514_v14  ;;  %v18228_v14 = vsel %vm2164_vm6, 1.0, %v22817_v48 }
 0x2d0   :  { %v18186_v16 = vpack.c.bf16 %v13394_v56, %v2553_v27  ;;  %v11517_v27 = vld [vmem:[%s22892_s3 + $0x158] sm:$0xff]  ;;  %22896 = vst [vmem:[#allocation11_spill] sm:$0xff] %v18228_v14 }
 0x2d1   :  { %13299 = vmatmul.mubr.msk.f32.vlgmr.msra.gmra.mrb[56].mxu1 %vm1459_vm2, %v18178_v59 }
 0x2d2   :  { %v13397_v7 = vpop.f32.mrb[78].mxu0  ;;  %14531 = vmatpush3.bf16.msra.mxu1 %v14528_v10  ;;  %13301 = vmatprep.mubr.msk.f32.mxu1 %vm1459_vm2, %v18181_v44  ;;  %v11516_v10 = vld [vmem:[%s22892_s3 + $0x150] sm:$0xff] }
 0x2d3   :  { %v2563_v15 = vpop.f32.mrb[79].mxu0  ;;  %14533 = vmatprep.subr.bf16.mxu1 %v14532_v26  ;;  %v18231_v45 = vpack.c.bf16 %v11517_v27, %v11516_v10  ;;  %v11521_v10 = vld [vmem:[%s22892_s3 + $0x178] sm:$0xff] }
 0x2d4   :  { %v18210_v56 = vpack.c.bf16 %v13397_v7, %v2563_v15  ;;  %v18245_v7 = vsel %vm2165_vm7, 1.0, %v22817_v48  ;;  %vm16544_vm7 = vmmov 0  }
 0x2d5   :  { %13302 = vmatmul.mubr.msk.f32.gmra.mrb[58].mxu1 %vm1459_vm2, %v18201_v0  ;;  %22897 = vst [vmem:[#allocation12_spill] sm:$0xff] %v18245_v7 }
 0x2d6   :  { %14535 = vmatpush3.bf16.msra.mxu1 %v14532_v26  ;;  %13334 = vmatprep.mubr.msk.f32.mxu1 %vm1459_vm2, %v18204_v29  ;;  %v11519_v26 = vld [vmem:[%s22892_s3 + $0x168] sm:$0xff] }
 0x2d7   :  { %14537 = vmatprep.subr.bf16.mxu1 %v18207_v5  ;;  %v18248_v15 = vpack.c.bf16 %v11519_v26, %v11518_v35  ;;  %v18262_v35 = vpack.c.bf16 %v11521_v10, %v11520_v32 }
 0x2d9   :  { %13335 = vmatmul.mubr.msk.f32.vlgmr.msra.gmra.mrb[56].mxu1 %vm1459_vm2, %v18224_v58 }
 0x2da   :  { %14539 = vmatpush3.bf16.msra.mxu1 %v18207_v5  ;;  %13337 = vmatprep.mubr.msk.f32.mxu1 %vm1459_vm2, %v18228_v14 }
 0x2db   :  { %14541 = vmatprep.subr.bf16.mxu1 %v18231_v45 }
 0x2dd   :  { %13338 = vmatmul.mubr.msk.f32.gmra.mrb[58].mxu1 %vm1459_vm2, %v18245_v7 }
 0x2de   :  { %v13430_v27 = vpop.f32.mrb[80].mxu0  ;;  %14543 = vmatpush3.bf16.msra.mxu1 %v18231_v45  ;;  %13356 = vmatprep.mubr.msk.f32.mxu1 %vm1147_vm0, %v17836_v49  ;;  %v2365_v49 = vadd.s32 2, %v18050_v4 }
 0x2df   :  { %v2774_v48 = vpop.f32.mrb[81].mxu0  ;;  %14545 = vmatprep.subr.bf16.mxu1 %v18248_v15 }
 0x2e0   :  { %v18264_v26 = vpack.c.bf16 %v13430_v27, %v2774_v48  ;;  %vm2369_vm8 = vcmp.eq.s32.totalorder %v18052_v38, %v2365_v49  ;;  %v22898_v48 = vmov 0.0   ;;  %v2368_v49 = vadd.s32 2, %v18077_v20 }
 0x2e1   :  { %v18280_v32 = vsel %vm2369_vm8, 1.0, %v22898_v48  ;;  %vm6810_vm8 = vcmask 64512  }
 0x2e2   :  { %v13433_v41 = vpop.f32.mrb[82].mxu0  ;;  %14547 = vmatpush3.bf16.msra.mxu1 %v18248_v15  ;;  %22899 = vst [vmem:[#allocation13_spill] sm:$0xff] %v18280_v32  ;;  %vm2372_vm11 = vcmp.eq.s32.totalorder %v18052_v38, %v2368_v49 }
 0x2e3   :  { %v2784_v14 = vpop.f32.mrb[83].mxu0  ;;  %14549 = vmatprep.subr.bf16.mxu1 %v18262_v35 }
 0x2e4   :  { %v18268_v7 = vpack.c.bf16 %v13433_v41, %v2784_v14 }
 0x2e6   :  { %14551 = vmatpush3.bf16.msra.mxu1 %v18262_v35 }
 0x2e9   :  { %13357 = vmatmul.mubr.msk.f32.vlgmr.msra.gmra.mrb[60].mxu1 %vm1147_vm0, %v17838_v63  ;;  %v2366_v63 = vadd.s32 2, %v18068_v31 }
 0x2ea   :  { %13359 = vmatprep.mubr.msk.f32.mxu1 %vm1147_vm0, %v17855_v57  ;;  %v2367_v57 = vadd.s32 2, %v18071_v8 }
 0x2eb   :  { %vm2370_vm9 = vcmp.eq.s32.totalorder %v18052_v38, %v2366_v63  ;;  %v2574_v63 = vadd.s32 3, %v18071_v8  ;;  %v2575_v8 = vadd.s32 3, %v18077_v20 }
 0x2ec   :  { %vm2371_vm10 = vcmp.eq.s32.totalorder %v18052_v38, %v2367_v57 }
 0x2ed   :  { %13360 = vmatmul.mubr.msk.f32.gmra.mrb[62].mxu1 %vm1147_vm0, %v17872_v62  ;;  %vm2578_vm14 = vcmp.eq.s32.totalorder %v18052_v38, %v2574_v63  ;;  %vm2579_vm15 = vcmp.eq.s32.totalorder %v18052_v38, %v2575_v8 }
 0x2ee   :  { %13370 = vmatprep.mubr.msk.f32.mxu1 %vm1459_vm2, %v18280_v32  ;;  %v2572_v32 = vadd.s32 3, %v18050_v4  ;;  %v18335_v20 = vsel %vm2579_vm15, 1.0, %v22898_v48 }
 0x2f0   :  { %vm2576_vm12 = vcmp.eq.s32.totalorder %v18052_v38, %v2572_v32  ;;  %v18326_v32 = vsel %vm2578_vm14, 1.0, %v22898_v48 }
 0x2f1   :  { %v18311_v57 = vsel %vm2576_vm12, 1.0, %v22898_v48  ;;  %vm10582_vm12 = vcmask 163840  }
 0x3bc   :  { %v13358_v41 = vpop.f32.mrb[60].mxu1 }
 0x3bd   :  { %v2346_v14 = vpop.f32.mrb[61].mxu1 }
 0x3be   :  { %v14552_v10 = vpack.c.bf16 %v13358_v41, %v2346_v14  ;;  %v18291_v41 = vsel %vm2370_vm9, 1.0, %v22898_v48  ;;  %v18295_v14 = vsel %vm2371_vm10, 1.0, %v22898_v48  ;;  %vm8375_vm9 = vcmask 1043456  }
 0x3bf   :  { %vm8372_vm10 = vcmask 31744  }
 0x3c0   :  { %v13361_v27 = vpop.f32.mrb[62].mxu1  ;;  %14553 = vmatprep.subr.bf16.mxu1 %v14552_v10 }
 0x3c1   :  { %v2356_v62 = vpop.f32.mrb[63].mxu1  ;;  %14555 = vmatpush3.bf16.msra.mxu1 %v14552_v10  ;;  %v2573_v10 = vadd.s32 3, %v18068_v31 }
 0x3c2   :  { %v14556_v58 = vpack.c.bf16 %v13361_v27, %v2356_v62 }
 0x3c3   :  { %vm2577_vm13 = vcmp.eq.s32.totalorder %v18052_v38, %v2573_v10 }
 0x3c4   :  { %14557 = vmatprep.subr.bf16.mxu1 %v14556_v58 }
 0x3c5   :  { %14559 = vmatpush3.bf16.msra.mxu1 %v14556_v58  ;;  %v18307_v58 = vsel %vm2372_vm11, 1.0, %v22898_v48  ;;  %vm10328_vm11 = vcmask 114688  }
 0x3c6   :  { %14577 = vmatprep.subr.bf16.mxu1 %v18186_v16 }
 0x3c8   :  { %13371 = vmatmul.mubr.msk.f32.vlgmr.msra.gmra.mrb[56].mxu1 %vm1459_vm2, %v18291_v41 }
 0x3c9   :  { %14579 = vmatpush3.bf16.msra.mxu1 %v18186_v16  ;;  %13373 = vmatprep.mubr.msk.f32.mxu1 %vm1459_vm2, %v18295_v14  ;;  %v18322_v16 = vsel %vm2577_vm13, 1.0, %v22898_v48 }
 0x3ca   :  { %14581 = vmatprep.subr.bf16.mxu1 %v18210_v56 }
 0x3cc   :  { %13374 = vmatmul.mubr.msk.f32.gmra.mrb[58].mxu1 %vm1459_vm2, %v18307_v58 }
 0x3cd   :  { %14583 = vmatpush3.bf16.msra.mxu1 %v18210_v56  ;;  %13406 = vmatprep.mubr.msk.f32.mxu1 %vm1459_vm2, %v18311_v57 }
 0x3ce   :  { %14601 = vmatprep.subr.bf16.mxu1 %v17784_v13 }
 0x3d0   :  { %13407 = vmatmul.mubr.msk.f32.vlgmr.msra.gmra.mrb[56].mxu1 %vm1459_vm2, %v18322_v16 }
 0x3d1   :  { %14603 = vmatpush3.bf16.msra.mxu1 %v17784_v13  ;;  %13409 = vmatprep.mubr.msk.f32.mxu1 %vm1459_vm2, %v18326_v32 }
 0x3d2   :  { %14605 = vmatprep.subr.bf16.mxu1 %v17844_v53 }
 0x3d4   :  { %13410 = vmatmul.mubr.msk.f32.gmra.mrb[58].mxu1 %vm1459_vm2, %v18335_v20 }
 0x3d5   :  { %14607 = vmatpush3.bf16.msra.mxu1 %v17844_v53  ;;  %13450 = vmatprep.mubr.msk.f32.mxu1 %vm1147_vm0, %v18024_v40 }
 0x3d6   :  { %14609 = vmatprep.subr.bf16.mxu1 %v17879_v50 }
 0x3d9   :  { %14611 = vmatpush3.bf16.msra.mxu1 %v17879_v50 }
 0x3da   :  { %14613 = vmatprep.subr.bf16.mxu1 %v17902_v21 }
 0x3dd   :  { %14615 = vmatpush3.bf16.msra.mxu1 %v17902_v21 }
 0x3de   :  { %14633 = vmatprep.subr.bf16.mxu1 %v17699_v52 }
 0x3e0   :  { %13451 = vmatmul.mubr.msk.f32.vlgmr.msra.gmra.mrb[64].mxu1 %vm1147_vm0, %v18036_v47 }
 0x3e1   :  { %13453 = vmatprep.mubr.msk.f32.mxu1 %vm1147_vm0, %v18039_v36  ;;  %14635 = vmatpush3.bf16.msra.mxu1 %v17699_v52  ;;  %v18420_v52 = vld [vmem:[%s22900_s27] ss:$0 sm:$0xff] }
 0x3e2   :  { %14637 = vmatprep.subr.bf16.mxu1 %v17722_v3 }
 0x3e4   :  { %13454 = vmatmul.mubr.msk.f32.gmra.mrb[66].mxu1 %vm1147_vm0, %v18046_v51 }
 0x3e5   :  { %14639 = vmatpush3.bf16.msra.mxu1 %v17722_v3  ;;  %13500 = vmatprep.mubr.msk.f32.mxu1 %vm1147_vm0, %v18024_v40 }
 0x3e6   :  { %14641 = vmatprep.subr.bf16.mxu1 %v17745_v1 }
 0x3e9   :  { %14643 = vmatpush3.bf16.msra.mxu1 %v17745_v1 }
 0x3ea   :  { %14645 = vmatprep.subr.bf16.mxu1 %v17768_v34 }
 0x3ed   :  { %14647 = vmatpush3.bf16.msra.mxu1 %v17768_v34 }
 0x3ee   :  { %14681 = vmatprep.subr.bf16.mxu1 %v17918_v60 }
 0x3f0   :  { %13501 = vmatmul.mubr.msk.f32.vlgmr.msra.gmra.mrb[68].mxu1 %vm1147_vm0, %v18036_v47 }
 0x3f1   :  { %13503 = vmatprep.mubr.msk.f32.mxu1 %vm1147_vm0, %v18039_v36  ;;  %14683 = vmatpush3.bf16.msra.mxu1 %v17918_v60 }
 0x3f2   :  { %14685 = vmatprep.subr.bf16.mxu1 %v17929_v12 }
 0x3f4   :  { %13504 = vmatmul.mubr.msk.f32.gmra.mrb[70].mxu1 %vm1147_vm0, %v18046_v51 }
 0x3f5   :  { %14687 = vmatpush3.bf16.msra.mxu1 %v17929_v12  ;;  %13572 = vmatprep.mubr.msk.f32.mxu1 %vm1147_vm0, %v18024_v40 }
 0x3f6   :  { %14689 = vmatprep.subr.bf16.mxu1 %v17947_v17 }
 0x3f9   :  { %14691 = vmatpush3.bf16.msra.mxu1 %v17947_v17 }
 0x3fa   :  { %14693 = vmatprep.subr.bf16.mxu1 %v17963_v22 }
 0x3fd   :  { %14695 = vmatpush3.bf16.msra.mxu1 %v17963_v22 }
 0x3fe   :  { %14705 = vmatprep.subr.bf16.mxu1 %v18207_v5 }
 0x400   :  { %13573 = vmatmul.mubr.msk.f32.vlgmr.msra.gmra.mrb[72].mxu1 %vm1147_vm0, %v18036_v47 }
 0x401   :  { %13575 = vmatprep.mubr.msk.f32.mxu1 %vm1147_vm0, %v18039_v36  ;;  %14707 = vmatpush3.bf16.msra.mxu1 %v18207_v5 }
 0x402   :  { %14709 = vmatprep.subr.bf16.mxu1 %v18231_v45 }
 0x404   :  { %13576 = vmatmul.mubr.msk.f32.gmra.mrb[74].mxu1 %vm1147_vm0, %v18046_v51 }
 0x405   :  { %14711 = vmatpush3.bf16.msra.mxu1 %v18231_v45  ;;  %13608 = vmatprep.mubr.msk.f32.mxu1 %vm1147_vm0, %v18024_v40 }
 0x406   :  { %14713 = vmatprep.subr.bf16.mxu1 %v18248_v15 }
 0x409   :  { %14715 = vmatpush3.bf16.msra.mxu1 %v18248_v15 }
 0x40a   :  { %14717 = vmatprep.subr.bf16.mxu1 %v18262_v35 }
 0x40d   :  { %14719 = vmatpush3.bf16.msra.mxu1 %v18262_v35 }
 0x40e   :  { %14729 = vmatprep.subr.bf16.mxu1 %v17973_v25 }
 0x410   :  { %13609 = vmatmul.mubr.msk.f32.vlgmr.msra.gmra.mrb[76].mxu1 %vm1147_vm0, %v18036_v47 }
 0x411   :  { %13611 = vmatprep.mubr.msk.f32.mxu1 %vm1147_vm0, %v18039_v36  ;;  %14731 = vmatpush3.bf16.msra.mxu1 %v17973_v25 }
 0x412   :  { %14733 = vmatprep.subr.bf16.mxu1 %v17983_v11 }
 0x414   :  { %13612 = vmatmul.mubr.msk.f32.gmra.mrb[78].mxu1 %vm1147_vm0, %v18046_v51 }
 0x415   :  { %14735 = vmatpush3.bf16.msra.mxu1 %v17983_v11  ;;  %13644 = vmatprep.mubr.msk.f32.mxu1 %vm1147_vm0, %v18024_v40 }
 0x416   :  { %14737 = vmatprep.subr.bf16.mxu1 %v17997_v37 }
 0x419   :  { %14739 = vmatpush3.bf16.msra.mxu1 %v17997_v37 }
 0x41a   :  { %14741 = vmatprep.subr.bf16.mxu1 %v18011_v19 }
 0x41d   :  { %14743 = vmatpush3.bf16.msra.mxu1 %v18011_v19 }
 0x420   :  { %13645 = vmatmul.mubr.msk.f32.vlgmr.msra.gmra.mrb[80].mxu1 %vm1147_vm0, %v18036_v47 }
 0x421   :  { %13647 = vmatprep.mubr.msk.f32.mxu1 %vm1147_vm0, %v18039_v36 }
 0x424   :  { %13648 = vmatmul.mubr.msk.f32.gmra.mrb[82].mxu1 %vm1147_vm0, %v18046_v51 }
 0x4a3   :  { %v13408_v3 = vpop.f32.mrb[56].mxu1 }
 0x4a4   :  { %v18423_v1 = vadd.f32 %v13408_v3, %v18420_v52  ;;  %v2662_v34 = vpop.f32.mrb[57].mxu1 }
 0x4a5   :  { %v18426_v13 = vadd.f32 %v18420_v52, %v2662_v34 }
 0x4a7   :  { %v3922_v53 = vadd.f32 %v18423_v1, %v18426_v13  ;;  %v13411_v50 = vpop.f32.mrb[58].mxu1 }
 0x4a8   :  { %v2672_v21 = vpop.f32.mrb[59].mxu1  ;;  %v18434_v12 = vadd.f32 %v13411_v50, %v18420_v52  ;;  %v22901_v50 = vld [vmem:[#allocation10_spill] sm:$0xff] }
 0x4a9   :  { %v18431_v60 = vadd.f32 %v18420_v52, %v2672_v21  ;;  %v22902_v21 = vld [vmem:[#allocation11_spill] sm:$0xff] }
 0x4ab   :  { %v3923_v17 = vadd.f32 %v3922_v53, %v18431_v60 }
 0x4ad   :  { %v18438_v22 = vadd.f32 %v3923_v17, %v18434_v12  ;;  %v22903_v17 = vld [vmem:[#allocation12_spill] sm:$0xff] }
 0x4b3   :  { %v13452_v25 = vpop.f32.mrb[64].mxu1 }
 0x4b4   :  { %v2859_v11 = vpop.f32.mrb[65].mxu1 }
 0x4b5   :  { %v14616_v37 = vpack.c.bf16 %v13452_v25, %v2859_v11  ;;  %v3925_v25 = vrot.slane %v18438_v22, 4 }
 0x4b7   :  { %v13455_v19 = vpop.f32.mrb[66].mxu1  ;;  %14617 = vmatprep.subr.bf16.mxu0 %v14616_v37 }
 0x4b8   :  { %v2869_v5 = vpop.f32.mrb[67].mxu1  ;;  %14619 = vmatpush3.bf16.msra.mxu0 %v14616_v37 }
 0x4b9   :  { %v14620_v56 = vpack.c.bf16 %v13455_v19, %v2869_v5 }
 0x4bb   :  { %14621 = vmatprep.subr.bf16.mxu0 %v14620_v56 }
 0x4bc   :  { %14623 = vmatpush3.bf16.msra.mxu0 %v14620_v56  ;;  %v3926_v56 = vadd.f32 %v3925_v25, %v18438_v22 }
 0x4bd   :  { %14625 = vmatprep.subr.bf16.mxu0 %v18264_v26 }
 0x4bf   :  { %13465 = vmatmul.mubr.msk.f32.vlgmr.msra.gmra.mrb[84].mxu0 %vm1459_vm2, %v18087_v39 }
 0x4c0   :  { %14627 = vmatpush3.bf16.msra.mxu0 %v18264_v26  ;;  %13467 = vmatprep.mubr.msk.f32.mxu0 %vm1459_vm2, %v18090_v24 }
 0x4c1   :  { %14629 = vmatprep.subr.bf16.mxu0 %v18268_v7 }
 0x4c3   :  { %13468 = vmatmul.mubr.msk.f32.gmra.mrb[86].mxu0 %vm1459_vm2, %v18101_v33  ;;  %v13502_v45 = vpop.f32.mrb[68].mxu1 }
 0x4c4   :  { %14631 = vmatpush3.bf16.msra.mxu0 %v18268_v7  ;;  %v3114_v15 = vpop.f32.mrb[69].mxu1  ;;  %13478 = vmatprep.mubr.msk.f32.mxu0 %vm1459_vm2, %v18104_v42 }
 0x4c5   :  { %v14648_v35 = vpack.c.bf16 %v13502_v45, %v3114_v15 }
 0x4c7   :  { %13479 = vmatmul.mubr.msk.f32.vlgmr.msra.gmra.mrb[84].mxu0 %vm1459_vm2, %v18115_v61  ;;  %v13505_v26 = vpop.f32.mrb[70].mxu1  ;;  %14649 = vmatprep.subr.bf16.mxu0 %v14648_v35 }
 0x4c8   :  { %v3124_v27 = vpop.f32.mrb[71].mxu1  ;;  %14651 = vmatpush3.bf16.msra.mxu0 %v14648_v35  ;;  %13481 = vmatprep.mubr.msk.f32.mxu0 %vm1459_vm2, %v18119_v54 }
 0x4c9   :  { %v14652_v24 = vpack.c.bf16 %v13505_v26, %v3124_v27  ;;  %v3927_v26 = vrot.slane %v3926_v56, 2 }
 0x4cb   :  { %13482 = vmatmul.mubr.msk.f32.gmra.mrb[86].mxu0 %vm1459_vm2, %v18131_v18  ;;  %14653 = vmatprep.subr.bf16.mxu0 %v14652_v24 }
 0x4cc   :  { %14655 = vmatpush3.bf16.msra.mxu0 %v14652_v24  ;;  %13514 = vmatprep.mubr.msk.f32.mxu0 %vm1459_vm2, %v18135_v23 }
 0x4cd   :  { %14657 = vmatprep.subr.bf16.mxu0 %v17789_v43 }
 0x4cf   :  { %13515 = vmatmul.mubr.msk.f32.vlgmr.msra.gmra.mrb[84].mxu0 %vm1459_vm2, %v18146_v46 }
 0x4d0   :  { %14659 = vmatpush3.bf16.msra.mxu0 %v17789_v43  ;;  %13517 = vmatprep.mubr.msk.f32.mxu0 %vm1459_vm2, %v18150_v28 }
 0x4d1   :  { %14661 = vmatprep.subr.bf16.mxu0 %v17846_v55 }
 0x4d3   :  { %13518 = vmatmul.mubr.msk.f32.gmra.mrb[86].mxu0 %vm1459_vm2, %v18161_v6  ;;  %v13574_v33 = vpop.f32.mrb[72].mxu1 }
 0x4d4   :  { %14663 = vmatpush3.bf16.msra.mxu0 %v17846_v55  ;;  %13536 = vmatprep.mubr.msk.f32.mxu0 %vm1147_vm0, %v18024_v40  ;;  %v3462_v42 = vpop.f32.mrb[73].mxu1 }
 0x4d5   :  { %v14696_v61 = vpack.c.bf16 %v13574_v33, %v3462_v42  ;;  %14665 = vmatprep.subr.bf16.mxu0 %v17881_v2  ;;  %v3928_v33 = vadd.f32 %v3927_v26, %v3926_v56 }
 0x4d7   :  { %v13577_v54 = vpop.f32.mrb[74].mxu1 }
 0x4d8   :  { %14667 = vmatpush3.bf16.msra.mxu0 %v17881_v2  ;;  %v3472_v43 = vpop.f32.mrb[75].mxu1 }
 0x4d9   :  { %v14700_v18 = vpack.c.bf16 %v13577_v54, %v3472_v43  ;;  %14669 = vmatprep.subr.bf16.mxu0 %v17904_v9  ;;  %v3929_v54 = vrot.slane %v3928_v33, 1 }
 0x4dc   :  { %14671 = vmatpush3.bf16.msra.mxu0 %v17904_v9 }
 0x4df   :  { %13537 = vmatmul.mubr.msk.f32.vlgmr.msra.gmra.mrb[88].mxu0 %vm1147_vm0, %v18036_v47 }
 0x4e0   :  { %13539 = vmatprep.mubr.msk.f32.mxu0 %vm1147_vm0, %v18039_v36 }
 0x4e3   :  { %13540 = vmatmul.mubr.msk.f32.gmra.mrb[90].mxu0 %vm1147_vm0, %v18046_v51  ;;  %v13610_v55 = vpop.f32.mrb[76].mxu1 }
 0x4e4   :  { %v3636_v40 = vpop.f32.mrb[77].mxu1  ;;  %13550 = vmatprep.mubr.msk.f32.mxu0 %vm1459_vm2, %v18165_v30 }
 0x4e5   :  { %v14720_v2 = vpack.c.bf16 %v13610_v55, %v3636_v40  ;;  %v3930_v55 = vadd.f32 %v3929_v54, %v3928_v33  ;;  %v3999_v33 = vmul.u32 2, %v18068_v31 }
 0x4e7   :  { %v13613_v28 = vpop.f32.mrb[78].mxu1  ;;  %vm4088_vm4 = vcmp.eq.s32.totalorder %v18052_v38, %v3999_v33 }
 0x4e8   :  { %v3646_v6 = vpop.f32.mrb[79].mxu1 }
 0x4e9   :  { %v14724_v7 = vpack.c.bf16 %v13613_v28, %v3646_v6 }
 0x4f3   :  { %v13646_v62 = vpop.f32.mrb[80].mxu1 }
 0x4f4   :  { %v3810_v9 = vpop.f32.mrb[81].mxu1 }
 0x4f5   :  { %v14744_v49 = vpack.c.bf16 %v13646_v62, %v3810_v9 }
 0x4f7   :  { %v13649_v10 = vpop.f32.mrb[82].mxu1 }
 0x4f8   :  { %v3820_v47 = vpop.f32.mrb[83].mxu1 }
 0x4f9   :  { %v14748_v63 = vpack.c.bf16 %v13649_v10, %v3820_v47 }
 0x5b2   :  { %v13538_v8 = vpop.f32.mrb[88].mxu0 }
 0x5b3   :  { %v3288_v36 = vpop.f32.mrb[89].mxu0 }
 0x5b4   :  { %v14672_v3 = vpack.c.bf16 %v13538_v8, %v3288_v36 }
 0x5b6   :  { %v13541_v34 = vpop.f32.mrb[90].mxu0  ;;  %14673 = vmatprep.subr.bf16.mxu0 %v14672_v3 }
 0x5b7   :  { %v3298_v51 = vpop.f32.mrb[91].mxu0  ;;  %14675 = vmatpush3.bf16.msra.mxu0 %v14672_v3 }
 0x5b8   :  { %v14676_v53 = vpack.c.bf16 %v13541_v34, %v3298_v51 }
 0x5ba   :  { %14677 = vmatprep.subr.bf16.mxu0 %v14676_v53 }
 0x5bb   :  { %14679 = vmatpush3.bf16.msra.mxu0 %v14676_v53 }
 0x5bc   :  { %14697 = vmatprep.subr.bf16.mxu0 %v14696_v61 }
 0x5be   :  { %13551 = vmatmul.mubr.msk.f32.vlgmr.msra.gmra.mrb[84].mxu0 %vm1459_vm2, %v18178_v59 }
 0x5bf   :  { %14699 = vmatpush3.bf16.msra.mxu0 %v14696_v61  ;;  %13553 = vmatprep.mubr.msk.f32.mxu0 %vm1459_vm2, %v18181_v44  ;;  %v22904_v44 = vld [vmem:[#allocation13_spill] sm:$0xff] }
 0x5c0   :  { %14701 = vmatprep.subr.bf16.mxu0 %v14700_v18 }
 0x5c2   :  { %13554 = vmatmul.mubr.msk.f32.gmra.mrb[86].mxu0 %vm1459_vm2, %v18201_v0  ;;  %v18515_v0 = vmul.u32 2, %v18050_v4 }
 0x5c3   :  { %14703 = vmatpush3.bf16.msra.mxu0 %v14700_v18  ;;  %13586 = vmatprep.mubr.msk.f32.mxu0 %vm1459_vm2, %v18204_v29 }
 0x5c4   :  { %14721 = vmatprep.subr.bf16.mxu0 %v14720_v2  ;;  %vm4087_vm1 = vcmp.eq.s32.totalorder %v18052_v38, %v18515_v0 }
 0x5c6   :  { %13587 = vmatmul.mubr.msk.f32.vlgmr.msra.gmra.mrb[84].mxu0 %vm1459_vm2, %v22901_v50 }
 0x5c7   :  { %14723 = vmatpush3.bf16.msra.mxu0 %v14720_v2  ;;  %13589 = vmatprep.mubr.msk.f32.mxu0 %vm1459_vm2, %v22902_v21 }
 0x5c8   :  { %14725 = vmatprep.subr.bf16.mxu0 %v14724_v7 }
 0x5ca   :  { %13590 = vmatmul.mubr.msk.f32.gmra.mrb[86].mxu0 %vm1459_vm2, %v22903_v17 }
 0x5cb   :  { %14727 = vmatpush3.bf16.msra.mxu0 %v14724_v7  ;;  %13622 = vmatprep.mubr.msk.f32.mxu0 %vm1459_vm2, %v22904_v44 }
 0x5cc   :  { %14745 = vmatprep.subr.bf16.mxu0 %v14744_v49 }
 0x5ce   :  { %13623 = vmatmul.mubr.msk.f32.vlgmr.msra.gmra.mrb[84].mxu0 %vm1459_vm2, %v18291_v41 }
 0x5cf   :  { %14747 = vmatpush3.bf16.msra.mxu0 %v14744_v49  ;;  %13625 = vmatprep.mubr.msk.f32.mxu0 %vm1459_vm2, %v18295_v14  ;;  %v4000_v14 = vadd.s32 4294967295, %v18515_v0 }
 0x5d0   :  { %14749 = vmatprep.subr.bf16.mxu0 %v14748_v63 }
 0x5d1   :  { %vm4002_vm0 = vcmp.eq.s32.totalorder %v18052_v38, %v4000_v14 }
 0x5d2   :  { %13626 = vmatmul.mubr.msk.f32.gmra.mrb[86].mxu0 %vm1459_vm2, %v18307_v58  ;;  %v18522_v58 = vsel %vm4002_vm0, 1.0, %v22898_v48 }
 0x5d3   :  { %14751 = vmatpush3.bf16.msra.mxu0 %v14748_v63  ;;  %13658 = vmatprep.mubr.msk.f32.mxu0 %vm1459_vm2, %v18311_v57  ;;  %22905 = vst [vmem:[#allocation10_spill] sm:$0xff] %v18522_v58  ;;  %v18525_v57 = vsel %vm4087_vm1, 1.0, %v22898_v48 }
 0x5d4   :  { %22906 = vst [vmem:[#allocation11_spill] sm:$0xff] %v18525_v57  ;;  %13683 = vmatprep.mubr.msk.f32.mxu1 %vm1459_vm2, %v18525_v57 }
 0x5d6   :  { %13659 = vmatmul.mubr.msk.f32.vlgmr.msra.gmra.mrb[84].mxu0 %vm1459_vm2, %v18322_v16 }
 0x5d7   :  { %13661 = vmatprep.mubr.msk.f32.mxu0 %vm1459_vm2, %v18326_v32 }
 0x5da   :  { %13662 = vmatmul.mubr.msk.f32.gmra.mrb[86].mxu0 %vm1459_vm2, %v18335_v20 }
 0x5db   :  { %13672 = vmatprep.mubr.msk.f32.mxu0 %vm1459_vm2, %v18522_v58 }
 0x6a9   :  { %v13660_v16 = vpop.f32.mrb[84].mxu0 }
 0x6aa   :  { %v3919_v32 = vadd.f32 %v13660_v16, %v18420_v52  ;;  %v3895_v20 = vpop.f32.mrb[85].mxu0 }
 0x6ab   :  { %v3918_v11 = vadd.f32 %v18420_v52, %v3895_v20 }
 0x6ad   :  { %v3932_v37 = vadd.f32 %v3919_v32, %v3918_v11  ;;  %v13663_v19 = vpop.f32.mrb[86].mxu0 }
 0x6ae   :  { %v3905_v5 = vpop.f32.mrb[87].mxu0  ;;  %v3921_v15 = vadd.f32 %v13663_v19, %v18420_v52 }
 0x6af   :  { %v3920_v45 = vadd.f32 %v18420_v52, %v3905_v5 }
 0x6b1   :  { %v3933_v35 = vadd.f32 %v3932_v37, %v3920_v45 }
 0x6b3   :  { %v3934_v27 = vadd.f32 %v3933_v35, %v3921_v15 }
 0x6b5   :  { %v3935_v24 = vrot.slane %v3934_v27, 4 }
 0x6b7   :  { %v3936_v42 = vadd.f32 %v3935_v24, %v3934_v27 }
 0x6b9   :  { %v3937_v61 = vrot.slane %v3936_v42, 2 }
 0x6bb   :  { %v3938_v43 = vadd.f32 %v3937_v61, %v3936_v42 }
 0x6bd   :  { %v3939_v18 = vrot.slane %v3938_v43, 1 }
 0x6bf   :  { %v3940_v40 = vadd.f32 %v3939_v18, %v3938_v43 }
 0x6c1   :  { %v3941_v2 = vadd.f32 %v3940_v40, %v3930_v55 }
 0x6c3   :  { %v3942_v28 = vmul.f32 0.015625, %v3941_v2 }
 0x6c5   :  { %v3943_v22 = vsub.f32 %v18426_v13, %v3942_v28  ;;  %v3944_v6 = vsub.f32 %v18423_v1, %v3942_v28  ;;  %v3945_v52 = vsub.f32 %v18431_v60, %v3942_v28  ;;  %v3946_v7 = vsub.f32 %v18434_v12, %v3942_v28 }
 0x6c6   :  { %v3961_v62 = vsub.f32 %v3918_v11, %v3942_v28  ;;  %v3962_v9 = vsub.f32 %v3919_v32, %v3942_v28  ;;  %v3963_v49 = vsub.f32 %v3920_v45, %v3942_v28  ;;  %v3964_v10 = vsub.f32 %v3921_v15, %v3942_v28 }
 0x6c7   :  { %v3947_v47 = vmul.f32 %v3943_v22, %v3943_v22  ;;  %v3948_v63 = vmul.f32 %v3944_v6, %v3944_v6  ;;  %v3949_v3 = vmul.f32 %v3945_v52, %v3945_v52  ;;  %v3950_v21 = vmul.f32 %v3946_v7, %v3946_v7 }
 0x6c8   :  { %v3965_v8 = vmul.f32 %v3961_v62, %v3961_v62  ;;  %v3966_v36 = vmul.f32 %v3962_v9, %v3962_v9  ;;  %v3967_v51 = vmul.f32 %v3963_v49, %v3963_v49  ;;  %v3968_v17 = vmul.f32 %v3964_v10, %v3964_v10 }
 0x6c9   :  { %v3951_v34 = vadd.f32 %v3948_v63, %v3947_v47 }
 0x6ca   :  { %v3969_v53 = vadd.f32 %v3966_v36, %v3965_v8 }
 0x6cb   :  { %v3952_v13 = vadd.f32 %v3951_v34, %v3949_v3 }
 0x6cc   :  { %v3970_v1 = vadd.f32 %v3969_v53, %v3967_v51 }
 0x6cd   :  { %v3953_v14 = vadd.f32 %v3952_v13, %v3950_v21 }
 0x6ce   :  { %v3971_v60 = vadd.f32 %v3970_v1, %v3968_v17  ;;  %v4493_v17 = vld [vmem:[%s22908_s0 + $0x8] sm:$0xff] }
 0x6cf   :  { %v3954_v16 = vrot.slane %v3953_v14, 4 }
 0x6d0   :  { %v3972_v12 = vrot.slane %v3971_v60, 4 }
 0x6d1   :  { %v3955_v20 = vadd.f32 %v3954_v16, %v3953_v14  ;;  %v11618_v16 = vld [vmem:[%s22908_s0 + $0x98] sm:$0xff] }
 0x6d2   :  { %v3973_v32 = vadd.f32 %v3972_v12, %v3971_v60  ;;  %v11617_v60 = vld [vmem:[%s22908_s0 + $0x90] sm:$0xff] }
 0x6d3   :  { %v3956_v25 = vrot.slane %v3955_v20, 2  ;;  %v4494_v12 = vld [vmem:[%s22908_s0 + $0x10] sm:$0xff] }
 0x6d4   :  { %v3974_v11 = vrot.slane %v3973_v32, 2 }
 0x6d5   :  { %v3957_v37 = vadd.f32 %v3956_v25, %v3955_v20  ;;  %v4495_v20 = vld [vmem:[%s22908_s0 + $0x18] sm:$0xff] }
 0x6d6   :  { %v3975_v19 = vadd.f32 %v3974_v11, %v3973_v32  ;;  %v18595_v32 = vpack.c.bf16 %v11618_v16, %v11617_v60  ;;  %v18597_v25 = vpack.c.bf16 %v4495_v20, %v4494_v12  ;;  %v11619_v11 = vld [vmem:[%s22908_s0 + $0xa0] sm:$0xff] }
 0x6d7   :  { %v3958_v5 = vrot.slane %v3957_v37, 1 }
 0x6d8   :  { %v3976_v56 = vrot.slane %v3975_v19, 1 }
 0x6d9   :  { %v3959_v45 = vadd.f32 %v3958_v5, %v3957_v37  ;;  %v11620_v37 = vld [vmem:[%s22908_s0 + $0xa8] sm:$0xff] }
 0x6da   :  { %v3977_v15 = vadd.f32 %v3976_v56, %v3975_v19  ;;  %v4496_v19 = vld [vmem:[%s22908_s0 + $0x20] sm:$0xff]  ;;  %v4497_v5 = vld [vmem:[%s22908_s0 + $0x28] sm:$0xff]  ;;  %v18617_v56 = vpack.c.bf16 %v11620_v37, %v11619_v11  ;;  %v11637_v11 = vld [vmem:[%s22908_s0 + $0x110] sm:$0xff] }
 0x6db   :  { %v11638_v37 = vld [vmem:[%s22908_s0 + $0x118] sm:$0xff] }
 0x6dc   :  { %v3978_v35 = vadd.f32 %v3977_v15, %v3959_v45  ;;  %v18619_v45 = vpack.c.bf16 %v4497_v5, %v4496_v19  ;;  %v11621_v15 = vld [vmem:[%s22908_s0 + $0xb0] sm:$0xff] }
 0x6de   :  { %v3979_v26 = vmul.f32 0.015625, %v3978_v35  ;;  %v11622_v35 = vld [vmem:[%s22908_s0 + $0xb8] sm:$0xff] }
 0x6e0   :  { %v3980_v27 = vadd.f32 1e-05, %v3979_v26  ;;  %v4498_v26 = vld [vmem:[%s22908_s0 + $0x30] sm:$0xff] }
 0x6e2   :  { %16482 = vrsqrt.f32 %v3980_v27  ;;  %v4499_v27 = vld [vmem:[%s22908_s0 + $0x38] sm:$0xff] }
 0x6ec   :  { %v16483_v24 = vpop.eup %16482 }
 0x6ed   :  { %v3990_v42 = vmul.f32 %v16483_v24, %v3961_v62  ;;  %v3991_v61 = vmul.f32 %v16483_v24, %v3962_v9  ;;  %v3992_v54 = vmul.f32 %v16483_v24, %v3963_v49  ;;  %v3993_v43 = vmul.f32 %v16483_v24, %v3964_v10  ;;  %v11615_v49 = vld [vmem:[%s22908_s0 + $0x80] sm:$0xff] }
 0x6ee   :  { %v3982_v18 = vmul.f32 %v16483_v24, %v3943_v22  ;;  %v3983_v55 = vmul.f32 %v16483_v24, %v3944_v6  ;;  %v3984_v40 = vmul.f32 %v16483_v24, %v3945_v52  ;;  %v3985_v2 = vmul.f32 %v16483_v24, %v3946_v7  ;;  %v4492_v10 = vld [vmem:[%s22908_s0] sm:$0xff] }
 0x6ef   :  { %v3994_v28 = vmax.f32 %v3990_v42, 0.0  ;;  %v3995_v47 = vmax.f32 %v3991_v61, 0.0  ;;  %v3996_v63 = vmax.f32 %v3992_v54, 0.0  ;;  %v3997_v8 = vmax.f32 %v3993_v43, 0.0  ;;  %v11623_v42 = vld [vmem:[%s22908_s0 + $0xc0] sm:$0xff]  ;;  %v11624_v61 = vld [vmem:[%s22908_s0 + $0xc8] sm:$0xff] }
 0x6f0   :  { %v3986_v36 = vmax.f32 %v3982_v18, 0.0  ;;  %v3987_v3 = vmax.f32 %v3983_v55, 0.0  ;;  %v3988_v34 = vmax.f32 %v3984_v40, 0.0  ;;  %v3989_v51 = vmax.f32 %v3985_v2, 0.0  ;;  %v4500_v54 = vld [vmem:[%s22908_s0 + $0x40] sm:$0xff]  ;;  %v4501_v43 = vld [vmem:[%s22908_s0 + $0x48] sm:$0xff] }
 0x6f1   :  { %v14776_v53 = vpack.c.bf16 %v3995_v47, %v3994_v28  ;;  %v14780_v21 = vpack.c.bf16 %v3997_v8, %v3996_v63  ;;  %v4001_v62 = vadd.s32 4294967295, %v3999_v33  ;;  %v4172_v22 = vadd.s32 1, %v18515_v0  ;;  %v11625_v40 = vld [vmem:[%s22908_s0 + $0xd0] sm:$0xff]  ;;  %v11626_v2 = vld [vmem:[%s22908_s0 + $0xd8] sm:$0xff] }
 0x6f2   :  { %v14752_v13 = vpack.c.bf16 %v3987_v3, %v3986_v36  ;;  %v14756_v31 = vpack.c.bf16 %v3989_v51, %v3988_v34  ;;  %v4090_v52 = vsel %vm4088_vm4, 1.0, %v22898_v48  ;;  %v4173_v7 = vadd.s32 1, %v3999_v33  ;;  %v4502_v47 = vld [vmem:[%s22908_s0 + $0x50] sm:$0xff]  ;;  %v4503_v63 = vld [vmem:[%s22908_s0 + $0x58] sm:$0xff]  ;;  %v11627_v36 = vld [vmem:[%s22908_s0 + $0xe0] sm:$0xff] }
 0x6f3   :  { %vm4003_vm3 = vcmp.eq.s32.totalorder %v18052_v38, %v4001_v62  ;;  %vm4174_vm5 = vcmp.eq.s32.totalorder %v18052_v38, %v4172_v22  ;;  %v18575_v14 = vpack.c.bf16 %v4493_v17, %v4492_v10  ;;  %v18637_v24 = vpack.c.bf16 %v11622_v35, %v11621_v15  ;;  %v11628_v3 = vld [vmem:[%s22908_s0 + $0xe8] sm:$0xff]  ;;  %v4504_v51 = vld [vmem:[%s22908_s0 + $0x60] sm:$0xff]  ;;  %v4506_v22 = vld [vmem:[%s22908_s0 + $0x70] sm:$0xff] }
 0x6f4   :  { %14753 = vmatprep.subr.bf16.mxu0 %v14752_v13  ;;  %14761 = vmatprep.subr.bf16.mxu1 %v14752_v13  ;;  %v4005_v6 = vsel %vm4003_vm3, 1.0, %v22898_v48  ;;  %v18551_v0 = vsel %vm4174_vm5, 1.0, %v22898_v48  ;;  %vm4175_vm6 = vcmp.eq.s32.totalorder %v18052_v38, %v4173_v7  ;;  %v11616_v38 = vld [vmem:[%s22908_s0 + $0x88] sm:$0xff]  ;;  %v18639_v33 = vpack.c.bf16 %v4499_v27, %v4498_v26  ;;  %v11635_v7 = vld [vmem:[%s22908_s0 + $0x100] sm:$0xff] }
 0x6f5   :  { %14755 = vmatpush3.bf16.msra.mxu0 %v14752_v13  ;;  %14763 = vmatpush3.bf16.msra.mxu1 %v14752_v13  ;;  %22907 = vst [vmem:[#allocation12_spill] sm:$0xff] %v18551_v0  ;;  %v4177_v9 = vsel %vm4175_vm6, 1.0, %v22898_v48  ;;  %v18573_v1 = vpack.c.bf16 %v11616_v38, %v11615_v49  ;;  %v18657_v18 = vpack.c.bf16 %v11624_v61, %v11623_v42  ;;  %v11639_v42 = vld [vmem:[%s22908_s0 + $0x120] sm:$0xff]  ;;  %v11640_v61 = vld [vmem:[%s22908_s0 + $0x128] sm:$0xff] }
 0x6f6   :  { %14757 = vmatprep.subr.bf16.mxu0 %v14756_v31  ;;  %14765 = vmatprep.subr.bf16.mxu1 %v14756_v31  ;;  %v18659_v55 = vpack.c.bf16 %v4501_v43, %v4500_v54  ;;  %v18673_v28 = vpack.c.bf16 %v11626_v2, %v11625_v40  ;;  %v18681_v8 = vpack.c.bf16 %v4503_v63, %v4502_v47  ;;  %v11641_v43 = vld [vmem:[%s22908_s0 + $0x130] sm:$0xff]  ;;  %v11642_v40 = vld [vmem:[%s22908_s0 + $0x138] sm:$0xff] }
 0x6f7   :  { %v18693_v34 = vpack.c.bf16 %v11628_v3, %v11627_v36  ;;  %v18746_v27 = vpack.c.bf16 %v11638_v37, %v11637_v11  ;;  %v18761_v54 = vpack.c.bf16 %v11640_v61, %v11639_v42  ;;  %v11671_v37 = vld [vmem:[%s22908_s0 + $0x200] sm:$0xff]  ;;  %v11674_v42 = vld [vmem:[%s22908_s0 + $0x218] sm:$0xff] }
 0x6f9   :  { %14759 = vmatpush3.bf16.msra.mxu0 %v14756_v31  ;;  %14767 = vmatpush3.bf16.msra.mxu1 %v14756_v31 }
 0x6fa   :  { %14769 = vmatprep.subr.bf16.mxu0 %v14752_v13  ;;  %14777 = vmatprep.subr.bf16.mxu1 %v14776_v53 }
 0x6fc   :  { %13673 = vmatmul.mubr.msk.f32.vlgmr.msra.gmra.mrb[92].mxu0 %vm1459_vm2, %v4005_v6  ;;  %13684 = vmatmul.mubr.msk.f32.vlgmr.msra.gmra.mrb[84].mxu1 %vm1459_vm2, %v4090_v52 }
 0x6fd   :  { %14771 = vmatpush3.bf16.msra.mxu0 %v14752_v13  ;;  %14779 = vmatpush3.bf16.msra.mxu1 %v14776_v53  ;;  %v11629_v13 = vld [vmem:[%s22908_s0 + $0xf0] sm:$0xff] }
 0x6fe   :  { %14773 = vmatprep.subr.bf16.mxu0 %v14756_v31  ;;  %14781 = vmatprep.subr.bf16.mxu1 %v14780_v21 }
 0x6ff   :  { %13694 = vmatprep.mubr.msk.f32.mxu0 %vm1459_vm2, %v18551_v0  ;;  %13705 = vmatprep.mubr.msk.f32.mxu1 %vm1459_vm2, %v18522_v58 }
 0x701   :  { %14775 = vmatpush3.bf16.msra.mxu0 %v14756_v31  ;;  %14783 = vmatpush3.bf16.msra.mxu1 %v14780_v21  ;;  %v11630_v31 = vld [vmem:[%s22908_s0 + $0xf8] sm:$0xff] }
 0x702   :  { %14785 = vmatprep.subr.bf16.mxu0 %v14776_v53  ;;  %14793 = vmatprep.subr.bf16.mxu1 %v14776_v53  ;;  %v18713_v62 = vpack.c.bf16 %v11630_v31, %v11629_v13  ;;  %v11643_v31 = vld [vmem:[%s22908_s0 + $0x140] sm:$0xff] }
 0x704   :  { %13695 = vmatmul.mubr.msk.f32.vlgmr.msra.gmra.mrb[94].mxu0 %vm1459_vm2, %v4177_v9  ;;  %13706 = vmatmul.mubr.msk.f32.vlgmr.msra.gmra.mrb[86].mxu1 %vm1459_vm2, %v4005_v6  ;;  %v4507_v6 = vld [vmem:[%s22908_s0 + $0x78] sm:$0xff] }
 0x705   :  { %14787 = vmatpush3.bf16.msra.mxu0 %v14776_v53  ;;  %14795 = vmatpush3.bf16.msra.mxu1 %v14776_v53  ;;  %v4505_v53 = vld [vmem:[%s22908_s0 + $0x68] sm:$0xff] }
 0x706   :  { %14789 = vmatprep.subr.bf16.mxu0 %v14780_v21  ;;  %14797 = vmatprep.subr.bf16.mxu1 %v14780_v21 }
 0x707   :  { %13716 = vmatprep.mubr.msk.f32.mxu0 %vm1459_vm2, %v18525_v57  ;;  %13727 = vmatprep.mubr.msk.f32.mxu1 %vm1459_vm2, %v18551_v0 }
 0x709   :  { %14791 = vmatpush3.bf16.msra.mxu0 %v14780_v21  ;;  %14799 = vmatpush3.bf16.msra.mxu1 %v14780_v21  ;;  %v18701_v21 = vpack.c.bf16 %v4505_v53, %v4504_v51  ;;  %v18771_v53 = vpack.c.bf16 %v11642_v40, %v11641_v43  ;;  %v11675_v43 = vld [vmem:[%s22908_s0 + $0x220] sm:$0xff]  ;;  %v11676_v40 = vld [vmem:[%s22908_s0 + $0x228] sm:$0xff] }
 0x70a   :  { %14833 = vmatprep.subr.bf16.mxu1 %v18573_v1  ;;  %14801 = vmatprep.subr.bf16.mxu0 %v18575_v14 }
 0x70c   :  { %13717 = vmatmul.mubr.msk.f32.vlgmr.msra.gmra.mrb[96].mxu0 %vm1459_vm2, %v4090_v52  ;;  %13728 = vmatmul.mubr.msk.f32.vlgmr.msra.gmra.mrb[88].mxu1 %vm1459_vm2, %v4177_v9  ;;  %v18721_v52 = vpack.c.bf16 %v4507_v6, %v4506_v22  ;;  %v11636_v9 = vld [vmem:[%s22908_s0 + $0x108] sm:$0xff]  ;;  %vm4675_vm2 = vcmask 130048  }
 0x70d   :  { %14835 = vmatpush3.bf16.msra.mxu1 %v18573_v1  ;;  %14803 = vmatpush3.bf16.msra.mxu0 %v18575_v14  ;;  %v18733_v49 = vpack.c.bf16 %v11636_v9, %v11635_v7  ;;  %v11644_v22 = vld [vmem:[%s22908_s0 + $0x148] sm:$0xff]  ;;  %v11645_v9 = vld [vmem:[%s22908_s0 + $0x150] sm:$0xff] }
 0x70e   :  { %14837 = vmatprep.subr.bf16.mxu1 %v18595_v32  ;;  %14805 = vmatprep.subr.bf16.mxu0 %v18597_v25  ;;  %v18785_v7 = vpack.c.bf16 %v11644_v22, %v11643_v31  ;;  %v11681_v22 = vld [vmem:[%s22908_s0 + $0x250] sm:$0xff] }
 0x711   :  { %14839 = vmatpush3.bf16.msra.mxu1 %v18595_v32  ;;  %14807 = vmatpush3.bf16.msra.mxu0 %v18597_v25 }
 0x712   :  { %14841 = vmatprep.subr.bf16.mxu1 %v18617_v56  ;;  %14809 = vmatprep.subr.bf16.mxu0 %v18619_v45 }
 0x715   :  { %14843 = vmatpush3.bf16.msra.mxu1 %v18617_v56  ;;  %14811 = vmatpush3.bf16.msra.mxu0 %v18619_v45 }
 0x716   :  { %14845 = vmatprep.subr.bf16.mxu1 %v18637_v24  ;;  %14813 = vmatprep.subr.bf16.mxu0 %v18639_v33 }
 0x719   :  { %14847 = vmatpush3.bf16.msra.mxu1 %v18637_v24  ;;  %14815 = vmatpush3.bf16.msra.mxu0 %v18639_v33 }
 0x71a   :  { %14849 = vmatprep.subr.bf16.mxu1 %v18657_v18  ;;  %14817 = vmatprep.subr.bf16.mxu0 %v18659_v55 }
 0x71d   :  { %14851 = vmatpush3.bf16.msra.mxu1 %v18657_v18  ;;  %14819 = vmatpush3.bf16.msra.mxu0 %v18659_v55 }
 0x71e   :  { %14853 = vmatprep.subr.bf16.mxu1 %v18673_v28  ;;  %14821 = vmatprep.subr.bf16.mxu0 %v18681_v8 }
 0x721   :  { %14855 = vmatpush3.bf16.msra.mxu1 %v18673_v28  ;;  %14823 = vmatpush3.bf16.msra.mxu0 %v18681_v8 }
 0x722   :  { %14857 = vmatprep.subr.bf16.mxu1 %v18693_v34  ;;  %14825 = vmatprep.subr.bf16.mxu0 %v18701_v21 }
 0x725   :  { %14859 = vmatpush3.bf16.msra.mxu1 %v18693_v34  ;;  %14827 = vmatpush3.bf16.msra.mxu0 %v18701_v21 }
 0x726   :  { %14861 = vmatprep.subr.bf16.mxu1 %v18713_v62  ;;  %14829 = vmatprep.subr.bf16.mxu0 %v18721_v52 }
 0x729   :  { %14863 = vmatpush3.bf16.msra.mxu1 %v18713_v62  ;;  %14831 = vmatpush3.bf16.msra.mxu0 %v18721_v52 }
 0x72a   :  { %14873 = vmatprep.subr.bf16.mxu1 %v18733_v49 }
 0x7cf   :  { %v13674_v38 = vpop.f32.mrb[92].mxu0  ;;  %v13685_v10 = vpop.f32.mrb[84].mxu1 }
 0x7d0   :  { %v4260_v17 = vmax.f32 %v13674_v38, %v13685_v10  ;;  %v4078_v60 = vpop.f32.mrb[93].mxu0  ;;  %v4163_v16 = vpop.f32.mrb[85].mxu1  ;;  %v11646_v38 = vld [vmem:[%s22908_s0 + $0x158] sm:$0xff] }
 0x7d1   :  { %v4259_v12 = vmax.f32 %v4078_v60, %v4163_v16  ;;  %v18795_v10 = vpack.c.bf16 %v11646_v38, %v11645_v9  ;;  %v11648_v60 = vld [vmem:[%s22908_s0 + $0x168] sm:$0xff]  ;;  %v11682_v9 = vld [vmem:[%s22908_s0 + $0x258] sm:$0xff] }
 0x7d2   :  { %v18877_v38 = vpack.c.bf16 %v11682_v9, %v11681_v22  ;;  %v11664_v22 = vld [vmem:[%s22908_s0 + $0x1d8] sm:$0xff] }
 0x7d7   :  { %v13696_v20 = vpop.f32.mrb[94].mxu0  ;;  %v13707_v19 = vpop.f32.mrb[86].mxu1 }
 0x7d8   :  { %v18742_v5 = vmax.f32 %v4260_v17, %v13696_v20  ;;  %v4250_v15 = vpop.f32.mrb[95].mxu0  ;;  %v4329_v35 = vpop.f32.mrb[87].mxu1  ;;  %v11647_v17 = vld [vmem:[%s22908_s0 + $0x160] sm:$0xff]  ;;  %v11650_v20 = vld [vmem:[%s22908_s0 + $0x178] sm:$0xff] }
 0x7d9   :  { %v18744_v26 = vmax.f32 %v4259_v12, %v4250_v15  ;;  %v18805_v16 = vpack.c.bf16 %v11648_v60, %v11647_v17  ;;  %v11649_v12 = vld [vmem:[%s22908_s0 + $0x170] sm:$0xff]  ;;  %v11683_v17 = vld [vmem:[%s22908_s0 + $0x260] sm:$0xff]  ;;  %v11684_v60 = vld [vmem:[%s22908_s0 + $0x268] sm:$0xff] }
 0x7da   :  { %v18815_v11 = vpack.c.bf16 %v11650_v20, %v11649_v12  ;;  %v18887_v12 = vpack.c.bf16 %v11684_v60, %v11683_v17  ;;  %v11685_v20 = vld [vmem:[%s22908_s0 + $0x270] sm:$0xff]  ;;  %v11665_v17 = vld [vmem:[%s22908_s0 + $0x1e0] sm:$0xff]  ;;  %v11666_v60 = vld [vmem:[%s22908_s0 + $0x1e8] sm:$0xff] }
 0x7db   :  { %13762 = vmatprep.mubr.f32.mxu0 %v18744_v26  ;;  %13797 = vmatprep.mubr.f32.mxu1 %v18744_v26 }
 0x7dc   :  { %13763 = vmatmul.mubr.f32.vlgmr.msra.gmra.mrb[98].mxu0 %v18742_v5  ;;  %13798 = vmatmul.mubr.f32.vlgmr.msra.gmra.mrb[90].mxu1 %v18742_v5 }
 0x7dd   :  { %14875 = vmatpush3.bf16.msra.mxu1 %v18733_v49  ;;  %13846 = vmatprep.mubr.f32.mxu1 %v18744_v26 }
 0x7de   :  { %14877 = vmatprep.subr.bf16.mxu1 %v18746_v27  ;;  %13804 = vmatprep.mubr.msk.f32.mxu0 %vm4675_vm2, %v18135_v23 }
 0x7df   :  { %v13718_v2 = vpop.f32.mrb[96].mxu0  ;;  %v13729_v47 = vpop.f32.mrb[88].mxu1 }
 0x7e0   :  { %v4489_v63 = vmax.f32 %v13707_v19, %v13718_v2  ;;  %v4404_v36 = vpop.f32.mrb[97].mxu0  ;;  %v4479_v3 = vpop.f32.mrb[89].mxu1  ;;  %v11672_v19 = vld [vmem:[%s22908_s0 + $0x208] sm:$0xff]  ;;  %v18847_v2 = vpack.c.bf16 %v11676_v40, %v11675_v43  ;;  %v11660_v43 = vld [vmem:[%s22908_s0 + $0x1b8] sm:$0xff] }
 0x7e1   :  { %14879 = vmatpush3.bf16.msra.mxu1 %v18746_v27  ;;  %v4488_v51 = vmax.f32 %v4329_v35, %v4404_v36  ;;  %v18825_v15 = vpack.c.bf16 %v11672_v19, %v11671_v37  ;;  %v11673_v35 = vld [vmem:[%s22908_s0 + $0x210] sm:$0xff]  ;;  %v11686_v37 = vld [vmem:[%s22908_s0 + $0x278] sm:$0xff] }
 0x7e2   :  { %14881 = vmatprep.subr.bf16.mxu1 %v18761_v54  ;;  %v18773_v13 = vmax.f32 %v4489_v63, %v13729_v47  ;;  %v18835_v61 = vpack.c.bf16 %v11674_v42, %v11673_v35  ;;  %v11677_v47 = vld [vmem:[%s22908_s0 + $0x230] sm:$0xff]  ;;  %v11678_v63 = vld [vmem:[%s22908_s0 + $0x238] sm:$0xff]  ;;  %v18897_v19 = vpack.c.bf16 %v11686_v37, %v11685_v20  ;;  %v11658_v35 = vld [vmem:[%s22908_s0 + $0x1a8] sm:$0xff]  ;;  %v18989_v20 = vpack.c.bf16 %v11666_v60, %v11665_v17 }
 0x7e3   :  { %v18781_v6 = vmax.f32 %v4488_v51, %v4479_v3  ;;  %v18857_v36 = vpack.c.bf16 %v11678_v63, %v11677_v47  ;;  %v11679_v3 = vld [vmem:[%s22908_s0 + $0x240] sm:$0xff]  ;;  %v11680_v51 = vld [vmem:[%s22908_s0 + $0x248] sm:$0xff]  ;;  %v11659_v42 = vld [vmem:[%s22908_s0 + $0x1b0] sm:$0xff] }
 0x7e4   :  { %v18867_v31 = vpack.c.bf16 %v11680_v51, %v11679_v3  ;;  %v18959_v40 = vpack.c.bf16 %v11660_v43, %v11659_v42  ;;  %v11661_v47 = vld [vmem:[%s22908_s0 + $0x1c0] sm:$0xff]  ;;  %v11662_v63 = vld [vmem:[%s22908_s0 + $0x1c8] sm:$0xff]  ;;  %v11663_v51 = vld [vmem:[%s22908_s0 + $0x1d0] sm:$0xff] }
 0x7e5   :  { %14883 = vmatpush3.bf16.msra.mxu1 %v18761_v54  ;;  %v18969_v3 = vpack.c.bf16 %v11662_v63, %v11661_v47  ;;  %v18979_v9 = vpack.c.bf16 %v11664_v22, %v11663_v51  ;;  %v11667_v37 = vld [vmem:[%s22908_s0 + $0x1f0] sm:$0xff]  ;;  %v11715_v17 = vld [vmem:[%s22798_s7 + $0x148] sm:$0xff]  ;;  %v11717_v60 = vld [vmem:[%s22798_s7 + $0x158] sm:$0xff] }
 0x7e6   :  { %14885 = vmatprep.subr.bf16.mxu1 %v18771_v53 }
 0x7e9   :  { %14887 = vmatpush3.bf16.msra.mxu1 %v18771_v53 }
 0x7ea   :  { %14889 = vmatprep.subr.bf16.mxu1 %v18785_v7 }
 0x7ed   :  { %14891 = vmatpush3.bf16.msra.mxu1 %v18785_v7 }
 0x7ee   :  { %14893 = vmatprep.subr.bf16.mxu1 %v18795_v10 }
 0x7f1   :  { %14895 = vmatpush3.bf16.msra.mxu1 %v18795_v10 }
 0x7f2   :  { %14897 = vmatprep.subr.bf16.mxu1 %v18805_v16 }
 0x7f5   :  { %14899 = vmatpush3.bf16.msra.mxu1 %v18805_v16 }
 0x7f6   :  { %14901 = vmatprep.subr.bf16.mxu1 %v18815_v11 }
 0x7f9   :  { %14903 = vmatpush3.bf16.msra.mxu1 %v18815_v11 }
 0x7fa   :  { %14945 = vmatprep.subr.bf16.mxu1 %v18825_v15 }
 0x7fc   :  { %13847 = vmatmul.mubr.f32.vlgmr.msra.gmra.mrb[92].mxu1 %v18742_v5 }
 0x7fd   :  { %14947 = vmatpush3.bf16.msra.mxu1 %v18825_v15  ;;  %13930 = vmatprep.mubr.f32.mxu1 %v18744_v26 }
 0x7fe   :  { %14949 = vmatprep.subr.bf16.mxu1 %v18835_v61 }
 0x801   :  { %14951 = vmatpush3.bf16.msra.mxu1 %v18835_v61 }
 0x802   :  { %14953 = vmatprep.subr.bf16.mxu1 %v18847_v2 }
 0x805   :  { %14955 = vmatpush3.bf16.msra.mxu1 %v18847_v2 }
 0x806   :  { %14957 = vmatprep.subr.bf16.mxu1 %v18857_v36 }
 0x809   :  { %14959 = vmatpush3.bf16.msra.mxu1 %v18857_v36 }
 0x80a   :  { %14961 = vmatprep.subr.bf16.mxu1 %v18867_v31 }
 0x80d   :  { %14963 = vmatpush3.bf16.msra.mxu1 %v18867_v31 }
 0x80e   :  { %14965 = vmatprep.subr.bf16.mxu1 %v18877_v38 }
 0x811   :  { %14967 = vmatpush3.bf16.msra.mxu1 %v18877_v38 }
 0x812   :  { %14969 = vmatprep.subr.bf16.mxu1 %v18887_v12 }
 0x815   :  { %14971 = vmatpush3.bf16.msra.mxu1 %v18887_v12 }
 0x816   :  { %14973 = vmatprep.subr.bf16.mxu1 %v18897_v19 }
 0x819   :  { %14975 = vmatpush3.bf16.msra.mxu1 %v18897_v19 }
 0x81a   :  { %15013 = vmatprep.subr.bf16.mxu1 %v18573_v1 }
 0x81c   :  { %13931 = vmatmul.mubr.f32.vlgmr.msra.gmra.mrb[94].mxu1 %v18742_v5 }
 0x81d   :  { %15015 = vmatpush3.bf16.msra.mxu1 %v18573_v1  ;;  %14007 = vmatprep.mubr.f32.mxu1 %v18781_v6  ;;  %v11653_v1 = vld [vmem:[%s22908_s0 + $0x180] sm:$0xff] }
 0x81e   :  { %15017 = vmatprep.subr.bf16.mxu1 %v18595_v32 }
 0x821   :  { %15019 = vmatpush3.bf16.msra.mxu1 %v18595_v32  ;;  %v11654_v32 = vld [vmem:[%s22908_s0 + $0x188] sm:$0xff] }
 0x822   :  { %15021 = vmatprep.subr.bf16.mxu1 %v18617_v56 }
 0x825   :  { %15023 = vmatpush3.bf16.msra.mxu1 %v18617_v56  ;;  %v18925_v56 = vpack.c.bf16 %v11654_v32, %v11653_v1  ;;  %v11668_v1 = vld [vmem:[%s22908_s0 + $0x1f8] sm:$0xff] }
 0x826   :  { %15025 = vmatprep.subr.bf16.mxu1 %v18637_v24  ;;  %v14936_v32 = vpack.c.bf16 %v11668_v1, %v11667_v37  ;;  %v11714_v37 = vld [vmem:[%s22798_s7 + $0x140] sm:$0xff]  ;;  %v11716_v1 = vld [vmem:[%s22798_s7 + $0x150] sm:$0xff] }
 0x829   :  { %15027 = vmatpush3.bf16.msra.mxu1 %v18637_v24  ;;  %v11655_v24 = vld [vmem:[%s22908_s0 + $0x190] sm:$0xff] }
 0x82a   :  { %15029 = vmatprep.subr.bf16.mxu1 %v18657_v18 }
 0x82d   :  { %15031 = vmatpush3.bf16.msra.mxu1 %v18657_v18  ;;  %v11656_v18 = vld [vmem:[%s22908_s0 + $0x198] sm:$0xff] }
 0x82e   :  { %15033 = vmatprep.subr.bf16.mxu1 %v18673_v28 }
 0x831   :  { %15035 = vmatpush3.bf16.msra.mxu1 %v18673_v28  ;;  %v18937_v28 = vpack.c.bf16 %v11656_v18, %v11655_v24 }
 0x832   :  { %15037 = vmatprep.subr.bf16.mxu1 %v18693_v34 }
 0x835   :  { %15039 = vmatpush3.bf16.msra.mxu1 %v18693_v34  ;;  %v11657_v34 = vld [vmem:[%s22908_s0 + $0x1a0] sm:$0xff] }
 0x836   :  { %15041 = vmatprep.subr.bf16.mxu1 %v18713_v62 }
 0x839   :  { %15043 = vmatpush3.bf16.msra.mxu1 %v18713_v62  ;;  %v18949_v62 = vpack.c.bf16 %v11658_v35, %v11657_v34 }
 0x83a   :  { %15089 = vmatprep.subr.bf16.mxu1 %v18925_v56 }
 0x83c   :  { %14008 = vmatmul.mubr.f32.vlgmr.msra.gmra.mrb[96].mxu1 %v18773_v13 }
 0x83d   :  { %15091 = vmatpush3.bf16.msra.mxu1 %v18925_v56  ;;  %14098 = vmatprep.mubr.f32.mxu1 %v18781_v6 }
 0x83e   :  { %15093 = vmatprep.subr.bf16.mxu1 %v18937_v28 }
 0x841   :  { %15095 = vmatpush3.bf16.msra.mxu1 %v18937_v28 }
 0x842   :  { %15097 = vmatprep.subr.bf16.mxu1 %v18949_v62 }
 0x845   :  { %15099 = vmatpush3.bf16.msra.mxu1 %v18949_v62 }
 0x846   :  { %15101 = vmatprep.subr.bf16.mxu1 %v18959_v40 }
 0x849   :  { %15103 = vmatpush3.bf16.msra.mxu1 %v18959_v40 }
 0x84a   :  { %15105 = vmatprep.subr.bf16.mxu1 %v18969_v3 }
 0x84d   :  { %15107 = vmatpush3.bf16.msra.mxu1 %v18969_v3 }
 0x84e   :  { %15109 = vmatprep.subr.bf16.mxu1 %v18979_v9 }
 0x851   :  { %15111 = vmatpush3.bf16.msra.mxu1 %v18979_v9 }
 0x852   :  { %15113 = vmatprep.subr.bf16.mxu1 %v18989_v20 }
 0x855   :  { %15115 = vmatpush3.bf16.msra.mxu1 %v18989_v20 }
 0x856   :  { %15117 = vmatprep.subr.bf16.mxu1 %v14936_v32 }
 0x859   :  { %15119 = vmatpush3.bf16.msra.mxu1 %v14936_v32 }
 0x85a   :  { %15125 = vmatprep.subr.bf16.mxu1 %v18825_v15 }
 0x85c   :  { %14099 = vmatmul.mubr.f32.vlgmr.msra.gmra.mrb[98].mxu1 %v18773_v13 }
 0x85d   :  { %15127 = vmatpush3.bf16.msra.mxu1 %v18825_v15  ;;  %14140 = vmatprep.mubr.f32.mxu1 %v18781_v6 }
 0x85e   :  { %15129 = vmatprep.subr.bf16.mxu1 %v18835_v61 }
 0x861   :  { %15131 = vmatpush3.bf16.msra.mxu1 %v18835_v61 }
 0x862   :  { %15133 = vmatprep.subr.bf16.mxu1 %v18847_v2 }
 0x865   :  { %15135 = vmatpush3.bf16.msra.mxu1 %v18847_v2 }
 0x866   :  { %15137 = vmatprep.subr.bf16.mxu1 %v18857_v36 }
 0x869   :  { %15139 = vmatpush3.bf16.msra.mxu1 %v18857_v36 }
 0x86a   :  { %15141 = vmatprep.subr.bf16.mxu1 %v18867_v31 }
 0x86d   :  { %15143 = vmatpush3.bf16.msra.mxu1 %v18867_v31 }
 0x86e   :  { %15145 = vmatprep.subr.bf16.mxu1 %v18877_v38 }
 0x871   :  { %15147 = vmatpush3.bf16.msra.mxu1 %v18877_v38  ;;  %v22909_v38 = vld [vmem:[#allocation9_spill] sm:$0xff] }
 0x872   :  { %15149 = vmatprep.subr.bf16.mxu1 %v18887_v12 }
 0x875   :  { %15151 = vmatpush3.bf16.msra.mxu1 %v18887_v12 }
 0x876   :  { %15153 = vmatprep.subr.bf16.mxu1 %v18897_v19 }
 0x879   :  { %15155 = vmatpush3.bf16.msra.mxu1 %v18897_v19 }
 0x87c   :  { %14141 = vmatmul.mubr.f32.vlgmr.msra.gmra.mrb[100].mxu1 %v18773_v13 }
 0x87d   :  { %6803 = vmatprep.mubr.f32.mxu1 %v22898_v48 }
 0x8af   :  { %v13764_v15 = vpop.f32.mrb[98].mxu0  ;;  %v13799_v61 = vpop.f32.mrb[90].mxu1 }
 0x8b0   :  { %v4574_v2 = vpop.f32.mrb[99].mxu0  ;;  %v4666_v36 = vpop.f32.mrb[91].mxu1 }
 0x8b1   :  { %v14868_v31 = vpack.c.bf16 %v13764_v15, %v4574_v2  ;;  %v14864_v24 = vpack.c.bf16 %v13799_v61, %v4666_v36  ;;  %v11719_v15 = vld [vmem:[%s22798_s7 + $0x168] sm:$0xff]  ;;  %v11721_v61 = vld [vmem:[%s22798_s7 + $0x178] sm:$0xff]  ;;  %v11718_v36 = vld [vmem:[%s22798_s7 + $0x160] sm:$0xff] }
 0x8b2   :  { %v19196_v2 = vpack.c.bf16 %v11721_v61, %v11719_v15 }
 0x8b3   :  { %14865 = vmatprep.subr.bf16.mxu0 %v14864_v24 }
 0x8b4   :  { %14867 = vmatpush3.bf16.msra.mxu0 %v14864_v24 }
 0x8b5   :  { %14869 = vmatprep.subr.bf16.mxu0 %v14868_v31 }
 0x8b7   :  { %13805 = vmatmul.mubr.msk.f32.vlgmr.msra.gmra.mrb[100].mxu0 %vm4675_vm2, %v18146_v46 }
 0x8b8   :  { %14871 = vmatpush3.bf16.msra.mxu0 %v14868_v31  ;;  %13811 = vmatprep.mubr.msk.f32.mxu0 %vm4675_vm2, %v22909_v38  ;;  %v11720_v31 = vld [vmem:[%s22798_s7 + $0x170] sm:$0xff] }
 0x8b9   :  { %v19204_v24 = vpack.c.bf16 %v11720_v31, %v11718_v36 }
 0x8bf   :  { %13812 = vmatmul.mubr.msk.f32.vlgmr.msra.gmra.mrb[100].mxu0 %vm4675_vm2, %v18087_v39 }
 0x8c0   :  { %13853 = vmatprep.mubr.msk.f32.mxu0 %vm4675_vm2, %v18165_v30 }
 0x8cf   :  { %v13848_v12 = vpop.f32.mrb[92].mxu1 }
 0x8d0   :  { %v4917_v19 = vpop.f32.mrb[93].mxu1 }
 0x8d1   :  { %v14904_v18 = vpack.c.bf16 %v13848_v12, %v4917_v19  ;;  %v11725_v12 = vld [vmem:[%s22798_s7 + $0x198] sm:$0xff] }
 0x8d3   :  { %14905 = vmatprep.subr.bf16.mxu0 %v14904_v18 }
 0x8d4   :  { %14907 = vmatpush3.bf16.msra.mxu0 %v14904_v18  ;;  %v11722_v18 = vld [vmem:[%s22798_s7 + $0x180] sm:$0xff] }
 0x8d5   :  { %14909 = vmatprep.subr.bf16.mxu0 %v18925_v56 }
 0x8d7   :  { %13854 = vmatmul.mubr.msk.f32.vlgmr.msra.gmra.mrb[100].mxu0 %vm4675_vm2, %v18178_v59 }
 0x8d8   :  { %14911 = vmatpush3.bf16.msra.mxu0 %v18925_v56  ;;  %13888 = vmatprep.mubr.f32.mxu0 %v18744_v26 }
 0x8d9   :  { %14913 = vmatprep.subr.bf16.mxu0 %v18937_v28 }
 0x8dc   :  { %14915 = vmatpush3.bf16.msra.mxu0 %v18937_v28 }
 0x8dd   :  { %14917 = vmatprep.subr.bf16.mxu0 %v18949_v62 }
 0x8e0   :  { %14919 = vmatpush3.bf16.msra.mxu0 %v18949_v62 }
 0x8e1   :  { %14921 = vmatprep.subr.bf16.mxu0 %v18959_v40 }
 0x8e4   :  { %14923 = vmatpush3.bf16.msra.mxu0 %v18959_v40 }
 0x8e5   :  { %14925 = vmatprep.subr.bf16.mxu0 %v18969_v3 }
 0x8e8   :  { %14927 = vmatpush3.bf16.msra.mxu0 %v18969_v3 }
 0x8e9   :  { %14929 = vmatprep.subr.bf16.mxu0 %v18979_v9 }
 0x8ec   :  { %14931 = vmatpush3.bf16.msra.mxu0 %v18979_v9 }
 0x8ed   :  { %14933 = vmatprep.subr.bf16.mxu0 %v18989_v20 }
 0x8ef   :  { %v13932_v26 = vpop.f32.mrb[94].mxu1 }
 0x8f0   :  { %14935 = vmatpush3.bf16.msra.mxu0 %v18989_v20  ;;  %v5263_v56 = vpop.f32.mrb[95].mxu1  ;;  %v19178_v20 = vpack.c.bf16 %v11717_v60, %v11715_v17 }
 0x8f1   :  { %v14976_v28 = vpack.c.bf16 %v13932_v26, %v5263_v56  ;;  %14937 = vmatprep.subr.bf16.mxu0 %v14936_v32  ;;  %v11724_v26 = vld [vmem:[%s22798_s7 + $0x190] sm:$0xff] }
 0x8f2   :  { %v19222_v56 = vpack.c.bf16 %v11724_v26, %v11722_v18 }
 0x8f4   :  { %14939 = vmatpush3.bf16.msra.mxu0 %v14936_v32  ;;  %v19186_v32 = vpack.c.bf16 %v11716_v1, %v11714_v37 }
 0x8f7   :  { %13889 = vmatmul.mubr.f32.vlgmr.msra.gmra.mrb[102].mxu0 %v18742_v5 }
 0x8f8   :  { %13895 = vmatprep.mubr.msk.f32.mxu0 %vm4675_vm2, %v18204_v29 }
 0x90f   :  { %v14009_v34 = vpop.f32.mrb[96].mxu1 }
 0x910   :  { %v5503_v35 = vpop.f32.mrb[97].mxu1 }
 0x911   :  { %v15044_v62 = vpack.c.bf16 %v14009_v34, %v5503_v35  ;;  %v11729_v34 = vld [vmem:[%s22798_s7 + $0x1b8] sm:$0xff] }
 0x92f   :  { %v14100_v42 = vpop.f32.mrb[98].mxu1 }
 0x930   :  { %v5880_v43 = vpop.f32.mrb[99].mxu1 }
 0x931   :  { %v19048_v40 = vpack.c.bf16 %v14100_v42, %v5880_v43  ;;  %v11728_v42 = vld [vmem:[%s22798_s7 + $0x1b0] sm:$0xff] }
 0x94f   :  { %v14142_v47 = vpop.f32.mrb[100].mxu1 }
 0x950   :  { %v6032_v63 = vpop.f32.mrb[101].mxu1 }
 0x951   :  { %v19050_v3 = vpack.c.bf16 %v14142_v47, %v6032_v63 }
 0x9ca   :  { %v13890_v51 = vpop.f32.mrb[102].mxu0 }
 0x9cb   :  { %v5090_v22 = vpop.f32.mrb[103].mxu0 }
 0x9cc   :  { %v14940_v9 = vpack.c.bf16 %v13890_v51, %v5090_v22 }
 0x9ce   :  { %14941 = vmatprep.subr.bf16.mxu0 %v14940_v9 }
 0x9cf   :  { %14943 = vmatpush3.bf16.msra.mxu0 %v14940_v9 }
 0x9d0   :  { %14977 = vmatprep.subr.bf16.mxu0 %v14976_v28 }
 0x9d2   :  { %13896 = vmatmul.mubr.msk.f32.vlgmr.msra.gmra.mrb[100].mxu0 %vm4675_vm2, %v22901_v50 }
 0x9d3   :  { %14979 = vmatpush3.bf16.msra.mxu0 %v14976_v28  ;;  %13937 = vmatprep.mubr.msk.f32.mxu0 %vm4675_vm2, %v22904_v44  ;;  %v11727_v28 = vld [vmem:[%s22798_s7 + $0x1a8] sm:$0xff] }
 0x9d4   :  { %14981 = vmatprep.subr.bf16.mxu0 %v18575_v14  ;;  %v19232_v35 = vpack.c.bf16 %v11729_v34, %v11727_v28 }
 0x9da   :  { %13938 = vmatmul.mubr.msk.f32.vlgmr.msra.gmra.mrb[100].mxu0 %vm4675_vm2, %v18291_v41 }
 0x9db   :  { %14983 = vmatpush3.bf16.msra.mxu0 %v18575_v14  ;;  %13972 = vmatprep.mubr.f32.mxu0 %v18781_v6  ;;  %v19085_v14 = vld [vmem:[%s22797_s6] ss:$0 sm:$0xff] }
 0x9dc   :  { %14985 = vmatprep.subr.bf16.mxu0 %v18597_v25 }
 0x9df   :  { %14987 = vmatpush3.bf16.msra.mxu0 %v18597_v25 }
 0x9e0   :  { %14989 = vmatprep.subr.bf16.mxu0 %v18619_v45 }
 0x9e3   :  { %14991 = vmatpush3.bf16.msra.mxu0 %v18619_v45 }
 0x9e4   :  { %14993 = vmatprep.subr.bf16.mxu0 %v18639_v33 }
 0x9e7   :  { %14995 = vmatpush3.bf16.msra.mxu0 %v18639_v33 }
 0x9e8   :  { %14997 = vmatprep.subr.bf16.mxu0 %v18659_v55 }
 0x9eb   :  { %14999 = vmatpush3.bf16.msra.mxu0 %v18659_v55 }
 0x9ec   :  { %15001 = vmatprep.subr.bf16.mxu0 %v18681_v8 }
 0x9ef   :  { %15003 = vmatpush3.bf16.msra.mxu0 %v18681_v8 }
 0x9f0   :  { %15005 = vmatprep.subr.bf16.mxu0 %v18701_v21 }
 0x9f3   :  { %15007 = vmatpush3.bf16.msra.mxu0 %v18701_v21 }
 0x9f4   :  { %15009 = vmatprep.subr.bf16.mxu0 %v18721_v52 }
 0x9f7   :  { %15011 = vmatpush3.bf16.msra.mxu0 %v18721_v52 }
 0x9f8   :  { %15045 = vmatprep.subr.bf16.mxu0 %v15044_v62 }
 0x9fa   :  { %13973 = vmatmul.mubr.f32.vlgmr.msra.gmra.mrb[104].mxu0 %v18773_v13 }
 0x9fb   :  { %15047 = vmatpush3.bf16.msra.mxu0 %v15044_v62  ;;  %14014 = vmatprep.mubr.msk.f32.mxu0 %vm4675_vm2, %v18135_v23  ;;  %v11726_v62 = vld [vmem:[%s22798_s7 + $0x1a0] sm:$0xff] }
 0x9fc   :  { %v19240_v43 = vpack.c.bf16 %v11728_v42, %v11726_v62 }
 0x9fe   :  { %14015 = vmatmul.mubr.msk.f32.vlgmr.msra.gmra.mrb[106].mxu0 %vm4675_vm2, %v18146_v46 }
 0x9ff   :  { %14021 = vmatprep.mubr.msk.f32.mxu0 %vm4675_vm2, %v22909_v38  ;;  %v11723_v38 = vld [vmem:[%s22798_s7 + $0x188] sm:$0xff] }
 0xa00   :  { %v19214_v19 = vpack.c.bf16 %v11725_v12, %v11723_v38 }
 0xaad   :  { %v13939_v25 = vpop.f32.mrb[100].mxu0 }
 0xaae   :  { %v19088_v45 = vadd.f32 %v13939_v25, %v19085_v14  ;;  %v5342_v33 = vpop.f32.mrb[101].mxu0 }
 0xaaf   :  { %v19091_v55 = vadd.f32 %v19085_v14, %v5342_v33 }
 0xab1   :  { %v19095_v8 = vadd.f32 %v19088_v45, %v19091_v55 }
 0xacd   :  { %v13974_v46 = vpop.f32.mrb[104].mxu0 }
 0xace   :  { %v5428_v21 = vpop.f32.mrb[105].mxu0 }
 0xacf   :  { %v15048_v52 = vpack.c.bf16 %v13974_v46, %v5428_v21 }
 0xad1   :  { %15049 = vmatprep.subr.bf16.mxu0 %v15048_v52 }
 0xad2   :  { %15051 = vmatpush3.bf16.msra.mxu0 %v15048_v52 }
 0xad3   :  { %15053 = vmatprep.subr.bf16.mxu0 %v18733_v49 }
 0xad5   :  { %14022 = vmatmul.mubr.msk.f32.vlgmr.msra.gmra.mrb[106].mxu0 %vm4675_vm2, %v18087_v39 }
 0xad6   :  { %15055 = vmatpush3.bf16.msra.mxu0 %v18733_v49  ;;  %14056 = vmatprep.mubr.f32.mxu0 %v18781_v6  ;;  %v11713_v6 = vld [vmem:[%s22798_s7 + $0x138] sm:$0xff] }
 0xad7   :  { %15057 = vmatprep.subr.bf16.mxu0 %v18746_v27 }
 0xada   :  { %15059 = vmatpush3.bf16.msra.mxu0 %v18746_v27  ;;  %v16543_v27 = vmov 0.0|0.0  }
 0xadb   :  { %15061 = vmatprep.subr.bf16.mxu0 %v18761_v54 }
 0xade   :  { %15063 = vmatpush3.bf16.msra.mxu0 %v18761_v54 }
 0xadf   :  { %15065 = vmatprep.subr.bf16.mxu0 %v18771_v53 }
 0xae2   :  { %15067 = vmatpush3.bf16.msra.mxu0 %v18771_v53 }
 0xae3   :  { %15069 = vmatprep.subr.bf16.mxu0 %v18785_v7 }
 0xae6   :  { %15071 = vmatpush3.bf16.msra.mxu0 %v18785_v7 }
 0xae7   :  { %15073 = vmatprep.subr.bf16.mxu0 %v18795_v10 }
 0xaea   :  { %15075 = vmatpush3.bf16.msra.mxu0 %v18795_v10  ;;  %v11710_v10 = vld [vmem:[%s22798_s7 + $0x120] sm:$0xff] }
 0xaeb   :  { %15077 = vmatprep.subr.bf16.mxu0 %v18805_v16 }
 0xaee   :  { %15079 = vmatpush3.bf16.msra.mxu0 %v18805_v16  ;;  %v11712_v16 = vld [vmem:[%s22798_s7 + $0x130] sm:$0xff] }
 0xaef   :  { %15081 = vmatprep.subr.bf16.mxu0 %v18815_v11 }
 0xaf2   :  { %15083 = vmatpush3.bf16.msra.mxu0 %v18815_v11  ;;  %v19168_v11 = vpack.c.bf16 %v11712_v16, %v11710_v10 }
 0xaf5   :  { %14057 = vmatmul.mubr.f32.vlgmr.msra.gmra.mrb[108].mxu0 %v18773_v13  ;;  %v11711_v13 = vld [vmem:[%s22798_s7 + $0x128] sm:$0xff] }
 0xaf6   :  { %14063 = vmatprep.mubr.msk.f32.mxu0 %vm4675_vm2, %v18165_v30  ;;  %v19160_v7 = vpack.c.bf16 %v11713_v6, %v11711_v13 }
 0xbc8   :  { %v14058_v39 = vpop.f32.mrb[108].mxu0 }
 0xbc9   :  { %v5728_v49 = vpop.f32.mrb[109].mxu0 }
 0xbca   :  { %v15084_v5 = vpack.c.bf16 %v14058_v39, %v5728_v49 }
 0xbcc   :  { %15085 = vmatprep.subr.bf16.mxu0 %v15084_v5 }
 0xbcd   :  { %15087 = vmatpush3.bf16.msra.mxu0 %v15084_v5 }
 0xbce   :  { %15121 = vmatprep.subr.bf16.mxu0 %v19048_v40 }
 0xbd0   :  { %14064 = vmatmul.mubr.msk.f32.vlgmr.msra.gmra.mrb[106].mxu0 %vm4675_vm2, %v18178_v59  ;;  %v11707_v59 = vld [vmem:[%s22798_s7 + $0x108] sm:$0xff] }
 0xbd1   :  { %15123 = vmatpush3.bf16.msra.mxu0 %v19048_v40  ;;  %14105 = vmatprep.mubr.msk.f32.mxu0 %vm4675_vm2, %v18204_v29  ;;  %v6121_v40 = vrot.slane %v19095_v8, 4 }
 0xbd2   :  { %15157 = vmatprep.subr.bf16.mxu0 %v19050_v3 }
 0xbd3   :  { %v6122_v47 = vadd.f32 %v6121_v40, %v19095_v8 }
 0xbd5   :  { %v6123_v9 = vrot.slane %v6122_v47, 2 }
 0xbd7   :  { %v6124_v46 = vadd.f32 %v6123_v9, %v6122_v47 }
 0xbd8   :  { %14106 = vmatmul.mubr.msk.f32.vlgmr.msra.gmra.mrb[106].mxu0 %vm4675_vm2, %v22901_v50  ;;  %v11709_v50 = vld [vmem:[%s22798_s7 + $0x118] sm:$0xff] }
 0xbd9   :  { %15159 = vmatpush3.bf16.msra.mxu0 %v19050_v3  ;;  %14147 = vmatprep.mubr.msk.f32.mxu0 %vm4675_vm2, %v22904_v44  ;;  %v19142_v54 = vpack.c.bf16 %v11709_v50, %v11707_v59  ;;  %v11708_v44 = vld [vmem:[%s22798_s7 + $0x110] sm:$0xff]  ;;  %v6125_v39 = vrot.slane %v6124_v46, 1 }
 0xbda   :  { %15160 = vmatprep.subr.bf16.mxu0 %v16543_v27 }
 0xbdb   :  { %15211 = vmatprep.subr.bf16.mxu1 %v19142_v54  ;;  %v6126_v59 = vadd.f32 %v6125_v39, %v6124_v46  ;;  %v6604_v39 = vld [vmem:[%s22798_s7 + $0x8] sm:$0xff] }
 0xbe0   :  { %14148 = vmatmul.mubr.msk.f32.vlgmr.msra.gmra.mrb[106].mxu0 %vm4675_vm2, %v18291_v41  ;;  %v11706_v41 = vld [vmem:[%s22798_s7 + $0x100] sm:$0xff] }
 0xbe1   :  { %14154 = vmatprep.mubr.msk.f32.mxu0 %vm16544_vm7, %v22898_v48  ;;  %v19150_v53 = vpack.c.bf16 %v11708_v44, %v11706_v41 }
 0xbe3   :  { %15213 = vmatpush1.bf16.msra.mxu1 %v19150_v53 }
 0xbe4   :  { %15215 = vmatprep.subr.bf16.mxu1 %v19160_v7 }
 0xbe7   :  { %15217 = vmatpush1.bf16.msra.mxu1 %v19168_v11 }
 0xbe8   :  { %15219 = vmatprep.subr.bf16.mxu1 %v19178_v20 }
 0xbeb   :  { %15221 = vmatpush1.bf16.msra.mxu1 %v19186_v32 }
 0xbec   :  { %15223 = vmatprep.subr.bf16.mxu1 %v19196_v2 }
 0xbef   :  { %15225 = vmatpush1.bf16.msra.mxu1 %v19204_v24 }
 0xbf0   :  { %15227 = vmatprep.subr.bf16.mxu1 %v19214_v19 }
 0xbf3   :  { %15229 = vmatpush1.bf16.msra.mxu1 %v19222_v56 }
 0xbf4   :  { %15231 = vmatprep.subr.bf16.mxu1 %v19232_v35 }
 0xbf7   :  { %15233 = vmatpush1.bf16.msra.mxu1 %v19240_v43 }
 0xcb3   :  { %v14149_v63 = vpop.f32.mrb[106].mxu0 }
 0xcb4   :  { %v6119_v3 = vadd.f32 %v14149_v63, %v19085_v14  ;;  %v6107_v51 = vpop.f32.mrb[107].mxu0 }
 0xcb5   :  { %v6118_v22 = vadd.f32 %v19085_v14, %v6107_v51 }
 0xcb7   :  { %v6128_v25 = vadd.f32 %v6119_v3, %v6118_v22 }
 0xcb9   :  { %v6129_v33 = vrot.slane %v6128_v25, 4 }
 0xcbb   :  { %v6130_v21 = vadd.f32 %v6129_v33, %v6128_v25 }
 0xcbd   :  { %v6131_v52 = vrot.slane %v6130_v21, 2 }
 0xcbf   :  { %v6132_v49 = vadd.f32 %v6131_v52, %v6130_v21 }
 0xcc1   :  { %v6133_v5 = vrot.slane %v6132_v49, 1 }
 0xcc3   :  { %v6134_v50 = vadd.f32 %v6133_v5, %v6132_v49  ;;  %v6606_v49 = vld [vmem:[%s22798_s7 + $0x18] sm:$0xff] }
 0xcc4   :  { %v19277_v5 = vpack.c.bf16 %v6606_v49, %v6604_v39  ;;  %v6627_v39 = vld [vmem:[%s22798_s7 + $0xc0] sm:$0xff]  ;;  %v6629_v49 = vld [vmem:[%s22798_s7 + $0xd0] sm:$0xff] }
 0xcc5   :  { %v6135_v41 = vadd.f32 %v6134_v50, %v6126_v59  ;;  %v6603_v59 = vld [vmem:[%s22798_s7] sm:$0xff]  ;;  %v6605_v50 = vld [vmem:[%s22798_s7 + $0x10] sm:$0xff] }
 0xcc7   :  { %v6137_v44 = vmul.f32 0.03125, %v6135_v41  ;;  %v6608_v41 = vld [vmem:[%s22798_s7 + $0x28] sm:$0xff] }
 0xcc9   :  { %v6138_v8 = vsub.f32 %v19091_v55, %v6137_v44  ;;  %v6139_v13 = vsub.f32 %v19088_v45, %v6137_v44  ;;  %v6150_v6 = vsub.f32 %v6118_v22, %v6137_v44  ;;  %v6151_v10 = vsub.f32 %v6119_v3, %v6137_v44  ;;  %v6610_v44 = vld [vmem:[%s22798_s7 + $0x38] sm:$0xff] }
 0xccb   :  { %v6140_v14 = vmul.f32 %v6138_v8, %v6138_v8  ;;  %v6141_v16 = vmul.f32 %v6139_v13, %v6139_v13  ;;  %v6152_v17 = vmul.f32 %v6150_v6, %v6150_v6  ;;  %v6153_v60 = vmul.f32 %v6151_v10, %v6151_v10 }
 0xccd   :  { %v6142_v37 = vadd.f32 %v6141_v16, %v6140_v14  ;;  %v6154_v1 = vadd.f32 %v6153_v60, %v6152_v17  ;;  %v6614_v14 = vld [vmem:[%s22798_s7 + $0x58] sm:$0xff]  ;;  %v6611_v60 = vld [vmem:[%s22798_s7 + $0x40] sm:$0xff] }
 0xccf   :  { %v6143_v15 = vrot.slane %v6142_v37, 4  ;;  %v6155_v61 = vrot.slane %v6154_v1, 4 }
 0xcd1   :  { %v6144_v36 = vadd.f32 %v6143_v15, %v6142_v37  ;;  %v6156_v31 = vadd.f32 %v6155_v61, %v6154_v1  ;;  %v6613_v37 = vld [vmem:[%s22798_s7 + $0x50] sm:$0xff]  ;;  %v6616_v1 = vld [vmem:[%s22798_s7 + $0x68] sm:$0xff]  ;;  %v6618_v15 = vld [vmem:[%s22798_s7 + $0x78] sm:$0xff] }
 0xcd2   :  { %v19334_v61 = vpack.c.bf16 %v6613_v37, %v6611_v60  ;;  %v11736_v37 = vld [vmem:[%s22798_s7 + $0x1f0] sm:$0xff] }
 0xcd3   :  { %v6145_v38 = vrot.slane %v6144_v36, 2  ;;  %v6157_v12 = vrot.slane %v6156_v31, 2 }
 0xcd5   :  { %v6146_v18 = vadd.f32 %v6145_v38, %v6144_v36  ;;  %v6158_v26 = vadd.f32 %v6157_v12, %v6156_v31  ;;  %v19337_v36 = vpack.c.bf16 %v6618_v15, %v6616_v1  ;;  %v6615_v31 = vld [vmem:[%s22798_s7 + $0x60] sm:$0xff]  ;;  %v6617_v38 = vld [vmem:[%s22798_s7 + $0x70] sm:$0xff]  ;;  %v6620_v12 = vld [vmem:[%s22798_s7 + $0x88] sm:$0xff] }
 0xcd6   :  { %v6631_v1 = vld [vmem:[%s22798_s7 + $0xe0] sm:$0xff]  ;;  %v6633_v15 = vld [vmem:[%s22798_s7 + $0xf0] sm:$0xff] }
 0xcd7   :  { %v6147_v28 = vrot.slane %v6146_v18, 1  ;;  %v6159_v55 = vrot.slane %v6158_v26, 1 }
 0xcd9   :  { %v6148_v34 = vadd.f32 %v6147_v28, %v6146_v18  ;;  %v6160_v45 = vadd.f32 %v6159_v55, %v6158_v26  ;;  %v6622_v18 = vld [vmem:[%s22798_s7 + $0x98] sm:$0xff]  ;;  %v19352_v26 = vpack.c.bf16 %v6617_v38, %v6615_v31  ;;  %v6619_v55 = vld [vmem:[%s22798_s7 + $0x80] sm:$0xff]  ;;  %v19453_v38 = vpack.c.bf16 %v6633_v15, %v6631_v1 }
 0xcda   :  { %v19355_v28 = vpack.c.bf16 %v6622_v18, %v6620_v12  ;;  %v11741_v12 = vld [vmem:[%s22798_s7 + $0x208] sm:$0xff]  ;;  %v11743_v18 = vld [vmem:[%s22798_s7 + $0x218] sm:$0xff] }
 0xcdb   :  { %v6161_v62 = vadd.f32 %v6160_v45, %v6148_v34  ;;  %v6621_v34 = vld [vmem:[%s22798_s7 + $0x90] sm:$0xff]  ;;  %v6624_v45 = vld [vmem:[%s22798_s7 + $0xa8] sm:$0xff] }
 0xcdd   :  { %v6162_v42 = vmul.f32 0.03125, %v6161_v62  ;;  %v6626_v62 = vld [vmem:[%s22798_s7 + $0xb8] sm:$0xff] }
 0xcdf   :  { %v6163_v40 = vadd.f32 1e-05, %v6162_v42  ;;  %v19370_v42 = vpack.c.bf16 %v6621_v34, %v6619_v55  ;;  %v19464_v55 = vpack.c.bf16 %v11743_v18, %v11741_v12  ;;  %v11748_v12 = vld [vmem:[%s22798_s7 + $0x240] sm:$0xff]  ;;  %v11750_v18 = vld [vmem:[%s22798_s7 + $0x250] sm:$0xff] }
 0xce1   :  { %16484 = vrsqrt.f32 %v6163_v40  ;;  %v19373_v40 = vpack.c.bf16 %v6626_v62, %v6624_v45 }
 0xceb   :  { %v16485_v47 = vpop.eup %16484 }
 0xcec   :  { %v6169_v63 = vmul.f32 %v16485_v47, %v6150_v6  ;;  %v6170_v3 = vmul.f32 %v16485_v47, %v6151_v10  ;;  %v6165_v51 = vmul.f32 %v16485_v47, %v6138_v8  ;;  %v6166_v22 = vmul.f32 %v16485_v47, %v6139_v13  ;;  %v6607_v13 = vld [vmem:[%s22798_s7 + $0x20] sm:$0xff]  ;;  %v6609_v6 = vld [vmem:[%s22798_s7 + $0x30] sm:$0xff]  ;;  %v6612_v10 = vld [vmem:[%s22798_s7 + $0x48] sm:$0xff] }
 0xced   :  { %v19298_v8 = vpack.c.bf16 %v6610_v44, %v6608_v41  ;;  %v19315_v16 = vpack.c.bf16 %v6609_v6, %v6607_v13  ;;  %v19319_v17 = vpack.c.bf16 %v6614_v14, %v6612_v10  ;;  %v6623_v47 = vld [vmem:[%s22798_s7 + $0xa0] sm:$0xff]  ;;  %v11735_v41 = vld [vmem:[%s22798_s7 + $0x1e8] sm:$0xff]  ;;  %v11737_v44 = vld [vmem:[%s22798_s7 + $0x1f8] sm:$0xff] }
 0xcee   :  { %v6171_v9 = vmax.f32 %v6169_v63, 0.0  ;;  %v6172_v25 = vmax.f32 %v6170_v3, 0.0  ;;  %v6167_v33 = vmax.f32 %v6165_v51, 0.0  ;;  %v6168_v46 = vmax.f32 %v6166_v22, 0.0  ;;  %v6625_v63 = vld [vmem:[%s22798_s7 + $0xb0] sm:$0xff]  ;;  %v11731_v51 = vld [vmem:[%s22798_s7 + $0x1c8] sm:$0xff] }
 0xcef   :  { %v19383_v3 = vpack.c.bf16 %v6625_v63, %v6623_v47  ;;  %v11733_v22 = vld [vmem:[%s22798_s7 + $0x1d8] sm:$0xff]  ;;  %v19428_v13 = vpack.c.bf16 %v11737_v44, %v11735_v41  ;;  %v6632_v6 = vld [vmem:[%s22798_s7 + $0xe8] sm:$0xff]  ;;  %v11734_v14 = vld [vmem:[%s22798_s7 + $0x1e0] sm:$0xff] }
 0xcf0   :  { %v15170_v21 = vpack.c.bf16 %v6172_v25, %v6171_v9  ;;  %v15161_v52 = vpack.c.bf16 %v6168_v46, %v6167_v33  ;;  %v19392_v9 = vpack.c.bf16 %v11733_v22, %v11731_v51  ;;  %v6628_v25 = vld [vmem:[%s22798_s7 + $0xc8] sm:$0xff]  ;;  %v6630_v33 = vld [vmem:[%s22798_s7 + $0xd8] sm:$0xff]  ;;  %v11730_v46 = vld [vmem:[%s22798_s7 + $0x1c0] sm:$0xff]  ;;  %v19451_v31 = vpack.c.bf16 %v11736_v37, %v11734_v14 }
 0xcf1   :  { %v6634_v10 = vld [vmem:[%s22798_s7 + $0xf8] sm:$0xff]  ;;  %v11740_v51 = vld [vmem:[%s22798_s7 + $0x200] sm:$0xff]  ;;  %v11742_v22 = vld [vmem:[%s22798_s7 + $0x210] sm:$0xff] }
 0xcf2   :  { %15162 = vmatpush3.bf16.msra.mxu0 %v15161_v52  ;;  %15235 = vmatprep.subr.bf16.mxu1 %v19392_v9  ;;  %v19439_v60 = vpack.c.bf16 %v6634_v10, %v6632_v6  ;;  %v11744_v44 = vld [vmem:[%s22798_s7 + $0x220] sm:$0xff]  ;;  %v11746_v6 = vld [vmem:[%s22798_s7 + $0x230] sm:$0xff]  ;;  %v11749_v10 = vld [vmem:[%s22798_s7 + $0x248] sm:$0xff] }
 0xcf3   :  { %15163 = vmatprep.subr.bf16.mxu0 %v16543_v27  ;;  %v11751_v14 = vld [vmem:[%s22798_s7 + $0x258] sm:$0xff]  ;;  %v19500_v37 = vpack.c.bf16 %v11746_v6, %v11744_v44 }
 0xcf4   :  { %v19504_v15 = vpack.c.bf16 %v11751_v14, %v11749_v10  ;;  %v11759_v44 = vld [vmem:[%s22798_s7 + $0x298] sm:$0xff] }
 0xcf5   :  { %14155 = vmatmul.mubr.msk.f32.vlgmr.msra.gmra.mrb[110].mxu0 %vm4675_vm2, %v18522_v58 }
 0xcf6   :  { %15165 = vmatpush3.bf16.msra.mxu0 %v15161_v52  ;;  %14161 = vmatprep.mubr.msk.f32.mxu0 %vm16544_vm7, %v22898_v48 }
 0xcf7   :  { %15166 = vmatprep.subr.bf16.mxu0 %v16543_v27 }
 0xcf9   :  { %14162 = vmatmul.mubr.msk.f32.vlgmr.msra.gmra.mrb[112].mxu0 %vm4675_vm2, %v18525_v57 }
 0xcfa   :  { %15168 = vmatpush3.bf16.msra.mxu0 %v15161_v52  ;;  %14168 = vmatprep.mubr.msk.f32.mxu0 %vm16544_vm7, %v22898_v48  ;;  %v11732_v52 = vld [vmem:[%s22798_s7 + $0x1d0] sm:$0xff] }
 0xcfb   :  { %15169 = vmatprep.subr.bf16.mxu0 %v16543_v27 }
 0xcfd   :  { %14169 = vmatmul.mubr.msk.f32.vlgmr.msra.gmra.mrb[114].mxu0 %vm4675_vm2, %v18551_v0 }
 0xcfe   :  { %15171 = vmatpush3.bf16.msra.mxu0 %v15170_v21  ;;  %14175 = vmatprep.mubr.msk.f32.mxu0 %vm16544_vm7, %v22898_v48 }
 0xcff   :  { %15172 = vmatprep.subr.bf16.mxu0 %v16543_v27 }
 0xd01   :  { %14176 = vmatmul.mubr.msk.f32.vlgmr.msra.gmra.mrb[116].mxu0 %vm4675_vm2, %v18522_v58 }
 0xd02   :  { %15174 = vmatpush3.bf16.msra.mxu0 %v15170_v21  ;;  %14182 = vmatprep.mubr.msk.f32.mxu0 %vm16544_vm7, %v22898_v48 }
 0xd03   :  { %15175 = vmatprep.subr.bf16.mxu0 %v16543_v27  ;;  %v19295_v27 = vpack.c.bf16 %v6605_v50, %v6603_v59  ;;  %v19415_v59 = vpack.c.bf16 %v11732_v52, %v11730_v46  ;;  %v19417_v50 = vpack.c.bf16 %v6629_v49, %v6627_v39  ;;  %v19479_v52 = vpack.c.bf16 %v11742_v22, %v11740_v51  ;;  %v11752_v22 = vld [vmem:[%s22798_s7 + $0x260] sm:$0xff] }
 0xd05   :  { %14183 = vmatmul.mubr.msk.f32.vlgmr.msra.gmra.mrb[118].mxu0 %vm4675_vm2, %v18525_v57  ;;  %15237 = vmatpush1.bf16.msra.mxu1 %v19415_v59 }
 0xd06   :  { %15177 = vmatpush3.bf16.msra.mxu0 %v15170_v21  ;;  %14189 = vmatprep.mubr.msk.f32.mxu0 %vm16544_vm7, %v22898_v48  ;;  %v19403_v21 = vpack.c.bf16 %v6630_v33, %v6628_v25  ;;  %v11745_v25 = vld [vmem:[%s22798_s7 + $0x228] sm:$0xff]  ;;  %v11747_v33 = vld [vmem:[%s22798_s7 + $0x238] sm:$0xff] }
 0xd07   :  { %15179 = vmatprep.subr.bf16.mxu0 %v19277_v5  ;;  %15239 = vmatprep.subr.bf16.mxu1 %v19428_v13  ;;  %v19483_v41 = vpack.c.bf16 %v11747_v33, %v11745_v25  ;;  %v11754_v25 = vld [vmem:[%s22798_s7 + $0x270] sm:$0xff] }
 0xd08   :  { %v19538_v6 = vpack.c.bf16 %v11754_v25, %v11752_v22  ;;  %v11760_v25 = vld [vmem:[%s22798_s7 + $0x2a0] sm:$0xff] }
 0xd09   :  { %14190 = vmatmul.mubr.msk.f32.vlgmr.msra.gmra.mrb[120].mxu0 %vm4675_vm2, %v18551_v0  ;;  %15241 = vmatpush1.bf16.msra.mxu1 %v19451_v31 }
 0xd0a   :  { %15181 = vmatpush1.bf16.msra.mxu0 %v19295_v27  ;;  %6699 = vmatprep.mubr.f32.mxu0 %v22898_v48 }
 0xd0b   :  { %15183 = vmatprep.subr.bf16.mxu0 %v19298_v8  ;;  %15243 = vmatprep.subr.bf16.mxu1 %v19464_v55 }
 0xd0e   :  { %15185 = vmatpush1.bf16.msra.mxu0 %v19315_v16 }
 0xd0f   :  { %15187 = vmatprep.subr.bf16.mxu0 %v19319_v17 }
 0xd12   :  { %15189 = vmatpush1.bf16.msra.mxu0 %v19334_v61 }
 0xd13   :  { %15191 = vmatprep.subr.bf16.mxu0 %v19337_v36 }
 0xd16   :  { %15193 = vmatpush1.bf16.msra.mxu0 %v19352_v26 }
 0xd17   :  { %15195 = vmatprep.subr.bf16.mxu0 %v19355_v28 }
 0xd1a   :  { %15197 = vmatpush1.bf16.msra.mxu0 %v19370_v42 }
 0xd1b   :  { %15199 = vmatprep.subr.bf16.mxu0 %v19373_v40 }
 0xd1e   :  { %15201 = vmatpush1.bf16.msra.mxu0 %v19383_v3 }
 0xd1f   :  { %15203 = vmatprep.subr.bf16.mxu0 %v19403_v21 }
 0xd22   :  { %15205 = vmatpush1.bf16.msra.mxu0 %v19417_v50 }
 0xd23   :  { %15207 = vmatprep.subr.bf16.mxu0 %v19439_v60 }
 0xd26   :  { %15209 = vmatpush1.bf16.msra.mxu0 %v19453_v38 }
 0xdc8   :  { %v6241_v34 = vpop.f32.mrb[110].mxu0 }
 0xdc9   :  { %v14156_v45 = vpop.f32.mrb[111].mxu0 }
 0xdca   :  { %v11753_v45 = vld [vmem:[%s22798_s7 + $0x268] sm:$0xff] }
 0xdcc   :  { %v6313_v62 = vpop.f32.mrb[112].mxu0 }
 0xdcd   :  { %v6389_v47 = vmax.f32 %v6241_v34, %v6313_v62  ;;  %v14163_v63 = vpop.f32.mrb[113].mxu0  ;;  %v11755_v62 = vld [vmem:[%s22798_s7 + $0x278] sm:$0xff] }
 0xdce   :  { %v19523_v51 = vpack.c.bf16 %v11755_v62, %v11753_v45  ;;  %v11761_v45 = vld [vmem:[%s22798_s7 + $0x2a8] sm:$0xff]  ;;  %v11763_v62 = vld [vmem:[%s22798_s7 + $0x2b8] sm:$0xff] }
 0xdcf   :  { %v19561_v22 = vpack.c.bf16 %v11763_v62, %v11761_v45  ;;  %v11771_v45 = vld [vmem:[%s22798_s7 + $0x2f8] sm:$0xff] }
 0xdd0   :  { %v6385_v46 = vpop.f32.mrb[114].mxu0 }
 0xdd1   :  { %v19481_v39 = vmax.f32 %v6389_v47, %v6385_v46  ;;  %v14170_v49 = vpop.f32.mrb[115].mxu0  ;;  %v19520_v47 = vpack.c.bf16 %v11750_v18, %v11748_v12  ;;  %v11758_v12 = vld [vmem:[%s22798_s7 + $0x290] sm:$0xff] }
 0xdd2   :  { %v11757_v49 = vld [vmem:[%s22798_s7 + $0x288] sm:$0xff] }
 0xdd3   :  { %6700 = vmatmul.mubr.f32.vlgmr.msra.gmra.mrb[122].mxu0 %v19481_v39  ;;  %6804 = vmatmul.mubr.f32.vlgmr.msra.gmra.mrb[102].mxu1 %v19481_v39  ;;  %v19541_v14 = vpack.c.bf16 %v11759_v44, %v11757_v49  ;;  %v11767_v49 = vld [vmem:[%s22798_s7 + $0x2d8] sm:$0xff] }
 0xdd4   :  { %15245 = vmatpush1.bf16.msra.mxu1 %v19479_v52  ;;  %7054 = vmatprep.mubr.f32.mxu1 %v22898_v48  ;;  %v6457_v1 = vpop.f32.mrb[116].mxu0 }
 0xdd5   :  { %15247 = vmatprep.subr.bf16.mxu1 %v19483_v41  ;;  %v14177_v34 = vpop.f32.mrb[117].mxu0  ;;  %6877 = vmatprep.mubr.f32.mxu0 %v22898_v48 }
 0xdd8   :  { %15249 = vmatpush1.bf16.msra.mxu1 %v19500_v37  ;;  %v6527_v63 = vpop.f32.mrb[118].mxu0 }
 0xdd9   :  { %15251 = vmatprep.subr.bf16.mxu1 %v19504_v15  ;;  %v6601_v33 = vmax.f32 %v6457_v1, %v6527_v63  ;;  %v14184_v46 = vpop.f32.mrb[119].mxu0  ;;  %v11756_v1 = vld [vmem:[%s22798_s7 + $0x280] sm:$0xff] }
 0xdda   :  { %v19558_v63 = vpack.c.bf16 %v11758_v12, %v11756_v1  ;;  %v11765_v46 = vld [vmem:[%s22798_s7 + $0x2c8] sm:$0xff]  ;;  %v11764_v1 = vld [vmem:[%s22798_s7 + $0x2c0] sm:$0xff]  ;;  %v11766_v12 = vld [vmem:[%s22798_s7 + $0x2d0] sm:$0xff] }
 0xddb   :  { %v19594_v62 = vpack.c.bf16 %v11766_v12, %v11764_v1  ;;  %v8121_v1 = vld [vmem:[%s22800_s9 + $0xa0] sm:$0xff]  ;;  %v8123_v12 = vld [vmem:[%s22800_s9 + $0xb0] sm:$0xff] }
 0xddc   :  { %15253 = vmatpush1.bf16.msra.mxu1 %v19520_v47  ;;  %v6597_v10 = vpop.f32.mrb[120].mxu0 }
 0xddd   :  { %15255 = vmatprep.subr.bf16.mxu1 %v19523_v51  ;;  %v19549_v18 = vmax.f32 %v6601_v33, %v6597_v10  ;;  %v14191_v34 = vpop.f32.mrb[121].mxu0  ;;  %v11762_v33 = vld [vmem:[%s22798_s7 + $0x2b0] sm:$0xff]  ;;  %v19579_v10 = vpack.c.bf16 %v11767_v49, %v11765_v46 }
 0xdde   :  { %v19576_v44 = vpack.c.bf16 %v11762_v33, %v11760_v25  ;;  %v11769_v34 = vld [vmem:[%s22798_s7 + $0x2e8] sm:$0xff]  ;;  %v11768_v33 = vld [vmem:[%s22798_s7 + $0x2e0] sm:$0xff]  ;;  %v11770_v46 = vld [vmem:[%s22798_s7 + $0x2f0] sm:$0xff] }
 0xddf   :  { %v19597_v25 = vpack.c.bf16 %v11771_v45, %v11769_v34  ;;  %v19606_v49 = vpack.c.bf16 %v11770_v46, %v11768_v33  ;;  %v19792_v34 = vpack.c.bf16 %v8123_v12, %v8121_v1  ;;  %v8126_v45 = vld [vmem:[%s22800_s9 + $0xc8] sm:$0xff]  ;;  %v8125_v33 = vld [vmem:[%s22800_s9 + $0xc0] sm:$0xff]  ;;  %v8127_v46 = vld [vmem:[%s22800_s9 + $0xd0] sm:$0xff] }
 0xde0   :  { %15257 = vmatpush1.bf16.msra.mxu1 %v19538_v6  ;;  %v8145_v1 = vld [vmem:[%s22800_s9 + $0x160] sm:$0xff]  ;;  %v8147_v12 = vld [vmem:[%s22800_s9 + $0x170] sm:$0xff] }
 0xde1   :  { %15259 = vmatprep.subr.bf16.mxu1 %v19541_v14  ;;  %22910 = vst [vmem:[#allocation13_spill] sm:$0xff] %v19792_v34 }
 0xde4   :  { %15261 = vmatpush1.bf16.msra.mxu1 %v19558_v63 }
 0xde5   :  { %15263 = vmatprep.subr.bf16.mxu1 %v19561_v22 }
 0xde8   :  { %15265 = vmatpush1.bf16.msra.mxu1 %v19576_v44 }
 0xde9   :  { %15267 = vmatprep.subr.bf16.mxu1 %v19579_v10 }
 0xdec   :  { %15269 = vmatpush1.bf16.msra.mxu1 %v19594_v62 }
 0xded   :  { %15271 = vmatprep.subr.bf16.mxu1 %v19597_v25 }
 0xdf0   :  { %15273 = vmatpush1.bf16.msra.mxu1 %v19606_v49 }
 0xdf1   :  { %15307 = vmatprep.subr.bf16.mxu1 %v19142_v54 }
 0xdf3   :  { %7055 = vmatmul.mubr.f32.vlgmr.msra.gmra.mrb[104].mxu1 %v19481_v39 }
 0xdf4   :  { %15309 = vmatpush1.bf16.msra.mxu1 %v19150_v53  ;;  %7285 = vmatprep.mubr.f32.mxu1 %v22898_v48 }
 0xdf5   :  { %15311 = vmatprep.subr.bf16.mxu1 %v19160_v7 }
 0xdf8   :  { %15313 = vmatpush1.bf16.msra.mxu1 %v19168_v11 }
 0xdf9   :  { %15315 = vmatprep.subr.bf16.mxu1 %v19178_v20 }
 0xdfc   :  { %15317 = vmatpush1.bf16.msra.mxu1 %v19186_v32 }
 0xdfd   :  { %15319 = vmatprep.subr.bf16.mxu1 %v19196_v2 }
 0xe00   :  { %15321 = vmatpush1.bf16.msra.mxu1 %v19204_v24 }
 0xe01   :  { %15323 = vmatprep.subr.bf16.mxu1 %v19214_v19 }
 0xe04   :  { %15325 = vmatpush1.bf16.msra.mxu1 %v19222_v56 }
 0xe05   :  { %15327 = vmatprep.subr.bf16.mxu1 %v19232_v35 }
 0xe08   :  { %15329 = vmatpush1.bf16.msra.mxu1 %v19240_v43 }
 0xe09   :  { %15331 = vmatprep.subr.bf16.mxu1 %v19392_v9  ;;  %v8107_v9 = vld [vmem:[%s22800_s9 + $0x30] sm:$0xff] }
 0xe0c   :  { %15333 = vmatpush1.bf16.msra.mxu1 %v19415_v59  ;;  %v8110_v59 = vld [vmem:[%s22800_s9 + $0x48] sm:$0xff] }
 0xe0d   :  { %15335 = vmatprep.subr.bf16.mxu1 %v19428_v13 }
 0xe10   :  { %15337 = vmatpush1.bf16.msra.mxu1 %v19451_v31  ;;  %v8111_v31 = vld [vmem:[%s22800_s9 + $0x50] sm:$0xff] }
 0xe13   :  { %7286 = vmatmul.mubr.f32.vlgmr.msra.gmra.mrb[106].mxu1 %v19549_v18 }
 0xe14   :  { %7727 = vmatprep.mubr.f32.mxu1 %v22898_v48 }
 0xea6   :  { %v6701_v54 = vpop.f32.mrb[122].mxu0  ;;  %v6805_v53 = vpop.f32.mrb[102].mxu1 }
 0xea7   :  { %v6703_v7 = vpop.f32.mrb[123].mxu0  ;;  %v6807_v11 = vpop.f32.mrb[103].mxu1 }
 0xea8   :  { %6813 = vmatprep.subr.mxu0 %v6807_v11  ;;  %v8129_v11 = vld [vmem:[%s22800_s9 + $0xe0] sm:$0xff] }
 0xea9   :  { %6814 = vmatpush1.msra.mxu0 %v6805_v53  ;;  %v8132_v53 = vld [vmem:[%s22800_s9 + $0xf8] sm:$0xff] }
 0xeaa   :  { %6886 = vmatprep.subr.mxu0 %v6703_v7  ;;  %11738 = vmatmul.mubr.msk.f32.vlgmr.msra.gmra.mrb[124].mxu0 %vm6810_vm8, %v18165_v30 }
 0xeab   :  { %6887 = vmatpush1.msra.mxu0 %v6701_v54  ;;  %6950 = vmatprep.mubr.f32.mxu0 %v22898_v48  ;;  %v8130_v54 = vld [vmem:[%s22800_s9 + $0xe8] sm:$0xff] }
 0xeac   :  { %v19818_v7 = vpack.c.bf16 %v8132_v53, %v8130_v54 }
 0xeae   :  { %22913 = vst [vmem:[#allocation15_spill] sm:$0xff] %v19818_v7 }
 0xeb2   :  { %11739 = vmatmul.mubr.msk.f32.vlgmr.msra.gmra.mrb[124].mxu0 %vm6810_vm8, %v18135_v23 }
 0xeb3   :  { %7127 = vmatprep.mubr.f32.mxu0 %v22898_v48 }
 0xec6   :  { %v7056_v20 = vpop.f32.mrb[104].mxu1 }
 0xec7   :  { %v7058_v32 = vpop.f32.mrb[105].mxu1 }
 0xec8   :  { %7063 = vmatprep.subr.mxu0 %v7058_v32  ;;  %v19828_v32 = vsub.s32 0, %v18050_v4 }
 0xec9   :  { %7064 = vmatpush1.msra.mxu0 %v7056_v20  ;;  %v8131_v20 = vld [vmem:[%s22800_s9 + $0xf0] sm:$0xff] }
 0xeca   :  { %11772 = vmatmul.mubr.msk.f32.vlgmr.msra.gmra.mrb[124].mxu0 %vm6810_vm8, %v18204_v29  ;;  %15275 = vmatprep.subr.bf16.mxu0 %v19277_v5  ;;  %22914 = vst [vmem:[#allocation16_spill] sm:$0xff] %v19828_v32 }
 0xecb   :  { %15277 = vmatpush1.bf16.msra.mxu0 %v19295_v27  ;;  %7214 = vmatprep.mubr.f32.mxu0 %v22898_v48 }
 0xecc   :  { %15279 = vmatprep.subr.bf16.mxu0 %v19298_v8  ;;  %v8102_v8 = vld [vmem:[%s22800_s9 + $0x8] sm:$0xff] }
 0xecf   :  { %15281 = vmatpush1.bf16.msra.mxu0 %v19315_v16  ;;  %v8104_v16 = vld [vmem:[%s22800_s9 + $0x18] sm:$0xff] }
 0xed0   :  { %15283 = vmatprep.subr.bf16.mxu0 %v19319_v17  ;;  %v19693_v17 = vpack.c.bf16 %v8104_v16, %v8102_v8  ;;  %v8133_v8 = vld [vmem:[%s22800_s9 + $0x100] sm:$0xff]  ;;  %v8135_v16 = vld [vmem:[%s22800_s9 + $0x110] sm:$0xff] }
 0xed3   :  { %15285 = vmatpush1.bf16.msra.mxu0 %v19334_v61  ;;  %v8101_v61 = vld [vmem:[%s22800_s9] sm:$0xff] }
 0xed4   :  { %15287 = vmatprep.subr.bf16.mxu0 %v19337_v36  ;;  %v8103_v36 = vld [vmem:[%s22800_s9 + $0x10] sm:$0xff] }
 0xed7   :  { %15289 = vmatpush1.bf16.msra.mxu0 %v19352_v26  ;;  %v19701_v26 = vpack.c.bf16 %v8103_v36, %v8101_v61  ;;  %v19856_v36 = vpack.c.bf16 %v8135_v16, %v8133_v8 }
 0xed8   :  { %15291 = vmatprep.subr.bf16.mxu0 %v19355_v28  ;;  %v8106_v28 = vld [vmem:[%s22800_s9 + $0x28] sm:$0xff] }
 0xed9   :  { %22918 = vst [vmem:[#allocation20_spill] sm:$0xff] %v19856_v36 }
 0xedb   :  { %15293 = vmatpush1.bf16.msra.mxu0 %v19370_v42  ;;  %v8108_v42 = vld [vmem:[%s22800_s9 + $0x38] sm:$0xff] }
 0xedc   :  { %15295 = vmatprep.subr.bf16.mxu0 %v19373_v40  ;;  %v19710_v40 = vpack.c.bf16 %v8108_v42, %v8106_v28  ;;  %v8138_v28 = vld [vmem:[%s22800_s9 + $0x128] sm:$0xff]  ;;  %v8140_v42 = vld [vmem:[%s22800_s9 + $0x138] sm:$0xff] }
 0xedf   :  { %15297 = vmatpush1.bf16.msra.mxu0 %v19383_v3  ;;  %v8105_v3 = vld [vmem:[%s22800_s9 + $0x20] sm:$0xff] }
 0xee0   :  { %15299 = vmatprep.subr.bf16.mxu0 %v19403_v21  ;;  %v19720_v21 = vpack.c.bf16 %v8107_v9, %v8105_v3  ;;  %v19865_v9 = vpack.c.bf16 %v8140_v42, %v8138_v28 }
 0xee2   :  { %22919 = vst [vmem:[#allocation21_spill] sm:$0xff] %v19865_v9 }
 0xee3   :  { %15301 = vmatpush1.bf16.msra.mxu0 %v19417_v50  ;;  %v8112_v50 = vld [vmem:[%s22800_s9 + $0x58] sm:$0xff] }
 0xee4   :  { %15303 = vmatprep.subr.bf16.mxu0 %v19439_v60  ;;  %v19728_v13 = vpack.c.bf16 %v8112_v50, %v8110_v59  ;;  %v8109_v60 = vld [vmem:[%s22800_s9 + $0x40] sm:$0xff]  ;;  %v8139_v50 = vld [vmem:[%s22800_s9 + $0x130] sm:$0xff] }
 0xee5   :  { %v8137_v59 = vld [vmem:[%s22800_s9 + $0x120] sm:$0xff] }
 0xee6   :  { %v7287_v2 = vpop.f32.mrb[106].mxu1 }
 0xee7   :  { %15305 = vmatpush1.bf16.msra.mxu0 %v19453_v38  ;;  %v7289_v24 = vpop.f32.mrb[107].mxu1  ;;  %v19738_v38 = vpack.c.bf16 %v8111_v31, %v8109_v60  ;;  %v19876_v31 = vpack.c.bf16 %v8139_v50, %v8137_v59 }
 0xee8   :  { %7292 = vmatprep.subr.mxu0 %v7289_v24  ;;  %v8134_v24 = vld [vmem:[%s22800_s9 + $0x108] sm:$0xff] }
 0xee9   :  { %22920 = vst [vmem:[#allocation22_spill] sm:$0xff] %v19876_v31 }
 0xeea   :  { %7215 = vmatmul.mubr.f32.vlgmr.msra.gmra.mrb[126].mxu0 %v19549_v18 }
 0xeeb   :  { %7293 = vmatpush1.msra.mxu0 %v7287_v2  ;;  %7356 = vmatprep.mubr.f32.mxu0 %v22898_v48  ;;  %v19831_v2 = vpack.c.bf16 %v8131_v20, %v8129_v11  ;;  %v8149_v20 = vld [vmem:[%s22800_s9 + $0x180] sm:$0xff] }
 0xeed   :  { %22915 = vst [vmem:[#allocation17_spill] sm:$0xff] %v19831_v2 }
 0xeee   :  { %11773 = vmatmul.mubr.msk.f32.vlgmr.msra.gmra.mrb[128].mxu0 %vm6810_vm8, %v18165_v30 }
 0xeef   :  { %7427 = vmatprep.mubr.f32.mxu0 %v22898_v48 }
 0xf9d   :  { %v19660_v19 = vpop.f32.mrb[124].mxu0 }
 0xf9e   :  { %v19662_v56 = vpop.f32.mrb[125].mxu0 }
 0xfbd   :  { %v7216_v35 = vpop.f32.mrb[126].mxu0 }
 0xfbe   :  { %v7218_v43 = vpop.f32.mrb[127].mxu0 }
 0xfbf   :  { %7363 = vmatprep.subr.mxu0 %v7218_v43  ;;  %v7136_v43 = vld [vmem:[%s22799_s8] sm:$0x3] }
 0xfc0   :  { %7364 = vmatpush1.msra.mxu0 %v7216_v35  ;;  %v8136_v35 = vld [vmem:[%s22800_s9 + $0x118] sm:$0xff]  ;;  %v7141_v61 = vrot.slane %v7136_v43, %v19828_v32 }
 0xfc1   :  { %15339 = vmatprep.subr.bf16.mxu0 %v19464_v55  ;;  %11774 = vmatmul.mubr.msk.f32.vlgmr.msra.gmra.mrb[128].mxu0 %vm6810_vm8, %v18135_v23  ;;  %v8114_v55 = vld [vmem:[%s22800_s9 + $0x68] sm:$0xff] }
 0xfc2   :  { %15341 = vmatpush1.bf16.msra.mxu0 %v19479_v52  ;;  %7498 = vmatprep.mubr.f32.mxu0 %v22898_v48  ;;  %v8116_v52 = vld [vmem:[%s22800_s9 + $0x78] sm:$0xff]  ;;  %v7148_v60 = vadd.f32 %v7141_v61, %v19660_v19  ;;  %v8141_v19 = vld [vmem:[%s22800_s9 + $0x140] sm:$0xff] }
 0xfc3   :  { %15343 = vmatprep.subr.bf16.mxu0 %v19483_v41  ;;  %v19746_v39 = vpack.c.bf16 %v8116_v52, %v8114_v55  ;;  %v8113_v41 = vld [vmem:[%s22800_s9 + $0x60] sm:$0xff]  ;;  %v8142_v55 = vld [vmem:[%s22800_s9 + $0x148] sm:$0xff]  ;;  %v8144_v52 = vld [vmem:[%s22800_s9 + $0x158] sm:$0xff] }
 0xfc6   :  { %15345 = vmatpush1.bf16.msra.mxu0 %v19500_v37  ;;  %v8115_v37 = vld [vmem:[%s22800_s9 + $0x70] sm:$0xff] }
 0xfc7   :  { %15347 = vmatprep.subr.bf16.mxu0 %v19504_v15  ;;  %v19756_v15 = vpack.c.bf16 %v8115_v37, %v8113_v41  ;;  %v19885_v37 = vpack.c.bf16 %v8144_v52, %v8142_v55 }
 0xfc9   :  { %22921 = vst [vmem:[#allocation23_spill] sm:$0xff] %v19885_v37 }
 0xfca   :  { %15349 = vmatpush1.bf16.msra.mxu0 %v19520_v47  ;;  %v8118_v47 = vld [vmem:[%s22800_s9 + $0x88] sm:$0xff] }
 0xfcb   :  { %15351 = vmatprep.subr.bf16.mxu0 %v19523_v51  ;;  %v8120_v51 = vld [vmem:[%s22800_s9 + $0x98] sm:$0xff] }
 0xfce   :  { %15353 = vmatpush1.bf16.msra.mxu0 %v19538_v6  ;;  %v19764_v6 = vpack.c.bf16 %v8120_v51, %v8118_v47  ;;  %v8143_v47 = vld [vmem:[%s22800_s9 + $0x150] sm:$0xff]  ;;  %v7580_v51 = vrot.slane %v7148_v60, 4 }
 0xfcf   :  { %15355 = vmatprep.subr.bf16.mxu0 %v19541_v14  ;;  %v8117_v14 = vld [vmem:[%s22800_s9 + $0x80] sm:$0xff] }
 0xfd2   :  { %15357 = vmatpush1.bf16.msra.mxu0 %v19558_v63 }
 0xfd3   :  { %15359 = vmatprep.subr.bf16.mxu0 %v19561_v22  ;;  %v8122_v22 = vld [vmem:[%s22800_s9 + $0xa8] sm:$0xff] }
 0xfd6   :  { %15361 = vmatpush1.bf16.msra.mxu0 %v19576_v44  ;;  %v8124_v44 = vld [vmem:[%s22800_s9 + $0xb8] sm:$0xff] }
 0xfd7   :  { %15363 = vmatprep.subr.bf16.mxu0 %v19579_v10  ;;  %v19782_v10 = vpack.c.bf16 %v8124_v44, %v8122_v22 }
 0xfda   :  { %15365 = vmatpush1.bf16.msra.mxu0 %v19594_v62  ;;  %v8128_v62 = vld [vmem:[%s22800_s9 + $0xd8] sm:$0xff] }
 0xfdb   :  { %15367 = vmatprep.subr.bf16.mxu0 %v19597_v25  ;;  %v19800_v25 = vpack.c.bf16 %v8128_v62, %v8126_v45  ;;  %v7581_v45 = vadd.f32 %v7580_v51, %v7148_v60  ;;  %v19913_v62 = vpack.c.bf16 %v8147_v12, %v8145_v1 }
 0xfdd   :  { %22911 = vst [vmem:[#allocation9_spill] sm:$0xff] %v19800_v25  ;;  %22924 = vst [vmem:[#allocation26_spill] sm:$0xff] %v19913_v62 }
 0xfde   :  { %15369 = vmatpush1.bf16.msra.mxu0 %v19606_v49  ;;  %v19810_v49 = vpack.c.bf16 %v8127_v46, %v8125_v33  ;;  %v8150_v33 = vld [vmem:[%s22800_s9 + $0x188] sm:$0xff]  ;;  %v8152_v46 = vld [vmem:[%s22800_s9 + $0x198] sm:$0xff] }
 0xfdf   :  { %v19921_v53 = vpack.c.bf16 %v8152_v46, %v8150_v33 }
 0xfe0   :  { %22912 = vst [vmem:[#allocation14_spill] sm:$0xff] %v19810_v49 }
 0xfe1   :  { %7499 = vmatmul.mubr.f32.vlgmr.msra.gmra.mrb[130].mxu0 %v19549_v18  ;;  %v8119_v18 = vld [vmem:[%s22800_s9 + $0x90] sm:$0xff]  ;;  %22925 = vst [vmem:[#allocation27_spill] sm:$0xff] %v19921_v53 }
 0xfe2   :  { %7569 = vmatprep.mubr.f32.mxu0 %v22898_v48  ;;  %v19774_v63 = vpack.c.bf16 %v8119_v18, %v8117_v14  ;;  %v19895_v14 = vpack.c.bf16 %v8143_v47, %v8141_v19  ;;  %v8148_v18 = vld [vmem:[%s22800_s9 + $0x178] sm:$0xff] }
 0xfe4   :  { %22922 = vst [vmem:[#allocation24_spill] sm:$0xff] %v19895_v14 }
0x10b4   :  { %v7500_v5 = vpop.f32.mrb[130].mxu0 }
0x10b5   :  { %v7502_v27 = vpop.f32.mrb[131].mxu0 }
0x10b6   :  { %7505 = vmatprep.subr.mxu0 %v7502_v27  ;;  %v19845_v27 = vpack.c.bf16 %v8136_v35, %v8134_v24  ;;  %v8151_v24 = vld [vmem:[%s22800_s9 + $0x190] sm:$0xff]  ;;  %v7582_v35 = vrot.slane %v7581_v45, 2 }
0x10b7   :  { %7506 = vmatpush1.msra.mxu0 %v7500_v5  ;;  %v19843_v5 = vsub.s32 1, %v18050_v4  ;;  %v19931_v16 = vpack.c.bf16 %v8151_v24, %v8149_v20 }
0x10b8   :  { %11775 = vmatmul.mubr.msk.f32.vlgmr.msra.gmra.mrb[128].mxu0 %vm6810_vm8, %v18204_v29  ;;  %15371 = vmatprep.subr.bf16.mxu0 %v19693_v17  ;;  %22917 = vst [vmem:[#allocation19_spill] sm:$0xff] %v19845_v27  ;;  %v7583_v55 = vadd.f32 %v7582_v35, %v7581_v45 }
0x10b9   :  { %15373 = vmatpush1.bf16.msra.mxu0 %v19701_v26  ;;  %22916 = vst [vmem:[#allocation18_spill] sm:$0xff] %v19843_v5  ;;  %v7145_v3 = vrot.slane %v7136_v43, %v19843_v5  ;;  %22926 = vst [vmem:[#allocation28_spill] sm:$0xff] %v19931_v16 }
0x10ba   :  { %15375 = vmatprep.subr.bf16.mxu0 %v19710_v40 }
0x10bb   :  { %v7149_v41 = vadd.f32 %v7145_v3, %v19662_v56  ;;  %v8146_v56 = vld [vmem:[%s22800_s9 + $0x168] sm:$0xff] }
0x10bc   :  { %v19903_v44 = vpack.c.bf16 %v8148_v18, %v8146_v56  ;;  %v7584_v18 = vrot.slane %v7583_v55, 1 }
0x10bd   :  { %15377 = vmatpush1.bf16.msra.mxu0 %v19720_v21  ;;  %v7586_v22 = vrot.slane %v7149_v41, 4 }
0x10be   :  { %15379 = vmatprep.subr.bf16.mxu0 %v19728_v13  ;;  %22923 = vst [vmem:[#allocation25_spill] sm:$0xff] %v19903_v44  ;;  %v7585_v46 = vadd.f32 %v7584_v18, %v7583_v55 }
0x10bf   :  { %v7587_v54 = vadd.f32 %v7586_v22, %v7149_v41 }
0x10c1   :  { %15381 = vmatpush1.bf16.msra.mxu0 %v19738_v38  ;;  %v7588_v28 = vrot.slane %v7587_v54, 2 }
0x10c2   :  { %15383 = vmatprep.subr.bf16.mxu0 %v19746_v39 }
0x10c3   :  { %v7589_v19 = vadd.f32 %v7588_v28, %v7587_v54 }
0x10c5   :  { %15385 = vmatpush1.bf16.msra.mxu0 %v19756_v15 }
0x10c6   :  { %15387 = vmatprep.subr.bf16.mxu0 %v19764_v6 }
0x10c9   :  { %15389 = vmatpush1.bf16.msra.mxu0 %v19774_v63 }
0x10ca   :  { %15391 = vmatprep.subr.bf16.mxu0 %v19782_v10 }
0x10cd   :  { %15393 = vmatpush1.bf16.msra.mxu0 %v19792_v34  ;;  %v11866_v34 = vld [vmem:[%s22800_s9 + $0x470] sm:$0xff] }
0x10ce   :  { %15395 = vmatprep.subr.bf16.mxu0 %v19800_v25  ;;  %v11864_v25 = vld [vmem:[%s22800_s9 + $0x460] sm:$0xff] }
0x10d1   :  { %15397 = vmatpush1.bf16.msra.mxu0 %v19810_v49 }
0x10d2   :  { %15399 = vmatprep.subr.bf16.mxu0 %v19818_v7  ;;  %v11858_v7 = vld [vmem:[%s22800_s9 + $0x430] sm:$0xff] }
0x10d5   :  { %15401 = vmatpush1.bf16.msra.mxu0 %v19831_v2 }
0x10d6   :  { %15403 = vmatprep.subr.bf16.mxu0 %v19845_v27  ;;  %v11854_v27 = vld [vmem:[%s22800_s9 + $0x410] sm:$0xff] }
0x10d9   :  { %15405 = vmatpush1.bf16.msra.mxu0 %v19856_v36  ;;  %v11852_v36 = vld [vmem:[%s22800_s9 + $0x400] sm:$0xff] }
0x10da   :  { %15407 = vmatprep.subr.bf16.mxu0 %v19865_v9 }
0x10dd   :  { %15409 = vmatpush1.bf16.msra.mxu0 %v19876_v31 }
0x10de   :  { %15411 = vmatprep.subr.bf16.mxu0 %v19885_v37 }
0x10e1   :  { %15413 = vmatpush1.bf16.msra.mxu0 %v19895_v14 }
0x10e2   :  { %15415 = vmatprep.subr.bf16.mxu0 %v19903_v44 }
0x10e5   :  { %15417 = vmatpush1.bf16.msra.mxu0 %v19913_v62 }
0x10e6   :  { %15419 = vmatprep.subr.bf16.mxu0 %v19921_v53 }
0x10e9   :  { %15421 = vmatpush1.bf16.msra.mxu0 %v19931_v16 }
0x118b   :  { %v7571_v11 = vpop.f32.mrb[128].mxu0 }
0x118c   :  { %v7578_v43 = vadd.f32 %v7571_v11, %v7141_v61  ;;  %v7573_v8 = vpop.f32.mrb[129].mxu0  ;;  %v7590_v61 = vrot.slane %v7589_v19, 1 }
0x118d   :  { %v7579_v42 = vadd.f32 %v7573_v8, %v7145_v3 }
0x118e   :  { %v7594_v59 = vrot.slane %v7578_v43, 4  ;;  %v7591_v20 = vadd.f32 %v7590_v61, %v7589_v19 }
0x118f   :  { %v7600_v50 = vrot.slane %v7579_v42, 4 }
0x1190   :  { %v7595_v52 = vadd.f32 %v7594_v59, %v7578_v43 }
0x1191   :  { %v7601_v47 = vadd.f32 %v7600_v50, %v7579_v42 }
0x1192   :  { %v7596_v51 = vrot.slane %v7595_v52, 2 }
0x1193   :  { %v7602_v56 = vrot.slane %v7601_v47, 2 }
0x1194   :  { %v7597_v22 = vadd.f32 %v7596_v51, %v7595_v52 }
0x1195   :  { %v7603_v1 = vadd.f32 %v7602_v56, %v7601_v47 }
0x1196   :  { %v7598_v12 = vrot.slane %v7597_v22, 1 }
0x1197   :  { %v7604_v33 = vrot.slane %v7603_v1, 1 }
0x1198   :  { %v7599_v11 = vadd.f32 %v7598_v12, %v7597_v22 }
0x1199   :  { %v7605_v3 = vadd.f32 %v7604_v33, %v7603_v1 }
0x119a   :  { %v7606_v24 = vadd.f32 %v7599_v11, %v7585_v46 }
0x119b   :  { %v7607_v8 = vadd.f32 %v7605_v3, %v7591_v20 }
0x119c   :  { %v7609_v4 = vmul.f32 0.0625, %v7606_v24 }
0x119d   :  { %v7610_v5 = vmul.f32 0.0625, %v7607_v8 }
0x119e   :  { %v7611_v45 = vsub.f32 %v7148_v60, %v7609_v4  ;;  %v7629_v35 = vsub.f32 %v7578_v43, %v7609_v4 }
0x119f   :  { %v7630_v54 = vsub.f32 %v7579_v42, %v7610_v5  ;;  %v7612_v28 = vsub.f32 %v7149_v41, %v7610_v5 }
0x11a0   :  { %v7613_v59 = vmul.f32 %v7611_v45, %v7611_v45  ;;  %v7631_v50 = vmul.f32 %v7629_v35, %v7629_v35 }
0x11a1   :  { %v7632_v32 = vmul.f32 %v7630_v54, %v7630_v54  ;;  %v7614_v52 = vmul.f32 %v7612_v28, %v7612_v28 }
0x11a2   :  { %v7615_v51 = vrot.slane %v7613_v59, 4  ;;  %v7633_v47 = vrot.slane %v7631_v50, 4 }
0x11a3   :  { %v7639_v56 = vrot.slane %v7632_v32, 4  ;;  %v7621_v16 = vrot.slane %v7614_v52, 4 }
0x11a4   :  { %v7616_v55 = vadd.f32 %v7615_v51, %v7613_v59  ;;  %v7634_v18 = vadd.f32 %v7633_v47, %v7631_v50 }
0x11a5   :  { %v7640_v19 = vadd.f32 %v7639_v56, %v7632_v32  ;;  %v7622_v22 = vadd.f32 %v7621_v16, %v7614_v52 }
0x11a6   :  { %v7617_v61 = vrot.slane %v7616_v55, 2  ;;  %v7635_v1 = vrot.slane %v7634_v18, 2 }
0x11a7   :  { %v7641_v12 = vrot.slane %v7640_v19, 2  ;;  %v7623_v33 = vrot.slane %v7622_v22, 2 }
0x11a8   :  { %v7618_v60 = vadd.f32 %v7617_v61, %v7616_v55  ;;  %v7636_v4 = vadd.f32 %v7635_v1, %v7634_v18 }
0x11a9   :  { %v7642_v43 = vadd.f32 %v7641_v12, %v7640_v19  ;;  %v7624_v5 = vadd.f32 %v7623_v33, %v7622_v22  ;;  %v11782_v33 = vld [vmem:[%s22800_s9 + $0x200] sm:$0xff] }
0x11aa   :  { %v7619_v41 = vrot.slane %v7618_v60, 1  ;;  %v7637_v42 = vrot.slane %v7636_v4, 1 }
0x11ab   :  { %v7643_v46 = vrot.slane %v7642_v43, 1  ;;  %v7625_v11 = vrot.slane %v7624_v5, 1 }
0x11ac   :  { %v7620_v20 = vadd.f32 %v7619_v41, %v7618_v60  ;;  %v7638_v3 = vadd.f32 %v7637_v42, %v7636_v4  ;;  %v11784_v60 = vld [vmem:[%s22800_s9 + $0x210] sm:$0xff]  ;;  %v11787_v4 = vld [vmem:[%s22800_s9 + $0x228] sm:$0xff]  ;;  %v11786_v42 = vld [vmem:[%s22800_s9 + $0x220] sm:$0xff] }
0x11ad   :  { %v7644_v24 = vadd.f32 %v7643_v46, %v7642_v43  ;;  %v7626_v8 = vadd.f32 %v7625_v11, %v7624_v5  ;;  %v11789_v43 = vld [vmem:[%s22800_s9 + $0x238] sm:$0xff]  ;;  %v19969_v5 = vpack.c.bf16 %v11784_v60, %v11782_v33  ;;  %v11788_v46 = vld [vmem:[%s22800_s9 + $0x230] sm:$0xff]  ;;  %v11791_v11 = vld [vmem:[%s22800_s9 + $0x248] sm:$0xff] }
0x11ae   :  { %v7645_v59 = vadd.f32 %v7638_v3, %v7620_v20  ;;  %v19972_v41 = vpack.c.bf16 %v11789_v43, %v11787_v4  ;;  %v11793_v20 = vld [vmem:[%s22800_s9 + $0x258] sm:$0xff]  ;;  %v19989_v3 = vpack.c.bf16 %v11788_v46, %v11786_v42  ;;  %v11804_v33 = vld [vmem:[%s22800_s9 + $0x2b0] sm:$0xff]  ;;  %v11807_v60 = vld [vmem:[%s22800_s9 + $0x2c8] sm:$0xff] }
0x11af   :  { %v7646_v50 = vadd.f32 %v7644_v24, %v7626_v8  ;;  %v19992_v24 = vpack.c.bf16 %v11793_v20, %v11791_v11  ;;  %v11790_v8 = vld [vmem:[%s22800_s9 + $0x240] sm:$0xff]  ;;  %v11809_v4 = vld [vmem:[%s22800_s9 + $0x2d8] sm:$0xff]  ;;  %v11808_v11 = vld [vmem:[%s22800_s9 + $0x2d0] sm:$0xff] }
0x11b0   :  { %v7647_v32 = vmul.f32 0.0625, %v7645_v59  ;;  %v11792_v59 = vld [vmem:[%s22800_s9 + $0x250] sm:$0xff]  ;;  %v20064_v42 = vpack.c.bf16 %v11809_v4, %v11807_v60  ;;  %v11806_v46 = vld [vmem:[%s22800_s9 + $0x2c0] sm:$0xff]  ;;  %v11811_v20 = vld [vmem:[%s22800_s9 + $0x2e8] sm:$0xff] }
0x11b1   :  { %v7648_v16 = vmul.f32 0.0625, %v7646_v50  ;;  %v11795_v50 = vld [vmem:[%s22800_s9 + $0x268] sm:$0xff]  ;;  %v11818_v4 = vld [vmem:[%s22800_s9 + $0x320] sm:$0xff] }
0x11b2   :  { %v7649_v52 = vadd.f32 1e-05, %v7647_v32  ;;  %v11797_v32 = vld [vmem:[%s22800_s9 + $0x278] sm:$0xff] }
0x11b3   :  { %v7650_v51 = vadd.f32 1e-05, %v7648_v16  ;;  %v20007_v16 = vpack.c.bf16 %v11792_v59, %v11790_v8  ;;  %v11813_v8 = vld [vmem:[%s22800_s9 + $0x2f8] sm:$0xff]  ;;  %v20079_v59 = vpack.c.bf16 %v11808_v11, %v11806_v46  ;;  %v11820_v46 = vld [vmem:[%s22800_s9 + $0x330] sm:$0xff]  ;;  %v11823_v11 = vld [vmem:[%s22800_s9 + $0x348] sm:$0xff] }
0x11b4   :  { %16486 = vrsqrt.f32 %v7649_v52  ;;  %v20010_v52 = vpack.c.bf16 %v11797_v32, %v11795_v50  ;;  %v20082_v50 = vpack.c.bf16 %v11813_v8, %v11811_v20  ;;  %v11810_v32 = vld [vmem:[%s22800_s9 + $0x2e0] sm:$0xff]  ;;  %v11825_v20 = vld [vmem:[%s22800_s9 + $0x358] sm:$0xff]  ;;  %v20133_v8 = vpack.c.bf16 %v11820_v46, %v11818_v4  ;;  %v11828_v4 = vld [vmem:[%s22800_s9 + $0x370] sm:$0xff] }
0x11b5   :  { %16488 = vrsqrt.f32 %v7650_v51  ;;  %v11794_v51 = vld [vmem:[%s22800_s9 + $0x260] sm:$0xff]  ;;  %v11831_v46 = vld [vmem:[%s22800_s9 + $0x388] sm:$0xff] }
0x11be   :  { %v16487_v47 = vpop.eup %16486 }
0x11bf   :  { %v16489_v56 = vpop.eup %16488  ;;  %v7657_v55 = vmul.f32 %v16487_v47, %v7629_v35  ;;  %v7653_v18 = vmul.f32 %v16487_v47, %v7611_v45  ;;  %v11783_v35 = vld [vmem:[%s22800_s9 + $0x208] sm:$0xff]  ;;  %v11796_v47 = vld [vmem:[%s22800_s9 + $0x270] sm:$0xff] }
0x11c0   :  { %v7654_v19 = vmul.f32 %v16489_v56, %v7612_v28  ;;  %v7658_v22 = vmul.f32 %v16489_v56, %v7630_v54  ;;  %v11785_v54 = vld [vmem:[%s22800_s9 + $0x218] sm:$0xff]  ;;  %v11799_v56 = vld [vmem:[%s22800_s9 + $0x288] sm:$0xff] }
0x11c1   :  { %v7655_v1 = vmax.f32 %v7653_v18, 0.0  ;;  %v7659_v45 = vmax.f32 %v7657_v55, 0.0  ;;  %v19952_v28 = vpack.c.bf16 %v11785_v54, %v11783_v35  ;;  %v11801_v55 = vld [vmem:[%s22800_s9 + $0x298] sm:$0xff]  ;;  %v20025_v18 = vpack.c.bf16 %v11796_v47, %v11794_v51  ;;  %v11802_v54 = vld [vmem:[%s22800_s9 + $0x2a0] sm:$0xff]  ;;  %v11812_v51 = vld [vmem:[%s22800_s9 + $0x2f0] sm:$0xff] }
0x11c2   :  { %v7656_v61 = vmax.f32 %v7654_v19, 0.0  ;;  %v7660_v12 = vmax.f32 %v7658_v22, 0.0  ;;  %v20028_v19 = vpack.c.bf16 %v11801_v55, %v11799_v56  ;;  %v11798_v22 = vld [vmem:[%s22800_s9 + $0x280] sm:$0xff]  ;;  %v20061_v43 = vpack.c.bf16 %v11804_v33, %v11802_v54  ;;  %v11815_v47 = vld [vmem:[%s22800_s9 + $0x308] sm:$0xff]  ;;  %v11817_v56 = vld [vmem:[%s22800_s9 + $0x318] sm:$0xff] }
0x11c3   :  { %v20097_v55 = vpack.c.bf16 %v11812_v51, %v11810_v32  ;;  %v11821_v54 = vld [vmem:[%s22800_s9 + $0x338] sm:$0xff]  ;;  %v20136_v32 = vpack.c.bf16 %v11825_v20, %v11823_v11  ;;  %v11822_v51 = vld [vmem:[%s22800_s9 + $0x340] sm:$0xff] }
0x11c4   :  { %7663 = vmatprep.subr.mxu1 %v7656_v61  ;;  %v11833_v11 = vld [vmem:[%s22800_s9 + $0x398] sm:$0xff] }
0x11c5   :  { %7664 = vmatpush1.msra.mxu1 %v7655_v1 }
0x11c6   :  { %11776 = vmatmul.mubr.msk.f32.vlgmr.msra.gmra.mrb[108].mxu1 %vm6810_vm8, %v18522_v58  ;;  %7736 = vmatprep.subr.mxu1 %v7656_v61 }
0x11c7   :  { %7737 = vmatpush1.msra.mxu1 %v7655_v1  ;;  %7800 = vmatprep.mubr.f32.mxu1 %v22898_v48 }
0x11c8   :  { %7809 = vmatprep.subr.mxu1 %v7656_v61  ;;  %v11800_v61 = vld [vmem:[%s22800_s9 + $0x290] sm:$0xff] }
0x11ca   :  { %11777 = vmatmul.mubr.msk.f32.vlgmr.msra.gmra.mrb[110].mxu1 %vm6810_vm8, %v18525_v57 }
0x11cb   :  { %7810 = vmatpush1.msra.mxu1 %v7655_v1  ;;  %7873 = vmatprep.mubr.f32.mxu1 %v22898_v48  ;;  %v11803_v1 = vld [vmem:[%s22800_s9 + $0x2a8] sm:$0xff] }
0x11cc   :  { %7884 = vmatprep.subr.mxu1 %v7660_v12 }
0x11ce   :  { %11778 = vmatmul.mubr.msk.f32.vlgmr.msra.gmra.mrb[112].mxu1 %vm6810_vm8, %v18551_v0 }
0x11cf   :  { %7885 = vmatpush1.msra.mxu1 %v7659_v45  ;;  %7948 = vmatprep.mubr.f32.mxu1 %v22898_v48 }
0x11d0   :  { %7955 = vmatprep.subr.mxu1 %v7660_v12 }
0x11d2   :  { %11779 = vmatmul.mubr.msk.f32.vlgmr.msra.gmra.mrb[114].mxu1 %vm6810_vm8, %v18522_v58 }
0x11d3   :  { %7956 = vmatpush1.msra.mxu1 %v7659_v45  ;;  %8019 = vmatprep.mubr.f32.mxu1 %v22898_v48 }
0x11d4   :  { %8026 = vmatprep.subr.mxu1 %v7660_v12  ;;  %v11805_v12 = vld [vmem:[%s22800_s9 + $0x2b8] sm:$0xff] }
0x11d5   :  { %v20046_v35 = vpack.c.bf16 %v11805_v12, %v11803_v1  ;;  %v11816_v1 = vld [vmem:[%s22800_s9 + $0x310] sm:$0xff]  ;;  %v11819_v12 = vld [vmem:[%s22800_s9 + $0x328] sm:$0xff] }
0x11d6   :  { %11780 = vmatmul.mubr.msk.f32.vlgmr.msra.gmra.mrb[116].mxu1 %vm6810_vm8, %v18525_v57  ;;  %v20118_v60 = vpack.c.bf16 %v11821_v54, %v11819_v12  ;;  %v11826_v54 = vld [vmem:[%s22800_s9 + $0x360] sm:$0xff]  ;;  %v11836_v57 = vld [vmem:[%s22800_s9 + $0x3b0] sm:$0xff] }
0x11d7   :  { %8027 = vmatpush1.msra.mxu1 %v7659_v45  ;;  %8090 = vmatprep.mubr.f32.mxu1 %v22898_v48  ;;  %v20043_v45 = vpack.c.bf16 %v11800_v61, %v11798_v22  ;;  %v20100_v22 = vpack.c.bf16 %v11817_v56, %v11815_v47  ;;  %v11814_v61 = vld [vmem:[%s22800_s9 + $0x300] sm:$0xff]  ;;  %v11824_v47 = vld [vmem:[%s22800_s9 + $0x350] sm:$0xff]  ;;  %v11827_v56 = vld [vmem:[%s22800_s9 + $0x368] sm:$0xff]  ;;  %v20169_v20 = vpack.c.bf16 %v11828_v4, %v11826_v54 }
0x11d8   :  { %15435 = vmatprep.subr.bf16.mxu1 %v19952_v28  ;;  %v20115_v33 = vpack.c.bf16 %v11816_v1, %v11814_v61  ;;  %v11829_v61 = vld [vmem:[%s22800_s9 + $0x378] sm:$0xff]  ;;  %v20151_v1 = vpack.c.bf16 %v11824_v47, %v11822_v51  ;;  %v20172_v51 = vpack.c.bf16 %v11833_v11, %v11831_v46  ;;  %v11830_v47 = vld [vmem:[%s22800_s9 + $0x380] sm:$0xff]  ;;  %v11835_v54 = vld [vmem:[%s22800_s9 + $0x3a8] sm:$0xff] }
0x11d9   :  { %v20154_v12 = vpack.c.bf16 %v11829_v61, %v11827_v56  ;;  %v11832_v56 = vld [vmem:[%s22800_s9 + $0x390] sm:$0xff]  ;;  %v11837_v4 = vld [vmem:[%s22800_s9 + $0x3b8] sm:$0xff]  ;;  %v8154_v11 = vld [vmem:[%s22800_s9 + $0x1a8] sm:$0xff] }
0x11da   :  { %11781 = vmatmul.mubr.msk.f32.vlgmr.msra.gmra.mrb[118].mxu1 %vm6810_vm8, %v18551_v0  ;;  %v20181_v61 = vpack.c.bf16 %v11832_v56, %v11830_v47  ;;  %v20191_v46 = vpack.c.bf16 %v11837_v4, %v11835_v54  ;;  %v8156_v47 = vld [vmem:[%s22800_s9 + $0x1b8] sm:$0xff]  ;;  %v11834_v56 = vld [vmem:[%s22800_s9 + $0x3a0] sm:$0xff]  ;;  %v8155_v4 = vld [vmem:[%s22800_s9 + $0x1b0] sm:$0xff] }
0x11db   :  { %15437 = vmatpush1.bf16.msra.mxu1 %v19969_v5  ;;  %v20202_v0 = vpack.c.bf16 %v8156_v47, %v8154_v11  ;;  %v8153_v54 = vld [vmem:[%s22800_s9 + $0x1a0] sm:$0xff]  ;;  %v20214_v58 = vpack.c.bf16 %v11836_v57, %v11834_v56  ;;  %v11839_v11 = vld [vmem:[%s22800_s9 + $0x3c8] sm:$0xff]  ;;  %v11841_v47 = vld [vmem:[%s22800_s9 + $0x3d8] sm:$0xff] }
0x11dc   :  { %15439 = vmatprep.subr.bf16.mxu1 %v19972_v41  ;;  %v20216_v53 = vpack.c.bf16 %v8155_v4, %v8153_v54  ;;  %v20227_v62 = vpack.c.bf16 %v11841_v47, %v11839_v11  ;;  %v8158_v57 = vld [vmem:[%s22800_s9 + $0x1c8] sm:$0xff]  ;;  %v8160_v56 = vld [vmem:[%s22800_s9 + $0x1d8] sm:$0xff]  ;;  %v11838_v54 = vld [vmem:[%s22800_s9 + $0x3c0] sm:$0xff] }
0x11dd   :  { %22927 = vst [vmem:[#allocation29_spill] sm:$0xff] %v20202_v0  ;;  %15423 = vmatprep.subr.bf16.mxu0 %v20202_v0  ;;  %v20238_v4 = vpack.c.bf16 %v8160_v56, %v8158_v57  ;;  %v8157_v11 = vld [vmem:[%s22800_s9 + $0x1c0] sm:$0xff]  ;;  %v8159_v47 = vld [vmem:[%s22800_s9 + $0x1d0] sm:$0xff]  ;;  %v11843_v57 = vld [vmem:[%s22800_s9 + $0x3e8] sm:$0xff] }
0x11de   :  { %22928 = vst [vmem:[#allocation30_spill] sm:$0xff] %v20216_v53  ;;  %15425 = vmatpush1.bf16.msra.mxu0 %v20216_v53  ;;  %v11840_v53 = vld [vmem:[%s22800_s9 + $0x3d0] sm:$0xff]  ;;  %v20252_v44 = vpack.c.bf16 %v8159_v47, %v8157_v11  ;;  %v11845_v56 = vld [vmem:[%s22800_s9 + $0x3f8] sm:$0xff]  ;;  %v11842_v11 = vld [vmem:[%s22800_s9 + $0x3e0] sm:$0xff] }
0x11df   :  { %15441 = vmatpush1.bf16.msra.mxu1 %v19989_v3  ;;  %22929 = vst [vmem:[#allocation31_spill] sm:$0xff] %v20238_v4  ;;  %v20250_v0 = vpack.c.bf16 %v11840_v53, %v11838_v54  ;;  %15427 = vmatprep.subr.bf16.mxu0 %v20238_v4  ;;  %v20263_v14 = vpack.c.bf16 %v11845_v56, %v11843_v57  ;;  %v8162_v53 = vld [vmem:[%s22800_s9 + $0x1e8] sm:$0xff]  ;;  %v8164_v54 = vld [vmem:[%s22800_s9 + $0x1f8] sm:$0xff]  ;;  %v8161_v57 = vld [vmem:[%s22800_s9 + $0x1e0] sm:$0xff] }
0x11e0   :  { %15443 = vmatprep.subr.bf16.mxu1 %v19992_v24  ;;  %22930 = vst [vmem:[#allocation32_spill] sm:$0xff] %v20252_v44  ;;  %v20274_v47 = vpack.c.bf16 %v8164_v54, %v8162_v53  ;;  %v8163_v56 = vld [vmem:[%s22800_s9 + $0x1f0] sm:$0xff]  ;;  %v11853_v53 = vld [vmem:[%s22800_s9 + $0x408] sm:$0xff]  ;;  %v11855_v54 = vld [vmem:[%s22800_s9 + $0x418] sm:$0xff] }
0x11e1   :  { %v20288_v37 = vpack.c.bf16 %v8163_v56, %v8161_v57  ;;  %v20299_v31 = vpack.c.bf16 %v11855_v54, %v11853_v53  ;;  %v11857_v53 = vld [vmem:[%s22800_s9 + $0x428] sm:$0xff]  ;;  %v11859_v54 = vld [vmem:[%s22800_s9 + $0x438] sm:$0xff] }
0x11e2   :  { %15429 = vmatpush1.bf16.msra.mxu0 %v20252_v44  ;;  %22931 = vst [vmem:[#allocation33_spill] sm:$0xff] %v20274_v47  ;;  %v11844_v44 = vld [vmem:[%s22800_s9 + $0x3f0] sm:$0xff] }
0x11e3   :  { %15445 = vmatpush1.bf16.msra.mxu1 %v20007_v16  ;;  %v20286_v4 = vpack.c.bf16 %v11844_v44, %v11842_v11  ;;  %22932 = vst [vmem:[#allocation34_spill] sm:$0xff] %v20288_v37  ;;  %15431 = vmatprep.subr.bf16.mxu0 %v20274_v47  ;;  %22933 = vst [vmem:[#allocation35_spill] sm:$0xff] %v20299_v31 }
0x11e4   :  { %15447 = vmatprep.subr.bf16.mxu1 %v20010_v52 }
0x11e6   :  { %15433 = vmatpush1.bf16.msra.mxu0 %v20288_v37  ;;  %v11856_v37 = vld [vmem:[%s22800_s9 + $0x420] sm:$0xff] }
0x11e7   :  { %15449 = vmatpush1.bf16.msra.mxu1 %v20025_v18 }
0x11e8   :  { %15451 = vmatprep.subr.bf16.mxu1 %v20028_v19 }
0x11eb   :  { %15453 = vmatpush1.bf16.msra.mxu1 %v20043_v45 }
0x11ec   :  { %15455 = vmatprep.subr.bf16.mxu1 %v20046_v35 }
0x11ef   :  { %15457 = vmatpush1.bf16.msra.mxu1 %v20061_v43 }
0x11f0   :  { %15459 = vmatprep.subr.bf16.mxu1 %v20064_v42 }
0x11f3   :  { %15461 = vmatpush1.bf16.msra.mxu1 %v20079_v59 }
0x11f4   :  { %15463 = vmatprep.subr.bf16.mxu1 %v20082_v50 }
0x11f7   :  { %15465 = vmatpush1.bf16.msra.mxu1 %v20097_v55 }
0x11f8   :  { %15467 = vmatprep.subr.bf16.mxu1 %v20100_v22 }
0x11fb   :  { %15469 = vmatpush1.bf16.msra.mxu1 %v20115_v33 }
0x11fc   :  { %15471 = vmatprep.subr.bf16.mxu1 %v20118_v60 }
0x11ff   :  { %15473 = vmatpush1.bf16.msra.mxu1 %v20133_v8 }
0x1200   :  { %15475 = vmatprep.subr.bf16.mxu1 %v20136_v32 }
0x1203   :  { %15477 = vmatpush1.bf16.msra.mxu1 %v20151_v1 }
0x1204   :  { %15479 = vmatprep.subr.bf16.mxu1 %v20154_v12 }
0x1207   :  { %15481 = vmatpush1.bf16.msra.mxu1 %v20169_v20 }
0x1208   :  { %15483 = vmatprep.subr.bf16.mxu1 %v20172_v51 }
0x120b   :  { %15485 = vmatpush1.bf16.msra.mxu1 %v20181_v61 }
0x120c   :  { %15487 = vmatprep.subr.bf16.mxu1 %v20191_v46 }
0x120f   :  { %15489 = vmatpush1.bf16.msra.mxu1 %v20214_v58 }
0x1210   :  { %15491 = vmatprep.subr.bf16.mxu1 %v20227_v62 }
0x1213   :  { %15493 = vmatpush1.bf16.msra.mxu1 %v20250_v0 }
0x1214   :  { %15495 = vmatprep.subr.bf16.mxu1 %v20263_v14 }
0x1217   :  { %15497 = vmatpush1.bf16.msra.mxu1 %v20286_v4 }
0x1218   :  { %15499 = vmatprep.subr.bf16.mxu1 %v20299_v31  ;;  %v20318_v31 = vpack.c.bf16 %v11859_v54, %v11857_v53  ;;  %v11860_v54 = vld [vmem:[%s22800_s9 + $0x440] sm:$0xff] }
0x121a   :  { %22935 = vst [vmem:[#allocation37_spill] sm:$0xff] %v20318_v31 }
0x1299   :  { %v7729_v44 = vpop.f32.mrb[108].mxu1 }
0x129a   :  { %v7731_v11 = vpop.f32.mrb[109].mxu1 }
0x129d   :  { %v7802_v57 = vpop.f32.mrb[110].mxu1 }
0x129e   :  { %v7880_v56 = vmax.f32 %v7729_v44, %v7802_v57  ;;  %v7804_v47 = vpop.f32.mrb[111].mxu1  ;;  %v20316_v57 = vpack.c.bf16 %v11854_v27, %v11852_v36  ;;  %v11863_v27 = vld [vmem:[%s22800_s9 + $0x458] sm:$0xff] }
0x129f   :  { %v7881_v9 = vmax.f32 %v7731_v11, %v7804_v47 }
0x12a0   :  { %22934 = vst [vmem:[#allocation36_spill] sm:$0xff] %v20316_v57 }
0x12a1   :  { %v7875_v2 = vpop.f32.mrb[112].mxu1 }
0x12a2   :  { %v20314_v44 = vmax.f32 %v7880_v56, %v7875_v2  ;;  %v7877_v47 = vpop.f32.mrb[113].mxu1  ;;  %v11861_v2 = vld [vmem:[%s22800_s9 + $0x448] sm:$0xff]  ;;  %v20335_v56 = vpack.c.bf16 %v11858_v7, %v11856_v37  ;;  %v11867_v7 = vld [vmem:[%s22800_s9 + $0x478] sm:$0xff] }
0x12a3   :  { %v7883_v11 = vmax.f32 %v7881_v9, %v7877_v47  ;;  %v20338_v53 = vpack.c.bf16 %v11863_v27, %v11861_v2  ;;  %v11862_v47 = vld [vmem:[%s22800_s9 + $0x450] sm:$0xff] }
0x12a5   :  { %8229 = vmatprep.mubr.f32.mxu0 %v7883_v11  ;;  %8365 = vmatprep.mubr.f32.mxu1 %v7883_v11  ;;  %v7950_v36 = vpop.f32.mrb[114].mxu1  ;;  %22936 = vst [vmem:[#allocation38_spill] sm:$0xff] %v20338_v53 }
0x12a6   :  { %8230 = vmatmul.mubr.f32.vlgmr.msra.gmra.mrb[132].mxu0 %v20314_v44  ;;  %8366 = vmatmul.mubr.f32.vlgmr.msra.gmra.mrb[120].mxu1 %v20314_v44  ;;  %v7952_v9 = vpop.f32.mrb[115].mxu1 }
0x12a7   :  { %15501 = vmatpush1.bf16.msra.mxu1 %v20316_v57  ;;  %8661 = vmatprep.mubr.f32.mxu1 %v7883_v11  ;;  %v11865_v11 = vld [vmem:[%s22800_s9 + $0x468] sm:$0xff] }
0x12a8   :  { %15503 = vmatprep.subr.bf16.mxu1 %v20318_v31  ;;  %8446 = vmatprep.mubr.f32.mxu0 %v22898_v48  ;;  %v20354_v31 = vpack.c.bf16 %v11862_v47, %v11860_v54  ;;  %v20357_v49 = vpack.c.bf16 %v11867_v7, %v11865_v11  ;;  %v20374_v7 = vpack.c.bf16 %v11866_v34, %v11864_v25  ;;  %v11875_v34 = vld [vmem:[%s22800_s9 + $0x4b8] sm:$0xff] }
0x12a9   :  { %v8021_v37 = vpop.f32.mrb[116].mxu1 }
0x12aa   :  { %v8097_v2 = vmax.f32 %v7950_v36, %v8021_v37  ;;  %v8023_v27 = vpop.f32.mrb[117].mxu1  ;;  %v11869_v36 = vld [vmem:[%s22800_s9 + $0x488] sm:$0xff]  ;;  %22937 = vst [vmem:[#allocation39_spill] sm:$0xff] %v20374_v7 }
0x12ab   :  { %15505 = vmatpush1.bf16.msra.mxu1 %v20335_v56  ;;  %v8098_v57 = vmax.f32 %v7952_v9, %v8023_v27  ;;  %v11871_v9 = vld [vmem:[%s22800_s9 + $0x498] sm:$0xff] }
0x12ac   :  { %15507 = vmatprep.subr.bf16.mxu1 %v20338_v53  ;;  %v20379_v27 = vpack.c.bf16 %v11871_v9, %v11869_v36  ;;  %v11868_v53 = vld [vmem:[%s22800_s9 + $0x480] sm:$0xff]  ;;  %v11874_v9 = vld [vmem:[%s22800_s9 + $0x4b0] sm:$0xff] }
0x12ad   :  { %v8092_v54 = vpop.f32.mrb[118].mxu1  ;;  %v11872_v36 = vld [vmem:[%s22800_s9 + $0x4a0] sm:$0xff] }
0x12ae   :  { %v20371_v47 = vmax.f32 %v8097_v2, %v8092_v54  ;;  %v8094_v11 = vpop.f32.mrb[119].mxu1  ;;  %22938 = vst [vmem:[#allocation40_spill] sm:$0xff] %v20379_v27  ;;  %v11870_v2 = vld [vmem:[%s22800_s9 + $0x490] sm:$0xff]  ;;  %v11873_v54 = vld [vmem:[%s22800_s9 + $0x4a8] sm:$0xff] }
0x12af   :  { %15509 = vmatpush1.bf16.msra.mxu1 %v20354_v31  ;;  %v20376_v37 = vmax.f32 %v8098_v57, %v8094_v11  ;;  %v20394_v25 = vpack.c.bf16 %v11870_v2, %v11868_v53  ;;  %v20397_v57 = vpack.c.bf16 %v11875_v34, %v11873_v54  ;;  %v11877_v11 = vld [vmem:[%s22800_s9 + $0x4c8] sm:$0xff]  ;;  %v11879_v53 = vld [vmem:[%s22800_s9 + $0x4d8] sm:$0xff]  ;;  %v20412_v2 = vpack.c.bf16 %v11874_v9, %v11872_v36  ;;  %v11876_v34 = vld [vmem:[%s22800_s9 + $0x4c0] sm:$0xff] }
0x12b0   :  { %15511 = vmatprep.subr.bf16.mxu1 %v20357_v49  ;;  %v20415_v54 = vpack.c.bf16 %v11879_v53, %v11877_v11  ;;  %v11883_v36 = vld [vmem:[%s22800_s9 + $0x4f8] sm:$0xff]  ;;  %v11880_v53 = vld [vmem:[%s22800_s9 + $0x4e0] sm:$0xff] }
0x12b1   :  { %22939 = vst [vmem:[#allocation41_spill] sm:$0xff] %v20394_v25  ;;  %22940 = vst [vmem:[#allocation42_spill] sm:$0xff] %v20397_v57 }
0x12b2   :  { %22941 = vst [vmem:[#allocation43_spill] sm:$0xff] %v20412_v2  ;;  %22942 = vst [vmem:[#allocation44_spill] sm:$0xff] %v20415_v54 }
0x12b3   :  { %15513 = vmatpush1.bf16.msra.mxu1 %v20374_v7  ;;  %v11881_v7 = vld [vmem:[%s22800_s9 + $0x4e8] sm:$0xff] }
0x12b4   :  { %15515 = vmatprep.subr.bf16.mxu1 %v20379_v27  ;;  %v11878_v27 = vld [vmem:[%s22800_s9 + $0x4d0] sm:$0xff]  ;;  %v20433_v11 = vpack.c.bf16 %v11883_v36, %v11881_v7  ;;  %v11884_v36 = vld [vmem:[%s22800_s9 + $0x500] sm:$0xff] }
0x12b5   :  { %v20430_v9 = vpack.c.bf16 %v11878_v27, %v11876_v34  ;;  %v11887_v27 = vld [vmem:[%s22800_s9 + $0x518] sm:$0xff] }
0x12b6   :  { %22944 = vst [vmem:[#allocation46_spill] sm:$0xff] %v20433_v11 }
0x12b7   :  { %15517 = vmatpush1.bf16.msra.mxu1 %v20394_v25  ;;  %22943 = vst [vmem:[#allocation45_spill] sm:$0xff] %v20430_v9  ;;  %v11885_v25 = vld [vmem:[%s22800_s9 + $0x508] sm:$0xff] }
0x12b8   :  { %15519 = vmatprep.subr.bf16.mxu1 %v20397_v57  ;;  %v11882_v57 = vld [vmem:[%s22800_s9 + $0x4f0] sm:$0xff]  ;;  %v20451_v34 = vpack.c.bf16 %v11887_v27, %v11885_v25  ;;  %v11888_v27 = vld [vmem:[%s22800_s9 + $0x520] sm:$0xff] }
0x12b9   :  { %v20448_v7 = vpack.c.bf16 %v11882_v57, %v11880_v53  ;;  %v11891_v57 = vld [vmem:[%s22800_s9 + $0x538] sm:$0xff] }
0x12ba   :  { %22946 = vst [vmem:[#allocation48_spill] sm:$0xff] %v20451_v34 }
0x12bb   :  { %15521 = vmatpush1.bf16.msra.mxu1 %v20412_v2  ;;  %22945 = vst [vmem:[#allocation47_spill] sm:$0xff] %v20448_v7  ;;  %v11889_v2 = vld [vmem:[%s22800_s9 + $0x528] sm:$0xff] }
0x12bc   :  { %15523 = vmatprep.subr.bf16.mxu1 %v20415_v54  ;;  %v11886_v54 = vld [vmem:[%s22800_s9 + $0x510] sm:$0xff]  ;;  %v20469_v53 = vpack.c.bf16 %v11891_v57, %v11889_v2  ;;  %v11892_v57 = vld [vmem:[%s22800_s9 + $0x540] sm:$0xff] }
0x12bd   :  { %v20466_v25 = vpack.c.bf16 %v11886_v54, %v11884_v36  ;;  %v11895_v54 = vld [vmem:[%s22800_s9 + $0x558] sm:$0xff] }
0x12be   :  { %22948 = vst [vmem:[#allocation50_spill] sm:$0xff] %v20469_v53 }
0x12bf   :  { %15525 = vmatpush1.bf16.msra.mxu1 %v20430_v9  ;;  %22947 = vst [vmem:[#allocation49_spill] sm:$0xff] %v20466_v25  ;;  %v11893_v9 = vld [vmem:[%s22800_s9 + $0x548] sm:$0xff] }
0x12c0   :  { %15527 = vmatprep.subr.bf16.mxu1 %v20433_v11  ;;  %v11890_v11 = vld [vmem:[%s22800_s9 + $0x530] sm:$0xff]  ;;  %v20487_v36 = vpack.c.bf16 %v11895_v54, %v11893_v9  ;;  %v11896_v54 = vld [vmem:[%s22800_s9 + $0x560] sm:$0xff] }
0x12c1   :  { %v20484_v2 = vpack.c.bf16 %v11890_v11, %v11888_v27  ;;  %v11899_v11 = vld [vmem:[%s22800_s9 + $0x578] sm:$0xff] }
0x12c2   :  { %22950 = vst [vmem:[#allocation52_spill] sm:$0xff] %v20487_v36 }
0x12c3   :  { %15529 = vmatpush1.bf16.msra.mxu1 %v20448_v7  ;;  %22949 = vst [vmem:[#allocation51_spill] sm:$0xff] %v20484_v2  ;;  %v11897_v7 = vld [vmem:[%s22800_s9 + $0x568] sm:$0xff] }
0x12c4   :  { %15531 = vmatprep.subr.bf16.mxu1 %v20451_v34  ;;  %v11894_v34 = vld [vmem:[%s22800_s9 + $0x550] sm:$0xff]  ;;  %v20505_v27 = vpack.c.bf16 %v11899_v11, %v11897_v7  ;;  %v11900_v11 = vld [vmem:[%s22800_s9 + $0x580] sm:$0xff] }
0x12c5   :  { %v20502_v9 = vpack.c.bf16 %v11894_v34, %v11892_v57  ;;  %v11903_v34 = vld [vmem:[%s22800_s9 + $0x598] sm:$0xff] }
0x12c6   :  { %22952 = vst [vmem:[#allocation54_spill] sm:$0xff] %v20505_v27 }
0x12c7   :  { %15533 = vmatpush1.bf16.msra.mxu1 %v20466_v25  ;;  %22951 = vst [vmem:[#allocation53_spill] sm:$0xff] %v20502_v9  ;;  %v11901_v25 = vld [vmem:[%s22800_s9 + $0x588] sm:$0xff] }
0x12c8   :  { %15535 = vmatprep.subr.bf16.mxu1 %v20469_v53  ;;  %v11898_v53 = vld [vmem:[%s22800_s9 + $0x570] sm:$0xff]  ;;  %v20523_v57 = vpack.c.bf16 %v11903_v34, %v11901_v25  ;;  %v11904_v34 = vld [vmem:[%s22800_s9 + $0x5a0] sm:$0xff] }
0x12c9   :  { %v20520_v7 = vpack.c.bf16 %v11898_v53, %v11896_v54  ;;  %v11907_v53 = vld [vmem:[%s22800_s9 + $0x5b8] sm:$0xff] }
0x12ca   :  { %22954 = vst [vmem:[#allocation56_spill] sm:$0xff] %v20523_v57 }
0x12cb   :  { %15537 = vmatpush1.bf16.msra.mxu1 %v20484_v2  ;;  %22953 = vst [vmem:[#allocation55_spill] sm:$0xff] %v20520_v7  ;;  %v11905_v2 = vld [vmem:[%s22800_s9 + $0x5a8] sm:$0xff] }
0x12cc   :  { %15539 = vmatprep.subr.bf16.mxu1 %v20487_v36  ;;  %v11902_v36 = vld [vmem:[%s22800_s9 + $0x590] sm:$0xff]  ;;  %v20541_v54 = vpack.c.bf16 %v11907_v53, %v11905_v2  ;;  %v11908_v53 = vld [vmem:[%s22800_s9 + $0x5c0] sm:$0xff] }
0x12cd   :  { %v20538_v25 = vpack.c.bf16 %v11902_v36, %v11900_v11  ;;  %v11911_v36 = vld [vmem:[%s22800_s9 + $0x5d8] sm:$0xff] }
0x12ce   :  { %22956 = vst [vmem:[#allocation58_spill] sm:$0xff] %v20541_v54 }
0x12cf   :  { %15541 = vmatpush1.bf16.msra.mxu1 %v20502_v9  ;;  %22955 = vst [vmem:[#allocation57_spill] sm:$0xff] %v20538_v25  ;;  %v11909_v9 = vld [vmem:[%s22800_s9 + $0x5c8] sm:$0xff] }
0x12d0   :  { %15543 = vmatprep.subr.bf16.mxu1 %v20505_v27  ;;  %v11906_v27 = vld [vmem:[%s22800_s9 + $0x5b0] sm:$0xff]  ;;  %v20559_v11 = vpack.c.bf16 %v11911_v36, %v11909_v9  ;;  %v11912_v36 = vld [vmem:[%s22800_s9 + $0x5e0] sm:$0xff] }
0x12d1   :  { %v20556_v2 = vpack.c.bf16 %v11906_v27, %v11904_v34  ;;  %v11915_v27 = vld [vmem:[%s22800_s9 + $0x5f8] sm:$0xff] }
0x12d3   :  { %15545 = vmatpush1.bf16.msra.mxu1 %v20520_v7  ;;  %v11913_v7 = vld [vmem:[%s22800_s9 + $0x5e8] sm:$0xff] }
0x12d4   :  { %15547 = vmatprep.subr.bf16.mxu1 %v20523_v57  ;;  %v11910_v57 = vld [vmem:[%s22800_s9 + $0x5d0] sm:$0xff]  ;;  %v20577_v34 = vpack.c.bf16 %v11915_v27, %v11913_v7  ;;  %v22995_v7 = vld [vmem:[#allocation52_spill] sm:$0xff] }
0x12d5   :  { %v20574_v9 = vpack.c.bf16 %v11910_v57, %v11908_v53  ;;  %v22996_v57 = vld [vmem:[#allocation53_spill] sm:$0xff]  ;;  %v22998_v53 = vld [vmem:[#allocation55_spill] sm:$0xff]  ;;  %v22999_v27 = vld [vmem:[#allocation56_spill] sm:$0xff] }
0x12d7   :  { %15549 = vmatpush1.bf16.msra.mxu1 %v20538_v25 }
0x12d8   :  { %15551 = vmatprep.subr.bf16.mxu1 %v20541_v54  ;;  %v11914_v54 = vld [vmem:[%s22800_s9 + $0x5f0] sm:$0xff] }
0x12d9   :  { %v20586_v25 = vpack.c.bf16 %v11914_v54, %v11912_v36  ;;  %v22997_v54 = vld [vmem:[#allocation54_spill] sm:$0xff]  ;;  %v23000_v36 = vld [vmem:[#allocation57_spill] sm:$0xff] }
0x12db   :  { %15553 = vmatpush1.bf16.msra.mxu1 %v20556_v2 }
0x12dc   :  { %15555 = vmatprep.subr.bf16.mxu1 %v20559_v11 }
0x12df   :  { %15557 = vmatpush1.bf16.msra.mxu1 %v20574_v9 }
0x12e0   :  { %15559 = vmatprep.subr.bf16.mxu1 %v20577_v34 }
0x12e3   :  { %15561 = vmatpush1.bf16.msra.mxu1 %v20586_v25 }
0x12e4   :  { %15627 = vmatprep.subr.bf16.mxu1 %v19952_v28 }
0x12e6   :  { %8662 = vmatmul.mubr.f32.vlgmr.msra.gmra.mrb[122].mxu1 %v20314_v44  ;;  %v22990_v44 = vld [vmem:[#allocation47_spill] sm:$0xff] }
0x12e7   :  { %15629 = vmatpush1.bf16.msra.mxu1 %v19969_v5  ;;  %8898 = vmatprep.mubr.f32.mxu1 %v20376_v37 }
0x12e8   :  { %15631 = vmatprep.subr.bf16.mxu1 %v19972_v41 }
0x12eb   :  { %15633 = vmatpush1.bf16.msra.mxu1 %v19989_v3 }
0x12ec   :  { %15635 = vmatprep.subr.bf16.mxu1 %v19992_v24  ;;  %v22970_v24 = vld [vmem:[#allocation27_spill] sm:$0xff] }
0x12ef   :  { %15637 = vmatpush1.bf16.msra.mxu1 %v20007_v16  ;;  %v22971_v16 = vld [vmem:[#allocation28_spill] sm:$0xff] }
0x12f0   :  { %15639 = vmatprep.subr.bf16.mxu1 %v20010_v52  ;;  %v22972_v52 = vld [vmem:[#allocation29_spill] sm:$0xff] }
0x12f3   :  { %15641 = vmatpush1.bf16.msra.mxu1 %v20025_v18  ;;  %v22973_v18 = vld [vmem:[#allocation30_spill] sm:$0xff] }
0x12f4   :  { %15643 = vmatprep.subr.bf16.mxu1 %v20028_v19  ;;  %v22974_v19 = vld [vmem:[#allocation31_spill] sm:$0xff] }
0x12f7   :  { %15645 = vmatpush1.bf16.msra.mxu1 %v20043_v45  ;;  %v22975_v45 = vld [vmem:[#allocation32_spill] sm:$0xff] }
0x12f8   :  { %15647 = vmatprep.subr.bf16.mxu1 %v20046_v35  ;;  %v22976_v35 = vld [vmem:[#allocation33_spill] sm:$0xff] }
0x12fb   :  { %15649 = vmatpush1.bf16.msra.mxu1 %v20061_v43 }
0x12fc   :  { %15651 = vmatprep.subr.bf16.mxu1 %v20064_v42  ;;  %v22977_v42 = vld [vmem:[#allocation34_spill] sm:$0xff] }
0x12ff   :  { %15653 = vmatpush1.bf16.msra.mxu1 %v20079_v59 }
0x1300   :  { %15655 = vmatprep.subr.bf16.mxu1 %v20082_v50 }
0x1303   :  { %15657 = vmatpush1.bf16.msra.mxu1 %v20097_v55 }
0x1304   :  { %15659 = vmatprep.subr.bf16.mxu1 %v20100_v22 }
0x1307   :  { %15661 = vmatpush1.bf16.msra.mxu1 %v20115_v33 }
0x1308   :  { %15663 = vmatprep.subr.bf16.mxu1 %v20118_v60  ;;  %v22978_v60 = vld [vmem:[#allocation35_spill] sm:$0xff] }
0x130b   :  { %15665 = vmatpush1.bf16.msra.mxu1 %v20133_v8  ;;  %v22979_v8 = vld [vmem:[#allocation36_spill] sm:$0xff] }
0x130c   :  { %15667 = vmatprep.subr.bf16.mxu1 %v20136_v32  ;;  %v22981_v32 = vld [vmem:[#allocation38_spill] sm:$0xff] }
0x130f   :  { %15669 = vmatpush1.bf16.msra.mxu1 %v20151_v1  ;;  %v22982_v1 = vld [vmem:[#allocation39_spill] sm:$0xff] }
0x1310   :  { %15671 = vmatprep.subr.bf16.mxu1 %v20154_v12  ;;  %v22983_v12 = vld [vmem:[#allocation40_spill] sm:$0xff] }
0x1313   :  { %15673 = vmatpush1.bf16.msra.mxu1 %v20169_v20  ;;  %v22985_v20 = vld [vmem:[#allocation42_spill] sm:$0xff] }
0x1314   :  { %15675 = vmatprep.subr.bf16.mxu1 %v20172_v51  ;;  %v22986_v51 = vld [vmem:[#allocation43_spill] sm:$0xff] }
0x1317   :  { %15677 = vmatpush1.bf16.msra.mxu1 %v20181_v61  ;;  %v22987_v61 = vld [vmem:[#allocation44_spill] sm:$0xff] }
0x1318   :  { %15679 = vmatprep.subr.bf16.mxu1 %v20191_v46  ;;  %v22988_v46 = vld [vmem:[#allocation45_spill] sm:$0xff] }
0x131b   :  { %15681 = vmatpush1.bf16.msra.mxu1 %v20214_v58 }
0x131c   :  { %15683 = vmatprep.subr.bf16.mxu1 %v20227_v62  ;;  %v22969_v62 = vld [vmem:[#allocation26_spill] sm:$0xff] }
0x131f   :  { %15685 = vmatpush1.bf16.msra.mxu1 %v20250_v0 }
0x1320   :  { %15687 = vmatprep.subr.bf16.mxu1 %v20263_v14  ;;  %v22968_v14 = vld [vmem:[#allocation25_spill] sm:$0xff] }
0x1323   :  { %15689 = vmatpush1.bf16.msra.mxu1 %v20286_v4  ;;  %v22989_v4 = vld [vmem:[#allocation46_spill] sm:$0xff] }
0x1326   :  { %8899 = vmatmul.mubr.f32.vlgmr.msra.gmra.mrb[124].mxu1 %v20371_v47 }
0x1327   :  { %9372 = vmatprep.mubr.f32.mxu1 %v22898_v48 }
0x1379   :  { %v8231_v28 = vpop.f32.mrb[132].mxu0  ;;  %v8367_v5 = vpop.f32.mrb[120].mxu1 }
0x137a   :  { %v8233_v41 = vpop.f32.mrb[133].mxu0  ;;  %v8369_v3 = vpop.f32.mrb[121].mxu1 }
0x137b   :  { %11846 = vmatprep.subr.msk.mxu0 %vm8375_vm9, %v8369_v3  ;;  %v9760_v3 = vld [vmem:[%s22802_s11 + $0x38] sm:$0xff] }
0x137c   :  { %11847 = vmatpush1.msk.msra.mxu0 %vm8375_vm9, %v8367_v5 }
0x137d   :  { %11849 = vmatprep.subr.msk.mxu0 %vm8375_vm9, %v8233_v41  ;;  %11848 = vmatmul.mubr.msk.f32.vlgmr.msra.gmra.mrb[134].mxu0 %vm8372_vm10, %v18165_v30 }
0x137e   :  { %11850 = vmatpush1.msk.msra.mxu0 %vm8375_vm9, %v8231_v28  ;;  %8525 = vmatprep.mubr.f32.mxu0 %v22898_v48  ;;  %v23001_v28 = vld [vmem:[#allocation58_spill] sm:$0xff] }
0x1385   :  { %11851 = vmatmul.mubr.msk.f32.vlgmr.msra.gmra.mrb[134].mxu0 %vm8372_vm10, %v18135_v23 }
0x1386   :  { %8740 = vmatprep.mubr.f32.mxu0 %v22898_v48 }
0x13b9   :  { %v8663_v58 = vpop.f32.mrb[122].mxu1 }
0x13ba   :  { %v8665_v0 = vpop.f32.mrb[123].mxu1 }
0x13bb   :  { %11916 = vmatprep.subr.msk.mxu0 %vm8375_vm9, %v8665_v0  ;;  %v9757_v0 = vld [vmem:[%s22802_s11 + $0x20] sm:$0xff] }
0x13bc   :  { %11917 = vmatpush1.msk.msra.mxu0 %vm8375_vm9, %v8663_v58 }
0x13bd   :  { %11918 = vmatmul.mubr.msk.f32.vlgmr.msra.gmra.mrb[134].mxu0 %vm8372_vm10, %v18204_v29  ;;  %15563 = vmatprep.subr.bf16.mxu0 %v19693_v17  ;;  %v22957_v17 = vld [vmem:[#allocation13_spill] sm:$0xff] }
0x13be   :  { %15565 = vmatpush1.bf16.msra.mxu0 %v19701_v26  ;;  %8827 = vmatprep.mubr.f32.mxu0 %v20376_v37  ;;  %v22958_v26 = vld [vmem:[#allocation9_spill] sm:$0xff] }
0x13bf   :  { %15567 = vmatprep.subr.bf16.mxu0 %v19710_v40  ;;  %v22959_v40 = vld [vmem:[#allocation14_spill] sm:$0xff] }
0x13c2   :  { %15569 = vmatpush1.bf16.msra.mxu0 %v19720_v21  ;;  %v22960_v21 = vld [vmem:[#allocation15_spill] sm:$0xff] }
0x13c3   :  { %15571 = vmatprep.subr.bf16.mxu0 %v19728_v13  ;;  %v22961_v13 = vld [vmem:[#allocation17_spill] sm:$0xff] }
0x13c6   :  { %15573 = vmatpush1.bf16.msra.mxu0 %v19738_v38  ;;  %v22962_v38 = vld [vmem:[#allocation19_spill] sm:$0xff] }
0x13c7   :  { %15575 = vmatprep.subr.bf16.mxu0 %v19746_v39  ;;  %v22963_v39 = vld [vmem:[#allocation20_spill] sm:$0xff] }
0x13ca   :  { %15577 = vmatpush1.bf16.msra.mxu0 %v19756_v15  ;;  %v22964_v15 = vld [vmem:[#allocation21_spill] sm:$0xff] }
0x13cb   :  { %15579 = vmatprep.subr.bf16.mxu0 %v19764_v6  ;;  %v22965_v6 = vld [vmem:[#allocation22_spill] sm:$0xff] }
0x13ce   :  { %15581 = vmatpush1.bf16.msra.mxu0 %v19774_v63  ;;  %v22966_v63 = vld [vmem:[#allocation23_spill] sm:$0xff] }
0x13cf   :  { %15583 = vmatprep.subr.bf16.mxu0 %v19782_v10  ;;  %v22967_v10 = vld [vmem:[#allocation24_spill] sm:$0xff] }
0x13d2   :  { %15585 = vmatpush1.bf16.msra.mxu0 %v22957_v17  ;;  %v9759_v17 = vld [vmem:[%s22802_s11 + $0x30] sm:$0xff] }
0x13d3   :  { %15587 = vmatprep.subr.bf16.mxu0 %v22958_v26  ;;  %v15760_v26 = vpack.c.bf16 %v9759_v17, %v9757_v0  ;;  %v9795_v0 = vld [vmem:[%s22802_s11 + $0x150] sm:$0xff] }
0x13d6   :  { %15589 = vmatpush1.bf16.msra.mxu0 %v22959_v40  ;;  %v9762_v40 = vld [vmem:[%s22802_s11 + $0x48] sm:$0xff] }
0x13d7   :  { %15591 = vmatprep.subr.bf16.mxu0 %v22960_v21  ;;  %v9764_v21 = vld [vmem:[%s22802_s11 + $0x58] sm:$0xff] }
0x13da   :  { %15593 = vmatpush1.bf16.msra.mxu0 %v22961_v13  ;;  %v9761_v13 = vld [vmem:[%s22802_s11 + $0x40] sm:$0xff] }
0x13db   :  { %15595 = vmatprep.subr.bf16.mxu0 %v22962_v38  ;;  %v15762_v38 = vpack.c.bf16 %v9764_v21, %v9762_v40  ;;  %v9798_v21 = vld [vmem:[%s22802_s11 + $0x168] sm:$0xff] }
0x13de   :  { %15597 = vmatpush1.bf16.msra.mxu0 %v22963_v39  ;;  %v9763_v39 = vld [vmem:[%s22802_s11 + $0x50] sm:$0xff] }
0x13df   :  { %15599 = vmatprep.subr.bf16.mxu0 %v22964_v15  ;;  %v15764_v15 = vpack.c.bf16 %v9763_v39, %v9761_v13  ;;  %v9800_v13 = vld [vmem:[%s22802_s11 + $0x178] sm:$0xff] }
0x13e2   :  { %15601 = vmatpush1.bf16.msra.mxu0 %v22965_v6  ;;  %v9766_v6 = vld [vmem:[%s22802_s11 + $0x68] sm:$0xff] }
0x13e3   :  { %15603 = vmatprep.subr.bf16.mxu0 %v22966_v63  ;;  %v9768_v63 = vld [vmem:[%s22802_s11 + $0x78] sm:$0xff] }
0x13e6   :  { %15605 = vmatpush1.bf16.msra.mxu0 %v22967_v10  ;;  %v9765_v10 = vld [vmem:[%s22802_s11 + $0x60] sm:$0xff] }
0x13e7   :  { %15607 = vmatprep.subr.bf16.mxu0 %v22968_v14  ;;  %v15766_v14 = vpack.c.bf16 %v9768_v63, %v9766_v6  ;;  %v9799_v6 = vld [vmem:[%s22802_s11 + $0x170] sm:$0xff] }
0x13ea   :  { %15609 = vmatpush1.bf16.msra.mxu0 %v22969_v62  ;;  %v9767_v62 = vld [vmem:[%s22802_s11 + $0x70] sm:$0xff] }
0x13eb   :  { %15611 = vmatprep.subr.bf16.mxu0 %v22970_v24  ;;  %v15768_v24 = vpack.c.bf16 %v9767_v62, %v9765_v10  ;;  %v9804_v62 = vld [vmem:[%s22802_s11 + $0x198] sm:$0xff] }
0x13ee   :  { %15613 = vmatpush1.bf16.msra.mxu0 %v22971_v16  ;;  %v9770_v16 = vld [vmem:[%s22802_s11 + $0x88] sm:$0xff] }
0x13ef   :  { %15615 = vmatprep.subr.bf16.mxu0 %v22972_v52  ;;  %v9772_v52 = vld [vmem:[%s22802_s11 + $0x98] sm:$0xff] }
0x13f2   :  { %15617 = vmatpush1.bf16.msra.mxu0 %v22973_v18  ;;  %v9769_v18 = vld [vmem:[%s22802_s11 + $0x80] sm:$0xff] }
0x13f3   :  { %15619 = vmatprep.subr.bf16.mxu0 %v22974_v19  ;;  %v15770_v19 = vpack.c.bf16 %v9772_v52, %v9770_v16 }
0x13f6   :  { %15621 = vmatpush1.bf16.msra.mxu0 %v22975_v45  ;;  %v9771_v45 = vld [vmem:[%s22802_s11 + $0x90] sm:$0xff] }
0x13f7   :  { %15623 = vmatprep.subr.bf16.mxu0 %v22976_v35  ;;  %v15772_v35 = vpack.c.bf16 %v9771_v45, %v9769_v18  ;;  %v9803_v18 = vld [vmem:[%s22802_s11 + $0x190] sm:$0xff] }
0x13f9   :  { %v8900_v43 = vpop.f32.mrb[124].mxu1 }
0x13fa   :  { %15625 = vmatpush1.bf16.msra.mxu0 %v22977_v42  ;;  %v8902_v59 = vpop.f32.mrb[125].mxu1  ;;  %v9776_v42 = vld [vmem:[%s22802_s11 + $0xb8] sm:$0xff] }
0x13fb   :  { %11919 = vmatprep.subr.msk.mxu0 %vm8375_vm9, %v8902_v59  ;;  %v9773_v59 = vld [vmem:[%s22802_s11 + $0xa0] sm:$0xff] }
0x13fd   :  { %8828 = vmatmul.mubr.f32.vlgmr.msra.gmra.mrb[136].mxu0 %v20371_v47 }
0x13fe   :  { %11920 = vmatpush1.msk.msra.mxu0 %vm8375_vm9, %v8900_v43  ;;  %8975 = vmatprep.mubr.f32.mxu0 %v22898_v48  ;;  %v9774_v43 = vld [vmem:[%s22802_s11 + $0xa8] sm:$0xff] }
0x1401   :  { %11921 = vmatmul.mubr.msk.f32.vlgmr.msra.gmra.mrb[138].mxu0 %vm8372_vm10, %v18165_v30  ;;  %v22980_v30 = vld [vmem:[#allocation37_spill] sm:$0xff] }
0x1402   :  { %9052 = vmatprep.mubr.f32.mxu0 %v22898_v48 }
0x1490   :  { %v20680_v50 = vpop.f32.mrb[134].mxu0 }
0x1491   :  { %v20682_v55 = vpop.f32.mrb[135].mxu0 }
0x14d0   :  { %v8829_v22 = vpop.f32.mrb[136].mxu0 }
0x14d1   :  { %v8831_v33 = vpop.f32.mrb[137].mxu0 }
0x14d2   :  { %11922 = vmatprep.subr.msk.mxu0 %vm8375_vm9, %v8831_v33  ;;  %v9775_v33 = vld [vmem:[%s22802_s11 + $0xb0] sm:$0xff] }
0x14d3   :  { %11923 = vmatpush1.msk.msra.mxu0 %vm8375_vm9, %v8829_v22  ;;  %v15774_v22 = vpack.c.bf16 %v9776_v42, %v9774_v43 }
0x14d4   :  { %11924 = vmatmul.mubr.msk.f32.vlgmr.msra.gmra.mrb[138].mxu0 %vm8372_vm10, %v18135_v23  ;;  %15691 = vmatprep.subr.bf16.mxu0 %v22978_v60  ;;  %v22984_v23 = vld [vmem:[#allocation41_spill] sm:$0xff]  ;;  %v15776_v60 = vpack.c.bf16 %v9775_v33, %v9773_v59  ;;  %v9808_v33 = vld [vmem:[%s22802_s11 + $0x1b8] sm:$0xff] }
0x14d5   :  { %15693 = vmatpush1.bf16.msra.mxu0 %v22979_v8  ;;  %9123 = vmatprep.mubr.f32.mxu0 %v20376_v37  ;;  %v22994_v37 = vld [vmem:[#allocation51_spill] sm:$0xff]  ;;  %v9778_v8 = vld [vmem:[%s22802_s11 + $0xc8] sm:$0xff] }
0x14d6   :  { %15695 = vmatprep.subr.bf16.mxu0 %v22980_v30  ;;  %v9780_v30 = vld [vmem:[%s22802_s11 + $0xd8] sm:$0xff] }
0x14d9   :  { %15697 = vmatpush1.bf16.msra.mxu0 %v20335_v56  ;;  %v22993_v56 = vld [vmem:[#allocation50_spill] sm:$0xff] }
0x14da   :  { %15699 = vmatprep.subr.bf16.mxu0 %v22981_v32  ;;  %v9777_v32 = vld [vmem:[%s22802_s11 + $0xc0] sm:$0xff] }
0x14dd   :  { %15701 = vmatpush1.bf16.msra.mxu0 %v20354_v31  ;;  %v22991_v31 = vld [vmem:[#allocation48_spill] sm:$0xff] }
0x14de   :  { %15703 = vmatprep.subr.bf16.mxu0 %v20357_v49  ;;  %v22992_v49 = vld [vmem:[#allocation49_spill] sm:$0xff] }
0x14e1   :  { %15705 = vmatpush1.bf16.msra.mxu0 %v22982_v1  ;;  %v15778_v1 = vpack.c.bf16 %v9780_v30, %v9778_v8 }
0x14e2   :  { %15707 = vmatprep.subr.bf16.mxu0 %v22983_v12  ;;  %v9779_v12 = vld [vmem:[%s22802_s11 + $0xd0] sm:$0xff] }
0x14e5   :  { %15709 = vmatpush1.bf16.msra.mxu0 %v22984_v23  ;;  %v15780_v23 = vpack.c.bf16 %v9779_v12, %v9777_v32 }
0x14e6   :  { %15711 = vmatprep.subr.bf16.mxu0 %v22985_v20  ;;  %v9782_v20 = vld [vmem:[%s22802_s11 + $0xe8] sm:$0xff] }
0x14e9   :  { %15713 = vmatpush1.bf16.msra.mxu0 %v22986_v51  ;;  %v9784_v51 = vld [vmem:[%s22802_s11 + $0xf8] sm:$0xff] }
0x14ea   :  { %15715 = vmatprep.subr.bf16.mxu0 %v22987_v61  ;;  %v9781_v61 = vld [vmem:[%s22802_s11 + $0xe0] sm:$0xff] }
0x14ed   :  { %15717 = vmatpush1.bf16.msra.mxu0 %v22988_v46  ;;  %v15782_v46 = vpack.c.bf16 %v9784_v51, %v9782_v20 }
0x14ee   :  { %15719 = vmatprep.subr.bf16.mxu0 %v22989_v4  ;;  %v9783_v4 = vld [vmem:[%s22802_s11 + $0xf0] sm:$0xff] }
0x14f1   :  { %15721 = vmatpush1.bf16.msra.mxu0 %v22990_v44  ;;  %v8749_v44 = vld [vmem:[%s22801_s10] sm:$0x3] }
0x14f2   :  { %15723 = vmatprep.subr.bf16.mxu0 %v22991_v31  ;;  %v15784_v31 = vpack.c.bf16 %v9783_v4, %v9781_v61 }
0x14f5   :  { %15725 = vmatpush1.bf16.msra.mxu0 %v22992_v49  ;;  %v9786_v49 = vld [vmem:[%s22802_s11 + $0x108] sm:$0xff] }
0x14f6   :  { %15727 = vmatprep.subr.bf16.mxu0 %v22993_v56  ;;  %v9788_v56 = vld [vmem:[%s22802_s11 + $0x118] sm:$0xff] }
0x14f9   :  { %15729 = vmatpush1.bf16.msra.mxu0 %v22994_v37  ;;  %v9785_v37 = vld [vmem:[%s22802_s11 + $0x100] sm:$0xff] }
0x14fa   :  { %15731 = vmatprep.subr.bf16.mxu0 %v22995_v7  ;;  %v23002_v7 = vld [vmem:[#allocation16_spill] sm:$0xff] }
0x14fd   :  { %15733 = vmatpush1.bf16.msra.mxu0 %v22996_v57  ;;  %v8754_v57 = vrot.slane %v8749_v44, %v23002_v7 }
0x14fe   :  { %15735 = vmatprep.subr.bf16.mxu0 %v22997_v54  ;;  %v15786_v54 = vpack.c.bf16 %v9788_v56, %v9786_v49 }
0x1501   :  { %15737 = vmatpush1.bf16.msra.mxu0 %v22998_v53  ;;  %v9787_v53 = vld [vmem:[%s22802_s11 + $0x110] sm:$0xff] }
0x1502   :  { %15739 = vmatprep.subr.bf16.mxu0 %v22999_v27  ;;  %v23003_v27 = vld [vmem:[#allocation18_spill] sm:$0xff] }
0x1505   :  { %15741 = vmatpush1.bf16.msra.mxu0 %v23000_v36  ;;  %v8758_v36 = vrot.slane %v8749_v44, %v23003_v27 }
0x1506   :  { %15743 = vmatprep.subr.bf16.mxu0 %v23001_v28  ;;  %v15788_v28 = vpack.c.bf16 %v9787_v53, %v9785_v37 }
0x1509   :  { %15745 = vmatpush1.bf16.msra.mxu0 %v20556_v2  ;;  %v9754_v2 = vld [vmem:[%s22802_s11 + $0x8] sm:$0xff] }
0x150a   :  { %15747 = vmatprep.subr.bf16.mxu0 %v20559_v11 }
0x150d   :  { %15749 = vmatpush1.bf16.msra.mxu0 %v20574_v9  ;;  %v9755_v9 = vld [vmem:[%s22802_s11 + $0x10] sm:$0xff] }
0x150e   :  { %15751 = vmatprep.subr.bf16.mxu0 %v20577_v34 }
0x1511   :  { %15753 = vmatpush1.bf16.msra.mxu0 %v20586_v25  ;;  %v9756_v25 = vld [vmem:[%s22802_s11 + $0x18] sm:$0xff] }
0x1512   :  { %v15754_v11 = vpack.c.bf16 %v9756_v25, %v9754_v2  ;;  %v9789_v2 = vld [vmem:[%s22802_s11 + $0x120] sm:$0xff]  ;;  %v20850_v25 = vadd.f32 %v8754_v57, %v20680_v50  ;;  %v9796_v50 = vld [vmem:[%s22802_s11 + $0x158] sm:$0xff] }
0x1514   :  { %9124 = vmatmul.mubr.f32.vlgmr.msra.gmra.mrb[140].mxu0 %v20371_v47  ;;  %v9753_v47 = vld [vmem:[%s22802_s11] sm:$0xff] }
0x1515   :  { %9200 = vmatprep.mubr.f32.mxu0 %v22898_v48  ;;  %v15756_v34 = vpack.c.bf16 %v9755_v9, %v9753_v47  ;;  %v20856_v9 = vadd.f32 %v8758_v36, %v20682_v55 }
0x1517   :  { %v9218_v17 = vsel %vm8375_vm9, %v20856_v9, 0.0 }
0x1518   :  { %v9219_v39 = vrot.slane %v9218_v17, 4 }
0x151a   :  { %v9220_v16 = vadd.f32 %v9219_v39, %v9218_v17 }
0x151c   :  { %v9221_v8 = vrot.slane %v9220_v16, 2 }
0x151e   :  { %v9222_v4 = vadd.f32 %v9221_v8, %v9220_v16 }
0x15e7   :  { %v9125_v5 = vpop.f32.mrb[140].mxu0 }
0x15e8   :  { %v9127_v41 = vpop.f32.mrb[141].mxu0 }
0x15e9   :  { %11925 = vmatprep.subr.msk.mxu0 %vm8375_vm9, %v9127_v41  ;;  %v9792_v41 = vld [vmem:[%s22802_s11 + $0x138] sm:$0xff] }
0x15ea   :  { %11926 = vmatpush1.msk.msra.mxu0 %vm8375_vm9, %v9125_v5  ;;  %v9790_v5 = vld [vmem:[%s22802_s11 + $0x128] sm:$0xff] }
0x15eb   :  { %11927 = vmatmul.mubr.msk.f32.vlgmr.msra.gmra.mrb[138].mxu0 %vm8372_vm10, %v18204_v29  ;;  %15755 = vmatprep.subr.bf16.mxu0 %v15754_v11  ;;  %v9758_v29 = vld [vmem:[%s22802_s11 + $0x28] sm:$0xff]  ;;  %v15790_v47 = vpack.c.bf16 %v9792_v41, %v9790_v5  ;;  %v9791_v11 = vld [vmem:[%s22802_s11 + $0x130] sm:$0xff] }
0x15ec   :  { %15757 = vmatpush1.bf16.msra.mxu0 %v15756_v34  ;;  %v15758_v58 = vpack.c.bf16 %v9760_v3, %v9758_v29  ;;  %v15792_v34 = vpack.c.bf16 %v9791_v11, %v9789_v2  ;;  %v9794_v29 = vld [vmem:[%s22802_s11 + $0x148] sm:$0xff]  ;;  %v9793_v3 = vld [vmem:[%s22802_s11 + $0x140] sm:$0xff] }
0x15ed   :  { %v15794_v55 = vpack.c.bf16 %v9796_v50, %v9794_v29 }
0x15ee   :  { %15759 = vmatprep.subr.bf16.mxu0 %v15758_v58  ;;  %v9211_v58 = vsel %vm8375_vm9, %v20850_v25, 0.0 }
0x15ef   :  { %v9212_v40 = vrot.slane %v9211_v58, 4 }
0x15f0   :  { %15761 = vmatpush1.bf16.msra.mxu0 %v15760_v26  ;;  %v15796_v26 = vpack.c.bf16 %v9795_v0, %v9793_v3 }
0x15f1   :  { %15763 = vmatprep.subr.bf16.mxu0 %v15762_v38  ;;  %v9797_v38 = vld [vmem:[%s22802_s11 + $0x160] sm:$0xff]  ;;  %v9213_v10 = vadd.f32 %v9212_v40, %v9211_v58 }
0x15f2   :  { %v15800_v63 = vpack.c.bf16 %v9799_v6, %v9797_v38 }
0x15f3   :  { %v9214_v42 = vrot.slane %v9213_v10, 2 }
0x15f4   :  { %15765 = vmatpush1.bf16.msra.mxu0 %v15764_v15  ;;  %v15798_v15 = vpack.c.bf16 %v9800_v13, %v9798_v21 }
0x15f5   :  { %15767 = vmatprep.subr.bf16.mxu0 %v15766_v14  ;;  %v9802_v14 = vld [vmem:[%s22802_s11 + $0x188] sm:$0xff]  ;;  %v9215_v61 = vadd.f32 %v9214_v42, %v9213_v10 }
0x15f6   :  { %v15802_v52 = vpack.c.bf16 %v9804_v62, %v9802_v14 }
0x15f7   :  { %v9216_v56 = vrot.slane %v9215_v61, 1 }
0x15f8   :  { %15769 = vmatpush1.bf16.msra.mxu0 %v15768_v24  ;;  %v9801_v24 = vld [vmem:[%s22802_s11 + $0x180] sm:$0xff] }
0x15f9   :  { %15771 = vmatprep.subr.bf16.mxu0 %v15770_v19  ;;  %v15804_v45 = vpack.c.bf16 %v9803_v18, %v9801_v24 }
0x15fc   :  { %15773 = vmatpush1.bf16.msra.mxu0 %v15772_v35 }
0x15fd   :  { %15775 = vmatprep.subr.bf16.mxu0 %v15774_v22  ;;  %v9806_v22 = vld [vmem:[%s22802_s11 + $0x1a8] sm:$0xff] }
0x15fe   :  { %v15806_v32 = vpack.c.bf16 %v9808_v33, %v9806_v22 }
0x1600   :  { %15777 = vmatpush1.bf16.msra.mxu0 %v15776_v60  ;;  %v9805_v60 = vld [vmem:[%s22802_s11 + $0x1a0] sm:$0xff] }
0x1601   :  { %15779 = vmatprep.subr.bf16.mxu0 %v15778_v1  ;;  %v9807_v1 = vld [vmem:[%s22802_s11 + $0x1b0] sm:$0xff] }
0x1602   :  { %v15808_v20 = vpack.c.bf16 %v9807_v1, %v9805_v60 }
0x1604   :  { %15781 = vmatpush1.bf16.msra.mxu0 %v15780_v23 }
0x1605   :  { %15783 = vmatprep.subr.bf16.mxu0 %v15782_v46 }
0x1608   :  { %15785 = vmatpush1.bf16.msra.mxu0 %v15784_v31 }
0x1609   :  { %15787 = vmatprep.subr.bf16.mxu0 %v15786_v54 }
0x160c   :  { %15789 = vmatpush1.bf16.msra.mxu0 %v15788_v28  ;;  %v9217_v28 = vadd.f32 %v9216_v56, %v9215_v61 }
0x160d   :  { %15791 = vmatprep.subr.bf16.mxu0 %v15790_v47 }
0x1610   :  { %15793 = vmatpush1.bf16.msra.mxu0 %v15792_v34 }
0x1611   :  { %15795 = vmatprep.subr.bf16.mxu0 %v15794_v55 }
0x1614   :  { %15797 = vmatpush1.bf16.msra.mxu0 %v15796_v26 }
0x1615   :  { %15799 = vmatprep.subr.bf16.mxu0 %v15798_v15 }
0x1618   :  { %15801 = vmatpush1.bf16.msra.mxu0 %v15800_v63 }
0x1619   :  { %15803 = vmatprep.subr.bf16.mxu0 %v15802_v52 }
0x161c   :  { %15805 = vmatpush1.bf16.msra.mxu0 %v15804_v45 }
0x161d   :  { %15807 = vmatprep.subr.bf16.mxu0 %v15806_v32 }
0x1620   :  { %15809 = vmatpush1.bf16.msra.mxu0 %v15808_v20 }
0x16be   :  { %v9202_v19 = vpop.f32.mrb[138].mxu0 }
0x16bf   :  { %v9209_v35 = vadd.f32 %v9202_v19, %v8754_v57  ;;  %v9204_v43 = vpop.f32.mrb[139].mxu0  ;;  %v9223_v57 = vrot.slane %v9222_v4, 1 }
0x16c0   :  { %v9210_v59 = vadd.f32 %v9204_v43, %v8758_v36 }
0x16c1   :  { %v9227_v30 = vsel %vm8375_vm9, %v9209_v35, 0.0  ;;  %v9224_v41 = vadd.f32 %v9223_v57, %v9222_v4 }
0x16c2   :  { %v9228_v12 = vrot.slane %v9227_v30, 4  ;;  %v9234_v23 = vsel %vm8375_vm9, %v9210_v59, 0.0 }
0x16c3   :  { %v9235_v51 = vrot.slane %v9234_v23, 4 }
0x16c4   :  { %v9229_v46 = vadd.f32 %v9228_v12, %v9227_v30 }
0x16c5   :  { %v9236_v44 = vadd.f32 %v9235_v51, %v9234_v23 }
0x16c6   :  { %v9230_v31 = vrot.slane %v9229_v46, 2 }
0x16c7   :  { %v9237_v49 = vrot.slane %v9236_v44, 2 }
0x16c8   :  { %v9231_v37 = vadd.f32 %v9230_v31, %v9229_v46 }
0x16c9   :  { %v9238_v54 = vadd.f32 %v9237_v49, %v9236_v44 }
0x16ca   :  { %v9232_v53 = vrot.slane %v9231_v37, 1 }
0x16cb   :  { %v9239_v36 = vrot.slane %v9238_v54, 1 }
0x16cc   :  { %v9233_v5 = vadd.f32 %v9232_v53, %v9231_v37 }
0x16cd   :  { %v9240_v2 = vadd.f32 %v9239_v36, %v9238_v54  ;;  %v23004_v54 = vld [vmem:[#allocation10_spill] sm:$0xff]  ;;  %v23005_v36 = vld [vmem:[#allocation11_spill] sm:$0xff] }
0x16ce   :  { %v9241_v47 = vadd.f32 %v9233_v5, %v9217_v28  ;;  %v23006_v5 = vld [vmem:[#allocation12_spill] sm:$0xff] }
0x16cf   :  { %v9242_v11 = vadd.f32 %v9240_v2, %v9224_v41  ;;  %v11947_v41 = vld [vmem:[%s22802_s11 + $0x208] sm:$0xff]  ;;  %v11949_v2 = vld [vmem:[%s22802_s11 + $0x218] sm:$0xff] }
0x16d0   :  { %v9244_v34 = vmul.f32 0.125, %v9241_v47  ;;  %v15818_v47 = vpack.c.bf16 %v11949_v2, %v11947_v41  ;;  %v11986_v2 = vld [vmem:[%s22802_s11 + $0x340] sm:$0xff] }
0x16d1   :  { %v9245_v29 = vmul.f32 0.125, %v9242_v11  ;;  %v11946_v11 = vld [vmem:[%s22802_s11 + $0x200] sm:$0xff] }
0x16d2   :  { %v9246_v50 = vsub.f32 %v20850_v25, %v9244_v34  ;;  %v9266_v3 = vsub.f32 %v9209_v35, %v9244_v34  ;;  %v11948_v34 = vld [vmem:[%s22802_s11 + $0x210] sm:$0xff] }
0x16d3   :  { %v9247_v58 = vsub.f32 %v20856_v9, %v9245_v29  ;;  %v9267_v55 = vsub.f32 %v9210_v59, %v9245_v29  ;;  %v11951_v29 = vld [vmem:[%s22802_s11 + $0x228] sm:$0xff] }
0x16d4   :  { %v9248_v0 = vmul.f32 %v9246_v50, %v9246_v50  ;;  %v9268_v17 = vmul.f32 %v9266_v3, %v9266_v3 }
0x16d5   :  { %v9249_v26 = vmul.f32 %v9247_v58, %v9247_v58  ;;  %v9269_v40 = vmul.f32 %v9267_v55, %v9267_v55 }
0x16d6   :  { %v9250_v21 = vsel %vm8375_vm9, %v9248_v0, 0.0  ;;  %v9270_v13 = vsel %vm8375_vm9, %v9268_v17, 0.0  ;;  %v11952_v0 = vld [vmem:[%s22802_s11 + $0x230] sm:$0xff]  ;;  %v11955_v17 = vld [vmem:[%s22802_s11 + $0x248] sm:$0xff] }
0x16d7   :  { %v9251_v38 = vrot.slane %v9250_v21, 4  ;;  %v9271_v39 = vrot.slane %v9270_v13, 4  ;;  %v9257_v15 = vsel %vm8375_vm9, %v9249_v26, 0.0  ;;  %v9277_v6 = vsel %vm8375_vm9, %v9269_v40, 0.0  ;;  %v11957_v26 = vld [vmem:[%s22802_s11 + $0x258] sm:$0xff] }
0x16d8   :  { %v9258_v63 = vrot.slane %v9257_v15, 4  ;;  %v9278_v25 = vrot.slane %v9277_v6, 4  ;;  %v15826_v40 = vpack.c.bf16 %v11957_v26, %v11955_v17 }
0x16d9   :  { %v9252_v10 = vadd.f32 %v9251_v38, %v9250_v21  ;;  %v9272_v14 = vadd.f32 %v9271_v39, %v9270_v13  ;;  %v11954_v21 = vld [vmem:[%s22802_s11 + $0x240] sm:$0xff]  ;;  %v11956_v13 = vld [vmem:[%s22802_s11 + $0x250] sm:$0xff]  ;;  %v11959_v38 = vld [vmem:[%s22802_s11 + $0x268] sm:$0xff] }
0x16da   :  { %v9259_v9 = vadd.f32 %v9258_v63, %v9257_v15  ;;  %v9279_v62 = vadd.f32 %v9278_v25, %v9277_v6  ;;  %v11961_v39 = vld [vmem:[%s22802_s11 + $0x278] sm:$0xff]  ;;  %v15828_v15 = vpack.c.bf16 %v11956_v13, %v11954_v21  ;;  %v11958_v63 = vld [vmem:[%s22802_s11 + $0x260] sm:$0xff]  ;;  %v11960_v25 = vld [vmem:[%s22802_s11 + $0x270] sm:$0xff] }
0x16db   :  { %v9253_v24 = vrot.slane %v9252_v10, 2  ;;  %v9273_v16 = vrot.slane %v9272_v14, 2  ;;  %v15830_v6 = vpack.c.bf16 %v11961_v39, %v11959_v38  ;;  %v11999_v13 = vld [vmem:[%s22802_s11 + $0x3a8] sm:$0xff]  ;;  %v12001_v38 = vld [vmem:[%s22802_s11 + $0x3b8] sm:$0xff] }
0x16dc   :  { %v9260_v52 = vrot.slane %v9259_v9, 2  ;;  %v9280_v18 = vrot.slane %v9279_v62, 2  ;;  %v15870_v39 = vpack.c.bf16 %v12001_v38, %v11999_v13  ;;  %v10081_v13 = vld [vmem:[%s22804_s13 + $0x68] sm:$0xff]  ;;  %v10083_v38 = vld [vmem:[%s22804_s13 + $0x78] sm:$0xff] }
0x16dd   :  { %v9254_v19 = vadd.f32 %v9253_v24, %v9252_v10  ;;  %v9274_v45 = vadd.f32 %v9273_v16, %v9272_v14  ;;  %v11963_v10 = vld [vmem:[%s22802_s11 + $0x288] sm:$0xff]  ;;  %v11965_v14 = vld [vmem:[%s22802_s11 + $0x298] sm:$0xff]  ;;  %v11962_v24 = vld [vmem:[%s22802_s11 + $0x280] sm:$0xff] }
0x16de   :  { %v9261_v35 = vadd.f32 %v9260_v52, %v9259_v9  ;;  %v9281_v43 = vadd.f32 %v9280_v18, %v9279_v62  ;;  %v15832_v9 = vpack.c.bf16 %v11960_v25, %v11958_v63  ;;  %v15834_v62 = vpack.c.bf16 %v11965_v14, %v11963_v10  ;;  %v11964_v16 = vld [vmem:[%s22802_s11 + $0x290] sm:$0xff]  ;;  %v11967_v52 = vld [vmem:[%s22802_s11 + $0x2a8] sm:$0xff]  ;;  %v11969_v18 = vld [vmem:[%s22802_s11 + $0x2b8] sm:$0xff] }
0x16df   :  { %v9255_v42 = vrot.slane %v9254_v19, 1  ;;  %v9275_v59 = vrot.slane %v9274_v45, 1  ;;  %v9810_v25 = vld [vmem:[%s22802_s11 + $0x1c8] sm:$0xff]  ;;  %v9812_v10 = vld [vmem:[%s22802_s11 + $0x1d8] sm:$0xff] }
0x16e0   :  { %v9262_v22 = vrot.slane %v9261_v35, 1  ;;  %v9282_v33 = vrot.slane %v9281_v43, 1  ;;  %v15810_v14 = vpack.c.bf16 %v9812_v10, %v9810_v25  ;;  %v15894_v25 = vpack.c.bf16 %v10083_v38, %v10081_v13  ;;  %v10080_v10 = vld [vmem:[%s22804_s13 + $0x60] sm:$0xff] }
0x16e1   :  { %v9256_v60 = vadd.f32 %v9255_v42, %v9254_v19  ;;  %v9276_v8 = vadd.f32 %v9275_v59, %v9274_v45  ;;  %v15836_v19 = vpack.c.bf16 %v11964_v16, %v11962_v24  ;;  %v15838_v45 = vpack.c.bf16 %v11969_v18, %v11967_v52  ;;  %v11971_v42 = vld [vmem:[%s22802_s11 + $0x2c8] sm:$0xff]  ;;  %v11973_v59 = vld [vmem:[%s22802_s11 + $0x2d8] sm:$0xff]  ;;  %v10112_v38 = vld [vmem:[%s22804_s13 + $0x160] sm:$0xff] }
0x16e2   :  { %v9263_v30 = vadd.f32 %v9262_v22, %v9261_v35  ;;  %v9283_v32 = vadd.f32 %v9282_v33, %v9281_v43  ;;  %v11966_v35 = vld [vmem:[%s22802_s11 + $0x2a0] sm:$0xff]  ;;  %v11968_v43 = vld [vmem:[%s22802_s11 + $0x2b0] sm:$0xff]  ;;  %v15842_v33 = vpack.c.bf16 %v11973_v59, %v11971_v42  ;;  %v12003_v16 = vld [vmem:[%s22802_s11 + $0x3c8] sm:$0xff]  ;;  %15811 = vmatprep.subr.bf16.mxu0 %v15810_v14 }
0x16e3   :  { %v9284_v1 = vadd.f32 %v9276_v8, %v9256_v60  ;;  %v15840_v22 = vpack.c.bf16 %v11968_v43, %v11966_v35  ;;  %v11970_v60 = vld [vmem:[%s22802_s11 + $0x2c0] sm:$0xff]  ;;  %v11972_v8 = vld [vmem:[%s22802_s11 + $0x2d0] sm:$0xff]  ;;  %v12005_v52 = vld [vmem:[%s22802_s11 + $0x3d8] sm:$0xff] }
0x16e4   :  { %v9285_v12 = vadd.f32 %v9283_v32, %v9263_v30  ;;  %v11975_v30 = vld [vmem:[%s22802_s11 + $0x2e8] sm:$0xff]  ;;  %v11977_v32 = vld [vmem:[%s22802_s11 + $0x2f8] sm:$0xff]  ;;  %v21133_v18 = vpack.c.bf16 %v12005_v52, %v12003_v16  ;;  %v10082_v14 = vld [vmem:[%s22804_s13 + $0x70] sm:$0xff] }
0x16e5   :  { %v9286_v23 = vmul.f32 0.125, %v9284_v1  ;;  %v15844_v1 = vpack.c.bf16 %v11972_v8, %v11970_v60  ;;  %v9814_v43 = vld [vmem:[%s22802_s11 + $0x1e8] sm:$0xff]  ;;  %v9816_v42 = vld [vmem:[%s22802_s11 + $0x1f8] sm:$0xff] }
0x16e6   :  { %v9287_v20 = vmul.f32 0.125, %v9285_v12  ;;  %v15846_v12 = vpack.c.bf16 %v11977_v32, %v11975_v30  ;;  %v15814_v59 = vpack.c.bf16 %v9816_v42, %v9814_v43  ;;  %v12007_v8 = vld [vmem:[%s22802_s11 + $0x3e8] sm:$0xff]  ;;  %v12009_v30 = vld [vmem:[%s22802_s11 + $0x3f8] sm:$0xff]  ;;  %v10084_v42 = vld [vmem:[%s22804_s13 + $0x80] sm:$0xff] }
0x16e7   :  { %v9288_v51 = vadd.f32 1e-05, %v9286_v23  ;;  %v11974_v23 = vld [vmem:[%s22802_s11 + $0x2e0] sm:$0xff]  ;;  %v21163_v32 = vpack.c.bf16 %v12009_v30, %v12007_v8 }
0x16e8   :  { %v9289_v61 = vadd.f32 1e-05, %v9287_v20  ;;  %v11976_v20 = vld [vmem:[%s22802_s11 + $0x2f0] sm:$0xff]  ;;  %v10088_v30 = vld [vmem:[%s22804_s13 + $0xa0] sm:$0xff] }
0x16e9   :  { %16490 = vrsqrt.f32 %v9288_v51  ;;  %v11979_v51 = vld [vmem:[%s22802_s11 + $0x308] sm:$0xff] }
0x16ea   :  { %16492 = vrsqrt.f32 %v9289_v61  ;;  %v11981_v61 = vld [vmem:[%s22802_s11 + $0x318] sm:$0xff] }
0x16f3   :  { %v16491_v46 = vpop.eup %16490 }
0x16f4   :  { %v16493_v4 = vpop.eup %16492  ;;  %v9292_v44 = vmul.f32 %v16491_v46, %v9246_v50  ;;  %v9296_v31 = vmul.f32 %v16491_v46, %v9266_v3  ;;  %v11953_v50 = vld [vmem:[%s22802_s11 + $0x238] sm:$0xff]  ;;  %v15820_v3 = vpack.c.bf16 %v11948_v34, %v11946_v11  ;;  %v15848_v46 = vpack.c.bf16 %v11976_v20, %v11974_v23  ;;  %v11991_v11 = vld [vmem:[%s22802_s11 + $0x368] sm:$0xff] }
0x16f5   :  { %v9297_v49 = vmul.f32 %v16493_v4, %v9267_v55  ;;  %v9293_v56 = vmul.f32 %v16493_v4, %v9247_v58  ;;  %v15822_v58 = vpack.c.bf16 %v11953_v50, %v11951_v29  ;;  %v11950_v55 = vld [vmem:[%s22802_s11 + $0x220] sm:$0xff]  ;;  %v15850_v4 = vpack.c.bf16 %v11981_v61, %v11979_v51  ;;  %v11993_v34 = vld [vmem:[%s22802_s11 + $0x378] sm:$0xff]  ;;  %v10069_v20 = vld [vmem:[%s22804_s13 + $0x8] sm:$0xff] }
0x16f6   :  { %v9294_v57 = vmax.f32 %v9292_v44, 0.0  ;;  %v9298_v28 = vmax.f32 %v9296_v31, 0.0  ;;  %v11978_v44 = vld [vmem:[%s22802_s11 + $0x300] sm:$0xff]  ;;  %v11980_v31 = vld [vmem:[%s22802_s11 + $0x310] sm:$0xff]  ;;  %v15862_v50 = vpack.c.bf16 %v11993_v34, %v11991_v11  ;;  %v10071_v51 = vld [vmem:[%s22804_s13 + $0x18] sm:$0xff] }
0x16f7   :  { %v9295_v37 = vmax.f32 %v9293_v56, 0.0  ;;  %v9299_v53 = vmax.f32 %v9297_v49, 0.0  ;;  %v11983_v49 = vld [vmem:[%s22802_s11 + $0x328] sm:$0xff]  ;;  %v11985_v56 = vld [vmem:[%s22802_s11 + $0x338] sm:$0xff]  ;;  %v15882_v61 = vpack.c.bf16 %v10071_v51, %v10069_v20  ;;  %v10072_v11 = vld [vmem:[%s22804_s13 + $0x20] sm:$0xff] }
0x16f8   :  { %v10074_v34 = vld [vmem:[%s22804_s13 + $0x30] sm:$0xff]  ;;  %v10095_v20 = vld [vmem:[%s22804_s13 + $0xd8] sm:$0xff] }
0x16f9   :  { %11928 = vmatprep.subr.msk.mxu1 %vm8375_vm9, %v9295_v37 }
0x16fa   :  { %11929 = vmatpush1.msk.msra.mxu1 %vm8375_vm9, %v9294_v57 }
0x16fb   :  { %11930 = vmatmul.mubr.msk.f32.vlgmr.msra.gmra.mrb[126].mxu1 %vm8372_vm10, %v23004_v54  ;;  %11931 = vmatprep.subr.msk.mxu1 %vm8375_vm9, %v9295_v37 }
0x16fc   :  { %11932 = vmatpush1.msk.msra.mxu1 %vm8375_vm9, %v9294_v57  ;;  %9445 = vmatprep.mubr.f32.mxu1 %v22898_v48 }
0x16fd   :  { %11934 = vmatprep.subr.msk.mxu1 %vm8375_vm9, %v9295_v37  ;;  %v15852_v37 = vpack.c.bf16 %v11980_v31, %v11978_v44 }
0x16ff   :  { %11933 = vmatmul.mubr.msk.f32.vlgmr.msra.gmra.mrb[128].mxu1 %vm8372_vm10, %v23005_v36 }
0x1700   :  { %11935 = vmatpush1.msk.msra.mxu1 %vm8375_vm9, %v9294_v57  ;;  %9518 = vmatprep.mubr.f32.mxu1 %v22898_v48  ;;  %v15854_v57 = vpack.c.bf16 %v11985_v56, %v11983_v49 }
0x1701   :  { %11937 = vmatprep.subr.msk.mxu1 %vm8375_vm9, %v9299_v53 }
0x1703   :  { %11936 = vmatmul.mubr.msk.f32.vlgmr.msra.gmra.mrb[130].mxu1 %vm8372_vm10, %v23006_v5 }
0x1704   :  { %11938 = vmatpush1.msk.msra.mxu1 %vm8375_vm9, %v9298_v28  ;;  %9599 = vmatprep.mubr.f32.mxu1 %v22898_v48 }
0x1705   :  { %11940 = vmatprep.subr.msk.mxu1 %vm8375_vm9, %v9299_v53 }
0x1707   :  { %11939 = vmatmul.mubr.msk.f32.vlgmr.msra.gmra.mrb[132].mxu1 %vm8372_vm10, %v23004_v54  ;;  %v11982_v54 = vld [vmem:[%s22802_s11 + $0x320] sm:$0xff] }
0x1708   :  { %11941 = vmatpush1.msk.msra.mxu1 %vm8375_vm9, %v9298_v28  ;;  %9670 = vmatprep.mubr.f32.mxu1 %v22898_v48 }
0x1709   :  { %11943 = vmatprep.subr.msk.mxu1 %vm8375_vm9, %v9299_v53  ;;  %v11984_v53 = vld [vmem:[%s22802_s11 + $0x330] sm:$0xff] }
0x170b   :  { %11942 = vmatmul.mubr.msk.f32.vlgmr.msra.gmra.mrb[134].mxu1 %vm8372_vm10, %v23005_v36  ;;  %v11987_v36 = vld [vmem:[%s22802_s11 + $0x348] sm:$0xff] }
0x170c   :  { %11944 = vmatpush1.msk.msra.mxu1 %vm8375_vm9, %v9298_v28  ;;  %9741 = vmatprep.mubr.f32.mxu1 %v22898_v48  ;;  %v15824_v48 = vpack.c.bf16 %v11952_v0, %v11950_v55  ;;  %v11989_v28 = vld [vmem:[%s22802_s11 + $0x358] sm:$0xff]  ;;  %v11995_v55 = vld [vmem:[%s22802_s11 + $0x388] sm:$0xff] }
0x170d   :  { %15819 = vmatprep.subr.bf16.mxu1 %v15818_v47  ;;  %v15858_v41 = vpack.c.bf16 %v11989_v28, %v11987_v36  ;;  %v11988_v47 = vld [vmem:[%s22802_s11 + $0x350] sm:$0xff]  ;;  %v11997_v0 = vld [vmem:[%s22802_s11 + $0x398] sm:$0xff] }
0x170e   :  { %v15860_v29 = vpack.c.bf16 %v11988_v47, %v11986_v2  ;;  %v15866_v26 = vpack.c.bf16 %v11997_v0, %v11995_v55  ;;  %v10075_v36 = vld [vmem:[%s22804_s13 + $0x38] sm:$0xff] }
0x170f   :  { %11945 = vmatmul.mubr.msk.f32.vlgmr.msra.gmra.mrb[136].mxu1 %vm8372_vm10, %v23006_v5  ;;  %v15856_v5 = vpack.c.bf16 %v11984_v53, %v11982_v54  ;;  %v10073_v53 = vld [vmem:[%s22804_s13 + $0x28] sm:$0xff] }
0x1710   :  { %15821 = vmatpush1.bf16.msra.mxu1 %v15820_v3  ;;  %v11990_v3 = vld [vmem:[%s22802_s11 + $0x360] sm:$0xff]  ;;  %v15886_v47 = vpack.c.bf16 %v10075_v36, %v10073_v53  ;;  %v10103_v53 = vld [vmem:[%s22804_s13 + $0x118] sm:$0xff] }
0x1711   :  { %15823 = vmatprep.subr.bf16.mxu1 %v15822_v58  ;;  %v11992_v58 = vld [vmem:[%s22802_s11 + $0x370] sm:$0xff] }
0x1712   :  { %v15864_v17 = vpack.c.bf16 %v11992_v58, %v11990_v3  ;;  %v10077_v3 = vld [vmem:[%s22804_s13 + $0x48] sm:$0xff]  ;;  %v10079_v58 = vld [vmem:[%s22804_s13 + $0x58] sm:$0xff] }
0x1714   :  { %15825 = vmatpush1.bf16.msra.mxu1 %v15824_v48  ;;  %v11994_v48 = vld [vmem:[%s22802_s11 + $0x380] sm:$0xff] }
0x1715   :  { %15827 = vmatprep.subr.bf16.mxu1 %v15826_v40  ;;  %v11996_v40 = vld [vmem:[%s22802_s11 + $0x390] sm:$0xff] }
0x1716   :  { %v15868_v21 = vpack.c.bf16 %v11996_v40, %v11994_v48  ;;  %v10076_v48 = vld [vmem:[%s22804_s13 + $0x40] sm:$0xff]  ;;  %v10078_v40 = vld [vmem:[%s22804_s13 + $0x50] sm:$0xff] }
0x1718   :  { %15829 = vmatpush1.bf16.msra.mxu1 %v15828_v15  ;;  %v11998_v15 = vld [vmem:[%s22802_s11 + $0x3a0] sm:$0xff] }
0x1719   :  { %15831 = vmatprep.subr.bf16.mxu1 %v15830_v6  ;;  %v12000_v6 = vld [vmem:[%s22802_s11 + $0x3b0] sm:$0xff] }
0x171a   :  { %v15872_v63 = vpack.c.bf16 %v12000_v6, %v11998_v15 }
0x171c   :  { %15833 = vmatpush1.bf16.msra.mxu1 %v15832_v9  ;;  %v9809_v9 = vld [vmem:[%s22802_s11 + $0x1c0] sm:$0xff] }
0x171d   :  { %15835 = vmatprep.subr.bf16.mxu1 %v15834_v62  ;;  %v9811_v62 = vld [vmem:[%s22802_s11 + $0x1d0] sm:$0xff] }
0x171e   :  { %v15812_v24 = vpack.c.bf16 %v9811_v62, %v9809_v9  ;;  %v10085_v62 = vld [vmem:[%s22804_s13 + $0x88] sm:$0xff] }
0x1720   :  { %15837 = vmatpush1.bf16.msra.mxu1 %v15836_v19  ;;  %v12002_v19 = vld [vmem:[%s22802_s11 + $0x3c0] sm:$0xff]  ;;  %15813 = vmatpush1.bf16.msra.mxu0 %v15812_v24  ;;  %v10087_v24 = vld [vmem:[%s22804_s13 + $0x98] sm:$0xff] }
0x1721   :  { %15839 = vmatprep.subr.bf16.mxu1 %v15838_v45  ;;  %v12004_v45 = vld [vmem:[%s22802_s11 + $0x3d0] sm:$0xff]  ;;  %15815 = vmatprep.subr.bf16.mxu0 %v15814_v59  ;;  %v15898_v43 = vpack.c.bf16 %v10087_v24, %v10085_v62  ;;  %v10121_v62 = vld [vmem:[%s22804_s13 + $0x1a8] sm:$0xff]  ;;  %v10123_v24 = vld [vmem:[%s22804_s13 + $0x1b8] sm:$0xff] }
0x1722   :  { %v21141_v35 = vpack.c.bf16 %v12004_v45, %v12002_v19  ;;  %v15896_v45 = vpack.c.bf16 %v10082_v14, %v10080_v10  ;;  %v10086_v59 = vld [vmem:[%s22804_s13 + $0x90] sm:$0xff]  ;;  %v10116_v10 = vld [vmem:[%s22804_s13 + $0x180] sm:$0xff] }
0x1723   :  { %v10118_v14 = vld [vmem:[%s22804_s13 + $0x190] sm:$0xff] }
0x1724   :  { %15841 = vmatpush1.bf16.msra.mxu1 %v15840_v22  ;;  %v9813_v22 = vld [vmem:[%s22802_s11 + $0x1e0] sm:$0xff] }
0x1725   :  { %15843 = vmatprep.subr.bf16.mxu1 %v15842_v33  ;;  %v9815_v33 = vld [vmem:[%s22802_s11 + $0x1f0] sm:$0xff] }
0x1726   :  { %v15816_v60 = vpack.c.bf16 %v9815_v33, %v9813_v22  ;;  %v10089_v22 = vld [vmem:[%s22804_s13 + $0xa8] sm:$0xff]  ;;  %v10091_v33 = vld [vmem:[%s22804_s13 + $0xb8] sm:$0xff] }
0x1727   :  { %v15902_v8 = vpack.c.bf16 %v10091_v33, %v10089_v22  ;;  %v10127_v22 = vld [vmem:[%s22804_s13 + $0x1d8] sm:$0xff] }
0x1728   :  { %15845 = vmatpush1.bf16.msra.mxu1 %v15844_v1  ;;  %v12006_v1 = vld [vmem:[%s22802_s11 + $0x3e0] sm:$0xff]  ;;  %15817 = vmatpush1.bf16.msra.mxu0 %v15816_v60  ;;  %v15900_v60 = vpack.c.bf16 %v10086_v59, %v10084_v42  ;;  %v10125_v59 = vld [vmem:[%s22804_s13 + $0x1c8] sm:$0xff] }
0x1729   :  { %15847 = vmatprep.subr.bf16.mxu1 %v15846_v12  ;;  %v12008_v12 = vld [vmem:[%s22802_s11 + $0x3f0] sm:$0xff]  ;;  %15883 = vmatprep.subr.bf16.mxu0 %v15882_v61  ;;  %v15938_v33 = vpack.c.bf16 %v10127_v22, %v10125_v59 }
0x172a   :  { %v21171_v23 = vpack.c.bf16 %v12008_v12, %v12006_v1  ;;  %v10090_v1 = vld [vmem:[%s22804_s13 + $0xb0] sm:$0xff]  ;;  %v10093_v12 = vld [vmem:[%s22804_s13 + $0xc8] sm:$0xff] }
0x172b   :  { %v15904_v51 = vpack.c.bf16 %v10090_v1, %v10088_v30  ;;  %v15906_v61 = vpack.c.bf16 %v10095_v20, %v10093_v12  ;;  %v10129_v1 = vld [vmem:[%s22804_s13 + $0x1e8] sm:$0xff]  ;;  %v10131_v12 = vld [vmem:[%s22804_s13 + $0x1f8] sm:$0xff]  ;;  %v10128_v20 = vld [vmem:[%s22804_s13 + $0x1e0] sm:$0xff] }
0x172c   :  { %15849 = vmatpush1.bf16.msra.mxu1 %v15848_v46 }
0x172d   :  { %15851 = vmatprep.subr.bf16.mxu1 %v15850_v4 }
0x1730   :  { %15853 = vmatpush1.bf16.msra.mxu1 %v15852_v37  ;;  %v10068_v37 = vld [vmem:[%s22804_s13] sm:$0xff] }
0x1731   :  { %15855 = vmatprep.subr.bf16.mxu1 %v15854_v57  ;;  %v10070_v57 = vld [vmem:[%s22804_s13 + $0x10] sm:$0xff] }
0x1732   :  { %v15884_v2 = vpack.c.bf16 %v10070_v57, %v10068_v37  ;;  %v10096_v37 = vld [vmem:[%s22804_s13 + $0xe0] sm:$0xff]  ;;  %v10098_v57 = vld [vmem:[%s22804_s13 + $0xf0] sm:$0xff] }
0x1733   :  { %v15912_v36 = vpack.c.bf16 %v10098_v57, %v10096_v37  ;;  %v10244_v37 = vld [vmem:[%s22806_s15 + $0x90] sm:$0xff]  ;;  %v10245_v57 = vld [vmem:[%s22806_s15 + $0x98] sm:$0xff] }
0x1734   :  { %15857 = vmatpush1.bf16.msra.mxu1 %v15856_v5 }
0x1735   :  { %15859 = vmatprep.subr.bf16.mxu1 %v15858_v41 }
0x1738   :  { %15861 = vmatpush1.bf16.msra.mxu1 %v15860_v29 }
0x1739   :  { %15863 = vmatprep.subr.bf16.mxu1 %v15862_v50 }
0x173c   :  { %15865 = vmatpush1.bf16.msra.mxu1 %v15864_v17  ;;  %v15888_v17 = vpack.c.bf16 %v10074_v34, %v10072_v11 }
0x173d   :  { %15867 = vmatprep.subr.bf16.mxu1 %v15866_v26  ;;  %v15890_v26 = vpack.c.bf16 %v10079_v58, %v10077_v3  ;;  %v10109_v3 = vld [vmem:[%s22804_s13 + $0x148] sm:$0xff]  ;;  %v10111_v58 = vld [vmem:[%s22804_s13 + $0x158] sm:$0xff] }
0x1740   :  { %15869 = vmatpush1.bf16.msra.mxu1 %v15868_v21 }
0x1741   :  { %15871 = vmatprep.subr.bf16.mxu1 %v15870_v39 }
0x1744   :  { %15873 = vmatpush1.bf16.msra.mxu1 %v15872_v63  ;;  %v15892_v63 = vpack.c.bf16 %v10078_v40, %v10076_v48  ;;  %v10113_v48 = vld [vmem:[%s22804_s13 + $0x168] sm:$0xff]  ;;  %v10115_v40 = vld [vmem:[%s22804_s13 + $0x178] sm:$0xff] }
0x1745   :  { %15875 = vmatprep.subr.bf16.mxu1 %v21133_v18  ;;  %v15926_v13 = vpack.c.bf16 %v10115_v40, %v10113_v48 }
0x1748   :  { %15877 = vmatpush1.bf16.msra.mxu1 %v21141_v35 }
0x1749   :  { %15879 = vmatprep.subr.bf16.mxu1 %v21163_v32 }
0x174c   :  { %15881 = vmatpush1.bf16.msra.mxu1 %v21171_v23 }
0x17ce   :  { %v9374_v46 = vpop.f32.mrb[126].mxu1 }
0x17cf   :  { %v9376_v4 = vpop.f32.mrb[127].mxu1 }
0x17d2   :  { %v9447_v44 = vpop.f32.mrb[128].mxu1 }
0x17d3   :  { %v9525_v31 = vmax.f32 %v9374_v46, %v9447_v44  ;;  %v9449_v49 = vpop.f32.mrb[129].mxu1  ;;  %v10092_v46 = vld [vmem:[%s22804_s13 + $0xc0] sm:$0xff]  ;;  %v10097_v44 = vld [vmem:[%s22804_s13 + $0xe8] sm:$0xff] }
0x17d4   :  { %v9526_v56 = vmax.f32 %v9376_v4, %v9449_v49  ;;  %v10094_v4 = vld [vmem:[%s22804_s13 + $0xd0] sm:$0xff] }
0x17d5   :  { %v15908_v49 = vpack.c.bf16 %v10094_v4, %v10092_v46  ;;  %v10242_v4 = vld [vmem:[%s22806_s15 + $0x80] sm:$0xff] }
0x17d6   :  { %v9520_v54 = vpop.f32.mrb[130].mxu1 }
0x17d7   :  { %v9527_v28 = vmax.f32 %v9525_v31, %v9520_v54  ;;  %v9522_v5 = vpop.f32.mrb[131].mxu1  ;;  %v10099_v31 = vld [vmem:[%s22804_s13 + $0xf8] sm:$0xff]  ;;  %v10101_v54 = vld [vmem:[%s22804_s13 + $0x108] sm:$0xff] }
0x17d8   :  { %v9528_v41 = vmax.f32 %v9526_v56, %v9522_v5  ;;  %v15910_v56 = vpack.c.bf16 %v10099_v31, %v10097_v44  ;;  %v10100_v5 = vld [vmem:[%s22804_s13 + $0x100] sm:$0xff]  ;;  %v10243_v44 = vld [vmem:[%s22806_s15 + $0x88] sm:$0xff] }
0x17d9   :  { %v9974_v55 = vrot.slane %v9527_v28, 1  ;;  %v10226_v31 = vld [vmem:[%s22806_s15] sm:$0xff] }
0x17da   :  { %v9975_v29 = vrot.slane %v9528_v41, 1  ;;  %9881 = vmatprep.mubr.f32.mxu0 %v9528_v41  ;;  %v9601_v50 = vpop.f32.mrb[132].mxu1  ;;  %v10102_v41 = vld [vmem:[%s22804_s13 + $0x110] sm:$0xff] }
0x17db   :  { %9882 = vmatmul.mubr.f32.vlgmr.msra.gmra.mrb[142].mxu0 %v9527_v28  ;;  %v9603_v0 = vpop.f32.mrb[133].mxu1  ;;  %v15914_v28 = vpack.c.bf16 %v10103_v53, %v10101_v54  ;;  %v15916_v11 = vpack.c.bf16 %v10102_v41, %v10100_v5  ;;  %v15950_v53 = vpack.c.bf16 %v10245_v57, %v10244_v37  ;;  %v10246_v5 = vld [vmem:[%s22806_s15 + $0xa0] sm:$0xff]  ;;  %v10247_v41 = vld [vmem:[%s22806_s15 + $0xa8] sm:$0xff]  ;;  %v10256_v57 = vld [vmem:[%s22806_s15 + $0xf0] sm:$0xff] }
0x17dc   :  { %10042 = vmatprep.mubr.f32.mxu1 %v9975_v29  ;;  %15885 = vmatpush1.bf16.msra.mxu0 %v15884_v2  ;;  %v10105_v2 = vld [vmem:[%s22804_s13 + $0x128] sm:$0xff]  ;;  %v10104_v29 = vld [vmem:[%s22804_s13 + $0x120] sm:$0xff] }
0x17dd   :  { %10043 = vmatmul.mubr.f32.vlgmr.msra.gmra.mrb[138].mxu1 %v9974_v55  ;;  %15887 = vmatprep.subr.bf16.mxu0 %v15886_v47  ;;  %v10107_v47 = vld [vmem:[%s22804_s13 + $0x138] sm:$0xff] }
0x17de   :  { %v9672_v21 = vpop.f32.mrb[134].mxu1  ;;  %v15918_v34 = vpack.c.bf16 %v10107_v47, %v10105_v2  ;;  %v15954_v47 = vpack.c.bf16 %v10247_v41, %v10246_v5  ;;  %v10331_v41 = vld [vmem:[%s22807_s16 + $0x8] sm:$0xff] }
0x17df   :  { %v9748_v39 = vmax.f32 %v9601_v50, %v9672_v21  ;;  %v9674_v15 = vpop.f32.mrb[135].mxu1  ;;  %v10106_v50 = vld [vmem:[%s22804_s13 + $0x130] sm:$0xff] }
0x17e0   :  { %v9749_v6 = vmax.f32 %v9603_v0, %v9674_v15  ;;  %15889 = vmatpush1.bf16.msra.mxu0 %v15888_v17  ;;  %v15920_v55 = vpack.c.bf16 %v10106_v50, %v10104_v29  ;;  %v15922_v0 = vpack.c.bf16 %v10111_v58, %v10109_v3  ;;  %v10108_v17 = vld [vmem:[%s22804_s13 + $0x140] sm:$0xff]  ;;  %v10117_v15 = vld [vmem:[%s22804_s13 + $0x188] sm:$0xff]  ;;  %v10248_v29 = vld [vmem:[%s22806_s15 + $0xb0] sm:$0xff] }
0x17e1   :  { %15891 = vmatprep.subr.bf16.mxu0 %v15890_v26  ;;  %v10110_v26 = vld [vmem:[%s22804_s13 + $0x150] sm:$0xff]  ;;  %v10249_v50 = vld [vmem:[%s22806_s15 + $0xb8] sm:$0xff] }
0x17e2   :  { %v9743_v9 = vpop.f32.mrb[136].mxu1  ;;  %v15924_v21 = vpack.c.bf16 %v10110_v26, %v10108_v17  ;;  %v15958_v58 = vpack.c.bf16 %v10249_v50, %v10248_v29  ;;  %v10250_v17 = vld [vmem:[%s22806_s15 + $0xc0] sm:$0xff]  ;;  %v10251_v26 = vld [vmem:[%s22806_s15 + $0xc8] sm:$0xff] }
0x17e3   :  { %v21229_v16 = vmax.f32 %v9748_v39, %v9743_v9  ;;  %v9745_v52 = vpop.f32.mrb[137].mxu1  ;;  %v10114_v39 = vld [vmem:[%s22804_s13 + $0x170] sm:$0xff]  ;;  %v15932_v9 = vpack.c.bf16 %v10118_v14, %v10116_v10  ;;  %v15962_v40 = vpack.c.bf16 %v10251_v26, %v10250_v17  ;;  %v10254_v10 = vld [vmem:[%s22806_s15 + $0xe0] sm:$0xff]  ;;  %v10255_v14 = vld [vmem:[%s22806_s15 + $0xe8] sm:$0xff] }
0x17e4   :  { %v21231_v19 = vmax.f32 %v9749_v6, %v9745_v52  ;;  %15893 = vmatpush1.bf16.msra.mxu0 %v15892_v63  ;;  %v10119_v6 = vld [vmem:[%s22804_s13 + $0x198] sm:$0xff]  ;;  %v15928_v63 = vpack.c.bf16 %v10114_v39, %v10112_v38  ;;  %v15934_v52 = vpack.c.bf16 %v10123_v24, %v10121_v62  ;;  %v10252_v38 = vld [vmem:[%s22806_s15 + $0xd0] sm:$0xff]  ;;  %v15970_v62 = vpack.c.bf16 %v10255_v14, %v10254_v10  ;;  %v10238_v24 = vld [vmem:[%s22806_s15 + $0x60] sm:$0xff] }
0x17e5   :  { %15895 = vmatprep.subr.bf16.mxu0 %v15894_v25  ;;  %v15930_v25 = vpack.c.bf16 %v10119_v6, %v10117_v15  ;;  %v10253_v39 = vld [vmem:[%s22806_s15 + $0xd8] sm:$0xff]  ;;  %v10330_v50 = vld [vmem:[%s22807_s16] sm:$0xff]  ;;  %v10340_v10 = vld [vmem:[%s22807_s16 + $0x50] sm:$0xff] }
0x17e6   :  { %v15966_v6 = vpack.c.bf16 %v10253_v39, %v10252_v38  ;;  %v10336_v38 = vld [vmem:[%s22807_s16 + $0x30] sm:$0xff]  ;;  %v10339_v39 = vld [vmem:[%s22807_s16 + $0x48] sm:$0xff] }
0x17e7   :  { %v10343_v14 = vld [vmem:[%s22807_s16 + $0x68] sm:$0xff] }
0x17e8   :  { %15897 = vmatpush1.bf16.msra.mxu0 %v15896_v45  ;;  %v10120_v45 = vld [vmem:[%s22804_s13 + $0x1a0] sm:$0xff] }
0x17e9   :  { %15899 = vmatprep.subr.bf16.mxu0 %v15898_v43  ;;  %v10122_v43 = vld [vmem:[%s22804_s13 + $0x1b0] sm:$0xff] }
0x17ea   :  { %v15936_v42 = vpack.c.bf16 %v10122_v43, %v10120_v45  ;;  %v16545_v43 = vmov 1966171168  }
0x17ec   :  { %15901 = vmatpush1.bf16.msra.mxu0 %v15900_v60  ;;  %v10124_v60 = vld [vmem:[%s22804_s13 + $0x1c0] sm:$0xff] }
0x17ed   :  { %15903 = vmatprep.subr.bf16.mxu0 %v15902_v8  ;;  %v10126_v8 = vld [vmem:[%s22804_s13 + $0x1d0] sm:$0xff] }
0x17ee   :  { %v15940_v30 = vpack.c.bf16 %v10126_v8, %v10124_v60 }
0x17f0   :  { %15905 = vmatpush1.bf16.msra.mxu0 %v15904_v51  ;;  %v15942_v51 = vpack.c.bf16 %v10131_v12, %v10129_v1 }
0x17f1   :  { %15907 = vmatprep.subr.bf16.mxu0 %v15906_v61  ;;  %v10130_v61 = vld [vmem:[%s22804_s13 + $0x1f0] sm:$0xff] }
0x17f2   :  { %v15944_v46 = vpack.c.bf16 %v10130_v61, %v10128_v20  ;;  %v9752_v61 = vld [vmem:[%s22803_s12] sm:$0x3] }
0x17f4   :  { %15909 = vmatpush1.bf16.msra.mxu0 %v15908_v49  ;;  %v15946_v49 = vpack.c.bf16 %v10243_v44, %v10242_v4 }
0x17f5   :  { %15911 = vmatprep.subr.bf16.mxu0 %v15910_v56  ;;  %v10227_v56 = vld [vmem:[%s22806_s15 + $0x8] sm:$0xff] }
0x17f6   :  { %v15948_v54 = vpack.c.bf16 %v10227_v56, %v10226_v31  ;;  %15947 = vmatprep.subr.bf16.mxu1 %v15946_v49 }
0x17f8   :  { %15913 = vmatpush1.bf16.msra.mxu0 %v15912_v36  ;;  %v10228_v36 = vld [vmem:[%s22806_s15 + $0x10] sm:$0xff]  ;;  %15949 = vmatpush3.bf16.msra.mxu1 %v15948_v54  ;;  %v10257_v54 = vld [vmem:[%s22806_s15 + $0xf8] sm:$0xff] }
0x17f9   :  { %15915 = vmatprep.subr.bf16.mxu0 %v15914_v28  ;;  %v10229_v28 = vld [vmem:[%s22806_s15 + $0x18] sm:$0xff]  ;;  %15951 = vmatprep.subr.bf16.mxu1 %v15950_v53  ;;  %v15974_v53 = vpack.c.bf16 %v10257_v54, %v10256_v57 }
0x17fa   :  { %v15952_v2 = vpack.c.bf16 %v10229_v28, %v10228_v36  ;;  %v10240_v36 = vld [vmem:[%s22806_s15 + $0x70] sm:$0xff]  ;;  %v10241_v28 = vld [vmem:[%s22806_s15 + $0x78] sm:$0xff] }
0x17fb   :  { %v15976_v5 = vpack.c.bf16 %v10241_v28, %v10240_v36  ;;  %v10361_v57 = vld [vmem:[%s22807_s16 + $0xf8] sm:$0xff]  ;;  %v10358_v36 = vld [vmem:[%s22807_s16 + $0xe0] sm:$0xff]  ;;  %v10360_v28 = vld [vmem:[%s22807_s16 + $0xf0] sm:$0xff] }
0x17fc   :  { %15917 = vmatpush1.bf16.msra.mxu0 %v15916_v11  ;;  %v10230_v11 = vld [vmem:[%s22806_s15 + $0x20] sm:$0xff]  ;;  %15953 = vmatpush3.bf16.msra.mxu1 %v15952_v2  ;;  %v10333_v2 = vld [vmem:[%s22807_s16 + $0x18] sm:$0xff] }
0x17fd   :  { %15919 = vmatprep.subr.bf16.mxu0 %v15918_v34  ;;  %v10231_v34 = vld [vmem:[%s22806_s15 + $0x28] sm:$0xff]  ;;  %15955 = vmatprep.subr.bf16.mxu1 %v15954_v47  ;;  %v15978_v47 = vpack.c.bf16 %v10333_v2, %v10331_v41  ;;  %v10365_v41 = vld [vmem:[%s22807_s16 + $0x118] sm:$0xff]  ;;  %v16008_v2 = vpack.c.bf16 %v10360_v28, %v10358_v36  ;;  %v12010_v36 = vld [vmem:[%s22802_s11 + $0x200] sm:$0xff] }
0x17fe   :  { %v15956_v3 = vpack.c.bf16 %v10231_v34, %v10230_v11  ;;  %v10132_v11 = vld [vmem:[%s22805_s14] sm:$0x3]  ;;  %v12012_v28 = vld [vmem:[%s22802_s11 + $0x210] sm:$0xff] }
0x17ff   :  { %v10152_v34 = vrot.slane %v10132_v11, %v23003_v27  ;;  %v10148_v29 = vrot.slane %v10132_v11, %v23002_v7  ;;  %v10362_v11 = vld [vmem:[%s22807_s16 + $0x100] sm:$0xff] }
0x1800   :  { %15921 = vmatpush1.bf16.msra.mxu0 %v15920_v55  ;;  %v10232_v55 = vld [vmem:[%s22806_s15 + $0x30] sm:$0xff]  ;;  %15957 = vmatpush3.bf16.msra.mxu1 %v15956_v3 }
0x1801   :  { %15923 = vmatprep.subr.bf16.mxu0 %v15922_v0  ;;  %v10233_v0 = vld [vmem:[%s22806_s15 + $0x38] sm:$0xff]  ;;  %15959 = vmatprep.subr.bf16.mxu1 %v15958_v58  ;;  %v10332_v3 = vld [vmem:[%s22807_s16 + $0x10] sm:$0xff] }
0x1802   :  { %v15960_v48 = vpack.c.bf16 %v10233_v0, %v10232_v55  ;;  %v10335_v55 = vld [vmem:[%s22807_s16 + $0x28] sm:$0xff]  ;;  %v10337_v0 = vld [vmem:[%s22807_s16 + $0x38] sm:$0xff] }
0x1804   :  { %15925 = vmatpush1.bf16.msra.mxu0 %v15924_v21  ;;  %v10234_v21 = vld [vmem:[%s22806_s15 + $0x40] sm:$0xff]  ;;  %15961 = vmatpush3.bf16.msra.mxu1 %v15960_v48  ;;  %v15980_v48 = vpack.c.bf16 %v10332_v3, %v10330_v50  ;;  %v10369_v50 = vld [vmem:[%s22807_s16 + $0x138] sm:$0xff] }
0x1805   :  { %15927 = vmatprep.subr.bf16.mxu0 %v15926_v13  ;;  %v10235_v13 = vld [vmem:[%s22806_s15 + $0x48] sm:$0xff]  ;;  %15963 = vmatprep.subr.bf16.mxu1 %v15962_v40 }
0x1806   :  { %v15964_v15 = vpack.c.bf16 %v10235_v13, %v10234_v21  ;;  %v15982_v21 = vpack.c.bf16 %v10337_v0, %v10335_v55  ;;  %v10334_v13 = vld [vmem:[%s22807_s16 + $0x20] sm:$0xff]  ;;  %v10368_v0 = vld [vmem:[%s22807_s16 + $0x130] sm:$0xff] }
0x1807   :  { %v10366_v55 = vld [vmem:[%s22807_s16 + $0x120] sm:$0xff] }
0x1808   :  { %15929 = vmatpush1.bf16.msra.mxu0 %v15928_v63  ;;  %v10236_v63 = vld [vmem:[%s22806_s15 + $0x50] sm:$0xff]  ;;  %15965 = vmatpush3.bf16.msra.mxu1 %v15964_v15  ;;  %v10341_v15 = vld [vmem:[%s22807_s16 + $0x58] sm:$0xff] }
0x1809   :  { %15931 = vmatprep.subr.bf16.mxu0 %v15930_v25  ;;  %v10237_v25 = vld [vmem:[%s22806_s15 + $0x58] sm:$0xff]  ;;  %15967 = vmatprep.subr.bf16.mxu1 %v15966_v6  ;;  %v15984_v6 = vpack.c.bf16 %v10336_v38, %v10334_v13  ;;  %v10370_v13 = vld [vmem:[%s22807_s16 + $0x140] sm:$0xff]  ;;  %v10372_v38 = vld [vmem:[%s22807_s16 + $0x150] sm:$0xff] }
0x180c   :  { %15933 = vmatpush1.bf16.msra.mxu0 %v15932_v9  ;;  %v15968_v9 = vpack.c.bf16 %v10237_v25, %v10236_v63  ;;  %v15986_v63 = vpack.c.bf16 %v10341_v15, %v10339_v39  ;;  %v10338_v25 = vld [vmem:[%s22807_s16 + $0x40] sm:$0xff]  ;;  %v10375_v39 = vld [vmem:[%s22807_s16 + $0x168] sm:$0xff]  ;;  %v10377_v15 = vld [vmem:[%s22807_s16 + $0x178] sm:$0xff] }
0x180d   :  { %15935 = vmatprep.subr.bf16.mxu0 %v15934_v52  ;;  %v10239_v52 = vld [vmem:[%s22806_s15 + $0x68] sm:$0xff] }
0x180e   :  { %15969 = vmatpush3.bf16.msra.mxu1 %v15968_v9  ;;  %v15972_v45 = vpack.c.bf16 %v10239_v52, %v10238_v24  ;;  %v10345_v9 = vld [vmem:[%s22807_s16 + $0x78] sm:$0xff]  ;;  %v10342_v52 = vld [vmem:[%s22807_s16 + $0x60] sm:$0xff] }
0x180f   :  { %15971 = vmatprep.subr.bf16.mxu1 %v15970_v62  ;;  %v15988_v62 = vpack.c.bf16 %v10340_v10, %v10338_v25  ;;  %v15990_v24 = vpack.c.bf16 %v10345_v9, %v10343_v14  ;;  %v10374_v25 = vld [vmem:[%s22807_s16 + $0x160] sm:$0xff]  ;;  %v10376_v10 = vld [vmem:[%s22807_s16 + $0x170] sm:$0xff]  ;;  %v10379_v14 = vld [vmem:[%s22807_s16 + $0x188] sm:$0xff] }
0x1810   :  { %15937 = vmatpush1.bf16.msra.mxu0 %v15936_v42  ;;  %v9892_v42 = vunpack.c.l.s4 %v16545_v43  ;;  %v10347_v43 = vld [vmem:[%s22807_s16 + $0x88] sm:$0xff]  ;;  %v10381_v9 = vld [vmem:[%s22807_s16 + $0x198] sm:$0xff] }
0x1811   :  { %15939 = vmatprep.subr.bf16.mxu0 %v15938_v33  ;;  %v23007_v33 = vld [vmem:[#allocation8_spill] sm:$0xff] }
0x1812   :  { %15973 = vmatpush3.bf16.msra.mxu1 %v15972_v45  ;;  %v9893_v59 = vunpack.c.0.s8 %v9892_v42  ;;  %v10344_v45 = vld [vmem:[%s22807_s16 + $0x70] sm:$0xff]  ;;  %v10349_v42 = vld [vmem:[%s22807_s16 + $0x98] sm:$0xff] }
0x1813   :  { %15975 = vmatprep.subr.bf16.mxu1 %v15974_v53 }
0x1814   :  { %15941 = vmatpush1.bf16.msra.mxu0 %v15940_v30  ;;  %v21456_v60 = vsub.s32 %v9893_v59, %v23007_v33  ;;  %v15992_v59 = vpack.c.bf16 %v10344_v45, %v10342_v52  ;;  %v10346_v33 = vld [vmem:[%s22807_s16 + $0x80] sm:$0xff]  ;;  %v10380_v45 = vld [vmem:[%s22807_s16 + $0x190] sm:$0xff] }
0x1815   :  { %15943 = vmatprep.subr.bf16.mxu0 %v15942_v51  ;;  %v10378_v52 = vld [vmem:[%s22807_s16 + $0x180] sm:$0xff] }
0x1816   :  { %15977 = vmatpush3.bf16.msra.mxu1 %v15976_v5  ;;  %v10363_v5 = vld [vmem:[%s22807_s16 + $0x108] sm:$0xff] }
0x1817   :  { %15979 = vmatprep.subr.bf16.mxu1 %v15978_v47  ;;  %v16010_v47 = vpack.c.bf16 %v10365_v41, %v10363_v5  ;;  %v12015_v5 = vld [vmem:[%s22802_s11 + $0x228] sm:$0xff]  ;;  %v12017_v41 = vld [vmem:[%s22802_s11 + $0x238] sm:$0xff] }
0x1818   :  { %15945 = vmatpush1.bf16.msra.mxu0 %v15944_v46 }
0x18ae   :  { %v9883_v22 = vpop.f32.mrb[142].mxu0 }
0x18af   :  { %v9885_v8 = vpop.f32.mrb[143].mxu0 }
0x18b0   :  { %v9890_v30 = vcombine.low %v9883_v22, %v9885_v8  ;;  %v10044_v1 = vpop.f32.mrb[138].mxu1  ;;  %v15994_v22 = vpack.c.bf16 %v10349_v42, %v10347_v43  ;;  %v10348_v8 = vld [vmem:[%s22807_s16 + $0x90] sm:$0xff]  ;;  %v10383_v43 = vld [vmem:[%s22807_s16 + $0x1a8] sm:$0xff]  ;;  %v10385_v42 = vld [vmem:[%s22807_s16 + $0x1b8] sm:$0xff] }
0x18b1   :  { %v10046_v12 = vpop.f32.mrb[139].mxu1 }
0x18b2   :  { %v9897_v20 = vrot.slane %v9890_v30, %v21456_v60  ;;  %v10051_v51 = vcombine.low %v10044_v1, %v10046_v12  ;;  %v10351_v30 = vld [vmem:[%s22807_s16 + $0xa8] sm:$0xff]  ;;  %v10353_v1 = vld [vmem:[%s22807_s16 + $0xb8] sm:$0xff]  ;;  %v15996_v12 = vpack.c.bf16 %v10348_v8, %v10346_v33  ;;  %v10382_v33 = vld [vmem:[%s22807_s16 + $0x1a0] sm:$0xff] }
0x18b3   :  { %v10384_v8 = vld [vmem:[%s22807_s16 + $0x1b0] sm:$0xff] }
0x18b4   :  { %v9904_v46 = vrot.slane %v9897_v20, %v21456_v60  ;;  %v10058_v4 = vrot.slane %v10051_v51, %v21456_v60  ;;  %v15998_v20 = vpack.c.bf16 %v10353_v1, %v10351_v30  ;;  %v10350_v51 = vld [vmem:[%s22807_s16 + $0xa0] sm:$0xff]  ;;  %v10387_v30 = vld [vmem:[%s22807_s16 + $0x1c8] sm:$0xff]  ;;  %v10389_v1 = vld [vmem:[%s22807_s16 + $0x1d8] sm:$0xff] }
0x18b6   :  { %v9906_v44 = vadd.f32 %v9904_v46, %v9752_v61  ;;  %v10065_v31 = vrot.slane %v10058_v4, %v21456_v60  ;;  %v10352_v61 = vld [vmem:[%s22807_s16 + $0xb0] sm:$0xff]  ;;  %v10355_v46 = vld [vmem:[%s22807_s16 + $0xc8] sm:$0xff]  ;;  %v10357_v4 = vld [vmem:[%s22807_s16 + $0xd8] sm:$0xff] }
0x18b8   :  { %v10067_v49 = vadd.f32 %v10065_v31, %v9906_v44  ;;  %v16000_v44 = vpack.c.bf16 %v10352_v61, %v10350_v51  ;;  %v16002_v31 = vpack.c.bf16 %v10357_v4, %v10355_v46  ;;  %v10386_v51 = vld [vmem:[%s22807_s16 + $0x1c0] sm:$0xff]  ;;  %v10388_v61 = vld [vmem:[%s22807_s16 + $0x1d0] sm:$0xff]  ;;  %v10391_v46 = vld [vmem:[%s22807_s16 + $0x1e8] sm:$0xff] }
0x18b9   :  { %v10393_v4 = vld [vmem:[%s22807_s16 + $0x1f8] sm:$0xff] }
0x18ba   :  { %v10141_v56 = vrot.slane %v10067_v49, %v23003_v27  ;;  %v10137_v37 = vrot.slane %v10067_v49, %v23002_v7  ;;  %v10354_v49 = vld [vmem:[%s22807_s16 + $0xc0] sm:$0xff] }
0x18bc   :  { %10219 = vmatprep.mubr.f32.mxu0 %v10141_v56  ;;  %v10356_v56 = vld [vmem:[%s22807_s16 + $0xd0] sm:$0xff] }
0x18bd   :  { %10220 = vmatmul.mubr.f32.vlgmr.msra.gmra.mrb[144].mxu0 %v10137_v37  ;;  %v10359_v37 = vld [vmem:[%s22807_s16 + $0xe8] sm:$0xff]  ;;  %v16004_v54 = vpack.c.bf16 %v10356_v56, %v10354_v49  ;;  %v10390_v49 = vld [vmem:[%s22807_s16 + $0x1e0] sm:$0xff]  ;;  %v10392_v56 = vld [vmem:[%s22807_s16 + $0x1f0] sm:$0xff] }
0x18be   :  { %v16006_v53 = vpack.c.bf16 %v10361_v57, %v10359_v37  ;;  %v12011_v37 = vld [vmem:[%s22802_s11 + $0x208] sm:$0xff]  ;;  %v12013_v57 = vld [vmem:[%s22802_s11 + $0x218] sm:$0xff] }
0x1990   :  { %v10221_v58 = vpop.f32.mrb[144].mxu0 }
0x1991   :  { %v10223_v17 = vpop.f32.mrb[145].mxu0  ;;  %v21502_v40 = vadd.f32 %v10221_v58, %v10148_v29  ;;  %v10367_v29 = vld [vmem:[%s22807_s16 + $0x128] sm:$0xff] }
0x1992   :  { %v10224_v26 = vadd.f32 %v10223_v17, %v10152_v34  ;;  %v10364_v34 = vld [vmem:[%s22807_s16 + $0x110] sm:$0xff]  ;;  %v16014_v58 = vpack.c.bf16 %v10369_v50, %v10367_v29  ;;  %v10371_v17 = vld [vmem:[%s22807_s16 + $0x148] sm:$0xff]  ;;  %v10806_v29 = vrot.slane %v21231_v19, 1 }
0x1993   :  { %v16012_v3 = vpack.c.bf16 %v10364_v34, %v10362_v11  ;;  %v12014_v11 = vld [vmem:[%s22802_s11 + $0x220] sm:$0xff]  ;;  %v12016_v34 = vld [vmem:[%s22802_s11 + $0x230] sm:$0xff]  ;;  %v12019_v50 = vld [vmem:[%s22802_s11 + $0x248] sm:$0xff] }
0x1994   :  { %10322 = vmatprep.mubr.f32.mxu1 %v10224_v26 }
0x1995   :  { %10323 = vmatmul.mubr.f32.vlgmr.msra.gmra.mrb[140].mxu1 %v21502_v40 }
0x1996   :  { %15981 = vmatpush1.bf16.msra.mxu1 %v15980_v48  ;;  %10470 = vmatprep.mubr.f32.mxu1 %v10224_v26  ;;  %v10373_v26 = vld [vmem:[%s22807_s16 + $0x158] sm:$0xff]  ;;  %v16016_v48 = vpack.c.bf16 %v10368_v0, %v10366_v55  ;;  %v12018_v0 = vld [vmem:[%s22802_s11 + $0x240] sm:$0xff] }
0x1997   :  { %15983 = vmatprep.subr.bf16.mxu1 %v15982_v21  ;;  %v16018_v21 = vpack.c.bf16 %v10373_v26, %v10371_v17  ;;  %v12020_v17 = vld [vmem:[%s22802_s11 + $0x250] sm:$0xff]  ;;  %v12023_v26 = vld [vmem:[%s22802_s11 + $0x268] sm:$0xff] }
0x199a   :  { %15985 = vmatpush1.bf16.msra.mxu1 %v15984_v6  ;;  %v16020_v6 = vpack.c.bf16 %v10372_v38, %v10370_v13  ;;  %v12022_v13 = vld [vmem:[%s22802_s11 + $0x260] sm:$0xff]  ;;  %v12024_v38 = vld [vmem:[%s22802_s11 + $0x270] sm:$0xff] }
0x199b   :  { %15987 = vmatprep.subr.bf16.mxu1 %v15986_v63  ;;  %v16022_v63 = vpack.c.bf16 %v10377_v15, %v10375_v39  ;;  %v12027_v39 = vld [vmem:[%s22802_s11 + $0x288] sm:$0xff]  ;;  %v12029_v15 = vld [vmem:[%s22802_s11 + $0x298] sm:$0xff] }
0x199e   :  { %15989 = vmatpush1.bf16.msra.mxu1 %v15988_v62  ;;  %v16024_v62 = vpack.c.bf16 %v10376_v10, %v10374_v25  ;;  %v12026_v25 = vld [vmem:[%s22802_s11 + $0x280] sm:$0xff]  ;;  %v12028_v10 = vld [vmem:[%s22802_s11 + $0x290] sm:$0xff] }
0x199f   :  { %15991 = vmatprep.subr.bf16.mxu1 %v15990_v24  ;;  %v16026_v24 = vpack.c.bf16 %v10381_v9, %v10379_v14  ;;  %v12031_v14 = vld [vmem:[%s22802_s11 + $0x2a8] sm:$0xff]  ;;  %v12033_v9 = vld [vmem:[%s22802_s11 + $0x2b8] sm:$0xff] }
0x19a2   :  { %15993 = vmatpush1.bf16.msra.mxu1 %v15992_v59  ;;  %v16028_v59 = vpack.c.bf16 %v10380_v45, %v10378_v52  ;;  %v12030_v52 = vld [vmem:[%s22802_s11 + $0x2a0] sm:$0xff]  ;;  %v12032_v45 = vld [vmem:[%s22802_s11 + $0x2b0] sm:$0xff] }
0x19a3   :  { %15995 = vmatprep.subr.bf16.mxu1 %v15994_v22  ;;  %v16030_v22 = vpack.c.bf16 %v10385_v42, %v10383_v43  ;;  %v12035_v43 = vld [vmem:[%s22802_s11 + $0x2c8] sm:$0xff]  ;;  %v12037_v42 = vld [vmem:[%s22802_s11 + $0x2d8] sm:$0xff] }
0x19a6   :  { %15997 = vmatpush1.bf16.msra.mxu1 %v15996_v12  ;;  %v16032_v12 = vpack.c.bf16 %v10384_v8, %v10382_v33  ;;  %v12034_v33 = vld [vmem:[%s22802_s11 + $0x2c0] sm:$0xff]  ;;  %v12036_v8 = vld [vmem:[%s22802_s11 + $0x2d0] sm:$0xff] }
0x19a7   :  { %15999 = vmatprep.subr.bf16.mxu1 %v15998_v20  ;;  %v16034_v20 = vpack.c.bf16 %v10389_v1, %v10387_v30  ;;  %v12039_v30 = vld [vmem:[%s22802_s11 + $0x2e8] sm:$0xff]  ;;  %v12041_v1 = vld [vmem:[%s22802_s11 + $0x2f8] sm:$0xff] }
0x19aa   :  { %16001 = vmatpush1.bf16.msra.mxu1 %v16000_v44  ;;  %v16036_v44 = vpack.c.bf16 %v10388_v61, %v10386_v51  ;;  %v16164_v51 = vpack.c.bf16 %v12036_v8, %v12034_v33  ;;  %v12043_v61 = vld [vmem:[%s22802_s11 + $0x308] sm:$0xff]  ;;  %v12057_v8 = vld [vmem:[%s22802_s11 + $0x378] sm:$0xff] }
0x19ab   :  { %16003 = vmatprep.subr.bf16.mxu1 %v16002_v31  ;;  %v16038_v31 = vpack.c.bf16 %v10393_v4, %v10391_v46  ;;  %v12045_v46 = vld [vmem:[%s22802_s11 + $0x318] sm:$0xff]  ;;  %v10495_v4 = vld [vmem:[%s22809_s18 + $0x80] sm:$0xff]  ;;  %v10488_v33 = vld [vmem:[%s22809_s18 + $0x48] sm:$0xff] }
0x19ae   :  { %16005 = vmatpush1.bf16.msra.mxu1 %v16004_v54  ;;  %v16040_v54 = vpack.c.bf16 %v10392_v56, %v10390_v49  ;;  %v16166_v49 = vpack.c.bf16 %v12041_v1, %v12039_v30  ;;  %v10505_v30 = vld [vmem:[%s22809_s18 + $0xd0] sm:$0xff]  ;;  %v10506_v1 = vld [vmem:[%s22809_s18 + $0xd8] sm:$0xff] }
0x19af   :  { %16007 = vmatprep.subr.bf16.mxu1 %v16006_v53  ;;  %v16138_v53 = vpack.c.bf16 %v12013_v57, %v12011_v37  ;;  %v10480_v37 = vld [vmem:[%s22809_s18 + $0x8] sm:$0xff]  ;;  %v10497_v57 = vld [vmem:[%s22809_s18 + $0x90] sm:$0xff] }
0x19b2   :  { %16009 = vmatpush1.bf16.msra.mxu1 %v16008_v2  ;;  %v16140_v2 = vpack.c.bf16 %v12012_v28, %v12010_v36  ;;  %v10481_v28 = vld [vmem:[%s22809_s18 + $0x10] sm:$0xff] }
0x19b3   :  { %16011 = vmatprep.subr.bf16.mxu1 %v16010_v47  ;;  %v16142_v47 = vpack.c.bf16 %v12017_v41, %v12015_v5  ;;  %v10482_v5 = vld [vmem:[%s22809_s18 + $0x18] sm:$0xff]  ;;  %v10499_v41 = vld [vmem:[%s22809_s18 + $0xa0] sm:$0xff] }
0x19b6   :  { %16013 = vmatpush1.bf16.msra.mxu1 %v16012_v3  ;;  %v12021_v3 = vld [vmem:[%s22802_s11 + $0x258] sm:$0xff] }
0x19b7   :  { %16015 = vmatprep.subr.bf16.mxu1 %v16014_v58  ;;  %v16144_v58 = vpack.c.bf16 %v12016_v34, %v12014_v11  ;;  %v16146_v55 = vpack.c.bf16 %v12021_v3, %v12019_v50  ;;  %v12042_v11 = vld [vmem:[%s22802_s11 + $0x300] sm:$0xff]  ;;  %v12044_v34 = vld [vmem:[%s22802_s11 + $0x310] sm:$0xff]  ;;  %v16170_v50 = vpack.c.bf16 %v12045_v46, %v12043_v61  ;;  %v12047_v3 = vld [vmem:[%s22802_s11 + $0x328] sm:$0xff] }
0x19ba   :  { %16017 = vmatpush1.bf16.msra.mxu1 %v16016_v48  ;;  %v16148_v48 = vpack.c.bf16 %v12020_v17, %v12018_v0  ;;  %v10484_v0 = vld [vmem:[%s22809_s18 + $0x28] sm:$0xff]  ;;  %v12049_v17 = vld [vmem:[%s22802_s11 + $0x338] sm:$0xff] }
0x19bb   :  { %16019 = vmatprep.subr.bf16.mxu1 %v16018_v21 }
0x19be   :  { %16021 = vmatpush1.bf16.msra.mxu1 %v16020_v6  ;;  %v16152_v6 = vpack.c.bf16 %v12024_v38, %v12022_v13  ;;  %v12048_v13 = vld [vmem:[%s22802_s11 + $0x330] sm:$0xff] }
0x19bf   :  { %16023 = vmatprep.subr.bf16.mxu1 %v16022_v63  ;;  %v16154_v63 = vpack.c.bf16 %v12029_v15, %v12027_v39  ;;  %v16174_v39 = vpack.c.bf16 %v12049_v17, %v12047_v3  ;;  %v12051_v15 = vld [vmem:[%s22802_s11 + $0x348] sm:$0xff]  ;;  %v10805_v17 = vrot.slane %v21229_v16, 1 }
0x19c2   :  { %16025 = vmatpush1.bf16.msra.mxu1 %v16024_v62  ;;  %v16156_v62 = vpack.c.bf16 %v12028_v10, %v12026_v25  ;;  %v10486_v25 = vld [vmem:[%s22809_s18 + $0x38] sm:$0xff] }
0x19c3   :  { %16027 = vmatprep.subr.bf16.mxu1 %v16026_v24  ;;  %v16158_v24 = vpack.c.bf16 %v12033_v9, %v12031_v14  ;;  %v12053_v10 = vld [vmem:[%s22802_s11 + $0x358] sm:$0xff]  ;;  %v10503_v14 = vld [vmem:[%s22809_s18 + $0xc0] sm:$0xff]  ;;  %v10504_v9 = vld [vmem:[%s22809_s18 + $0xc8] sm:$0xff] }
0x19c6   :  { %16029 = vmatpush1.bf16.msra.mxu1 %v16028_v59  ;;  %v16160_v59 = vpack.c.bf16 %v12032_v45, %v12030_v52  ;;  %v12052_v52 = vld [vmem:[%s22802_s11 + $0x350] sm:$0xff] }
0x19c7   :  { %16031 = vmatprep.subr.bf16.mxu1 %v16030_v22  ;;  %v16162_v22 = vpack.c.bf16 %v12037_v42, %v12035_v43  ;;  %v16178_v43 = vpack.c.bf16 %v12053_v10, %v12051_v15  ;;  %v12055_v42 = vld [vmem:[%s22802_s11 + $0x368] sm:$0xff] }
0x19c8   :  { %v16182_v46 = vpack.c.bf16 %v12057_v8, %v12055_v42  ;;  %v10589_v8 = vld [vmem:[%s22802_s11 + $0x20] sm:$0xff] }
0x19ca   :  { %16033 = vmatpush1.bf16.msra.mxu1 %v16032_v12  ;;  %v12038_v12 = vld [vmem:[%s22802_s11 + $0x2e0] sm:$0xff] }
0x19cb   :  { %16035 = vmatprep.subr.bf16.mxu1 %v16034_v20  ;;  %v12040_v20 = vld [vmem:[%s22802_s11 + $0x2f0] sm:$0xff] }
0x19ce   :  { %16037 = vmatpush1.bf16.msra.mxu1 %v16036_v44  ;;  %v10496_v44 = vld [vmem:[%s22809_s18 + $0x88] sm:$0xff] }
0x19cf   :  { %16039 = vmatprep.subr.bf16.mxu1 %v16038_v31  ;;  %v10479_v31 = vld [vmem:[%s22809_s18] sm:$0xff]  ;;  %v16042_v56 = vpack.c.bf16 %v10496_v44, %v10495_v4  ;;  %v12059_v4 = vld [vmem:[%s22802_s11 + $0x388] sm:$0xff]  ;;  %v16062_v44 = vpack.c.bf16 %v10506_v1, %v10505_v30  ;;  %v10591_v30 = vld [vmem:[%s22802_s11 + $0x30] sm:$0xff] }
0x19d0   :  { %v10594_v1 = vld [vmem:[%s22802_s11 + $0x48] sm:$0xff] }
0x19d1   :  { %16043 = vmatprep.subr.bf16.mxu0 %v16042_v56  ;;  %v12061_v56 = vld [vmem:[%s22802_s11 + $0x398] sm:$0xff] }
0x19d2   :  { %16041 = vmatpush1.bf16.msra.mxu1 %v16040_v54  ;;  %v10498_v54 = vld [vmem:[%s22809_s18 + $0x98] sm:$0xff] }
0x19d3   :  { %16139 = vmatprep.subr.bf16.mxu1 %v16138_v53  ;;  %v16044_v53 = vpack.c.bf16 %v10480_v37, %v10479_v31  ;;  %v16046_v36 = vpack.c.bf16 %v10498_v54, %v10497_v57  ;;  %v10489_v31 = vld [vmem:[%s22809_s18 + $0x50] sm:$0xff]  ;;  %v10507_v37 = vld [vmem:[%s22809_s18 + $0xe0] sm:$0xff]  ;;  %v10508_v57 = vld [vmem:[%s22809_s18 + $0xe8] sm:$0xff] }
0x19d5   :  { %10471 = vmatmul.mubr.f32.vlgmr.msra.gmra.mrb[142].mxu1 %v21502_v40  ;;  %v12025_v40 = vld [vmem:[%s22802_s11 + $0x278] sm:$0xff]  ;;  %16045 = vmatpush3.bf16.msra.mxu0 %v16044_v53  ;;  %v12058_v53 = vld [vmem:[%s22802_s11 + $0x380] sm:$0xff] }
0x19d6   :  { %16141 = vmatpush1.bf16.msra.mxu1 %v16140_v2  ;;  %10873 = vmatprep.mubr.f32.mxu1 %v10806_v29  ;;  %v16150_v21 = vpack.c.bf16 %v12025_v40, %v12023_v26  ;;  %v10500_v2 = vld [vmem:[%s22809_s18 + $0xa8] sm:$0xff]  ;;  %v16048_v29 = vpack.c.bf16 %v10482_v5, %v10481_v28  ;;  %v10501_v26 = vld [vmem:[%s22809_s18 + $0xb0] sm:$0xff]  ;;  %v10502_v40 = vld [vmem:[%s22809_s18 + $0xb8] sm:$0xff]  ;;  %v16186_v28 = vpack.c.bf16 %v12061_v56, %v12059_v4 }
0x19d7   :  { %16143 = vmatprep.subr.bf16.mxu1 %v16142_v47  ;;  %v16168_v47 = vpack.c.bf16 %v12040_v20, %v12038_v12  ;;  %16047 = vmatprep.subr.bf16.mxu0 %v16046_v36  ;;  %v12054_v20 = vld [vmem:[%s22802_s11 + $0x360] sm:$0xff]  ;;  %v12060_v5 = vld [vmem:[%s22802_s11 + $0x390] sm:$0xff]  ;;  %v10598_v4 = vld [vmem:[%s22802_s11 + $0x68] sm:$0xff] }
0x19d8   :  { %v10599_v56 = vld [vmem:[%s22802_s11 + $0x70] sm:$0xff] }
0x19d9   :  { %16049 = vmatpush3.bf16.msra.mxu0 %v16048_v29  ;;  %v16188_v29 = vpack.c.bf16 %v12060_v5, %v12058_v53  ;;  %v10606_v5 = vld [vmem:[%s22802_s11 + $0xa8] sm:$0xff] }
0x19da   :  { %16145 = vmatpush1.bf16.msra.mxu1 %v16144_v58  ;;  %v16050_v58 = vpack.c.bf16 %v10500_v2, %v10499_v41  ;;  %v16066_v41 = vpack.c.bf16 %v10508_v57, %v10507_v37  ;;  %v10491_v2 = vld [vmem:[%s22809_s18 + $0x60] sm:$0xff]  ;;  %v10602_v37 = vld [vmem:[%s22802_s11 + $0x88] sm:$0xff]  ;;  %v10604_v57 = vld [vmem:[%s22802_s11 + $0x98] sm:$0xff] }
0x19db   :  { %16147 = vmatprep.subr.bf16.mxu1 %v16146_v55  ;;  %v10483_v55 = vld [vmem:[%s22809_s18 + $0x20] sm:$0xff]  ;;  %v16090_v53 = vpack.c.bf16 %v10604_v57, %v10602_v37  ;;  %v10642_v37 = vld [vmem:[%s22802_s11 + $0x1c8] sm:$0xff]  ;;  %v10644_v57 = vld [vmem:[%s22802_s11 + $0x1d8] sm:$0xff] }
0x19dc   :  { %v16052_v38 = vpack.c.bf16 %v10484_v0, %v10483_v55  ;;  %16051 = vmatprep.subr.bf16.mxu0 %v16050_v58  ;;  %v12062_v58 = vld [vmem:[%s22802_s11 + $0x3a0] sm:$0xff]  ;;  %v12064_v55 = vld [vmem:[%s22802_s11 + $0x3b0] sm:$0xff] }
0x19dd   :  { %v16192_v0 = vpack.c.bf16 %v12064_v55, %v12062_v58  ;;  %v10609_v55 = vld [vmem:[%s22802_s11 + $0xc0] sm:$0xff] }
0x19de   :  { %16149 = vmatpush1.bf16.msra.mxu1 %v16148_v48  ;;  %v16172_v48 = vpack.c.bf16 %v12044_v34, %v12042_v11  ;;  %16053 = vmatpush3.bf16.msra.mxu0 %v16052_v38  ;;  %v12063_v11 = vld [vmem:[%s22802_s11 + $0x3a8] sm:$0xff]  ;;  %v12065_v34 = vld [vmem:[%s22802_s11 + $0x3b8] sm:$0xff] }
0x19df   :  { %16151 = vmatprep.subr.bf16.mxu1 %v16150_v21  ;;  %v12046_v21 = vld [vmem:[%s22802_s11 + $0x320] sm:$0xff]  ;;  %v16190_v3 = vpack.c.bf16 %v12065_v34, %v12063_v11  ;;  %v10607_v34 = vld [vmem:[%s22802_s11 + $0xb0] sm:$0xff] }
0x19e0   :  { %v10605_v11 = vld [vmem:[%s22802_s11 + $0xa0] sm:$0xff] }
0x19e2   :  { %16153 = vmatpush1.bf16.msra.mxu1 %v16152_v6  ;;  %v16054_v6 = vpack.c.bf16 %v10502_v40, %v10501_v26  ;;  %v10509_v26 = vld [vmem:[%s22809_s18 + $0xf0] sm:$0xff]  ;;  %v10510_v40 = vld [vmem:[%s22809_s18 + $0xf8] sm:$0xff] }
0x19e3   :  { %16155 = vmatprep.subr.bf16.mxu1 %v16154_v63  ;;  %v10485_v63 = vld [vmem:[%s22809_s18 + $0x30] sm:$0xff] }
0x19e4   :  { %v16056_v45 = vpack.c.bf16 %v10486_v25, %v10485_v63  ;;  %16055 = vmatprep.subr.bf16.mxu0 %v16054_v6  ;;  %v10394_v6 = vld [vmem:[%s22808_s17] sm:$0x3] }
0x19e5   :  { %v10399_v63 = vrot.slane %v10394_v6, %v23002_v7  ;;  %v10403_v25 = vrot.slane %v10394_v6, %v23003_v27  ;;  %v10624_v6 = vld [vmem:[%s22802_s11 + $0x138] sm:$0xff] }
0x19e6   :  { %16157 = vmatpush1.bf16.msra.mxu1 %v16156_v62  ;;  %v16176_v62 = vpack.c.bf16 %v12048_v13, %v12046_v21  ;;  %16057 = vmatpush3.bf16.msra.mxu0 %v16056_v45  ;;  %v10588_v21 = vld [vmem:[%s22802_s11 + $0x18] sm:$0xff]  ;;  %v10590_v45 = vld [vmem:[%s22802_s11 + $0x28] sm:$0xff] }
0x19e7   :  { %16159 = vmatprep.subr.bf16.mxu1 %v16158_v24  ;;  %v12050_v24 = vld [vmem:[%s22802_s11 + $0x340] sm:$0xff] }
0x19e8   :  { %v16180_v12 = vpack.c.bf16 %v12052_v52, %v12050_v24  ;;  %v10587_v24 = vld [vmem:[%s22802_s11 + $0x10] sm:$0xff] }
0x19ea   :  { %16161 = vmatpush1.bf16.msra.mxu1 %v16160_v59  ;;  %v16058_v59 = vpack.c.bf16 %v10504_v9, %v10503_v14 }
0x19eb   :  { %16163 = vmatprep.subr.bf16.mxu1 %v16162_v22  ;;  %v10487_v22 = vld [vmem:[%s22809_s18 + $0x40] sm:$0xff] }
0x19ec   :  { %v16060_v61 = vpack.c.bf16 %v10488_v33, %v10487_v22  ;;  %16059 = vmatprep.subr.bf16.mxu0 %v16058_v59 }
0x19ee   :  { %16165 = vmatpush1.bf16.msra.mxu1 %v16164_v51  ;;  %v12056_v51 = vld [vmem:[%s22802_s11 + $0x370] sm:$0xff]  ;;  %16061 = vmatpush3.bf16.msra.mxu0 %v16060_v61  ;;  %v10593_v61 = vld [vmem:[%s22802_s11 + $0x40] sm:$0xff] }
0x19ef   :  { %16167 = vmatprep.subr.bf16.mxu1 %v16166_v49  ;;  %v10490_v49 = vld [vmem:[%s22809_s18 + $0x58] sm:$0xff]  ;;  %v16184_v54 = vpack.c.bf16 %v12056_v51, %v12054_v20  ;;  %16063 = vmatprep.subr.bf16.mxu0 %v16062_v44  ;;  %v16080_v20 = vpack.c.bf16 %v10591_v30, %v10589_v8  ;;  %v10629_v8 = vld [vmem:[%s22802_s11 + $0x160] sm:$0xff]  ;;  %v10631_v30 = vld [vmem:[%s22802_s11 + $0x170] sm:$0xff] }
0x19f0   :  { %v16064_v36 = vpack.c.bf16 %v10490_v49, %v10489_v31  ;;  %v10600_v44 = vld [vmem:[%s22802_s11 + $0x78] sm:$0xff]  ;;  %v10597_v49 = vld [vmem:[%s22802_s11 + $0x60] sm:$0xff] }
0x19f1   :  { %v16086_v31 = vpack.c.bf16 %v10600_v44, %v10598_v4  ;;  %v10638_v4 = vld [vmem:[%s22802_s11 + $0x1a8] sm:$0xff]  ;;  %v10640_v44 = vld [vmem:[%s22802_s11 + $0x1b8] sm:$0xff] }
0x19f2   :  { %16169 = vmatpush1.bf16.msra.mxu1 %v16168_v47  ;;  %v10492_v47 = vld [vmem:[%s22809_s18 + $0x68] sm:$0xff]  ;;  %16065 = vmatpush3.bf16.msra.mxu0 %v16064_v36  ;;  %v10601_v36 = vld [vmem:[%s22802_s11 + $0x80] sm:$0xff] }
0x19f3   :  { %16171 = vmatprep.subr.bf16.mxu1 %v16170_v50  ;;  %v16068_v50 = vpack.c.bf16 %v10492_v47, %v10491_v2  ;;  %16067 = vmatprep.subr.bf16.mxu0 %v16066_v41  ;;  %v10608_v41 = vld [vmem:[%s22802_s11 + $0xb8] sm:$0xff] }
0x19f4   :  { %v16094_v47 = vpack.c.bf16 %v10608_v41, %v10606_v5  ;;  %v10646_v5 = vld [vmem:[%s22802_s11 + $0x1e8] sm:$0xff]  ;;  %v10648_v41 = vld [vmem:[%s22802_s11 + $0x1f8] sm:$0xff] }
0x19f6   :  { %16173 = vmatpush1.bf16.msra.mxu1 %v16172_v48  ;;  %16069 = vmatpush3.bf16.msra.mxu0 %v16068_v50  ;;  %v16070_v48 = vpack.c.bf16 %v10510_v40, %v10509_v26  ;;  %v10612_v50 = vld [vmem:[%s22802_s11 + $0xd8] sm:$0xff] }
0x19f7   :  { %16175 = vmatprep.subr.bf16.mxu1 %v16174_v39  ;;  %v10616_v26 = vld [vmem:[%s22802_s11 + $0xf8] sm:$0xff] }
0x19f8   :  { %16071 = vmatprep.subr.bf16.mxu0 %v16070_v48 }
0x19fa   :  { %16177 = vmatpush1.bf16.msra.mxu1 %v16176_v62  ;;  %v10585_v62 = vld [vmem:[%s22802_s11] sm:$0xff] }
0x19fb   :  { %16179 = vmatprep.subr.bf16.mxu1 %v16178_v43  ;;  %v10592_v43 = vld [vmem:[%s22802_s11 + $0x38] sm:$0xff]  ;;  %v16076_v59 = vpack.c.bf16 %v10587_v24, %v10585_v62 }
0x19fc   :  { %v16078_v33 = vpack.c.bf16 %v10592_v43, %v10590_v45  ;;  %v10628_v62 = vld [vmem:[%s22802_s11 + $0x158] sm:$0xff]  ;;  %v10625_v45 = vld [vmem:[%s22802_s11 + $0x140] sm:$0xff]  ;;  %v10627_v43 = vld [vmem:[%s22802_s11 + $0x150] sm:$0xff] }
0x19fe   :  { %16181 = vmatpush1.bf16.msra.mxu1 %v16180_v12  ;;  %v10596_v12 = vld [vmem:[%s22802_s11 + $0x58] sm:$0xff] }
0x19ff   :  { %16183 = vmatprep.subr.bf16.mxu1 %v16182_v46  ;;  %v16082_v51 = vpack.c.bf16 %v10596_v12, %v10594_v1  ;;  %v10595_v46 = vld [vmem:[%s22802_s11 + $0x50] sm:$0xff]  ;;  %v10634_v1 = vld [vmem:[%s22802_s11 + $0x188] sm:$0xff]  ;;  %v10636_v12 = vld [vmem:[%s22802_s11 + $0x198] sm:$0xff] }
0x1a02   :  { %16185 = vmatpush1.bf16.msra.mxu1 %v16184_v54  ;;  %v16088_v54 = vpack.c.bf16 %v10599_v56, %v10597_v49  ;;  %v10637_v49 = vld [vmem:[%s22802_s11 + $0x1a0] sm:$0xff]  ;;  %v10639_v56 = vld [vmem:[%s22802_s11 + $0x1b0] sm:$0xff] }
0x1a03   :  { %16187 = vmatprep.subr.bf16.mxu1 %v16186_v28  ;;  %v10603_v28 = vld [vmem:[%s22802_s11 + $0x90] sm:$0xff] }
0x1a04   :  { %v16092_v2 = vpack.c.bf16 %v10603_v28, %v10601_v36  ;;  %v10641_v36 = vld [vmem:[%s22802_s11 + $0x1c0] sm:$0xff]  ;;  %v10643_v28 = vld [vmem:[%s22802_s11 + $0x1d0] sm:$0xff] }
0x1a06   :  { %16189 = vmatpush1.bf16.msra.mxu1 %v16188_v29  ;;  %v10610_v29 = vld [vmem:[%s22802_s11 + $0xc8] sm:$0xff] }
0x1a07   :  { %16191 = vmatprep.subr.bf16.mxu1 %v16190_v3  ;;  %v16096_v3 = vpack.c.bf16 %v10607_v34, %v10605_v11  ;;  %v16098_v58 = vpack.c.bf16 %v10612_v50, %v10610_v29  ;;  %v10645_v11 = vld [vmem:[%s22802_s11 + $0x1e0] sm:$0xff]  ;;  %v10647_v34 = vld [vmem:[%s22802_s11 + $0x1f0] sm:$0xff] }
0x1a08   :  { %v16136_v50 = vpack.c.bf16 %v10647_v34, %v10645_v11 }
0x1a0a   :  { %16193 = vmatpush1.bf16.msra.mxu1 %v16192_v0  ;;  %v10611_v0 = vld [vmem:[%s22802_s11 + $0xd0] sm:$0xff] }
0x1a0b   :  { %16195 = vmatprep.subr.bf16.mxu1 %v21133_v18  ;;  %v10493_v18 = vld [vmem:[%s22809_s18 + $0x70] sm:$0xff]  ;;  %v16100_v40 = vpack.c.bf16 %v10611_v0, %v10609_v55  ;;  %v10900_v55 = vld [vmem:[%s22804_s13 + $0x8] sm:$0xff]  ;;  %v10902_v0 = vld [vmem:[%s22804_s13 + $0x18] sm:$0xff] }
0x1a0e   :  { %16197 = vmatpush1.bf16.msra.mxu1 %v21141_v35  ;;  %v10494_v35 = vld [vmem:[%s22809_s18 + $0x78] sm:$0xff] }
0x1a0f   :  { %16199 = vmatprep.subr.bf16.mxu1 %v21163_v32  ;;  %v16072_v32 = vpack.c.bf16 %v10494_v35, %v10493_v18  ;;  %v10613_v18 = vld [vmem:[%s22802_s11 + $0xe0] sm:$0xff]  ;;  %v10615_v35 = vld [vmem:[%s22802_s11 + $0xf0] sm:$0xff] }
0x1a11   :  { %16073 = vmatpush3.bf16.msra.mxu0 %v16072_v32  ;;  %v10618_v32 = vld [vmem:[%s22802_s11 + $0x108] sm:$0xff] }
0x1a12   :  { %16201 = vmatpush1.bf16.msra.mxu1 %v21171_v23  ;;  %v10586_v23 = vld [vmem:[%s22802_s11 + $0x8] sm:$0xff] }
0x1a13   :  { %v16074_v13 = vpack.c.bf16 %v10588_v21, %v10586_v23  ;;  %v10620_v23 = vld [vmem:[%s22802_s11 + $0x118] sm:$0xff]  ;;  %v16104_v21 = vpack.c.bf16 %v10615_v35, %v10613_v18 }
0x1a15   :  { %10874 = vmatmul.mubr.f32.vlgmr.msra.gmra.mrb[144].mxu1 %v10805_v17  ;;  %16075 = vmatprep.subr.bf16.mxu0 %v16074_v13  ;;  %v10614_v17 = vld [vmem:[%s22802_s11 + $0xe8] sm:$0xff]  ;;  %v16106_v13 = vpack.c.bf16 %v10620_v23, %v10618_v32  ;;  %v10903_v32 = vld [vmem:[%s22804_s13 + $0x20] sm:$0xff]  ;;  %v10905_v23 = vld [vmem:[%s22804_s13 + $0x30] sm:$0xff] }
0x1a16   :  { %v16102_v48 = vpack.c.bf16 %v10616_v26, %v10614_v17  ;;  %v10899_v17 = vld [vmem:[%s22804_s13] sm:$0xff]  ;;  %v16202_v26 = vpack.c.bf16 %v10902_v0, %v10900_v55  ;;  %v10937_v55 = vld [vmem:[%s22804_s13 + $0x130] sm:$0xff]  ;;  %v10940_v0 = vld [vmem:[%s22804_s13 + $0x148] sm:$0xff] }
0x1a68   :  { %v13052_v38 = vpop.f32.mrb[140].mxu1 }
0x1a69   :  { %v13053_v39 = vpop.f32.mrb[141].mxu1 }
0x1a6a   :  { %v13054_v15 = vadd.f32 %v13053_v39, %v13052_v38  ;;  %v10617_v38 = vld [vmem:[%s22802_s11 + $0x100] sm:$0xff]  ;;  %v10619_v39 = vld [vmem:[%s22802_s11 + $0x110] sm:$0xff] }
0x1a6c   :  { %10329 = vst.msk [vmem:[#allocation2] sm:$0x1] %vm10328_vm11, %v13054_v15  ;;  %v10622_v15 = vld [vmem:[%s22802_s11 + $0x128] sm:$0xff] }
0x1aa8   :  { %v10472_v10 = vpop.f32.mrb[142].mxu1 }
0x1aa9   :  { %v10473_v14 = vadd.f32 %v10472_v10, %v10399_v63  ;;  %v10474_v9 = vpop.f32.mrb[143].mxu1  ;;  %v16108_v63 = vpack.c.bf16 %v10619_v39, %v10617_v38  ;;  %v10621_v10 = vld [vmem:[%s22802_s11 + $0x120] sm:$0xff]  ;;  %v16208_v38 = vpack.c.bf16 %v10905_v23, %v10903_v32 }
0x1aaa   :  { %v10475_v52 = vadd.f32 %v10474_v9, %v10403_v25  ;;  %v16110_v25 = vpack.c.bf16 %v10624_v6, %v10622_v15  ;;  %v10626_v9 = vld [vmem:[%s22802_s11 + $0x148] sm:$0xff]  ;;  %v10907_v15 = vld [vmem:[%s22804_s13 + $0x40] sm:$0xff]  ;;  %v10909_v6 = vld [vmem:[%s22804_s13 + $0x50] sm:$0xff] }
0x1aab   :  { %v10477_v22 = vmax.f32 %v10473_v14, 0.0  ;;  %v10623_v14 = vld [vmem:[%s22802_s11 + $0x130] sm:$0xff] }
0x1aac   :  { %v10478_v42 = vmax.f32 %v10475_v52, 0.0  ;;  %v16112_v24 = vpack.c.bf16 %v10623_v14, %v10621_v10  ;;  %v16114_v52 = vpack.c.bf16 %v10628_v62, %v10626_v9  ;;  %v16212_v10 = vpack.c.bf16 %v10909_v6, %v10907_v15  ;;  %v10911_v9 = vld [vmem:[%s22804_s13 + $0x60] sm:$0xff]  ;;  %v10913_v62 = vld [vmem:[%s22804_s13 + $0x70] sm:$0xff] }
0x1aae   :  { %10576 = vmatprep.mubr.f32.mxu0 %v10478_v42  ;;  %v10630_v42 = vld [vmem:[%s22802_s11 + $0x168] sm:$0xff] }
0x1aaf   :  { %10577 = vmatmul.mubr.f32.vlgmr.msra.gmra.mrb[146].mxu0 %v10477_v22  ;;  %v16116_v22 = vpack.c.bf16 %v10627_v43, %v10625_v45  ;;  %v16216_v45 = vpack.c.bf16 %v10913_v62, %v10911_v9  ;;  %v10954_v9 = vld [vmem:[%s22804_s13 + $0x1b8] sm:$0xff] }
0x1ab0   :  { %16077 = vmatpush1.bf16.msra.mxu0 %v16076_v59  ;;  %10713 = vmatprep.mubr.f32.mxu0 %v21231_v19  ;;  %v16084_v19 = vpack.c.bf16 %v10595_v46, %v10593_v61  ;;  %v10632_v59 = vld [vmem:[%s22802_s11 + $0x178] sm:$0xff]  ;;  %v10633_v61 = vld [vmem:[%s22802_s11 + $0x180] sm:$0xff]  ;;  %v10635_v46 = vld [vmem:[%s22802_s11 + $0x190] sm:$0xff] }
0x1ab1   :  { %16079 = vmatprep.subr.bf16.mxu0 %v16078_v33  ;;  %v16118_v33 = vpack.c.bf16 %v10632_v59, %v10630_v42  ;;  %v10915_v42 = vld [vmem:[%s22804_s13 + $0x80] sm:$0xff]  ;;  %v10917_v59 = vld [vmem:[%s22804_s13 + $0x90] sm:$0xff] }
0x1ab4   :  { %16081 = vmatpush1.bf16.msra.mxu0 %v16080_v20  ;;  %v16120_v20 = vpack.c.bf16 %v10631_v30, %v10629_v8  ;;  %v16220_v8 = vpack.c.bf16 %v10917_v59, %v10915_v42  ;;  %v10958_v42 = vld [vmem:[%s22804_s13 + $0x1d8] sm:$0xff] }
0x1ab5   :  { %16083 = vmatprep.subr.bf16.mxu0 %v16082_v51  ;;  %v16122_v51 = vpack.c.bf16 %v10636_v12, %v10634_v1  ;;  %v10919_v1 = vld [vmem:[%s22804_s13 + $0xa0] sm:$0xff]  ;;  %v10921_v12 = vld [vmem:[%s22804_s13 + $0xb0] sm:$0xff] }
0x1ab8   :  { %16085 = vmatpush1.bf16.msra.mxu0 %v16084_v19  ;;  %v16124_v19 = vpack.c.bf16 %v10635_v46, %v10633_v61  ;;  %v16224_v61 = vpack.c.bf16 %v10921_v12, %v10919_v1  ;;  %v10962_v1 = vld [vmem:[%s22804_s13 + $0x1f8] sm:$0xff]  ;;  %v10959_v12 = vld [vmem:[%s22804_s13 + $0x1e0] sm:$0xff] }
0x1ab9   :  { %16087 = vmatprep.subr.bf16.mxu0 %v16086_v31  ;;  %v16126_v31 = vpack.c.bf16 %v10640_v44, %v10638_v4  ;;  %v10923_v4 = vld [vmem:[%s22804_s13 + $0xc0] sm:$0xff]  ;;  %v10925_v44 = vld [vmem:[%s22804_s13 + $0xd0] sm:$0xff] }
0x1abc   :  { %16089 = vmatpush1.bf16.msra.mxu0 %v16088_v54  ;;  %v16128_v54 = vpack.c.bf16 %v10639_v56, %v10637_v49  ;;  %v16228_v49 = vpack.c.bf16 %v10925_v44, %v10923_v4  ;;  %v11074_v4 = vld [vmem:[%s22806_s15 + $0x88] sm:$0xff]  ;;  %v11057_v44 = vld [vmem:[%s22806_s15] sm:$0xff] }
0x1abd   :  { %16091 = vmatprep.subr.bf16.mxu0 %v16090_v53  ;;  %v16130_v53 = vpack.c.bf16 %v10644_v57, %v10642_v37  ;;  %v10927_v37 = vld [vmem:[%s22804_s13 + $0xe0] sm:$0xff]  ;;  %v10929_v57 = vld [vmem:[%s22804_s13 + $0xf0] sm:$0xff] }
0x1ac0   :  { %16093 = vmatpush1.bf16.msra.mxu0 %v16092_v2  ;;  %v16132_v2 = vpack.c.bf16 %v10643_v28, %v10641_v36  ;;  %v16232_v36 = vpack.c.bf16 %v10929_v57, %v10927_v37 }
0x1ac1   :  { %16095 = vmatprep.subr.bf16.mxu0 %v16094_v47  ;;  %v16134_v47 = vpack.c.bf16 %v10648_v41, %v10646_v5  ;;  %v10931_v5 = vld [vmem:[%s22804_s13 + $0x100] sm:$0xff]  ;;  %v10933_v41 = vld [vmem:[%s22804_s13 + $0x110] sm:$0xff] }
0x1ac2   :  { %v16236_v11 = vpack.c.bf16 %v10933_v41, %v10931_v5 }
0x1ac4   :  { %16097 = vmatpush1.bf16.msra.mxu0 %v16096_v3 }
0x1ac5   :  { %16099 = vmatprep.subr.bf16.mxu0 %v16098_v58 }
0x1ac8   :  { %16101 = vmatpush1.bf16.msra.mxu0 %v16100_v40  ;;  %v10901_v40 = vld [vmem:[%s22804_s13 + $0x10] sm:$0xff] }
0x1ac9   :  { %16103 = vmatprep.subr.bf16.mxu0 %v16102_v48  ;;  %v10906_v48 = vld [vmem:[%s22804_s13 + $0x38] sm:$0xff]  ;;  %v16204_v18 = vpack.c.bf16 %v10901_v40, %v10899_v17 }
0x1aca   :  { %v10942_v17 = vld [vmem:[%s22804_s13 + $0x158] sm:$0xff] }
0x1acb   :  { %v16242_v40 = vpack.c.bf16 %v10942_v17, %v10940_v0  ;;  %v11063_v0 = vld [vmem:[%s22806_s15 + $0x30] sm:$0xff]  ;;  %v11064_v17 = vld [vmem:[%s22806_s15 + $0x38] sm:$0xff] }
0x1acc   :  { %16105 = vmatpush1.bf16.msra.mxu0 %v16104_v21  ;;  %v10908_v21 = vld [vmem:[%s22804_s13 + $0x48] sm:$0xff] }
0x1acd   :  { %16107 = vmatprep.subr.bf16.mxu0 %v16106_v13  ;;  %v10910_v13 = vld [vmem:[%s22804_s13 + $0x58] sm:$0xff] }
0x1ace   :  { %v16210_v39 = vpack.c.bf16 %v10910_v13, %v10908_v21  ;;  %v10943_v21 = vld [vmem:[%s22804_s13 + $0x160] sm:$0xff]  ;;  %v10945_v13 = vld [vmem:[%s22804_s13 + $0x170] sm:$0xff] }
0x1acf   :  { %v16248_v15 = vpack.c.bf16 %v10945_v13, %v10943_v21 }
0x1ad0   :  { %16109 = vmatpush1.bf16.msra.mxu0 %v16108_v63  ;;  %v10912_v63 = vld [vmem:[%s22804_s13 + $0x68] sm:$0xff] }
0x1ad1   :  { %16111 = vmatprep.subr.bf16.mxu0 %v16110_v25  ;;  %v10914_v25 = vld [vmem:[%s22804_s13 + $0x78] sm:$0xff] }
0x1ad2   :  { %v16214_v14 = vpack.c.bf16 %v10914_v25, %v10912_v63  ;;  %v10947_v63 = vld [vmem:[%s22804_s13 + $0x180] sm:$0xff]  ;;  %v10949_v25 = vld [vmem:[%s22804_s13 + $0x190] sm:$0xff] }
0x1ad4   :  { %16113 = vmatpush1.bf16.msra.mxu0 %v16112_v24  ;;  %v10916_v24 = vld [vmem:[%s22804_s13 + $0x88] sm:$0xff] }
0x1ad5   :  { %16115 = vmatprep.subr.bf16.mxu0 %v16114_v52  ;;  %v10918_v52 = vld [vmem:[%s22804_s13 + $0x98] sm:$0xff] }
0x1ad6   :  { %v16218_v43 = vpack.c.bf16 %v10918_v52, %v10916_v24  ;;  %v10951_v24 = vld [vmem:[%s22804_s13 + $0x1a0] sm:$0xff]  ;;  %v10953_v52 = vld [vmem:[%s22804_s13 + $0x1b0] sm:$0xff] }
0x1ad8   :  { %16117 = vmatpush1.bf16.msra.mxu0 %v16116_v22  ;;  %v10920_v22 = vld [vmem:[%s22804_s13 + $0xa8] sm:$0xff] }
0x1ad9   :  { %16119 = vmatprep.subr.bf16.mxu0 %v16118_v33  ;;  %v10922_v33 = vld [vmem:[%s22804_s13 + $0xb8] sm:$0xff] }
0x1ada   :  { %v16222_v30 = vpack.c.bf16 %v10922_v33, %v10920_v22  ;;  %v10955_v22 = vld [vmem:[%s22804_s13 + $0x1c0] sm:$0xff]  ;;  %v10957_v33 = vld [vmem:[%s22804_s13 + $0x1d0] sm:$0xff] }
0x1adc   :  { %16121 = vmatpush1.bf16.msra.mxu0 %v16120_v20  ;;  %v10924_v20 = vld [vmem:[%s22804_s13 + $0xc8] sm:$0xff] }
0x1add   :  { %16123 = vmatprep.subr.bf16.mxu0 %v16122_v51  ;;  %v10926_v51 = vld [vmem:[%s22804_s13 + $0xd8] sm:$0xff] }
0x1ade   :  { %v16226_v46 = vpack.c.bf16 %v10926_v51, %v10924_v20  ;;  %v10961_v51 = vld [vmem:[%s22804_s13 + $0x1f0] sm:$0xff] }
0x1ae0   :  { %16125 = vmatpush1.bf16.msra.mxu0 %v16124_v19  ;;  %v10928_v19 = vld [vmem:[%s22804_s13 + $0xe8] sm:$0xff] }
0x1ae1   :  { %16127 = vmatprep.subr.bf16.mxu0 %v16126_v31  ;;  %v10930_v31 = vld [vmem:[%s22804_s13 + $0xf8] sm:$0xff] }
0x1ae2   :  { %v16230_v56 = vpack.c.bf16 %v10930_v31, %v10928_v19  ;;  %v11058_v31 = vld [vmem:[%s22806_s15 + $0x8] sm:$0xff] }
0x1ae3   :  { %v16268_v37 = vpack.c.bf16 %v11058_v31, %v11057_v44  ;;  %v11163_v31 = vld [vmem:[%s22807_s16 + $0x18] sm:$0xff] }
0x1ae4   :  { %16129 = vmatpush1.bf16.msra.mxu0 %v16128_v54  ;;  %v10932_v54 = vld [vmem:[%s22804_s13 + $0x108] sm:$0xff] }
0x1ae5   :  { %16131 = vmatprep.subr.bf16.mxu0 %v16130_v53  ;;  %v10934_v53 = vld [vmem:[%s22804_s13 + $0x118] sm:$0xff] }
0x1ae6   :  { %v16234_v28 = vpack.c.bf16 %v10934_v53, %v10932_v54  ;;  %v11059_v54 = vld [vmem:[%s22806_s15 + $0x10] sm:$0xff]  ;;  %v11060_v53 = vld [vmem:[%s22806_s15 + $0x18] sm:$0xff] }
0x1ae7   :  { %v16272_v5 = vpack.c.bf16 %v11060_v53, %v11059_v54  ;;  %v11160_v54 = vld [vmem:[%s22807_s16] sm:$0xff]  ;;  %v11162_v53 = vld [vmem:[%s22807_s16 + $0x10] sm:$0xff] }
0x1ae8   :  { %16133 = vmatpush1.bf16.msra.mxu0 %v16132_v2  ;;  %v22149_v29 = vpop.f32.mrb[144].mxu1  ;;  %v10936_v2 = vld [vmem:[%s22804_s13 + $0x128] sm:$0xff] }
0x1ae9   :  { %v22151_v3 = vpop.f32.mrb[145].mxu1  ;;  %16135 = vmatprep.subr.bf16.mxu0 %v16134_v47  ;;  %v10938_v47 = vld [vmem:[%s22804_s13 + $0x138] sm:$0xff] }
0x1aea   :  { %v10882_v58 = vcombine.low %v22149_v29, %v22151_v3  ;;  %v16238_v34 = vpack.c.bf16 %v10938_v47, %v10936_v2  ;;  %v11061_v2 = vld [vmem:[%s22806_s15 + $0x20] sm:$0xff]  ;;  %v11062_v47 = vld [vmem:[%s22806_s15 + $0x28] sm:$0xff]  ;;  %v11087_v29 = vld [vmem:[%s22806_s15 + $0xf0] sm:$0xff] }
0x1aeb   :  { %v11088_v3 = vld [vmem:[%s22806_s15 + $0xf8] sm:$0xff] }
0x1aec   :  { %16137 = vmatpush1.bf16.msra.mxu0 %v16136_v50  ;;  %v10935_v50 = vld [vmem:[%s22804_s13 + $0x120] sm:$0xff] }
0x1aed   :  { %16203 = vmatprep.subr.bf16.mxu0 %v16202_v26  ;;  %v16240_v26 = vpack.c.bf16 %v10937_v55, %v10935_v50  ;;  %v16276_v50 = vpack.c.bf16 %v11062_v47, %v11061_v2  ;;  %v16300_v47 = vpack.c.bf16 %v11162_v53, %v11160_v54 }
0x1aef   :  { %10714 = vmatmul.mubr.f32.vlgmr.msra.gmra.mrb[148].mxu0 %v21229_v16  ;;  %v10904_v16 = vld [vmem:[%s22804_s13 + $0x28] sm:$0xff] }
0x1af0   :  { %v16206_v35 = vpack.c.bf16 %v10906_v48, %v10904_v16  ;;  %16205 = vmatpush1.bf16.msra.mxu0 %v16204_v18  ;;  %v10939_v16 = vld [vmem:[%s22804_s13 + $0x140] sm:$0xff]  ;;  %v10941_v48 = vld [vmem:[%s22804_s13 + $0x150] sm:$0xff]  ;;  %v10944_v18 = vld [vmem:[%s22804_s13 + $0x168] sm:$0xff] }
0x1af1   :  { %v16244_v32 = vpack.c.bf16 %v10941_v48, %v10939_v16  ;;  %v16280_v16 = vpack.c.bf16 %v11064_v17, %v11063_v0  ;;  %v11169_v0 = vld [vmem:[%s22807_s16 + $0x48] sm:$0xff]  ;;  %v11171_v17 = vld [vmem:[%s22807_s16 + $0x58] sm:$0xff] }
0x1af2   :  { %16207 = vmatprep.subr.bf16.mxu0 %v16206_v35  ;;  %v10946_v35 = vld [vmem:[%s22804_s13 + $0x178] sm:$0xff] }
0x1af3   :  { %v16246_v23 = vpack.c.bf16 %v10946_v35, %v10944_v18  ;;  %v11065_v18 = vld [vmem:[%s22806_s15 + $0x40] sm:$0xff]  ;;  %v11066_v35 = vld [vmem:[%s22806_s15 + $0x48] sm:$0xff] }
0x1af4   :  { %16209 = vmatpush1.bf16.msra.mxu0 %v16208_v38  ;;  %v10948_v38 = vld [vmem:[%s22804_s13 + $0x188] sm:$0xff]  ;;  %v16284_v21 = vpack.c.bf16 %v11066_v35, %v11065_v18  ;;  %v11175_v35 = vld [vmem:[%s22807_s16 + $0x78] sm:$0xff] }
0x1af5   :  { %16211 = vmatprep.subr.bf16.mxu0 %v16210_v39  ;;  %v10950_v39 = vld [vmem:[%s22804_s13 + $0x198] sm:$0xff]  ;;  %v11173_v18 = vld [vmem:[%s22807_s16 + $0x68] sm:$0xff] }
0x1af6   :  { %v16250_v6 = vpack.c.bf16 %v10950_v39, %v10948_v38  ;;  %v11067_v38 = vld [vmem:[%s22806_s15 + $0x50] sm:$0xff]  ;;  %v11068_v39 = vld [vmem:[%s22806_s15 + $0x58] sm:$0xff] }
0x1af8   :  { %16213 = vmatpush1.bf16.msra.mxu0 %v16212_v10  ;;  %v16252_v10 = vpack.c.bf16 %v10949_v25, %v10947_v63  ;;  %v16288_v63 = vpack.c.bf16 %v11068_v39, %v11067_v38  ;;  %v11177_v38 = vld [vmem:[%s22807_s16 + $0x88] sm:$0xff]  ;;  %v11179_v39 = vld [vmem:[%s22807_s16 + $0x98] sm:$0xff] }
0x1af9   :  { %16215 = vmatprep.subr.bf16.mxu0 %v16214_v14  ;;  %v10952_v14 = vld [vmem:[%s22804_s13 + $0x1a8] sm:$0xff] }
0x1afa   :  { %v16254_v62 = vpack.c.bf16 %v10954_v9, %v10952_v14  ;;  %v11070_v14 = vld [vmem:[%s22806_s15 + $0x68] sm:$0xff] }
0x1afc   :  { %16217 = vmatpush1.bf16.msra.mxu0 %v16216_v45  ;;  %v16256_v45 = vpack.c.bf16 %v10953_v52, %v10951_v24  ;;  %v10511_v24 = vld [vmem:[%s22810_s19] sm:$0x1] }
0x1afd   :  { %16219 = vmatprep.subr.bf16.mxu0 %v16218_v43  ;;  %v10956_v43 = vld [vmem:[%s22804_s13 + $0x1c8] sm:$0xff] }
0x1afe   :  { %v16258_v59 = vpack.c.bf16 %v10958_v42, %v10956_v43 }
0x1b00   :  { %16221 = vmatpush1.bf16.msra.mxu0 %v16220_v8  ;;  %v16260_v8 = vpack.c.bf16 %v10957_v33, %v10955_v22  ;;  %v10889_v33 = vrot.slane %v10882_v58, %v21456_v60  ;;  %v16294_v58 = vpack.c.bf16 %v11088_v3, %v11087_v29 }
0x1b01   :  { %16223 = vmatprep.subr.bf16.mxu0 %v16222_v30  ;;  %v10960_v30 = vld [vmem:[%s22804_s13 + $0x1e8] sm:$0xff] }
0x1b02   :  { %v16262_v20 = vpack.c.bf16 %v10962_v1, %v10960_v30  ;;  %v10584_v30 = vld [vmem:[%s22803_s12] sm:$0x3] }
0x1b04   :  { %16225 = vmatpush1.bf16.msra.mxu0 %v16224_v61  ;;  %v16264_v61 = vpack.c.bf16 %v10961_v51, %v10959_v12  ;;  %v10896_v12 = vrot.slane %v10889_v33, %v21456_v60  ;;  %v11186_v33 = vld [vmem:[%s22807_s16 + $0xd0] sm:$0xff] }
0x1b05   :  { %16227 = vmatprep.subr.bf16.mxu0 %v16226_v46  ;;  %v11073_v46 = vld [vmem:[%s22806_s15 + $0x80] sm:$0xff] }
0x1b06   :  { %v16266_v19 = vpack.c.bf16 %v11074_v4, %v11073_v46  ;;  %v11072_v4 = vld [vmem:[%s22806_s15 + $0x78] sm:$0xff] }
0x1b08   :  { %16229 = vmatpush1.bf16.msra.mxu0 %v16228_v49  ;;  %v11075_v49 = vld [vmem:[%s22806_s15 + $0x90] sm:$0xff]  ;;  %16267 = vmatprep.subr.bf16.mxu1 %v16266_v19  ;;  %v11161_v19 = vld [vmem:[%s22807_s16 + $0x8] sm:$0xff] }
0x1b09   :  { %16231 = vmatprep.subr.bf16.mxu0 %v16230_v56  ;;  %v11076_v56 = vld [vmem:[%s22806_s15 + $0x98] sm:$0xff]  ;;  %16269 = vmatpush3.bf16.msra.mxu1 %v16268_v37 }
0x1b0a   :  { %v16270_v57 = vpack.c.bf16 %v11076_v56, %v11075_v49  ;;  %v16298_v49 = vpack.c.bf16 %v11163_v31, %v11161_v19  ;;  %v10963_v56 = vld [vmem:[%s22805_s14] sm:$0x3] }
0x1b0b   :  { %v10983_v37 = vrot.slane %v10963_v56, %v23003_v27 }
0x1b0c   :  { %16233 = vmatpush1.bf16.msra.mxu0 %v16232_v36  ;;  %v11077_v36 = vld [vmem:[%s22806_s15 + $0xa0] sm:$0xff]  ;;  %16271 = vmatprep.subr.bf16.mxu1 %v16270_v57  ;;  %v10979_v57 = vrot.slane %v10963_v56, %v23002_v7  ;;  %v11198_v56 = vld [vmem:[%s22807_s16 + $0x130] sm:$0xff] }
0x1b0d   :  { %16235 = vmatprep.subr.bf16.mxu0 %v16234_v28  ;;  %v11078_v28 = vld [vmem:[%s22806_s15 + $0xa8] sm:$0xff]  ;;  %16273 = vmatpush3.bf16.msra.mxu1 %v16272_v5  ;;  %v11167_v5 = vld [vmem:[%s22807_s16 + $0x38] sm:$0xff] }
0x1b0e   :  { %v16274_v41 = vpack.c.bf16 %v11078_v28, %v11077_v36  ;;  %v11165_v28 = vld [vmem:[%s22807_s16 + $0x28] sm:$0xff] }
0x1b10   :  { %16237 = vmatpush1.bf16.msra.mxu0 %v16236_v11  ;;  %v11079_v11 = vld [vmem:[%s22806_s15 + $0xb0] sm:$0xff]  ;;  %16275 = vmatprep.subr.bf16.mxu1 %v16274_v41 }
0x1b11   :  { %16239 = vmatprep.subr.bf16.mxu0 %v16238_v34  ;;  %v11080_v34 = vld [vmem:[%s22806_s15 + $0xb8] sm:$0xff]  ;;  %16277 = vmatpush3.bf16.msra.mxu1 %v16276_v50  ;;  %v11164_v50 = vld [vmem:[%s22807_s16 + $0x20] sm:$0xff] }
0x1b12   :  { %v16278_v55 = vpack.c.bf16 %v11080_v34, %v11079_v11  ;;  %v16302_v34 = vpack.c.bf16 %v11167_v5, %v11165_v28  ;;  %v11202_v28 = vld [vmem:[%s22807_s16 + $0x150] sm:$0xff]  ;;  %v11205_v5 = vld [vmem:[%s22807_s16 + $0x168] sm:$0xff] }
0x1b14   :  { %16241 = vmatpush1.bf16.msra.mxu0 %v16240_v26  ;;  %v11081_v26 = vld [vmem:[%s22806_s15 + $0xc0] sm:$0xff]  ;;  %16279 = vmatprep.subr.bf16.mxu1 %v16278_v55  ;;  %v11166_v55 = vld [vmem:[%s22807_s16 + $0x30] sm:$0xff] }
0x1b15   :  { %16243 = vmatprep.subr.bf16.mxu0 %v16242_v40  ;;  %v11082_v40 = vld [vmem:[%s22806_s15 + $0xc8] sm:$0xff]  ;;  %16281 = vmatpush3.bf16.msra.mxu1 %v16280_v16  ;;  %v11168_v16 = vld [vmem:[%s22807_s16 + $0x40] sm:$0xff] }
0x1b16   :  { %v16282_v48 = vpack.c.bf16 %v11082_v40, %v11081_v26  ;;  %v16304_v26 = vpack.c.bf16 %v11166_v55, %v11164_v50  ;;  %v16306_v40 = vpack.c.bf16 %v11171_v17, %v11169_v0  ;;  %v11206_v50 = vld [vmem:[%s22807_s16 + $0x170] sm:$0xff]  ;;  %v11209_v55 = vld [vmem:[%s22807_s16 + $0x188] sm:$0xff]  ;;  %v11211_v0 = vld [vmem:[%s22807_s16 + $0x198] sm:$0xff] }
0x1b18   :  { %16245 = vmatpush1.bf16.msra.mxu0 %v16244_v32  ;;  %v11083_v32 = vld [vmem:[%s22806_s15 + $0xd0] sm:$0xff]  ;;  %16283 = vmatprep.subr.bf16.mxu1 %v16282_v48 }
0x1b19   :  { %16247 = vmatprep.subr.bf16.mxu0 %v16246_v23  ;;  %v11084_v23 = vld [vmem:[%s22806_s15 + $0xd8] sm:$0xff]  ;;  %16285 = vmatpush3.bf16.msra.mxu1 %v16284_v21  ;;  %v11170_v48 = vld [vmem:[%s22807_s16 + $0x50] sm:$0xff]  ;;  %v11172_v21 = vld [vmem:[%s22807_s16 + $0x60] sm:$0xff] }
0x1b1a   :  { %v16286_v13 = vpack.c.bf16 %v11084_v23, %v11083_v32  ;;  %v16308_v32 = vpack.c.bf16 %v11170_v48, %v11168_v16  ;;  %v16310_v23 = vpack.c.bf16 %v11175_v35, %v11173_v18  ;;  %v11210_v16 = vld [vmem:[%s22807_s16 + $0x190] sm:$0xff]  ;;  %v11213_v48 = vld [vmem:[%s22807_s16 + $0x1a8] sm:$0xff]  ;;  %v11215_v18 = vld [vmem:[%s22807_s16 + $0x1b8] sm:$0xff] }
0x1b1c   :  { %16249 = vmatpush1.bf16.msra.mxu0 %v16248_v15  ;;  %v11085_v15 = vld [vmem:[%s22806_s15 + $0xe0] sm:$0xff]  ;;  %16287 = vmatprep.subr.bf16.mxu1 %v16286_v13  ;;  %v11174_v13 = vld [vmem:[%s22807_s16 + $0x70] sm:$0xff] }
0x1b1d   :  { %16251 = vmatprep.subr.bf16.mxu0 %v16250_v6  ;;  %v11086_v6 = vld [vmem:[%s22806_s15 + $0xe8] sm:$0xff]  ;;  %16289 = vmatpush3.bf16.msra.mxu1 %v16288_v63  ;;  %v11176_v63 = vld [vmem:[%s22807_s16 + $0x80] sm:$0xff] }
0x1b1e   :  { %v16290_v25 = vpack.c.bf16 %v11086_v6, %v11085_v15  ;;  %v16312_v15 = vpack.c.bf16 %v11174_v13, %v11172_v21  ;;  %v16314_v6 = vpack.c.bf16 %v11179_v39, %v11177_v38  ;;  %v11214_v21 = vld [vmem:[%s22807_s16 + $0x1b0] sm:$0xff]  ;;  %v11217_v13 = vld [vmem:[%s22807_s16 + $0x1c8] sm:$0xff]  ;;  %v11219_v38 = vld [vmem:[%s22807_s16 + $0x1d8] sm:$0xff] }
0x1b20   :  { %16253 = vmatpush1.bf16.msra.mxu0 %v16252_v10  ;;  %v11069_v10 = vld [vmem:[%s22806_s15 + $0x60] sm:$0xff]  ;;  %16291 = vmatprep.subr.bf16.mxu1 %v16290_v25  ;;  %v11178_v25 = vld [vmem:[%s22807_s16 + $0x90] sm:$0xff] }
0x1b21   :  { %16255 = vmatprep.subr.bf16.mxu0 %v16254_v62  ;;  %v16292_v9 = vpack.c.bf16 %v11070_v14, %v11069_v10  ;;  %v11181_v10 = vld [vmem:[%s22807_s16 + $0xa8] sm:$0xff]  ;;  %v11183_v14 = vld [vmem:[%s22807_s16 + $0xb8] sm:$0xff] }
0x1b23   :  { %16293 = vmatpush3.bf16.msra.mxu1 %v16292_v9  ;;  %v16316_v9 = vpack.c.bf16 %v11178_v25, %v11176_v63  ;;  %v11218_v63 = vld [vmem:[%s22807_s16 + $0x1d0] sm:$0xff]  ;;  %v11221_v25 = vld [vmem:[%s22807_s16 + $0x1e8] sm:$0xff] }
0x1b24   :  { %16257 = vmatpush1.bf16.msra.mxu0 %v16256_v45  ;;  %16295 = vmatprep.subr.bf16.mxu1 %v16294_v58  ;;  %v11192_v58 = vld [vmem:[%s22807_s16 + $0x100] sm:$0xff] }
0x1b25   :  { %16259 = vmatprep.subr.bf16.mxu0 %v16258_v59 }
0x1b28   :  { %16261 = vmatpush1.bf16.msra.mxu0 %v16260_v8 }
0x1b29   :  { %16263 = vmatprep.subr.bf16.mxu0 %v16262_v20 }
0x1b2c   :  { %16265 = vmatpush1.bf16.msra.mxu0 %v16264_v61 }
0x1b82   :  { %v13087_v62 = vpop.f32.mrb[146].mxu0 }
0x1b83   :  { %v13088_v52 = vpop.f32.mrb[147].mxu0 }
0x1b84   :  { %v13089_v45 = vadd.f32 %v13088_v52, %v13087_v62  ;;  %v16318_v62 = vpack.c.bf16 %v11183_v14, %v11181_v10  ;;  %v11182_v52 = vld [vmem:[%s22807_s16 + $0xb0] sm:$0xff]  ;;  %v11223_v10 = vld [vmem:[%s22807_s16 + $0x1f8] sm:$0xff] }
0x1b86   :  { %v10579_v43 = vadd.f32 %v13089_v45, %v10511_v24  ;;  %v11180_v24 = vld [vmem:[%s22807_s16 + $0xa0] sm:$0xff]  ;;  %v11185_v45 = vld [vmem:[%s22807_s16 + $0xc8] sm:$0xff] }
0x1b88   :  { %10583 = vst.msk [vmem:[#allocation4] sm:$0x1] %vm10582_vm12, %v10579_v43  ;;  %v11187_v43 = vld [vmem:[%s22807_s16 + $0xd8] sm:$0xff] }
0x1bc2   :  { %v10715_v42 = vpop.f32.mrb[148].mxu0 }
0x1bc3   :  { %v10717_v59 = vpop.f32.mrb[149].mxu0 }
0x1bc4   :  { %v10722_v22 = vcombine.low %v10715_v42, %v10717_v59  ;;  %v16320_v42 = vpack.c.bf16 %v11182_v52, %v11180_v24  ;;  %v16322_v59 = vpack.c.bf16 %v11187_v43, %v11185_v45  ;;  %v11222_v24 = vld [vmem:[%s22807_s16 + $0x1f0] sm:$0xff]  ;;  %v11325_v45 = vld [vmem:[%s22809_s18 + $0x80] sm:$0xff]  ;;  %v11326_v43 = vld [vmem:[%s22809_s18 + $0x88] sm:$0xff] }
0x1bc6   :  { %v10729_v8 = vrot.slane %v10722_v22, %v21456_v60  ;;  %v11184_v22 = vld [vmem:[%s22807_s16 + $0xc0] sm:$0xff] }
0x1bc8   :  { %v10736_v1 = vrot.slane %v10729_v8, %v21456_v60  ;;  %v11071_v60 = vld [vmem:[%s22806_s15 + $0x70] sm:$0xff]  ;;  %v11189_v8 = vld [vmem:[%s22807_s16 + $0xe8] sm:$0xff] }
0x1bc9   :  { %v16296_v44 = vpack.c.bf16 %v11072_v4, %v11071_v60  ;;  %v11194_v60 = vld [vmem:[%s22807_s16 + $0x110] sm:$0xff]  ;;  %v11197_v4 = vld [vmem:[%s22807_s16 + $0x128] sm:$0xff] }
0x1bca   :  { %v10738_v20 = vadd.f32 %v10736_v1, %v10584_v30  ;;  %v11191_v30 = vld [vmem:[%s22807_s16 + $0xf8] sm:$0xff]  ;;  %v16324_v1 = vpack.c.bf16 %v11186_v33, %v11184_v22  ;;  %v16332_v19 = vpack.c.bf16 %v11194_v60, %v11192_v58  ;;  %v11310_v22 = vld [vmem:[%s22809_s18 + $0x8] sm:$0xff]  ;;  %v11331_v58 = vld [vmem:[%s22809_s18 + $0xb0] sm:$0xff] }
0x1bcb   :  { %16297 = vmatpush3.bf16.msra.mxu1 %v16296_v44  ;;  %v11199_v44 = vld [vmem:[%s22807_s16 + $0x138] sm:$0xff] }
0x1bcc   :  { %v10898_v51 = vadd.f32 %v10896_v12, %v10738_v20  ;;  %16299 = vmatprep.subr.bf16.mxu1 %v16298_v49  ;;  %v16326_v12 = vpack.c.bf16 %v11191_v30, %v11189_v8  ;;  %v11188_v20 = vld [vmem:[%s22807_s16 + $0xe0] sm:$0xff]  ;;  %v16334_v31 = vpack.c.bf16 %v11199_v44, %v11197_v4  ;;  %v11328_v33 = vld [vmem:[%s22809_s18 + $0x98] sm:$0xff] }
0x1bcd   :  { %v11196_v49 = vld [vmem:[%s22807_s16 + $0x120] sm:$0xff]  ;;  %v11332_v60 = vld [vmem:[%s22809_s18 + $0xb8] sm:$0xff] }
0x1bce   :  { %v10972_v61 = vrot.slane %v10898_v51, %v23003_v27  ;;  %v10968_v46 = vrot.slane %v10898_v51, %v23002_v7  ;;  %v11190_v51 = vld [vmem:[%s22807_s16 + $0xf0] sm:$0xff]  ;;  %v16336_v54 = vpack.c.bf16 %v11198_v56, %v11196_v49  ;;  %v16374_v44 = vpack.c.bf16 %v11332_v60, %v11331_v58  ;;  %v11333_v49 = vld [vmem:[%s22809_s18 + $0xc0] sm:$0xff]  ;;  %v11334_v56 = vld [vmem:[%s22809_s18 + $0xc8] sm:$0xff] }
0x1bcf   :  { %v16328_v29 = vpack.c.bf16 %v11190_v51, %v11188_v20  ;;  %v11329_v20 = vld [vmem:[%s22809_s18 + $0xa0] sm:$0xff]  ;;  %v11330_v51 = vld [vmem:[%s22809_s18 + $0xa8] sm:$0xff] }
0x1bd0   :  { %11050 = vmatprep.mubr.f32.mxu0 %v10972_v61  ;;  %v11193_v61 = vld [vmem:[%s22807_s16 + $0x108] sm:$0xff] }
0x1bd1   :  { %11051 = vmatmul.mubr.f32.vlgmr.msra.gmra.mrb[150].mxu0 %v10968_v46  ;;  %v11195_v46 = vld [vmem:[%s22807_s16 + $0x118] sm:$0xff] }
0x1bd2   :  { %v16330_v3 = vpack.c.bf16 %v11195_v46, %v11193_v61  ;;  %v16370_v46 = vpack.c.bf16 %v11330_v51, %v11329_v20 }
0x1ca4   :  { %v11052_v36 = vpop.f32.mrb[150].mxu0 }
0x1ca5   :  { %v11054_v41 = vpop.f32.mrb[151].mxu0  ;;  %v22483_v11 = vadd.f32 %v11052_v36, %v10979_v57  ;;  %v11203_v57 = vld [vmem:[%s22807_s16 + $0x158] sm:$0xff]  ;;  %v11200_v36 = vld [vmem:[%s22807_s16 + $0x140] sm:$0xff] }
0x1ca6   :  { %v11055_v2 = vadd.f32 %v11054_v41, %v10983_v37  ;;  %v11201_v37 = vld [vmem:[%s22807_s16 + $0x148] sm:$0xff]  ;;  %v11207_v41 = vld [vmem:[%s22807_s16 + $0x178] sm:$0xff] }
0x1ca7   :  { %v16338_v53 = vpack.c.bf16 %v11203_v57, %v11201_v37  ;;  %v16378_v57 = vpack.c.bf16 %v11334_v56, %v11333_v49 }
0x1ca8   :  { %11153 = vmatprep.mubr.f32.mxu1 %v11055_v2 }
0x1ca9   :  { %11154 = vmatmul.mubr.f32.vlgmr.msra.gmra.mrb[146].mxu1 %v22483_v11 }
0x1caa   :  { %16301 = vmatpush1.bf16.msra.mxu1 %v16300_v47  ;;  %11300 = vmatprep.mubr.f32.mxu1 %v11055_v2  ;;  %v16340_v2 = vpack.c.bf16 %v11202_v28, %v11200_v36  ;;  %v16342_v47 = vpack.c.bf16 %v11207_v41, %v11205_v5  ;;  %v11335_v36 = vld [vmem:[%s22809_s18 + $0xd0] sm:$0xff]  ;;  %v11336_v28 = vld [vmem:[%s22809_s18 + $0xd8] sm:$0xff] }
0x1cab   :  { %16303 = vmatprep.subr.bf16.mxu1 %v16302_v34  ;;  %v11204_v34 = vld [vmem:[%s22807_s16 + $0x160] sm:$0xff]  ;;  %v16382_v41 = vpack.c.bf16 %v11336_v28, %v11335_v36 }
0x1cac   :  { %v16344_v17 = vpack.c.bf16 %v11206_v50, %v11204_v34  ;;  %v11337_v34 = vld [vmem:[%s22809_s18 + $0xe0] sm:$0xff]  ;;  %v11338_v50 = vld [vmem:[%s22809_s18 + $0xe8] sm:$0xff] }
0x1cae   :  { %16305 = vmatpush1.bf16.msra.mxu1 %v16304_v26  ;;  %v16346_v26 = vpack.c.bf16 %v11211_v0, %v11209_v55  ;;  %v16386_v0 = vpack.c.bf16 %v11338_v50, %v11337_v34 }
0x1caf   :  { %16307 = vmatprep.subr.bf16.mxu1 %v16306_v40  ;;  %v11208_v40 = vld [vmem:[%s22807_s16 + $0x180] sm:$0xff] }
0x1cb0   :  { %v16348_v35 = vpack.c.bf16 %v11210_v16, %v11208_v40  ;;  %v11339_v16 = vld [vmem:[%s22809_s18 + $0xf0] sm:$0xff] }
0x1cb2   :  { %16309 = vmatpush1.bf16.msra.mxu1 %v16308_v32  ;;  %v16350_v32 = vpack.c.bf16 %v11215_v18, %v11213_v48  ;;  %v11340_v48 = vld [vmem:[%s22809_s18 + $0xf8] sm:$0xff] }
0x1cb3   :  { %16311 = vmatprep.subr.bf16.mxu1 %v16310_v23  ;;  %v11212_v23 = vld [vmem:[%s22807_s16 + $0x1a0] sm:$0xff]  ;;  %v16390_v18 = vpack.c.bf16 %v11340_v48, %v11339_v16 }
0x1cb4   :  { %v16352_v39 = vpack.c.bf16 %v11214_v21, %v11212_v23 }
0x1cb6   :  { %16313 = vmatpush1.bf16.msra.mxu1 %v16312_v15  ;;  %v16354_v15 = vpack.c.bf16 %v11219_v38, %v11217_v13 }
0x1cb7   :  { %16315 = vmatprep.subr.bf16.mxu1 %v16314_v6  ;;  %v11216_v6 = vld [vmem:[%s22807_s16 + $0x1c0] sm:$0xff] }
0x1cb8   :  { %v16356_v14 = vpack.c.bf16 %v11218_v63, %v11216_v6 }
0x1cba   :  { %16317 = vmatpush1.bf16.msra.mxu1 %v16316_v9  ;;  %v16358_v9 = vpack.c.bf16 %v11223_v10, %v11221_v25 }
0x1cbb   :  { %16319 = vmatprep.subr.bf16.mxu1 %v16318_v62  ;;  %v11220_v62 = vld [vmem:[%s22807_s16 + $0x1e0] sm:$0xff] }
0x1cbc   :  { %v16360_v52 = vpack.c.bf16 %v11222_v24, %v11220_v62 }
0x1cbe   :  { %16321 = vmatpush1.bf16.msra.mxu1 %v16320_v42  ;;  %v11309_v42 = vld [vmem:[%s22809_s18] sm:$0xff] }
0x1cbf   :  { %16323 = vmatprep.subr.bf16.mxu1 %v16322_v59  ;;  %v16362_v59 = vpack.c.bf16 %v11326_v43, %v11325_v45  ;;  %v16364_v8 = vpack.c.bf16 %v11310_v22, %v11309_v42 }
0x1cc1   :  { %16363 = vmatprep.subr.bf16.mxu0 %v16362_v59 }
0x1cc2   :  { %16325 = vmatpush1.bf16.msra.mxu1 %v16324_v1  ;;  %v11311_v1 = vld [vmem:[%s22809_s18 + $0x10] sm:$0xff]  ;;  %16365 = vmatpush3.bf16.msra.mxu0 %v16364_v8 }
0x1cc3   :  { %16327 = vmatprep.subr.bf16.mxu1 %v16326_v12  ;;  %v11312_v12 = vld [vmem:[%s22809_s18 + $0x18] sm:$0xff] }
0x1cc4   :  { %v16368_v61 = vpack.c.bf16 %v11312_v12, %v11311_v1 }
0x1cc6   :  { %16329 = vmatpush1.bf16.msra.mxu1 %v16328_v29  ;;  %v11313_v29 = vld [vmem:[%s22809_s18 + $0x20] sm:$0xff] }
0x1cc7   :  { %16331 = vmatprep.subr.bf16.mxu1 %v16330_v3  ;;  %v11314_v3 = vld [vmem:[%s22809_s18 + $0x28] sm:$0xff] }
0x1cc8   :  { %v16372_v4 = vpack.c.bf16 %v11314_v3, %v11313_v29 }
0x1cca   :  { %16333 = vmatpush1.bf16.msra.mxu1 %v16332_v19  ;;  %v11315_v19 = vld [vmem:[%s22809_s18 + $0x30] sm:$0xff] }
0x1ccb   :  { %16335 = vmatprep.subr.bf16.mxu1 %v16334_v31  ;;  %v11316_v31 = vld [vmem:[%s22809_s18 + $0x38] sm:$0xff] }
0x1ccc   :  { %v16376_v37 = vpack.c.bf16 %v11316_v31, %v11315_v19 }
0x1cce   :  { %16337 = vmatpush1.bf16.msra.mxu1 %v16336_v54  ;;  %v11317_v54 = vld [vmem:[%s22809_s18 + $0x40] sm:$0xff] }
0x1ccf   :  { %16339 = vmatprep.subr.bf16.mxu1 %v16338_v53  ;;  %v11318_v53 = vld [vmem:[%s22809_s18 + $0x48] sm:$0xff] }
0x1cd0   :  { %v16380_v5 = vpack.c.bf16 %v11318_v53, %v11317_v54 }
0x1cd2   :  { %16341 = vmatpush1.bf16.msra.mxu1 %v16340_v2  ;;  %v11319_v2 = vld [vmem:[%s22809_s18 + $0x50] sm:$0xff] }
0x1cd3   :  { %16343 = vmatprep.subr.bf16.mxu1 %v16342_v47  ;;  %v11320_v47 = vld [vmem:[%s22809_s18 + $0x58] sm:$0xff] }
0x1cd4   :  { %v16384_v55 = vpack.c.bf16 %v11320_v47, %v11319_v2 }
0x1cd6   :  { %16345 = vmatpush1.bf16.msra.mxu1 %v16344_v17  ;;  %v11321_v17 = vld [vmem:[%s22809_s18 + $0x60] sm:$0xff] }
0x1cd7   :  { %16347 = vmatprep.subr.bf16.mxu1 %v16346_v26  ;;  %v11322_v26 = vld [vmem:[%s22809_s18 + $0x68] sm:$0xff] }
0x1cd8   :  { %v16388_v40 = vpack.c.bf16 %v11322_v26, %v11321_v17 }
0x1cda   :  { %16349 = vmatpush1.bf16.msra.mxu1 %v16348_v35  ;;  %v11323_v35 = vld [vmem:[%s22809_s18 + $0x70] sm:$0xff] }
0x1cdb   :  { %16351 = vmatprep.subr.bf16.mxu1 %v16350_v32  ;;  %v11324_v32 = vld [vmem:[%s22809_s18 + $0x78] sm:$0xff] }
0x1cdc   :  { %v16392_v23 = vpack.c.bf16 %v11324_v32, %v11323_v35 }
0x1cde   :  { %16353 = vmatpush1.bf16.msra.mxu1 %v16352_v39  ;;  %v11224_v39 = vld [vmem:[%s22808_s17] sm:$0x3] }
0x1cdf   :  { %16355 = vmatprep.subr.bf16.mxu1 %v16354_v15  ;;  %v11229_v15 = vrot.slane %v11224_v39, %v23002_v7  ;;  %v11233_v6 = vrot.slane %v11224_v39, %v23003_v27 }
0x1ce2   :  { %16357 = vmatpush1.bf16.msra.mxu1 %v16356_v14 }
0x1ce3   :  { %16359 = vmatprep.subr.bf16.mxu1 %v16358_v9 }
0x1ce6   :  { %16361 = vmatpush1.bf16.msra.mxu1 %v16360_v52 }
0x1ce9   :  { %11301 = vmatmul.mubr.f32.vlgmr.msra.gmra.mrb[148].mxu1 %v22483_v11  ;;  %v11327_v11 = vld [vmem:[%s22809_s18 + $0x90] sm:$0xff]  ;;  %s16546_s18 = smov [#allocation2]  }
0x1cea   :  { %v16366_v30 = vpack.c.bf16 %v11328_v33, %v11327_v11  ;;  %s11419_s6 = sshll.u32 %s16546_s18, 4  ;;  %s11420_s6 = int_to_ptr.vmem [resolvable:$true] %s11419_s6 }
0x1ceb   :  { %s16494_s1 = scalar_lea.vmem %s11420_s6, 32  ;;  %p16499_p1 = scmp.lt.s32.totalorder %s11420_s6, %s11420_s6 }
0x1cec   :  { %16367 = vmatprep.subr.bf16.mxu0 %v16366_v30  ;;  %p16495_p0 = scmp.ne.s32.totalorder %s11420_s6, %s16494_s1  ;;  %p16500_p2 = scmp.lt.s32.totalorder %s16494_s1, %s16494_s1 }
0x1ced   :  { %16369 = vmatpush3.bf16.msra.mxu0 %v16368_v61 }
0x1cee   :  { %16371 = vmatprep.subr.bf16.mxu0 %v16370_v46  ;;  %p16501_p3 = por %p16500_p2, %p16499_p1 }
0x1cf0   :  { %p16502_p4 = pnand %p16501_p3, %p16495_p0 }
0x1cf1   :  { %16373 = vmatpush3.bf16.msra.mxu0 %v16372_v4 }
0x1cf2   :  { %16375 = vmatprep.subr.bf16.mxu0 %v16374_v44 }
0x1cf5   :  { %16377 = vmatpush3.bf16.msra.mxu0 %v16376_v37 }
0x1cf6   :  { %16379 = vmatprep.subr.bf16.mxu0 %v16378_v57 }
0x1cf9   :  { %16381 = vmatpush3.bf16.msra.mxu0 %v16380_v5 }
0x1cfa   :  { %16383 = vmatprep.subr.bf16.mxu0 %v16382_v41 }
0x1cfd   :  { %16385 = vmatpush3.bf16.msra.mxu0 %v16384_v55 }
0x1cfe   :  { %16387 = vmatprep.subr.bf16.mxu0 %v16386_v0 }
0x1d01   :  { %16389 = vmatpush3.bf16.msra.mxu0 %v16388_v40 }
0x1d02   :  { %16391 = vmatprep.subr.bf16.mxu0 %v16390_v18 }
0x1d05   :  { %16393 = vmatpush3.bf16.msra.mxu0 %v16392_v23 }
0x1d7c   :  { %v13122_v21 = vpop.f32.mrb[146].mxu1 }
0x1d7d   :  { %v13123_v13 = vpop.f32.mrb[147].mxu1 }
0x1d7e   :  { %v13124_v38 = vadd.f32 %v13123_v13, %v13122_v21 }
0x1d80   :  { %11159 = vst.msk [vmem:[#allocation2 + $0x1] sm:$0x1] %vm10328_vm11, %v13124_v38 }
0x1dbc   :  { %v11302_v63 = vpop.f32.mrb[148].mxu1 }
0x1dbd   :  { %v11303_v25 = vadd.f32 %v11302_v63, %v11229_v15  ;;  %v11304_v10 = vpop.f32.mrb[149].mxu1 }
0x1dbe   :  { %v11305_v14 = vadd.f32 %v11304_v10, %v11233_v6 }
0x1dbf   :  { %v11307_v62 = vmax.f32 %v11303_v25, 0.0 }
0x1dc0   :  { %v11308_v9 = vmax.f32 %v11305_v14, 0.0 }
0x1dc2   :  { %11406 = vmatprep.mubr.f32.mxu0 %v11308_v9 }
0x1dc3   :  { %11407 = vmatmul.mubr.f32.vlgmr.msra.gmra.mrb[152].mxu0 %v11307_v62 }
0x1dc4   :  { %16505 = shalt.err (!%p16502_p4)
}
0x1dc5   :  { %s16506_s12 = scalar_lea.hbm %s22811_s20, 32 }
0x1dc6   :  { %p16507_p5 = scmp.ne.s32.totalorder %s22811_s20, %s16506_s12  ;;  %p16510_p6 = scmp.lt.u32.totalorder %s16506_s12, %s22811_s20 }
0x1dc8   :  { %p16512_p7 = pnand %p16510_p6, %p16507_p5 }
0x1dca   :  { %16515 = shalt.err (!%p16512_p7)
}
0x1dcb   :  { %11422 = dma.vmem_to_hbm [thread:$0]  %s11420_s6, 32, %s22811_s20, [#allocation3]   ;;  %v11341_v27 = vld [vmem:[%s22810_s19] sm:$0x1] }
0x1dcc   :  { %s16547_s28 = smov [#allocation4]  }
0x1dcd   :  { %s11429_s15 = sshll.u32 %s16547_s28, 4  ;;  %s11430_s15 = int_to_ptr.vmem [resolvable:$true] %s11429_s15 }
0x1dce   :  { %s16516_s29 = scalar_lea.vmem %s11430_s15, 32  ;;  %p16521_p9 = scmp.lt.s32.totalorder %s11430_s15, %s11430_s15 }
0x1dcf   :  { %p16517_p8 = scmp.ne.s32.totalorder %s11430_s15, %s16516_s29  ;;  %p16522_p10 = scmp.lt.s32.totalorder %s16516_s29, %s16516_s29 }
0x1dd1   :  { %p16523_p11 = por %p16522_p10, %p16521_p9 }
0x1dd3   :  { %p16524_p12 = pnand %p16523_p11, %p16517_p8 }
0x1e96   :  { %v13157_v7 = vpop.f32.mrb[152].mxu0 }
0x1e97   :  { %v13158_v24 = vpop.f32.mrb[153].mxu0 }
0x1e98   :  { %v13159_v52 = vadd.f32 %v13158_v24, %v13157_v7 }
0x1e9a   :  { %v11409_v45 = vadd.f32 %v13159_v52, %v11341_v27 }
0x1e9c   :  { %11412 = vst.msk [vmem:[#allocation4 + $0x1] sm:$0x1] %vm10582_vm12, %v11409_v45 }
0x1e9d   :  { %16527 = shalt.err (!%p16524_p12)
}
0x1e9e   :  { %s16528_s9 = scalar_lea.hbm %s22812_s21, 32 }
0x1e9f   :  { %p16529_p13 = scmp.ne.s32.totalorder %s22812_s21, %s16528_s9  ;;  %p16532_p0 = scmp.lt.u32.totalorder %s16528_s9, %s22812_s21 }
0x1ea1   :  { %p16534_p1 = pnand %p16532_p0, %p16529_p13 }
0x1ea3   :  { %16537 = shalt.err (!%p16534_p1)
}
0x1ea4   :  { %11432 = dma.vmem_to_hbm [thread:$0]  %s11430_s15, 32, %s22812_s21, [#allocation5]  }
0x1ea5   :  { %16538 = dma.done.wait [#allocation3], 32  }
0x1ea6   :  { %16539 = vsyncadd [#allocation3], 4294967264 }
0x1ea7   :  { %16540 = dma.done.wait [#allocation5], 32  }
0x1ea8   :  { %16541 = vsyncadd [#allocation5], 4294967264 }
0x1ea9   :  { %11439 = vsyncpa [#allocation3], 1 }
0x1eaa   :  { %11440 = vsyncpa [#allocation5], 1 }

</bundles_post_ra>
